<compile_context>
chip_gen: v6e
topology: v6e:2x2x1
jax: 0.10.0
libtpu: 0.0.40
codegen_flags: <defaults>
</compile_context>

<pallas_src>
import jax
import jax.numpy as jnp
from jax import lax
from jax.experimental import pallas as pl
from jax.experimental.pallas import tpu as pltpu


def lstm_fc_kernel(x_ref, wih_ref, whh_ref, b_ref, wfc_ref, bfc_ref, out_ref):
    # x_ref:   (T*B, 1)    time-major flattened input (I == 1); row t*B + b
    # wih_ref: (1, 4*HP)   W_ih^T, gate blocks [i|f|o|g], each padded to HP lanes
    # whh_ref: (HP, 4*HP)  W_hh^T, rows >= H zero-padded, same gate blocks
    # b_ref:   (1, 4*HP)   b_ih + b_hh, same gate blocks (padding zero)
    # wfc_ref: (O, HP)     FC weight rows, cols >= H zero-padded
    # bfc_ref: (1, O)      FC bias
    # out_ref: (B, O)
    TB = x_ref.shape[0]
    HP = whh_ref.shape[0]          # padded hidden width (one vreg = 128 lanes)
    B = out_ref.shape[0]
    T = TB // B

    # Hoisted input projection + bias for all T steps (single VPU broadcast);
    # kept as a traced value (~8 vregs), no VMEM scratch round trip.
    xg = x_ref[...] * wih_ref[...] + b_ref[...]          # (T*B, 4*HP)

    whh = whh_ref[...]                                   # (HP, 4*HP)

    h = jnp.zeros((B, HP), jnp.float32)
    c = jnp.zeros((B, HP), jnp.float32)

    # Fully static unrolled recurrence; every gate slice is vreg-aligned.
    for t in range(T):
        gates = xg[t * B:(t + 1) * B] + jnp.dot(
            h, whh,
            preferred_element_type=jnp.float32,
            precision=lax.Precision.HIGHEST)             # (B, 4*HP)

        # sigmoid(x) == 0.5*tanh(0.5*x) + 0.5  -> single EUP tanh + cheap VPU.
        sig = jnp.tanh(gates[:, :3 * HP] * 0.5) * 0.5 + 0.5
        i_g = sig[:, :HP]
        f_g = sig[:, HP:2 * HP]
        o_g = sig[:, 2 * HP:3 * HP]
        g_g = jnp.tanh(gates[:, 3 * HP:])

        c = f_g * c + i_g * g_g
        h = o_g * jnp.tanh(c)

    O = wfc_ref.shape[0]
    if O == 1:
        # O == 1: VPU multiply + lane reduce (avoids a 1-wide MXU matmul).
        out = jnp.sum(h * wfc_ref[...], axis=-1, keepdims=True)
    else:
        out = lax.dot_general(h, wfc_ref[...],
                              (((1,), (1,)), ((), ())),
                              preferred_element_type=jnp.float32,
                              precision=lax.Precision.HIGHEST)
    out_ref[...] = out + bfc_ref[...]


def lstm_model_forward(x, kernel_params):
    """x: (B, T, 1) float32. Returns (B, output_size) float32."""
    wih_t, whh_t, b, wfc, bfc = kernel_params
    B, T, I = x.shape
    O = wfc.shape[0]
    assert I == 1, "module spec has input_size == 1"

    # Time-major flatten outside the kernel: row t*B + b  <->  x[b, t, 0].
    x_flat = jnp.transpose(x, (1, 0, 2)).reshape(T * B, 1)

    vmem = pl.BlockSpec(memory_space=pltpu.MemorySpace.VMEM)
    return pl.pallas_call(
        lstm_fc_kernel,
        out_shape=jax.ShapeDtypeStruct((B, O), jnp.float32),
        in_specs=[vmem] * 6,
        out_specs=vmem,
    )(x_flat, wih_t, whh_t, b, wfc, bfc)


def init_torch_params(key, input_size=1, hidden_size=64, output_size=1):
    """PyTorch-layout params: W_ih (4H,I), W_hh (4H,H), b_ih, b_hh, W_fc (O,H), b_fc."""
    k = 1.0 / jnp.sqrt(jnp.float32(hidden_size))
    ks = jax.random.split(key, 6)
    w_ih = jax.random.uniform(ks[0], (4 * hidden_size, input_size),
                              jnp.float32, -k, k)
    w_hh = jax.random.uniform(ks[1], (4 * hidden_size, hidden_size),
                              jnp.float32, -k, k)
    b_ih = jax.random.uniform(ks[2], (4 * hidden_size,), jnp.float32, -k, k)
    b_hh = jax.random.uniform(ks[3], (4 * hidden_size,), jnp.float32, -k, k)
    w_fc = jax.random.uniform(ks[4], (output_size, hidden_size),
                              jnp.float32, -k, k)
    b_fc = jax.random.uniform(ks[5], (output_size,), jnp.float32, -k, k)
    return (w_ih, w_hh, b_ih, b_hh, w_fc, b_fc)


def prepare_kernel_params(torch_params, hidden_size):
    """Transpose / combine / gate-reorder ([i,f,g,o] -> [i,f,o,g]) and pad each
    gate (and the hidden dim) to a full 128-lane vreg for the kernel."""
    w_ih, w_hh, b_ih, b_hh, w_fc, b_fc = torch_params
    H = hidden_size
    HP = ((H + 127) // 128) * 128          # per-gate lane width (vreg-aligned)
    order = (0, 1, 3, 2)                   # torch [i, f, g, o] -> kernel [i, f, o, g]

    def pack_cols(w):
        """w: (4H, in_dim) torch layout -> (in_dim, 4*HP), gate blocks [i|f|o|g]."""
        in_dim = w.shape[1]
        out = jnp.zeros((in_dim, 4 * HP), jnp.float32)
        for dst, src in enumerate(order):
            out = out.at[:, dst * HP:dst * HP + H].set(w[src * H:(src + 1) * H].T)
        return out

    wih_t = pack_cols(w_ih)                                      # (I, 4*HP)
    whh_t = jnp.zeros((HP, 4 * HP), jnp.float32).at[:H].set(pack_cols(w_hh))

    b_comb = b_ih + b_hh
    b = jnp.zeros((1, 4 * HP), jnp.float32)
    for dst, src in enumerate(order):
        b = b.at[0, dst * HP:dst * HP + H].set(b_comb[src * H:(src + 1) * H])

    wfc = jnp.zeros((w_fc.shape[0], HP), jnp.float32).at[:, :H].set(w_fc)  # (O, HP)
    bfc = b_fc.reshape(1, -1)                                              # (1, O)
    return (wih_t, whh_t, b, wfc, bfc)


def lstm_model_reference(x, torch_params):
    """Pure-JAX reference with PyTorch gate order [i, f, g, o]."""
    w_ih, w_hh, b_ih, b_hh, w_fc, b_fc = torch_params
    B, T, I = x.shape
    H = w_hh.shape[1]

    def step(carry, x_t):
        h, c = carry
        gates = x_t @ w_ih.T + h @ w_hh.T + b_ih + b_hh
        i_g = jax.nn.sigmoid(gates[:, 0:H])
        f_g = jax.nn.sigmoid(gates[:, H:2 * H])
        g_g = jnp.tanh(gates[:, 2 * H:3 * H])
        o_g = jax.nn.sigmoid(gates[:, 3 * H:4 * H])
        c_new = f_g * c + i_g * g_g
        h_new = o_g * jnp.tanh(c_new)
        return (h_new, c_new), None

    h0 = jnp.zeros((B, H), jnp.float32)
    c0 = jnp.zeros((B, H), jnp.float32)
    (h_last, _), _ = jax.lax.scan(step, (h0, c0), jnp.transpose(x, (1, 0, 2)))
    return h_last @ w_fc.T + b_fc


if __name__ == "__main__":
    batch, seq, input_size, hidden_size, output_size = 2, 8, 1, 64, 1

    key = jax.random.PRNGKey(0)
    kx, kp = jax.random.split(key)
    x = jax.random.normal(kx, (batch, seq, input_size), jnp.float32)

    torch_params = init_torch_params(kp, input_size, hidden_size, output_size)
    kernel_params = prepare_kernel_params(torch_params, hidden_size)

    out = lstm_model_forward(x, kernel_params)
    out = jax.block_until_ready(out)

    ref = lstm_model_reference(x, torch_params)
    assert out.shape == (batch, output_size)
    # Tolerance accounts for the EUP tanh-based sigmoid vs. exp-based reference.
    assert jnp.allclose(out, ref, atol=1e-4, rtol=1e-4), (out, ref)

    print("KERNEL_OK")
</pallas_src>

<mosaic_0001>
module attributes {stable_mosaic.version = 11 : i64} {
  func.func @lstm_fc_kernel(%arg0: memref<16x1xf32, #tpu.memory_space<vmem>>, %arg1: memref<1x512xf32, #tpu.memory_space<vmem>>, %arg2: memref<128x512xf32, #tpu.memory_space<vmem>>, %arg3: memref<1x512xf32, #tpu.memory_space<vmem>>, %arg4: memref<1x128xf32, #tpu.memory_space<vmem>>, %arg5: memref<1x1xf32, #tpu.memory_space<vmem>>, %arg6: memref<2x1xf32, #tpu.memory_space<vmem>>) attributes {dimension_semantics = [], scalar_prefetch = 0 : i64, scratch_operands = 0 : i64, tpu.core_type = #tpu.core_type<tc>} {
    %c0 = arith.constant 0 : index
    %c0_0 = arith.constant 0 : index
    %0 = vector.load %arg0[%c0, %c0_0] : memref<16x1xf32, #tpu.memory_space<vmem>>, vector<16x1xf32>
    %c0_1 = arith.constant 0 : index
    %c0_2 = arith.constant 0 : index
    %1 = vector.load %arg1[%c0_1, %c0_2] : memref<1x512xf32, #tpu.memory_space<vmem>>, vector<1x512xf32>
    %2 = vector.broadcast %0 : vector<16x1xf32> to vector<16x512xf32>
    %3 = vector.broadcast %1 : vector<1x512xf32> to vector<16x512xf32>
    %4 = arith.mulf %2, %3 : vector<16x512xf32>
    %c0_3 = arith.constant 0 : index
    %c0_4 = arith.constant 0 : index
    %5 = vector.load %arg3[%c0_3, %c0_4] : memref<1x512xf32, #tpu.memory_space<vmem>>, vector<1x512xf32>
    %6 = vector.broadcast %5 : vector<1x512xf32> to vector<16x512xf32>
    %7 = arith.addf %4, %6 : vector<16x512xf32>
    %c0_5 = arith.constant 0 : index
    %c0_6 = arith.constant 0 : index
    %8 = vector.load %arg2[%c0_5, %c0_6] : memref<128x512xf32, #tpu.memory_space<vmem>>, vector<128x512xf32>
    %cst = arith.constant 0.000000e+00 : f32
    %9 = vector.broadcast %cst : f32 to vector<2x128xf32>
    %cst_7 = arith.constant 0.000000e+00 : f32
    %10 = vector.broadcast %cst_7 : f32 to vector<2x128xf32>
    %11 = vector.extract_strided_slice %7 {offsets = [0, 0], sizes = [2, 512], strides = [1, 1]} : vector<16x512xf32> to vector<2x512xf32>
    %cst_8 = arith.constant dense<0.000000e+00> : vector<2x512xf32>
    %12 = tpu.matmul %9, %8, %cst_8 {dimension_numbers = #tpu.dot_dimension_numbers<[1], [0], [0], [1], [0, 0, 1, 1], [], []>, precision = #tpu.contract_precision<fp32>} : vector<2x128xf32>, vector<128x512xf32>, vector<2x512xf32> -> vector<2x512xf32>
    %13 = arith.addf %11, %12 : vector<2x512xf32>
    %14 = vector.extract_strided_slice %13 {offsets = [0, 0], sizes = [2, 384], strides = [1, 1]} : vector<2x512xf32> to vector<2x384xf32>
    %cst_9 = arith.constant 5.000000e-01 : f32
    %15 = vector.broadcast %cst_9 : f32 to vector<2x384xf32>
    %16 = arith.mulf %14, %15 : vector<2x384xf32>
    %17 = math.tanh %16 : vector<2x384xf32>
    %cst_10 = arith.constant 5.000000e-01 : f32
    %18 = vector.broadcast %cst_10 : f32 to vector<2x384xf32>
    %19 = arith.mulf %17, %18 : vector<2x384xf32>
    %cst_11 = arith.constant 5.000000e-01 : f32
    %20 = vector.broadcast %cst_11 : f32 to vector<2x384xf32>
    %21 = arith.addf %19, %20 : vector<2x384xf32>
    %22 = vector.extract_strided_slice %21 {offsets = [0, 0], sizes = [2, 128], strides = [1, 1]} : vector<2x384xf32> to vector<2x128xf32>
    %23 = vector.extract_strided_slice %21 {offsets = [0, 128], sizes = [2, 128], strides = [1, 1]} : vector<2x384xf32> to vector<2x128xf32>
    %24 = vector.extract_strided_slice %21 {offsets = [0, 256], sizes = [2, 128], strides = [1, 1]} : vector<2x384xf32> to vector<2x128xf32>
    %25 = vector.extract_strided_slice %13 {offsets = [0, 384], sizes = [2, 128], strides = [1, 1]} : vector<2x512xf32> to vector<2x128xf32>
    %26 = math.tanh %25 : vector<2x128xf32>
    %27 = arith.mulf %23, %10 : vector<2x128xf32>
    %28 = arith.mulf %22, %26 : vector<2x128xf32>
    %29 = arith.addf %27, %28 : vector<2x128xf32>
    %30 = math.tanh %29 : vector<2x128xf32>
    %31 = arith.mulf %24, %30 : vector<2x128xf32>
    %32 = vector.extract_strided_slice %7 {offsets = [2, 0], sizes = [2, 512], strides = [1, 1]} : vector<16x512xf32> to vector<2x512xf32>
    %cst_12 = arith.constant dense<0.000000e+00> : vector<2x512xf32>
    %33 = tpu.matmul %31, %8, %cst_12 {dimension_numbers = #tpu.dot_dimension_numbers<[1], [0], [0], [1], [0, 0, 1, 1], [], []>, precision = #tpu.contract_precision<fp32>} : vector<2x128xf32>, vector<128x512xf32>, vector<2x512xf32> -> vector<2x512xf32>
    %34 = arith.addf %32, %33 : vector<2x512xf32>
    %35 = vector.extract_strided_slice %34 {offsets = [0, 0], sizes = [2, 384], strides = [1, 1]} : vector<2x512xf32> to vector<2x384xf32>
    %cst_13 = arith.constant 5.000000e-01 : f32
    %36 = vector.broadcast %cst_13 : f32 to vector<2x384xf32>
    %37 = arith.mulf %35, %36 : vector<2x384xf32>
    %38 = math.tanh %37 : vector<2x384xf32>
    %cst_14 = arith.constant 5.000000e-01 : f32
    %39 = vector.broadcast %cst_14 : f32 to vector<2x384xf32>
    %40 = arith.mulf %38, %39 : vector<2x384xf32>
    %cst_15 = arith.constant 5.000000e-01 : f32
    %41 = vector.broadcast %cst_15 : f32 to vector<2x384xf32>
    %42 = arith.addf %40, %41 : vector<2x384xf32>
    %43 = vector.extract_strided_slice %42 {offsets = [0, 0], sizes = [2, 128], strides = [1, 1]} : vector<2x384xf32> to vector<2x128xf32>
    %44 = vector.extract_strided_slice %42 {offsets = [0, 128], sizes = [2, 128], strides = [1, 1]} : vector<2x384xf32> to vector<2x128xf32>
    %45 = vector.extract_strided_slice %42 {offsets = [0, 256], sizes = [2, 128], strides = [1, 1]} : vector<2x384xf32> to vector<2x128xf32>
    %46 = vector.extract_strided_slice %34 {offsets = [0, 384], sizes = [2, 128], strides = [1, 1]} : vector<2x512xf32> to vector<2x128xf32>
    %47 = math.tanh %46 : vector<2x128xf32>
    %48 = arith.mulf %44, %29 : vector<2x128xf32>
    %49 = arith.mulf %43, %47 : vector<2x128xf32>
    %50 = arith.addf %48, %49 : vector<2x128xf32>
    %51 = math.tanh %50 : vector<2x128xf32>
    %52 = arith.mulf %45, %51 : vector<2x128xf32>
    %53 = vector.extract_strided_slice %7 {offsets = [4, 0], sizes = [2, 512], strides = [1, 1]} : vector<16x512xf32> to vector<2x512xf32>
    %cst_16 = arith.constant dense<0.000000e+00> : vector<2x512xf32>
    %54 = tpu.matmul %52, %8, %cst_16 {dimension_numbers = #tpu.dot_dimension_numbers<[1], [0], [0], [1], [0, 0, 1, 1], [], []>, precision = #tpu.contract_precision<fp32>} : vector<2x128xf32>, vector<128x512xf32>, vector<2x512xf32> -> vector<2x512xf32>
    %55 = arith.addf %53, %54 : vector<2x512xf32>
    %56 = vector.extract_strided_slice %55 {offsets = [0, 0], sizes = [2, 384], strides = [1, 1]} : vector<2x512xf32> to vector<2x384xf32>
    %cst_17 = arith.constant 5.000000e-01 : f32
    %57 = vector.broadcast %cst_17 : f32 to vector<2x384xf32>
    %58 = arith.mulf %56, %57 : vector<2x384xf32>
    %59 = math.tanh %58 : vector<2x384xf32>
    %cst_18 = arith.constant 5.000000e-01 : f32
    %60 = vector.broadcast %cst_18 : f32 to vector<2x384xf32>
    %61 = arith.mulf %59, %60 : vector<2x384xf32>
    %cst_19 = arith.constant 5.000000e-01 : f32
    %62 = vector.broadcast %cst_19 : f32 to vector<2x384xf32>
    %63 = arith.addf %61, %62 : vector<2x384xf32>
    %64 = vector.extract_strided_slice %63 {offsets = [0, 0], sizes = [2, 128], strides = [1, 1]} : vector<2x384xf32> to vector<2x128xf32>
    %65 = vector.extract_strided_slice %63 {offsets = [0, 128], sizes = [2, 128], strides = [1, 1]} : vector<2x384xf32> to vector<2x128xf32>
    %66 = vector.extract_strided_slice %63 {offsets = [0, 256], sizes = [2, 128], strides = [1, 1]} : vector<2x384xf32> to vector<2x128xf32>
    %67 = vector.extract_strided_slice %55 {offsets = [0, 384], sizes = [2, 128], strides = [1, 1]} : vector<2x512xf32> to vector<2x128xf32>
    %68 = math.tanh %67 : vector<2x128xf32>
    %69 = arith.mulf %65, %50 : vector<2x128xf32>
    %70 = arith.mulf %64, %68 : vector<2x128xf32>
    %71 = arith.addf %69, %70 : vector<2x128xf32>
    %72 = math.tanh %71 : vector<2x128xf32>
    %73 = arith.mulf %66, %72 : vector<2x128xf32>
    %74 = vector.extract_strided_slice %7 {offsets = [6, 0], sizes = [2, 512], strides = [1, 1]} : vector<16x512xf32> to vector<2x512xf32>
    %cst_20 = arith.constant dense<0.000000e+00> : vector<2x512xf32>
    %75 = tpu.matmul %73, %8, %cst_20 {dimension_numbers = #tpu.dot_dimension_numbers<[1], [0], [0], [1], [0, 0, 1, 1], [], []>, precision = #tpu.contract_precision<fp32>} : vector<2x128xf32>, vector<128x512xf32>, vector<2x512xf32> -> vector<2x512xf32>
    %76 = arith.addf %74, %75 : vector<2x512xf32>
    %77 = vector.extract_strided_slice %76 {offsets = [0, 0], sizes = [2, 384], strides = [1, 1]} : vector<2x512xf32> to vector<2x384xf32>
    %cst_21 = arith.constant 5.000000e-01 : f32
    %78 = vector.broadcast %cst_21 : f32 to vector<2x384xf32>
    %79 = arith.mulf %77, %78 : vector<2x384xf32>
    %80 = math.tanh %79 : vector<2x384xf32>
    %cst_22 = arith.constant 5.000000e-01 : f32
    %81 = vector.broadcast %cst_22 : f32 to vector<2x384xf32>
    %82 = arith.mulf %80, %81 : vector<2x384xf32>
    %cst_23 = arith.constant 5.000000e-01 : f32
    %83 = vector.broadcast %cst_23 : f32 to vector<2x384xf32>
    %84 = arith.addf %82, %83 : vector<2x384xf32>
    %85 = vector.extract_strided_slice %84 {offsets = [0, 0], sizes = [2, 128], strides = [1, 1]} : vector<2x384xf32> to vector<2x128xf32>
    %86 = vector.extract_strided_slice %84 {offsets = [0, 128], sizes = [2, 128], strides = [1, 1]} : vector<2x384xf32> to vector<2x128xf32>
    %87 = vector.extract_strided_slice %84 {offsets = [0, 256], sizes = [2, 128], strides = [1, 1]} : vector<2x384xf32> to vector<2x128xf32>
    %88 = vector.extract_strided_slice %76 {offsets = [0, 384], sizes = [2, 128], strides = [1, 1]} : vector<2x512xf32> to vector<2x128xf32>
    %89 = math.tanh %88 : vector<2x128xf32>
    %90 = arith.mulf %86, %71 : vector<2x128xf32>
    %91 = arith.mulf %85, %89 : vector<2x128xf32>
    %92 = arith.addf %90, %91 : vector<2x128xf32>
    %93 = math.tanh %92 : vector<2x128xf32>
    %94 = arith.mulf %87, %93 : vector<2x128xf32>
    %95 = vector.extract_strided_slice %7 {offsets = [8, 0], sizes = [2, 512], strides = [1, 1]} : vector<16x512xf32> to vector<2x512xf32>
    %cst_24 = arith.constant dense<0.000000e+00> : vector<2x512xf32>
    %96 = tpu.matmul %94, %8, %cst_24 {dimension_numbers = #tpu.dot_dimension_numbers<[1], [0], [0], [1], [0, 0, 1, 1], [], []>, precision = #tpu.contract_precision<fp32>} : vector<2x128xf32>, vector<128x512xf32>, vector<2x512xf32> -> vector<2x512xf32>
    %97 = arith.addf %95, %96 : vector<2x512xf32>
    %98 = vector.extract_strided_slice %97 {offsets = [0, 0], sizes = [2, 384], strides = [1, 1]} : vector<2x512xf32> to vector<2x384xf32>
    %cst_25 = arith.constant 5.000000e-01 : f32
    %99 = vector.broadcast %cst_25 : f32 to vector<2x384xf32>
    %100 = arith.mulf %98, %99 : vector<2x384xf32>
    %101 = math.tanh %100 : vector<2x384xf32>
    %cst_26 = arith.constant 5.000000e-01 : f32
    %102 = vector.broadcast %cst_26 : f32 to vector<2x384xf32>
    %103 = arith.mulf %101, %102 : vector<2x384xf32>
    %cst_27 = arith.constant 5.000000e-01 : f32
    %104 = vector.broadcast %cst_27 : f32 to vector<2x384xf32>
    %105 = arith.addf %103, %104 : vector<2x384xf32>
    %106 = vector.extract_strided_slice %105 {offsets = [0, 0], sizes = [2, 128], strides = [1, 1]} : vector<2x384xf32> to vector<2x128xf32>
    %107 = vector.extract_strided_slice %105 {offsets = [0, 128], sizes = [2, 128], strides = [1, 1]} : vector<2x384xf32> to vector<2x128xf32>
    %108 = vector.extract_strided_slice %105 {offsets = [0, 256], sizes = [2, 128], strides = [1, 1]} : vector<2x384xf32> to vector<2x128xf32>
    %109 = vector.extract_strided_slice %97 {offsets = [0, 384], sizes = [2, 128], strides = [1, 1]} : vector<2x512xf32> to vector<2x128xf32>
    %110 = math.tanh %109 : vector<2x128xf32>
    %111 = arith.mulf %107, %92 : vector<2x128xf32>
    %112 = arith.mulf %106, %110 : vector<2x128xf32>
    %113 = arith.addf %111, %112 : vector<2x128xf32>
    %114 = math.tanh %113 : vector<2x128xf32>
    %115 = arith.mulf %108, %114 : vector<2x128xf32>
    %116 = vector.extract_strided_slice %7 {offsets = [10, 0], sizes = [2, 512], strides = [1, 1]} : vector<16x512xf32> to vector<2x512xf32>
    %cst_28 = arith.constant dense<0.000000e+00> : vector<2x512xf32>
    %117 = tpu.matmul %115, %8, %cst_28 {dimension_numbers = #tpu.dot_dimension_numbers<[1], [0], [0], [1], [0, 0, 1, 1], [], []>, precision = #tpu.contract_precision<fp32>} : vector<2x128xf32>, vector<128x512xf32>, vector<2x512xf32> -> vector<2x512xf32>
    %118 = arith.addf %116, %117 : vector<2x512xf32>
    %119 = vector.extract_strided_slice %118 {offsets = [0, 0], sizes = [2, 384], strides = [1, 1]} : vector<2x512xf32> to vector<2x384xf32>
    %cst_29 = arith.constant 5.000000e-01 : f32
    %120 = vector.broadcast %cst_29 : f32 to vector<2x384xf32>
    %121 = arith.mulf %119, %120 : vector<2x384xf32>
    %122 = math.tanh %121 : vector<2x384xf32>
    %cst_30 = arith.constant 5.000000e-01 : f32
    %123 = vector.broadcast %cst_30 : f32 to vector<2x384xf32>
    %124 = arith.mulf %122, %123 : vector<2x384xf32>
    %cst_31 = arith.constant 5.000000e-01 : f32
    %125 = vector.broadcast %cst_31 : f32 to vector<2x384xf32>
    %126 = arith.addf %124, %125 : vector<2x384xf32>
    %127 = vector.extract_strided_slice %126 {offsets = [0, 0], sizes = [2, 128], strides = [1, 1]} : vector<2x384xf32> to vector<2x128xf32>
    %128 = vector.extract_strided_slice %126 {offsets = [0, 128], sizes = [2, 128], strides = [1, 1]} : vector<2x384xf32> to vector<2x128xf32>
    %129 = vector.extract_strided_slice %126 {offsets = [0, 256], sizes = [2, 128], strides = [1, 1]} : vector<2x384xf32> to vector<2x128xf32>
    %130 = vector.extract_strided_slice %118 {offsets = [0, 384], sizes = [2, 128], strides = [1, 1]} : vector<2x512xf32> to vector<2x128xf32>
    %131 = math.tanh %130 : vector<2x128xf32>
    %132 = arith.mulf %128, %113 : vector<2x128xf32>
    %133 = arith.mulf %127, %131 : vector<2x128xf32>
    %134 = arith.addf %132, %133 : vector<2x128xf32>
    %135 = math.tanh %134 : vector<2x128xf32>
    %136 = arith.mulf %129, %135 : vector<2x128xf32>
    %137 = vector.extract_strided_slice %7 {offsets = [12, 0], sizes = [2, 512], strides = [1, 1]} : vector<16x512xf32> to vector<2x512xf32>
    %cst_32 = arith.constant dense<0.000000e+00> : vector<2x512xf32>
    %138 = tpu.matmul %136, %8, %cst_32 {dimension_numbers = #tpu.dot_dimension_numbers<[1], [0], [0], [1], [0, 0, 1, 1], [], []>, precision = #tpu.contract_precision<fp32>} : vector<2x128xf32>, vector<128x512xf32>, vector<2x512xf32> -> vector<2x512xf32>
    %139 = arith.addf %137, %138 : vector<2x512xf32>
    %140 = vector.extract_strided_slice %139 {offsets = [0, 0], sizes = [2, 384], strides = [1, 1]} : vector<2x512xf32> to vector<2x384xf32>
    %cst_33 = arith.constant 5.000000e-01 : f32
    %141 = vector.broadcast %cst_33 : f32 to vector<2x384xf32>
    %142 = arith.mulf %140, %141 : vector<2x384xf32>
    %143 = math.tanh %142 : vector<2x384xf32>
    %cst_34 = arith.constant 5.000000e-01 : f32
    %144 = vector.broadcast %cst_34 : f32 to vector<2x384xf32>
    %145 = arith.mulf %143, %144 : vector<2x384xf32>
    %cst_35 = arith.constant 5.000000e-01 : f32
    %146 = vector.broadcast %cst_35 : f32 to vector<2x384xf32>
    %147 = arith.addf %145, %146 : vector<2x384xf32>
    %148 = vector.extract_strided_slice %147 {offsets = [0, 0], sizes = [2, 128], strides = [1, 1]} : vector<2x384xf32> to vector<2x128xf32>
    %149 = vector.extract_strided_slice %147 {offsets = [0, 128], sizes = [2, 128], strides = [1, 1]} : vector<2x384xf32> to vector<2x128xf32>
    %150 = vector.extract_strided_slice %147 {offsets = [0, 256], sizes = [2, 128], strides = [1, 1]} : vector<2x384xf32> to vector<2x128xf32>
    %151 = vector.extract_strided_slice %139 {offsets = [0, 384], sizes = [2, 128], strides = [1, 1]} : vector<2x512xf32> to vector<2x128xf32>
    %152 = math.tanh %151 : vector<2x128xf32>
    %153 = arith.mulf %149, %134 : vector<2x128xf32>
    %154 = arith.mulf %148, %152 : vector<2x128xf32>
    %155 = arith.addf %153, %154 : vector<2x128xf32>
    %156 = math.tanh %155 : vector<2x128xf32>
    %157 = arith.mulf %150, %156 : vector<2x128xf32>
    %158 = vector.extract_strided_slice %7 {offsets = [14, 0], sizes = [2, 512], strides = [1, 1]} : vector<16x512xf32> to vector<2x512xf32>
    %cst_36 = arith.constant dense<0.000000e+00> : vector<2x512xf32>
    %159 = tpu.matmul %157, %8, %cst_36 {dimension_numbers = #tpu.dot_dimension_numbers<[1], [0], [0], [1], [0, 0, 1, 1], [], []>, precision = #tpu.contract_precision<fp32>} : vector<2x128xf32>, vector<128x512xf32>, vector<2x512xf32> -> vector<2x512xf32>
    %160 = arith.addf %158, %159 : vector<2x512xf32>
    %161 = vector.extract_strided_slice %160 {offsets = [0, 0], sizes = [2, 384], strides = [1, 1]} : vector<2x512xf32> to vector<2x384xf32>
    %cst_37 = arith.constant 5.000000e-01 : f32
    %162 = vector.broadcast %cst_37 : f32 to vector<2x384xf32>
    %163 = arith.mulf %161, %162 : vector<2x384xf32>
    %164 = math.tanh %163 : vector<2x384xf32>
    %cst_38 = arith.constant 5.000000e-01 : f32
    %165 = vector.broadcast %cst_38 : f32 to vector<2x384xf32>
    %166 = arith.mulf %164, %165 : vector<2x384xf32>
    %cst_39 = arith.constant 5.000000e-01 : f32
    %167 = vector.broadcast %cst_39 : f32 to vector<2x384xf32>
    %168 = arith.addf %166, %167 : vector<2x384xf32>
    %169 = vector.extract_strided_slice %168 {offsets = [0, 0], sizes = [2, 128], strides = [1, 1]} : vector<2x384xf32> to vector<2x128xf32>
    %170 = vector.extract_strided_slice %168 {offsets = [0, 128], sizes = [2, 128], strides = [1, 1]} : vector<2x384xf32> to vector<2x128xf32>
    %171 = vector.extract_strided_slice %168 {offsets = [0, 256], sizes = [2, 128], strides = [1, 1]} : vector<2x384xf32> to vector<2x128xf32>
    %172 = vector.extract_strided_slice %160 {offsets = [0, 384], sizes = [2, 128], strides = [1, 1]} : vector<2x512xf32> to vector<2x128xf32>
    %173 = math.tanh %172 : vector<2x128xf32>
    %174 = arith.mulf %170, %155 : vector<2x128xf32>
    %175 = arith.mulf %169, %173 : vector<2x128xf32>
    %176 = arith.addf %174, %175 : vector<2x128xf32>
    %177 = math.tanh %176 : vector<2x128xf32>
    %178 = arith.mulf %171, %177 : vector<2x128xf32>
    %c0_40 = arith.constant 0 : index
    %c0_41 = arith.constant 0 : index
    %179 = vector.load %arg4[%c0_40, %c0_41] : memref<1x128xf32, #tpu.memory_space<vmem>>, vector<1x128xf32>
    %180 = vector.broadcast %179 : vector<1x128xf32> to vector<2x128xf32>
    %181 = arith.mulf %178, %180 : vector<2x128xf32>
    %cst_42 = arith.constant dense<0.000000e+00> : vector<2xf32>
    %182 = vector.multi_reduction <add>, %181, %cst_42 [1] : vector<2x128xf32> to vector<2xf32>
    %183 = vector.shape_cast %182 : vector<2xf32> to vector<2x1xf32>
    %c0_43 = arith.constant 0 : index
    %c0_44 = arith.constant 0 : index
    %184 = vector.load %arg5[%c0_43, %c0_44] : memref<1x1xf32, #tpu.memory_space<vmem>>, vector<1x1xf32>
    %185 = vector.broadcast %184 : vector<1x1xf32> to vector<2x1xf32>
    %186 = arith.addf %183, %185 : vector<2x1xf32>
    %c0_45 = arith.constant 0 : index
    %c0_46 = arith.constant 0 : index
    %187 = vector.load %arg6[%c0_45, %c0_46] : memref<2x1xf32, #tpu.memory_space<vmem>>, vector<2x1xf32>
    tpu.vector_store %arg6[%c0_45, %c0_46], %186 {strides = array<i32>} : memref<2x1xf32, #tpu.memory_space<vmem>>, vector<2x1xf32>,
    return
  }
}

</mosaic_0001>

<bundles_post_ra>
// kernel: tpu_custom_call.1
= control target key start
LH: loop header
LB: loop body
LE: loop exit
PB: predicated region body
PF: predicated region fallthrough
CT: control target
= control target key end

     0   :  { %s18616_s0 = inlined_call_operand.vmem [shape: f32[16,1], index: 0, kind: input, shape index: {}]   ;;  %s18617_s1 = inlined_call_operand.vmem [shape: f32[1,512], index: 1, kind: input, shape index: {}]   ;;  %s18618_s2 = inlined_call_operand.hbm [shape: f32[128,512], index: 2, kind: input, shape index: {}]   ;;  %s18619_s3 = inlined_call_operand.vmem [shape: f32[1,512], index: 3, kind: input, shape index: {}]   ;;  %s18620_s4 = inlined_call_operand.vmem [shape: f32[1,128], index: 4, kind: input, shape index: {}]   ;;  %s18621_s5 = inlined_call_operand.<no memory space> [shape: f32[1,1], index: 5, kind: input, shape index: {}]   ;;  %s18622_s6 = inlined_call_operand.vmem [shape: f32[2,1], index: 6, kind: output, shape index: {}]  }
   0x1   :  { %v11_v0 = vstv %s18621_s5 }
   0x2   :  { %12 = vst [vmem:[#allocation2] sm:$0x1] %v11_v0 }
   0x3   :  { %13 = vsyncpa [#allocation4], 0  ;;  %s14250_s23 = smov [#allocation3]  }
   0x4   :  { %s23_s24 = sshll.u32 %s14250_s23, 4  ;;  %s24_s24 = int_to_ptr.vmem [resolvable:$true] %s23_s24 }
   0x5   :  { %s14236_s25 = scalar_lea.vmem %s24_s24, 8192  ;;  %p14241_p1 = scmp.lt.s32.totalorder %s24_s24, %s24_s24 }
   0x6   :  { %p14237_p0 = scmp.ne.s32.totalorder %s24_s24, %s14236_s25  ;;  %p14242_p2 = scmp.lt.s32.totalorder %s14236_s25, %s14236_s25 }
   0x8   :  { %p14243_p3 = por %p14242_p2, %p14241_p1 }
   0xa   :  { %p14244_p4 = pnand %p14243_p3, %p14237_p0 }
   0xc   :  { %14247 = shalt.err (!%p14244_p4)
}
   0xd   :  { %s14251_s26 = smov 512   ;;  %s14252_s27 = smov 32  }
   0xe   :  { %29 = dma.hbm_to_vmem [thread:$0]  %s18618_s2, 8192, %s24_s24, [#allocation4], %s14251_s26, %s14251_s26, %s14252_s27  }
   0xf   :  { %14248 = dma.done.wait [#allocation4], 8192  }
  0x10   :  { %14249 = vsyncadd [#allocation4], 4294959104  ;;  %v18623_v1 = vmov 0.0   ;;  %v172_v2 = vld [vmem:[#allocation3 + $0x1e8] sm:$0xff]  ;;  %v171_v3 = vld [vmem:[#allocation3 + $0x1e0] sm:$0xff]  ;;  %vm14121_vm0 = vcmask 1047558  }
  0x11   :  { %271 = vmatprep.mubr.f32.mxu0 %v18623_v1  ;;  %502 = vmatprep.mubr.f32.mxu1 %v18623_v1  ;;  %v168_v4 = vld [vmem:[#allocation3 + $0x1c8] sm:$0xff]  ;;  %v14298_v5 = vand.u32 4294901760, %v172_v2  ;;  %v14300_v6 = vand.u32 4294901760, %v171_v3  ;;  %v167_v8 = vld [vmem:[#allocation3 + $0x1c0] sm:$0xff]  ;;  %vm14133_vm1 = vcmask 7174  }
  0x12   :  { %v14302_v7 = vand.u32 4294901760, %v168_v4  ;;  %v164_v9 = vld [vmem:[#allocation3 + $0x1a8] sm:$0xff]  ;;  %v163_v10 = vld [vmem:[#allocation3 + $0x1a0] sm:$0xff]  ;;  %v14304_v11 = vand.u32 4294901760, %v167_v8 }
  0x13   :  { %19413 = vst [vmem:[#allocation6_spill] sm:$0xff] %v14298_v5  ;;  %19414 = vst [vmem:[#allocation7_spill] sm:$0xff] %v14300_v6  ;;  %v14306_v12 = vand.u32 4294901760, %v164_v9  ;;  %v14308_v13 = vand.u32 4294901760, %v163_v10  ;;  %v160_v14 = vld [vmem:[#allocation3 + $0x188] sm:$0xff]  ;;  %v159_v15 = vld [vmem:[#allocation3 + $0x180] sm:$0xff]  ;;  %176 = vmatprep.subr.mxu0 %v14298_v5  ;;  %v14318_v20 = vsub.f32 %v172_v2, %v14298_v5  ;;  %v14331_v25 = vsub.f32 %v171_v3, %v14300_v6 }
  0x14   :  { %19415 = vst [vmem:[#allocation8_spill] sm:$0xff] %v14302_v7  ;;  %19416 = vst [vmem:[#allocation9_spill] sm:$0xff] %v14304_v11  ;;  %v156_v16 = vld [vmem:[#allocation3 + $0x168] sm:$0xff]  ;;  %v14311_v17 = vand.u32 4294901760, %v160_v14  ;;  %v14313_v18 = vand.u32 4294901760, %v159_v15  ;;  %v14320_v21 = vld [vmem:[#allocation3 + $0x160] sm:$0xff]  ;;  %178 = vmatpush1.msra.mxu0 %v14300_v6  ;;  %v14337_v27 = vsub.f32 %v168_v4, %v14302_v7  ;;  %v14353_v33 = vsub.f32 %v167_v8, %v14304_v11 }
  0x15   :  { %19417 = vst [vmem:[#allocation10_spill] sm:$0xff] %v14306_v12  ;;  %19418 = vst [vmem:[#allocation11_spill] sm:$0xff] %v14308_v13  ;;  %v14315_v19 = vand.u32 4294901760, %v156_v16  ;;  %v14322_v22 = vld [vmem:[#allocation3 + $0x148] sm:$0xff]  ;;  %v14324_v23 = vld [vmem:[#allocation3 + $0x140] sm:$0xff]  ;;  %v14328_v24 = vand.u32 4294901760, %v14320_v21  ;;  %180 = vmatprep.subr.mxu0 %v14302_v7  ;;  %v14366_v37 = vsub.f32 %v164_v9, %v14306_v12  ;;  %v14380_v42 = vsub.f32 %v163_v10, %v14308_v13 }
  0x16   :  { %19419 = vst [vmem:[#allocation12_spill] sm:$0xff] %v14311_v17  ;;  %19420 = vst [vmem:[#allocation13_spill] sm:$0xff] %v14313_v18  ;;  %v14334_v26 = vand.u32 4294901760, %v14322_v22  ;;  %v14339_v28 = vld [vmem:[#allocation3 + $0x128] sm:$0xff]  ;;  %v14341_v29 = vld [vmem:[#allocation3 + $0x120] sm:$0xff]  ;;  %v14347_v31 = vand.u32 4294901760, %v14318_v20  ;;  %182 = vmatpush1.msra.mxu0 %v14304_v11  ;;  %v14394_v47 = vsub.f32 %v160_v14, %v14311_v17  ;;  %v14430_v61 = vsub.f32 %v159_v15, %v14313_v18 }
  0x17   :  { %19421 = vst [vmem:[#allocation14_spill] sm:$0xff] %v14315_v19  ;;  %19422 = vst [vmem:[#allocation15_spill] sm:$0xff] %v14318_v20  ;;  %v14343_v30 = vld [vmem:[#allocation3 + $0x108] sm:$0xff]  ;;  %v14350_v32 = vand.u32 4294901760, %v14324_v23  ;;  %v14356_v34 = vand.u32 4294901760, %v14339_v28  ;;  %v14360_v35 = vand.u32 4294901760, %v14331_v25  ;;  %184 = vmatprep.subr.mxu0 %v14306_v12  ;;  %v14444_v3 = vsub.f32 %v156_v16, %v14315_v19 }
  0x18   :  { %19423 = vst [vmem:[#allocation16_spill] sm:$0xff] %v14328_v24  ;;  %19424 = vst [vmem:[#allocation17_spill] sm:$0xff] %v14331_v25  ;;  %v14363_v36 = vand.u32 4294901760, %v14337_v27  ;;  %v14369_v38 = vand.u32 4294901760, %v14341_v29  ;;  %v14371_v39 = vld [vmem:[#allocation3 + $0x100] sm:$0xff]  ;;  %v281_v40 = vsub.f32 %v14318_v20, %v14347_v31  ;;  %v14377_v41 = vand.u32 4294901760, %v14353_v33  ;;  %186 = vmatpush1.msra.mxu0 %v14308_v13 }
  0x19   :  { %19425 = vst [vmem:[#allocation18_spill] sm:$0xff] %v14334_v26  ;;  %19426 = vst [vmem:[#allocation19_spill] sm:$0xff] %v14337_v27  ;;  %v14383_v43 = vand.u32 4294901760, %v14343_v30  ;;  %v287_v44 = vsub.f32 %v14331_v25, %v14360_v35  ;;  %v14391_v46 = vand.u32 4294901760, %v14366_v37  ;;  %v14396_v48 = vld [vmem:[#allocation3 + $0xe8] sm:$0xff]  ;;  %188 = vmatprep.subr.mxu0 %v14311_v17  ;;  %v14404_v51 = vand.u32 4294901760, %v14380_v42 }
  0x1a   :  { %19427 = vst [vmem:[#allocation20_spill] sm:$0xff] %v14347_v31  ;;  %19428 = vst [vmem:[#allocation21_spill] sm:$0xff] %v14350_v32  ;;  %v293_v45 = vsub.f32 %v14337_v27, %v14363_v36  ;;  %v14399_v49 = vand.u32 4294901760, %v281_v40  ;;  %v299_v50 = vsub.f32 %v14353_v33, %v14377_v41  ;;  %v14407_v52 = vand.u32 4294901760, %v14371_v39  ;;  %v14409_v53 = vld [vmem:[#allocation3 + $0xe0] sm:$0xff]  ;;  %190 = vmatpush1.msra.mxu0 %v14313_v18  ;;  %v14421_v58 = vld [vmem:[#allocation3 + $0xc8] sm:$0xff] }
  0x1b   :  { %19429 = vst [vmem:[#allocation22_spill] sm:$0xff] %v14353_v33  ;;  %19430 = vst [vmem:[#allocation23_spill] sm:$0xff] %v14356_v34  ;;  %v14412_v54 = vand.u32 4294901760, %v287_v44  ;;  %v305_v56 = vsub.f32 %v14366_v37, %v14391_v46  ;;  %v14419_v57 = vand.u32 4294901760, %v14394_v47  ;;  %192 = vmatprep.subr.mxu0 %v14315_v19  ;;  %v311_v60 = vsub.f32 %v14380_v42, %v14404_v51  ;;  %v14435_v63 = vld [vmem:[#allocation3 + $0xc0] sm:$0xff]  ;;  %v14449_v8 = vld [vmem:[#allocation3 + $0xa8] sm:$0xff] }
  0x1c   :  { %19431 = vst [vmem:[#allocation24_spill] sm:$0xff] %v14360_v35  ;;  %19432 = vst [vmem:[#allocation25_spill] sm:$0xff] %v14363_v36  ;;  %v14414_v55 = vand.u32 4294901760, %v293_v45  ;;  %283 = vmatprep.subr.mxu1 %v14399_v49  ;;  %v14425_v59 = vand.u32 4294901760, %v299_v50  ;;  %v14433_v62 = vand.u32 4294901760, %v14396_v48  ;;  %194 = vmatpush1.msra.mxu0 %v14328_v24  ;;  %v14447_v4 = vand.u32 4294901760, %v14409_v53 }
  0x1d   :  { %19433 = vst [vmem:[#allocation26_spill] sm:$0xff] %v14366_v37  ;;  %19434 = vst [vmem:[#allocation27_spill] sm:$0xff] %v14369_v38  ;;  %289 = vmatpush1.msra.mxu1 %v14412_v54  ;;  %v14439_v0 = vand.u32 4294901760, %v305_v56  ;;  %v317_v2 = vsub.f32 %v14394_v47, %v14419_v57  ;;  %196 = vmatprep.subr.mxu0 %v14334_v26  ;;  %v14453_v9 = vand.u32 4294901760, %v311_v60  ;;  %v14456_v10 = vand.u32 4294901760, %v14430_v61  ;;  %v14465_v16 = vld [vmem:[#allocation3 + $0xa0] sm:$0xff] }
  0x1e   :  { %19435 = vst [vmem:[#allocation28_spill] sm:$0xff] %v14377_v41  ;;  %19436 = vst [vmem:[#allocation29_spill] sm:$0xff] %v14380_v42  ;;  %295 = vmatprep.subr.mxu1 %v14414_v55  ;;  %v14460_v14 = vsub.f32 %v14320_v21, %v14328_v24  ;;  %v14463_v15 = vand.u32 4294901760, %v14421_v58  ;;  %198 = vmatpush1.msra.mxu0 %v14350_v32  ;;  %v14472_v44 = vand.u32 4294901760, %v14444_v3  ;;  %v14479_v21 = vand.u32 4294901760, %v14435_v63  ;;  %v14581_v36 = vld [vmem:[#allocation3 + $0x40] sm:$0xff] }
  0x1f   :  { %19437 = vst [vmem:[#allocation30_spill] sm:$0xff] %v14383_v43  ;;  %19438 = vst [vmem:[#allocation31_spill] sm:$0xff] %v14391_v46  ;;  %301 = vmatpush1.msra.mxu1 %v14425_v59  ;;  %v14469_v40 = vand.u32 4294901760, %v317_v2  ;;  %v14476_v45 = vsub.f32 %v14322_v22, %v14334_v26  ;;  %200 = vmatprep.subr.mxu0 %v14356_v34  ;;  %v323_v50 = vsub.f32 %v14430_v61, %v14456_v10  ;;  %v14495_v2 = vld [vmem:[#allocation3 + $0x88] sm:$0xff] }
  0x20   :  { %19439 = vst [vmem:[#allocation32_spill] sm:$0xff] %v14394_v47  ;;  %19440 = vst [vmem:[#allocation33_spill] sm:$0xff] %v14399_v49  ;;  %307 = vmatprep.subr.mxu1 %v14439_v0  ;;  %v14486_v56 = vand.u32 4294901760, %v14460_v14  ;;  %v14490_v60 = vsub.f32 %v14324_v23, %v14350_v32  ;;  %v14493_v22 = vand.u32 4294901760, %v14449_v8  ;;  %202 = vmatpush1.msra.mxu0 %v14369_v38  ;;  %v14509_v23 = vand.u32 4294901760, %v14465_v16  ;;  %v14597_v35 = vld [vmem:[#allocation3 + $0x28] sm:$0xff] }
  0x21   :  { %19441 = vst [vmem:[#allocation34_spill] sm:$0xff] %v14404_v51  ;;  %19442 = vst [vmem:[#allocation35_spill] sm:$0xff] %v14407_v52  ;;  %313 = vmatpush1.msra.mxu1 %v14453_v9  ;;  %v329_v1 = vsub.f32 %v14444_v3, %v14472_v44  ;;  %204 = vmatprep.subr.mxu0 %v14383_v43  ;;  %v14522_v49 = vsub.f32 %v14341_v29, %v14369_v38  ;;  %v14552_v51 = vld [vmem:[#allocation3 + $0x60] sm:$0xff] }
  0x22   :  { %19443 = vst [vmem:[#allocation36_spill] sm:$0xff] %v14412_v54  ;;  %19444 = vst [vmem:[#allocation37_spill] sm:$0xff] %v14414_v55  ;;  %319 = vmatprep.subr.mxu1 %v14469_v40  ;;  %v14513_v55 = vand.u32 4294901760, %v323_v50  ;;  %v14518_v54 = vand.u32 4294901760, %v14490_v60  ;;  %206 = vmatpush1.msra.mxu0 %v14407_v52  ;;  %v14565_v46 = vsub.f32 %v14371_v39, %v14407_v52  ;;  %v14670_v38 = vld [vmem:[#allocation3] sm:$0xff] }
  0x23   :  { %19445 = vst [vmem:[#allocation38_spill] sm:$0xff] %v14419_v57  ;;  %19446 = vst [vmem:[#allocation39_spill] sm:$0xff] %v14425_v59  ;;  %v14506_v59 = vsub.f32 %v14339_v28, %v14356_v34  ;;  %v14524_v28 = vld [vmem:[#allocation3 + $0x80] sm:$0xff]  ;;  %208 = vmatprep.subr.mxu0 %v14433_v62  ;;  %v14546_v57 = vand.u32 4294901760, %v14522_v49  ;;  %v14607_v31 = vsub.f32 %v14409_v53, %v14447_v4  ;;  %v14624_v53 = vand.u32 4294901760, %v14581_v36 }
  0x24   :  { %19447 = vst [vmem:[#allocation40_spill] sm:$0xff] %v14430_v61  ;;  %19448 = vst [vmem:[#allocation41_spill] sm:$0xff] %v14433_v62  ;;  %325 = vmatpush1.msra.mxu1 %v14513_v55  ;;  %210 = vmatpush1.msra.mxu0 %v14447_v4 }
  0x25   :  { %19449 = vst [vmem:[#allocation42_spill] sm:$0xff] %v14439_v0  ;;  %19450 = vst [vmem:[#allocation43_spill] sm:$0xff] %v14444_v3  ;;  %v14502_v0 = vand.u32 4294901760, %v14476_v45  ;;  %212 = vmatprep.subr.mxu0 %v14463_v15 }
  0x26   :  { %19451 = vst [vmem:[#allocation44_spill] sm:$0xff] %v14447_v4  ;;  %19452 = vst [vmem:[#allocation45_spill] sm:$0xff] %v14453_v9  ;;  %v335_v9 = vsub.f32 %v14460_v14, %v14486_v56  ;;  %214 = vmatpush1.msra.mxu0 %v14479_v21  ;;  %v14626_v4 = vld [vmem:[#allocation3 + $0x20] sm:$0xff] }
  0x27   :  { %19453 = vst [vmem:[#allocation46_spill] sm:$0xff] %v14456_v10  ;;  %19454 = vst [vmem:[#allocation47_spill] sm:$0xff] %v14460_v14  ;;  %v341_v50 = vsub.f32 %v14476_v45, %v14502_v0  ;;  %v14537_v10 = vld [vmem:[#allocation3 + $0x68] sm:$0xff]  ;;  %216 = vmatprep.subr.mxu0 %v14493_v22 }
  0x28   :  { %19455 = vst [vmem:[#allocation48_spill] sm:$0xff] %v14463_v15  ;;  %19456 = vst [vmem:[#allocation49_spill] sm:$0xff] %v14469_v40  ;;  %v14532_v40 = vand.u32 4294901760, %v14506_v59  ;;  %v14541_v29 = vand.u32 4294901760, %v335_v9  ;;  %v14579_v41 = vand.u32 4294901760, %v14537_v10  ;;  %218 = vmatpush1.msra.mxu0 %v14509_v23 }
  0x29   :  { %19457 = vst [vmem:[#allocation50_spill] sm:$0xff] %v14472_v44  ;;  %19458 = vst [vmem:[#allocation51_spill] sm:$0xff] %v14476_v45  ;;  %v14527_v44 = vand.u32 4294901760, %v329_v1  ;;  %v347_v1 = vsub.f32 %v14490_v60, %v14518_v54 }
  0x2a   :  { %19459 = vst [vmem:[#allocation52_spill] sm:$0xff] %v14479_v21  ;;  %19460 = vst [vmem:[#allocation53_spill] sm:$0xff] %v14486_v56  ;;  %v14535_v56 = vand.u32 4294901760, %v14495_v2  ;;  %v353_v9 = vsub.f32 %v14506_v59, %v14532_v40 }
  0x2b   :  { %19461 = vst [vmem:[#allocation54_spill] sm:$0xff] %v14490_v60  ;;  %19462 = vst [vmem:[#allocation55_spill] sm:$0xff] %v14493_v22  ;;  %331 = vmatprep.subr.mxu1 %v14527_v44 }
  0x2c   :  { %19463 = vst [vmem:[#allocation56_spill] sm:$0xff] %v14502_v0  ;;  %19464 = vst [vmem:[#allocation57_spill] sm:$0xff] %v14506_v59  ;;  %v14550_v0 = vsub.f32 %v14343_v30, %v14383_v43  ;;  %v14567_v30 = vld [vmem:[#allocation3 + $0x48] sm:$0xff]  ;;  %337 = vmatpush1.msra.mxu1 %v14541_v29  ;;  %v14585_v39 = vand.u32 4294901760, %v353_v9  ;;  %220 = vmatprep.subr.mxu0 %v14535_v56  ;;  %v14654_v43 = vsub.f32 %v14449_v8, %v14493_v22 }
  0x2d   :  { %19465 = vst [vmem:[#allocation58_spill] sm:$0xff] %v14509_v23  ;;  %19466 = vst [vmem:[#allocation59_spill] sm:$0xff] %v14513_v55  ;;  %v14556_v55 = vand.u32 4294901760, %v341_v50  ;;  %v359_v50 = vsub.f32 %v14522_v49, %v14546_v57 }
  0x2e   :  { %19467 = vst [vmem:[#allocation60_spill] sm:$0xff] %v14518_v54  ;;  %19468 = vst [vmem:[#allocation61_spill] sm:$0xff] %v14522_v49  ;;  %v14561_v54 = vand.u32 4294901760, %v14524_v28 }
  0x2f   :  { %19469 = vst [vmem:[#allocation62_spill] sm:$0xff] %v14527_v44  ;;  %19470 = vst [vmem:[#allocation63_spill] sm:$0xff] %v14532_v40  ;;  %v14571_v44 = vand.u32 4294901760, %v347_v1  ;;  %v14576_v40 = vand.u32 4294901760, %v14550_v0  ;;  %343 = vmatprep.subr.mxu1 %v14556_v55  ;;  %v14588_v1 = vand.u32 4294901760, %v14565_v46 }
  0x30   :  { %19471 = vst [vmem:[#allocation64_spill] sm:$0xff] %v14535_v56  ;;  %19472 = vst [vmem:[#allocation65_spill] sm:$0xff] %v14541_v29  ;;  %v14592_v29 = vsub.f32 %v14396_v48, %v14433_v62  ;;  %v14610_v48 = vand.u32 4294901760, %v14567_v30  ;;  %v14637_v62 = vsub.f32 %v14435_v63, %v14479_v21  ;;  %222 = vmatpush1.msra.mxu0 %v14561_v54  ;;  %v14664_v21 = vand.u32 4294901760, %v14626_v4 }
  0x31   :  { %19473 = vst [vmem:[#allocation66_spill] sm:$0xff] %v14546_v57  ;;  %19474 = vst [vmem:[#allocation67_spill] sm:$0xff] %v14550_v0  ;;  %v14595_v57 = vand.u32 4294901760, %v14552_v51  ;;  %349 = vmatpush1.msra.mxu1 %v14571_v44  ;;  %v365_v9 = vsub.f32 %v14550_v0, %v14576_v40  ;;  %224 = vmatprep.subr.mxu0 %v14579_v41 }
  0x32   :  { %19475 = vst [vmem:[#allocation68_spill] sm:$0xff] %v14556_v55  ;;  %19476 = vst [vmem:[#allocation69_spill] sm:$0xff] %v14561_v54  ;;  %v14601_v55 = vand.u32 4294901760, %v359_v50  ;;  %355 = vmatprep.subr.mxu1 %v14585_v39  ;;  %v14617_v50 = vand.u32 4294901760, %v14592_v29 }
  0x33   :  { %19477 = vst [vmem:[#allocation70_spill] sm:$0xff] %v14565_v46  ;;  %19478 = vst [vmem:[#allocation71_spill] sm:$0xff] %v14571_v44  ;;  %v371_v44 = vsub.f32 %v14565_v46, %v14588_v1  ;;  %226 = vmatpush1.msra.mxu0 %v14595_v57 }
  0x34   :  { %19479 = vst [vmem:[#allocation72_spill] sm:$0xff] %v14576_v40  ;;  %19480 = vst [vmem:[#allocation73_spill] sm:$0xff] %v14579_v41  ;;  %v14621_v40 = vsub.f32 %v14421_v58, %v14463_v15  ;;  %361 = vmatpush1.msra.mxu1 %v14601_v55  ;;  %v14640_v58 = vand.u32 4294901760, %v14597_v35  ;;  %v14642_v15 = vld [vmem:[#allocation3 + $0x8] sm:$0xff]  ;;  %228 = vmatprep.subr.mxu0 %v14610_v48 }
  0x35   :  { %19481 = vst [vmem:[#allocation74_spill] sm:$0xff] %v14585_v39  ;;  %19482 = vst [vmem:[#allocation75_spill] sm:$0xff] %v14588_v1  ;;  %v14630_v39 = vand.u32 4294901760, %v365_v9  ;;  %v14633_v1 = vand.u32 4294901760, %v14607_v31  ;;  %v14645_v52 = vand.u32 4294901760, %v371_v44  ;;  %v377_v9 = vsub.f32 %v14592_v29, %v14617_v50  ;;  %230 = vmatpush1.msra.mxu0 %v14624_v53 }
  0x36   :  { %19483 = vst [vmem:[#allocation76_spill] sm:$0xff] %v14592_v29  ;;  %19484 = vst [vmem:[#allocation77_spill] sm:$0xff] %v14595_v57  ;;  %v14661_v44 = vand.u32 4294901760, %v14637_v62  ;;  %v14682_v22 = vand.u32 4294901760, %v14642_v15  ;;  %232 = vmatprep.subr.mxu0 %v14640_v58 }
  0x37   :  { %19485 = vst [vmem:[#allocation78_spill] sm:$0xff] %v14601_v55  ;;  %19486 = vst [vmem:[#allocation79_spill] sm:$0xff] %v14607_v31  ;;  %v14650_v55 = vand.u32 4294901760, %v14621_v40  ;;  %367 = vmatprep.subr.mxu1 %v14630_v39  ;;  %v383_v63 = vsub.f32 %v14607_v31, %v14633_v1  ;;  %v14673_v8 = vand.u32 4294901760, %v377_v9  ;;  %234 = vmatpush1.msra.mxu0 %v14664_v21 }
  0x38   :  { %19487 = vst [vmem:[#allocation80_spill] sm:$0xff] %v14610_v48  ;;  %19488 = vst [vmem:[#allocation81_spill] sm:$0xff] %v14617_v50  ;;  %v14668_v50 = vsub.f32 %v14465_v16, %v14509_v23  ;;  %373 = vmatpush1.msra.mxu1 %v14645_v52  ;;  %v395_v16 = vsub.f32 %v14637_v62, %v14661_v44  ;;  %v14703_v23 = vand.u32 4294901760, %v14670_v38  ;;  %236 = vmatprep.subr.mxu0 %v14682_v22 }
  0x39   :  { %19489 = vst [vmem:[#allocation82_spill] sm:$0xff] %v14621_v40  ;;  %19490 = vst [vmem:[#allocation83_spill] sm:$0xff] %v14624_v53  ;;  %v14684_v34 = vand.u32 4294901760, %v383_v63  ;;  %379 = vmatprep.subr.mxu1 %v14673_v8 }
  0x3a   :  { %19491 = vst [vmem:[#allocation84_spill] sm:$0xff] %v14630_v39  ;;  %19492 = vst [vmem:[#allocation85_spill] sm:$0xff] %v14633_v1  ;;  %v389_v39 = vsub.f32 %v14621_v40, %v14650_v55  ;;  %v14679_v1 = vand.u32 4294901760, %v14654_v43  ;;  %v14690_v9 = vand.u32 4294901760, %v14668_v50  ;;  %238 = vmatpush1.msra.mxu0 %v14703_v23 }
  0x3b   :  { %19493 = vst [vmem:[#allocation86_spill] sm:$0xff] %v14637_v62  ;;  %19494 = vst [vmem:[#allocation87_spill] sm:$0xff] %v14640_v58  ;;  %385 = vmatpush1.msra.mxu1 %v14684_v34  ;;  %511 = vmatprep.subr.mxu0 %v14318_v20 }
  0x3c   :  { %19495 = vst [vmem:[#allocation88_spill] sm:$0xff] %v14645_v52  ;;  %19496 = vst [vmem:[#allocation89_spill] sm:$0xff] %v14650_v55  ;;  %v14694_v52 = vsub.f32 %v14495_v2, %v14535_v56  ;;  %v14697_v55 = vand.u32 4294901760, %v389_v39  ;;  %v401_v63 = vsub.f32 %v14654_v43, %v14679_v1  ;;  %v14710_v2 = vand.u32 4294901760, %v395_v16 }
  0x3d   :  { %19497 = vst [vmem:[#allocation90_spill] sm:$0xff] %v14654_v43  ;;  %19498 = vst [vmem:[#allocation91_spill] sm:$0xff] %v14661_v44  ;;  %v14707_v44 = vsub.f32 %v14524_v28, %v14561_v54  ;;  %v407_v39 = vsub.f32 %v14668_v50, %v14690_v9 }
  0x3e   :  { %19499 = vst [vmem:[#allocation92_spill] sm:$0xff] %v14664_v21  ;;  %19500 = vst [vmem:[#allocation93_spill] sm:$0xff] %v14668_v50  ;;  %391 = vmatprep.subr.mxu1 %v14697_v55  ;;  %v14723_v28 = vand.u32 4294901760, %v401_v63 }
  0x3f   :  { %19501 = vst [vmem:[#allocation94_spill] sm:$0xff] %v14673_v8  ;;  %19502 = vst [vmem:[#allocation95_spill] sm:$0xff] %v14679_v1  ;;  %v14716_v8 = vand.u32 4294901760, %v14694_v52  ;;  %v14720_v1 = vsub.f32 %v14537_v10, %v14579_v41  ;;  %v14727_v16 = vand.u32 4294901760, %v14707_v44  ;;  %397 = vmatpush1.msra.mxu1 %v14710_v2  ;;  %v14738_v10 = vand.u32 4294901760, %v407_v39 }
  0x40   :  { %19503 = vst [vmem:[#allocation96_spill] sm:$0xff] %v14682_v22  ;;  %19504 = vst [vmem:[#allocation97_spill] sm:$0xff] %v14684_v34  ;;  %v14731_v34 = vsub.f32 %v14552_v51, %v14595_v57  ;;  %v14748_v51 = vsub.f32 %v14581_v36, %v14624_v53  ;;  %403 = vmatprep.subr.mxu1 %v14723_v28  ;;  %v14775_v53 = vsub.f32 %v14626_v4, %v14664_v21 }
  0x41   :  { %19505 = vst [vmem:[#allocation98_spill] sm:$0xff] %v14690_v9  ;;  %19506 = vst [vmem:[#allocation99_spill] sm:$0xff] %v14694_v52  ;;  %v14735_v9 = vsub.f32 %v14567_v30, %v14610_v48  ;;  %v413_v63 = vsub.f32 %v14694_v52, %v14716_v8  ;;  %v419_v30 = vsub.f32 %v14707_v44, %v14727_v16  ;;  %409 = vmatpush1.msra.mxu1 %v14738_v10 }
  0x42   :  { %19507 = vst [vmem:[#allocation100_spill] sm:$0xff] %v14697_v55  ;;  %19508 = vst [vmem:[#allocation101_spill] sm:$0xff] %v14703_v23  ;;  %v14744_v55 = vand.u32 4294901760, %v14720_v1  ;;  %v14755_v39 = vand.u32 4294901760, %v14731_v34 }
  0x43   :  { %19509 = vst [vmem:[#allocation102_spill] sm:$0xff] %v14707_v44  ;;  %19510 = vst [vmem:[#allocation103_spill] sm:$0xff] %v14710_v2  ;;  %v14758_v2 = vand.u32 4294901760, %v14735_v9  ;;  %v14765_v36 = vand.u32 4294901760, %v413_v63  ;;  %v14777_v48 = vand.u32 4294901760, %v419_v30  ;;  %v14794_v30 = vand.u32 4294901760, %v14775_v53 }
  0x44   :  { %19511 = vst [vmem:[#allocation104_spill] sm:$0xff] %v14716_v8  ;;  %19512 = vst [vmem:[#allocation105_spill] sm:$0xff] %v14720_v1  ;;  %v14762_v8 = vsub.f32 %v14597_v35, %v14640_v58  ;;  %v19527_v35 = vmov 0.0   ;;  %v431_v63 = vsub.f32 %v14731_v34, %v14755_v39 }
  0x45   :  { %19513 = vst [vmem:[#allocation106_spill] sm:$0xff] %v14723_v28  ;;  %19514 = vst [vmem:[#allocation107_spill] sm:$0xff] %v14727_v16  ;;  %v425_v28 = vsub.f32 %v14720_v1, %v14744_v55  ;;  %v14771_v16 = vand.u32 4294901760, %v14748_v51  ;;  %272 = vmatmul.mubr.f32.vlgmr.msra.gmra.mxu0 %v19527_v35  ;;  %415 = vmatprep.subr.mxu1 %v14765_v36 }
  0x46   :  { %19515 = vst [vmem:[#allocation108_spill] sm:$0xff] %v14731_v34  ;;  %19516 = vst [vmem:[#allocation109_spill] sm:$0xff] %v14735_v9  ;;  %514 = vmatpush1.msra.mxu0 %v14331_v25  ;;  %421 = vmatpush1.msra.mxu1 %v14777_v48  ;;  %v14810_v25 = vsub.f32 %v14670_v38, %v14703_v23 }
  0x47   :  { %19517 = vst [vmem:[#allocation110_spill] sm:$0xff] %v14738_v10  ;;  %19518 = vst [vmem:[#allocation111_spill] sm:$0xff] %v14744_v55  ;;  %v437_v10 = vsub.f32 %v14735_v9, %v14758_v2  ;;  %v14785_v55 = vand.u32 4294901760, %v14762_v8  ;;  %v14788_v20 = vand.u32 4294901760, %v425_v28  ;;  %v443_v4 = vsub.f32 %v14748_v51, %v14771_v16  ;;  %517 = vmatprep.subr.mxu0 %v14337_v27 }
  0x48   :  { %19519 = vst [vmem:[#allocation112_spill] sm:$0xff] %v14748_v51  ;;  %19520 = vst [vmem:[#allocation113_spill] sm:$0xff] %v14755_v39  ;;  %v14798_v39 = vsub.f32 %v14642_v15, %v14682_v22  ;;  %520 = vmatpush1.msra.mxu0 %v14353_v33  ;;  %v455_v15 = vsub.f32 %v14775_v53, %v14794_v30  ;;  %v14826_v38 = vand.u32 4294901760, %v14810_v25  ;;  %637 = vmatprep.mubr.f32.mxu0 %v19527_v35 }
  0x49   :  { %19521 = vst [vmem:[#allocation114_spill] sm:$0xff] %v14758_v2  ;;  %19522 = vst [vmem:[#allocation115_spill] sm:$0xff] %v14762_v8  ;;  %v14801_v2 = vand.u32 4294901760, %v431_v63  ;;  %v14803_v21 = vand.u32 4294901760, %v437_v10  ;;  %v449_v28 = vsub.f32 %v14762_v8, %v14785_v55  ;;  %427 = vmatprep.subr.mxu1 %v14788_v20  ;;  %523 = vmatprep.subr.mxu0 %v14366_v37 }
  0x4a   :  { %19523 = vst [vmem:[#allocation116_spill] sm:$0xff] %v14765_v36  ;;  %19524 = vst [vmem:[#allocation117_spill] sm:$0xff] %v14771_v16  ;;  %v14813_v36 = vand.u32 4294901760, %v443_v4  ;;  %v14819_v10 = vand.u32 4294901760, %v14798_v39  ;;  %v14829_v4 = vand.u32 4294901760, %v455_v15  ;;  %526 = vmatpush1.msra.mxu0 %v14380_v42 }
  0x4b   :  { %19525 = vst [vmem:[#allocation118_spill] sm:$0xff] %v14775_v53  ;;  %19526 = vst [vmem:[#allocation119_spill] sm:$0xff] %v14777_v48  ;;  %433 = vmatpush1.msra.mxu1 %v14801_v2  ;;  %v14822_v63 = vand.u32 4294901760, %v449_v28  ;;  %529 = vmatprep.subr.mxu0 %v14394_v47  ;;  %v467_v28 = vsub.f32 %v14810_v25, %v14826_v38  ;;  %v19582_v47 = vld [vmem:[#allocation104_spill] sm:$0xff] }
  0x4c   :  { %19528 = vst [vmem:[#allocation120_spill] sm:$0xff] %v14785_v55  ;;  %19529 = vst [vmem:[#allocation121_spill] sm:$0xff] %v14788_v20  ;;  %439 = vmatprep.subr.mxu1 %v14803_v21  ;;  %v461_v33 = vsub.f32 %v14798_v39, %v14819_v10  ;;  %532 = vmatpush1.msra.mxu0 %v14430_v61  ;;  %v150_v20 = vld [vmem:[#allocation3 + $0x138] sm:$0xff] }
  0x4d   :  { %19530 = vst [vmem:[#allocation122_spill] sm:$0xff] %v14794_v30  ;;  %19531 = vst [vmem:[#allocation123_spill] sm:$0xff] %v14798_v39  ;;  %445 = vmatpush1.msra.mxu1 %v14813_v36  ;;  %v14843_v15 = vand.u32 4294901760, %v467_v28  ;;  %535 = vmatprep.subr.mxu0 %v14444_v3  ;;  %v19543_v28 = vld [vmem:[#allocation27_spill] sm:$0xff]  ;;  %v19580_v3 = vld [vmem:[#allocation98_spill] sm:$0xff] }
  0x4e   :  { %19532 = vst [vmem:[#allocation124_spill] sm:$0xff] %v14801_v2  ;;  %19533 = vst [vmem:[#allocation125_spill] sm:$0xff] %v14803_v21  ;;  %451 = vmatprep.subr.mxu1 %v14822_v63  ;;  %v14839_v37 = vand.u32 4294901760, %v461_v33  ;;  %538 = vmatpush1.msra.mxu0 %v14460_v14  ;;  %v19542_v33 = vld [vmem:[#allocation23_spill] sm:$0xff]  ;;  %v154_v2 = vld [vmem:[#allocation3 + $0x158] sm:$0xff] }
  0x4f   :  { %19534 = vst [vmem:[#allocation126_spill] sm:$0xff] %v14810_v25  ;;  %19535 = vst [vmem:[#allocation127_spill] sm:$0xff] %v14813_v36  ;;  %457 = vmatpush1.msra.mxu1 %v14829_v4  ;;  %541 = vmatprep.subr.mxu0 %v14476_v45  ;;  %v19578_v14 = vld [vmem:[#allocation95_spill] sm:$0xff]  ;;  %v157_v36 = vld [vmem:[#allocation3 + $0x170] sm:$0xff] }
  0x50   :  { %19536 = vst [vmem:[#allocation128_spill] sm:$0xff] %v14819_v10  ;;  %19537 = vst [vmem:[#allocation129_spill] sm:$0xff] %v14822_v63  ;;  %463 = vmatprep.subr.mxu1 %v14839_v37  ;;  %544 = vmatpush1.msra.mxu0 %v14490_v60  ;;  %v19575_v60 = vld [vmem:[#allocation91_spill] sm:$0xff]  ;;  %v19591_v63 = vld [vmem:[#allocation113_spill] sm:$0xff] }
  0x51   :  { %19538 = vst [vmem:[#allocation130_spill] sm:$0xff] %v14826_v38  ;;  %19539 = vst [vmem:[#allocation131_spill] sm:$0xff] %v14829_v4  ;;  %469 = vmatpush1.msra.mxu1 %v14843_v15  ;;  %547 = vmatprep.subr.mxu0 %v14506_v59  ;;  %v19573_v59 = vld [vmem:[#allocation89_spill] sm:$0xff]  ;;  %v19588_v4 = vld [vmem:[#allocation111_spill] sm:$0xff] }
  0x52   :  { %19540 = vst [vmem:[#allocation132_spill] sm:$0xff] %v14839_v37  ;;  %19541 = vst [vmem:[#allocation133_spill] sm:$0xff] %v14843_v15  ;;  %503 = vmatmul.mubr.f32.vlgmr.msra.gmra.mxu1 %v19527_v35  ;;  %645 = vmatprep.subr.mxu1 %v14298_v5  ;;  %v161_v15 = vld [vmem:[#allocation3 + $0x190] sm:$0xff] }
  0x53   :  { %647 = vmatpush1.msra.mxu1 %v14300_v6  ;;  %550 = vmatpush1.msra.mxu0 %v14522_v49  ;;  %v19572_v49 = vld [vmem:[#allocation85_spill] sm:$0xff] }
  0x54   :  { %649 = vmatprep.subr.mxu1 %v14302_v7  ;;  %553 = vmatprep.subr.mxu0 %v14550_v0  ;;  %v170_v0 = vld [vmem:[#allocation3 + $0x1d8] sm:$0xff] }
  0x55   :  { %651 = vmatpush1.msra.mxu1 %v14304_v11  ;;  %556 = vmatpush1.msra.mxu0 %v14565_v46  ;;  %v19560_v46 = vld [vmem:[#allocation34_spill] sm:$0xff]  ;;  %v14944_v45 = vand.u32 4294901760, %v170_v0 }
  0x56   :  { %653 = vmatprep.subr.mxu1 %v14306_v12  ;;  %559 = vmatprep.subr.mxu0 %v14592_v29  ;;  %v19559_v29 = vld [vmem:[#allocation92_spill] sm:$0xff] }
  0x57   :  { %655 = vmatpush1.msra.mxu1 %v14308_v13  ;;  %562 = vmatpush1.msra.mxu0 %v14607_v31  ;;  %v19558_v31 = vld [vmem:[#allocation31_spill] sm:$0xff]  ;;  %19577 = vst [vmem:[#allocation136_spill] sm:$0xff] %v14944_v45  ;;  %v14967_v37 = vsub.f32 %v170_v0, %v14944_v45  ;;  %v19593_v0 = vld [vmem:[#allocation114_spill] sm:$0xff] }
  0x58   :  { %657 = vmatprep.subr.mxu1 %v14311_v17  ;;  %565 = vmatprep.subr.mxu0 %v14621_v40  ;;  %v19544_v40 = vld [vmem:[#allocation30_spill] sm:$0xff] }
  0x59   :  { %659 = vmatpush1.msra.mxu1 %v14313_v18  ;;  %568 = vmatpush1.msra.mxu0 %v14637_v62  ;;  %v19545_v62 = vld [vmem:[#allocation35_spill] sm:$0xff]  ;;  %19587 = vst [vmem:[#allocation142_spill] sm:$0xff] %v14967_v37 }
  0x5a   :  { %661 = vmatprep.subr.mxu1 %v14315_v19  ;;  %571 = vmatprep.subr.mxu0 %v14654_v43  ;;  %v19546_v43 = vld [vmem:[#allocation41_spill] sm:$0xff] }
  0x5b   :  { %663 = vmatpush1.msra.mxu1 %v14328_v24  ;;  %574 = vmatpush1.msra.mxu0 %v14668_v50  ;;  %v19547_v50 = vld [vmem:[#allocation44_spill] sm:$0xff] }
  0x5c   :  { %665 = vmatprep.subr.mxu1 %v14334_v26  ;;  %577 = vmatprep.subr.mxu0 %v14694_v52  ;;  %v19548_v52 = vld [vmem:[#allocation48_spill] sm:$0xff] }
  0x5d   :  { %667 = vmatpush1.msra.mxu1 %v14350_v32  ;;  %580 = vmatpush1.msra.mxu0 %v14707_v44  ;;  %v19549_v44 = vld [vmem:[#allocation52_spill] sm:$0xff] }
  0x5e   :  { %669 = vmatprep.subr.mxu1 %v19542_v33  ;;  %583 = vmatprep.subr.mxu0 %v14720_v1  ;;  %v19550_v1 = vld [vmem:[#allocation55_spill] sm:$0xff] }
  0x5f   :  { %671 = vmatpush1.msra.mxu1 %v19543_v28  ;;  %586 = vmatpush1.msra.mxu0 %v14731_v34  ;;  %v19551_v34 = vld [vmem:[#allocation58_spill] sm:$0xff] }
  0x60   :  { %673 = vmatprep.subr.mxu1 %v19544_v40  ;;  %589 = vmatprep.subr.mxu0 %v14735_v9  ;;  %v19557_v9 = vld [vmem:[#allocation28_spill] sm:$0xff] }
  0x61   :  { %675 = vmatpush1.msra.mxu1 %v19545_v62  ;;  %592 = vmatpush1.msra.mxu0 %v14748_v51  ;;  %v19555_v51 = vld [vmem:[#allocation25_spill] sm:$0xff] }
  0x62   :  { %677 = vmatprep.subr.mxu1 %v19546_v43  ;;  %595 = vmatprep.subr.mxu0 %v14762_v8  ;;  %v19552_v8 = vld [vmem:[#allocation20_spill] sm:$0xff] }
  0x63   :  { %679 = vmatpush1.msra.mxu1 %v19547_v50  ;;  %598 = vmatpush1.msra.mxu0 %v14775_v53  ;;  %v19553_v53 = vld [vmem:[#allocation24_spill] sm:$0xff] }
  0x64   :  { %681 = vmatprep.subr.mxu1 %v19548_v52  ;;  %601 = vmatprep.subr.mxu0 %v14798_v39  ;;  %v19554_v39 = vld [vmem:[#allocation80_spill] sm:$0xff] }
  0x65   :  { %683 = vmatpush1.msra.mxu1 %v19549_v44  ;;  %604 = vmatpush1.msra.mxu0 %v14810_v25  ;;  %v19556_v25 = vld [vmem:[#allocation83_spill] sm:$0xff] }
  0x66   :  { %685 = vmatprep.subr.mxu1 %v19550_v1  ;;  %638 = vmatmul.mubr.f32.vlgmr.msra.gmra.mxu0 %v19527_v35 }
  0x67   :  { %687 = vmatpush1.msra.mxu1 %v19551_v34  ;;  %750 = vmatprep.subr.mxu0 %v19552_v8  ;;  %v19561_v8 = vld [vmem:[#allocation38_spill] sm:$0xff] }
  0x68   :  { %689 = vmatprep.subr.mxu1 %v14535_v56  ;;  %754 = vmatpush1.msra.mxu0 %v19553_v53  ;;  %v19567_v53 = vld [vmem:[#allocation63_spill] sm:$0xff] }
  0x69   :  { %691 = vmatpush1.msra.mxu1 %v14561_v54  ;;  %758 = vmatprep.subr.mxu0 %v19555_v51  ;;  %v19562_v51 = vld [vmem:[#allocation46_spill] sm:$0xff] }
  0x6a   :  { %693 = vmatprep.subr.mxu1 %v14579_v41  ;;  %762 = vmatpush1.msra.mxu0 %v19557_v9  ;;  %v19563_v9 = vld [vmem:[#allocation50_spill] sm:$0xff] }
  0x6b   :  { %695 = vmatpush1.msra.mxu1 %v14595_v57  ;;  %766 = vmatprep.subr.mxu0 %v19558_v31  ;;  %v19564_v31 = vld [vmem:[#allocation53_spill] sm:$0xff] }
  0x6c   :  { %697 = vmatprep.subr.mxu1 %v19554_v39  ;;  %770 = vmatpush1.msra.mxu0 %v19560_v46  ;;  %v19565_v46 = vld [vmem:[#allocation56_spill] sm:$0xff] }
  0x6d   :  { %699 = vmatpush1.msra.mxu1 %v19556_v25  ;;  %774 = vmatprep.subr.mxu0 %v19561_v8  ;;  %v19566_v8 = vld [vmem:[#allocation60_spill] sm:$0xff] }
  0x6e   :  { %701 = vmatprep.subr.mxu1 %v14640_v58  ;;  %740 = vmatprep.mubr.f32.mxu1 %v19527_v35 }
  0x6f   :  { %703 = vmatpush1.msra.mxu1 %v19559_v29  ;;  %778 = vmatpush1.msra.mxu0 %v19562_v51  ;;  %v19568_v51 = vld [vmem:[#allocation66_spill] sm:$0xff] }
  0x70   :  { %705 = vmatprep.subr.mxu1 %v14682_v22  ;;  %782 = vmatprep.subr.mxu0 %v19563_v9  ;;  %v19569_v9 = vld [vmem:[#allocation72_spill] sm:$0xff] }
  0x71   :  { %707 = vmatpush1.msra.mxu1 %v14703_v23  ;;  %786 = vmatpush1.msra.mxu0 %v19564_v31  ;;  %v19570_v31 = vld [vmem:[#allocation75_spill] sm:$0xff] }
  0x72   :  { %741 = vmatmul.mubr.f32.vlgmr.msra.gmra.mxu1 %v19527_v35  ;;  %915 = vmatprep.subr.mxu1 %v14298_v5  ;;  %v137_v5 = vld [vmem:[#allocation3 + $0xd0] sm:$0xff] }
  0x73   :  { %917 = vmatpush1.msra.mxu1 %v14300_v6  ;;  %790 = vmatprep.subr.mxu0 %v19565_v46  ;;  %v174_v46 = vld [vmem:[#allocation3 + $0x1f8] sm:$0xff] }
  0x74   :  { %919 = vmatprep.subr.mxu1 %v14302_v7  ;;  %794 = vmatpush1.msra.mxu0 %v19566_v8  ;;  %v19571_v8 = vld [vmem:[#allocation81_spill] sm:$0xff] }
  0x75   :  { %921 = vmatpush1.msra.mxu1 %v14304_v11  ;;  %798 = vmatprep.subr.mxu0 %v19567_v53  ;;  %v173_v53 = vld [vmem:[#allocation3 + $0x1f0] sm:$0xff] }
  0x76   :  { %923 = vmatprep.subr.mxu1 %v14306_v12  ;;  %802 = vmatpush1.msra.mxu0 %v19568_v51  ;;  %v169_v51 = vld [vmem:[#allocation3 + $0x1d0] sm:$0xff] }
  0x77   :  { %925 = vmatpush1.msra.mxu1 %v14308_v13  ;;  %806 = vmatprep.subr.mxu0 %v19569_v9  ;;  %v14938_v9 = vand.u32 4294901760, %v174_v46  ;;  %v141_v13 = vld [vmem:[#allocation3 + $0xf0] sm:$0xff] }
  0x78   :  { %927 = vmatprep.subr.mxu1 %v14311_v17  ;;  %810 = vmatpush1.msra.mxu0 %v19570_v31  ;;  %v166_v31 = vld [vmem:[#allocation3 + $0x1b8] sm:$0xff] }
  0x79   :  { %929 = vmatpush1.msra.mxu1 %v14313_v18  ;;  %814 = vmatprep.subr.mxu0 %v19571_v8  ;;  %19574 = vst [vmem:[#allocation134_spill] sm:$0xff] %v14938_v9  ;;  %v14942_v8 = vand.u32 4294901760, %v173_v53  ;;  %v14952_v61 = vand.u32 4294901760, %v166_v31  ;;  %v14957_v42 = vsub.f32 %v174_v46, %v14938_v9  ;;  %v158_v46 = vld [vmem:[#allocation3 + $0x178] sm:$0xff] }
  0x7a   :  { %931 = vmatprep.subr.mxu1 %v14315_v19  ;;  %818 = vmatpush1.msra.mxu0 %v19572_v49  ;;  %v14948_v49 = vand.u32 4294901760, %v169_v51 }
  0x7b   :  { %933 = vmatpush1.msra.mxu1 %v14328_v24  ;;  %822 = vmatprep.subr.mxu0 %v19573_v59  ;;  %19576 = vst [vmem:[#allocation135_spill] sm:$0xff] %v14942_v8  ;;  %v165_v59 = vld [vmem:[#allocation3 + $0x1b0] sm:$0xff]  ;;  %19581 = vst [vmem:[#allocation138_spill] sm:$0xff] %v14952_v61  ;;  %v14986_v21 = vand.u32 4294901760, %v14957_v42 }
  0x7c   :  { %935 = vmatprep.subr.mxu1 %v14334_v26  ;;  %826 = vmatpush1.msra.mxu0 %v19575_v60  ;;  %19579 = vst [vmem:[#allocation137_spill] sm:$0xff] %v14948_v49  ;;  %v162_v60 = vld [vmem:[#allocation3 + $0x198] sm:$0xff]  ;;  %19583 = vst [vmem:[#allocation139_spill] sm:$0xff] %v14957_v42  ;;  %v14961_v27 = vand.u32 4294901760, %v165_v59 }
  0x7d   :  { %937 = vmatpush1.msra.mxu1 %v14350_v32  ;;  %830 = vmatprep.subr.mxu0 %v19578_v14  ;;  %v19584_v14 = vld [vmem:[#allocation107_spill] sm:$0xff]  ;;  %19595 = vst [vmem:[#allocation147_spill] sm:$0xff] %v14986_v21  ;;  %v142_v26 = vld [vmem:[#allocation3 + $0xf8] sm:$0xff] }
  0x7e   :  { %939 = vmatprep.subr.mxu1 %v19542_v33  ;;  %834 = vmatpush1.msra.mxu0 %v19580_v3  ;;  %19585 = vst [vmem:[#allocation140_spill] sm:$0xff] %v14961_v27  ;;  %v14964_v3 = vsub.f32 %v173_v53, %v14942_v8  ;;  %v14979_v53 = vsub.f32 %v166_v31, %v14952_v61 }
  0x7f   :  { %941 = vmatpush1.msra.mxu1 %v19543_v28  ;;  %838 = vmatprep.subr.mxu0 %v19582_v47  ;;  %v14971_v47 = vand.u32 4294901760, %v162_v60  ;;  %v14999_v48 = vsub.f32 %v165_v59, %v14961_v27 }
  0x80   :  { %943 = vmatprep.subr.mxu1 %v19544_v40  ;;  %842 = vmatpush1.msra.mxu0 %v19584_v14  ;;  %19586 = vst [vmem:[#allocation141_spill] sm:$0xff] %v14964_v3  ;;  %v14974_v14 = vsub.f32 %v169_v51, %v14948_v49  ;;  %19592 = vst [vmem:[#allocation145_spill] sm:$0xff] %v14979_v53  ;;  %v153_v51 = vld [vmem:[#allocation3 + $0x150] sm:$0xff]  ;;  %v14993_v31 = vand.u32 4294901760, %v14964_v3 }
  0x81   :  { %945 = vmatpush1.msra.mxu1 %v19545_v62  ;;  %846 = vmatprep.subr.mxu0 %v19588_v4  ;;  %19589 = vst [vmem:[#allocation143_spill] sm:$0xff] %v14971_v47  ;;  %v14983_v4 = vand.u32 4294901760, %v161_v15  ;;  %19599 = vst [vmem:[#allocation151_spill] sm:$0xff] %v14999_v48  ;;  %v15015_v59 = vand.u32 4294901760, %v153_v51  ;;  %v145_v40 = vld [vmem:[#allocation3 + $0x110] sm:$0xff] }
  0x82   :  { %947 = vmatprep.subr.mxu1 %v19546_v43  ;;  %19590 = vst [vmem:[#allocation144_spill] sm:$0xff] %v14974_v14  ;;  %850 = vmatpush1.msra.mxu0 %v19591_v63  ;;  %v14990_v63 = vand.u32 4294901760, %v158_v46  ;;  %19597 = vst [vmem:[#allocation149_spill] sm:$0xff] %v14993_v31  ;;  %v15024_v43 = vand.u32 4294901760, %v150_v20  ;;  %v1129_v62 = vsub.f32 %v14964_v3, %v14993_v31 }
  0x83   :  { %949 = vmatpush1.msra.mxu1 %v19547_v50  ;;  %854 = vmatprep.subr.mxu0 %v19593_v0  ;;  %19594 = vst [vmem:[#allocation146_spill] sm:$0xff] %v14983_v4  ;;  %v14996_v0 = vand.u32 4294901760, %v14967_v37  ;;  %v15013_v50 = vand.u32 4294901760, %v154_v2  ;;  %19604 = vst [vmem:[#allocation156_spill] sm:$0xff] %v15015_v59  ;;  %v15063_v19 = vsub.f32 %v153_v51, %v15015_v59 }
  0x84   :  { %951 = vmatprep.subr.mxu1 %v19548_v52  ;;  %858 = vmatpush1.msra.mxu0 %v14771_v16  ;;  %19596 = vst [vmem:[#allocation148_spill] sm:$0xff] %v14990_v63  ;;  %v15003_v52 = vand.u32 4294901760, %v157_v36  ;;  %v15006_v16 = vand.u32 4294901760, %v14974_v14  ;;  %19606 = vst [vmem:[#allocation158_spill] sm:$0xff] %v15024_v43  ;;  %v15039_v28 = vsub.f32 %v158_v46, %v14990_v63 }
  0x85   :  { %953 = vmatpush1.msra.mxu1 %v19549_v44  ;;  %19598 = vst [vmem:[#allocation150_spill] sm:$0xff] %v14996_v0  ;;  %862 = vmatprep.subr.mxu0 %v14785_v55  ;;  %v15009_v44 = vsub.f32 %v162_v60, %v14971_v47  ;;  %19603 = vst [vmem:[#allocation155_spill] sm:$0xff] %v15013_v50  ;;  %v15018_v55 = vand.u32 4294901760, %v14979_v53  ;;  %v1123_v60 = vsub.f32 %v14957_v42, %v14986_v21 }
  0x86   :  { %955 = vmatprep.subr.mxu1 %v19550_v1  ;;  %19600 = vst [vmem:[#allocation152_spill] sm:$0xff] %v15003_v52  ;;  %19601 = vst [vmem:[#allocation153_spill] sm:$0xff] %v15006_v16  ;;  %866 = vmatpush1.msra.mxu0 %v14794_v30  ;;  %v149_v1 = vld [vmem:[#allocation3 + $0x130] sm:$0xff]  ;;  %v146_v30 = vld [vmem:[#allocation3 + $0x118] sm:$0xff]  ;;  %v15051_v32 = vsub.f32 %v157_v36, %v15003_v52  ;;  %v15060_v24 = vsub.f32 %v154_v2, %v15013_v50  ;;  %v15079_v2 = vand.u32 4294901760, %v1129_v62 }
  0x87   :  { %19602 = vst [vmem:[#allocation154_spill] sm:$0xff] %v15009_v44  ;;  %957 = vmatpush1.msra.mxu1 %v19551_v34  ;;  %19605 = vst [vmem:[#allocation157_spill] sm:$0xff] %v15018_v55  ;;  %870 = vmatprep.subr.mxu0 %v14819_v10  ;;  %v15027_v34 = vsub.f32 %v161_v15, %v14983_v4  ;;  %v1135_v10 = vsub.f32 %v14967_v37, %v14996_v0  ;;  %v15048_v33 = vand.u32 4294901760, %v15009_v44  ;;  %v130_v0 = vld [vmem:[#allocation3 + $0x98] sm:$0xff] }
  0x88   :  { %959 = vmatprep.subr.mxu1 %v14535_v56  ;;  %874 = vmatpush1.msra.mxu0 %v14826_v38  ;;  %v15036_v56 = vand.u32 4294901760, %v14999_v48  ;;  %19609 = vst [vmem:[#allocation161_spill] sm:$0xff] %v15039_v28  ;;  %v1141_v15 = vsub.f32 %v14974_v14, %v15006_v16  ;;  %v15045_v38 = vand.u32 4294901760, %v149_v1  ;;  %19612 = vst [vmem:[#allocation164_spill] sm:$0xff] %v15051_v32  ;;  %v15067_v36 = vand.u32 4294901760, %v1123_v60 }
  0x89   :  { %19607 = vst [vmem:[#allocation159_spill] sm:$0xff] %v15027_v34  ;;  %907 = vmatprep.mubr.f32.mxu0 %v19527_v35  ;;  %961 = vmatpush1.msra.mxu1 %v14561_v54  ;;  %19611 = vst [vmem:[#allocation163_spill] sm:$0xff] %v15048_v33  ;;  %v1147_v46 = vsub.f32 %v14979_v53, %v15018_v55  ;;  %v15057_v54 = vand.u32 4294901760, %v146_v30  ;;  %v15072_v18 = vand.u32 4294901760, %v15027_v34  ;;  %v15081_v51 = vand.u32 4294901760, %v1135_v10  ;;  %v138_v10 = vld [vmem:[#allocation3 + $0xd8] sm:$0xff] }
  0x8a   :  { %19608 = vst [vmem:[#allocation160_spill] sm:$0xff] %v15036_v56  ;;  %908 = vmatmul.mubr.f32.vlgmr.msra.gmra.mxu0 %v19527_v35  ;;  %19610 = vst [vmem:[#allocation162_spill] sm:$0xff] %v15045_v38  ;;  %963 = vmatprep.subr.mxu1 %v14579_v41  ;;  %v15069_v41 = vand.u32 4294901760, %v145_v40  ;;  %v15075_v17 = vsub.f32 %v150_v20, %v15024_v43  ;;  %v1153_v60 = vsub.f32 %v14999_v48, %v15036_v56  ;;  %v133_v55 = vld [vmem:[#allocation3 + $0xb0] sm:$0xff] }
  0x8b   :  { %1018 = vmatprep.subr.mxu0 %v14938_v9  ;;  %19613 = vst [vmem:[#allocation165_spill] sm:$0xff] %v15057_v54  ;;  %19614 = vst [vmem:[#allocation166_spill] sm:$0xff] %v15060_v24  ;;  %965 = vmatpush1.msra.mxu1 %v14595_v57  ;;  %v15086_v57 = vand.u32 4294901760, %v15039_v28  ;;  %v1159_v20 = vsub.f32 %v15009_v44, %v15048_v33  ;;  %v15095_v62 = vand.u32 4294901760, %v15051_v32  ;;  %v15102_v11 = vand.u32 4294901760, %v1141_v15  ;;  %v134_v15 = vld [vmem:[#allocation3 + $0xb8] sm:$0xff] }
  0x8c   :  { %19615 = vst [vmem:[#allocation167_spill] sm:$0xff] %v15063_v19  ;;  %1020 = vmatpush1.msra.mxu0 %v14942_v8  ;;  %19616 = vst [vmem:[#allocation168_spill] sm:$0xff] %v15067_v36  ;;  %967 = vmatprep.subr.mxu1 %v19554_v39  ;;  %v15092_v39 = vand.u32 4294901760, %v142_v26  ;;  %v15098_v12 = vsub.f32 %v149_v1, %v15045_v38  ;;  %v15107_v7 = vand.u32 4294901760, %v15060_v24  ;;  %v15110_v6 = vand.u32 4294901760, %v15063_v19 }
  0x8d   :  { %19617 = vst [vmem:[#allocation169_spill] sm:$0xff] %v15069_v41  ;;  %19618 = vst [vmem:[#allocation170_spill] sm:$0xff] %v15072_v18  ;;  %1022 = vmatprep.subr.mxu0 %v14944_v45  ;;  %969 = vmatpush1.msra.mxu1 %v19556_v25  ;;  %v15104_v25 = vand.u32 4294901760, %v1147_v46  ;;  %v1165_v1 = vsub.f32 %v15027_v34, %v15072_v18  ;;  %v15119_v46 = vand.u32 4294901760, %v15075_v17  ;;  %v15130_v18 = vand.u32 4294901760, %v138_v10 }
  0x8e   :  { %19619 = vst [vmem:[#allocation171_spill] sm:$0xff] %v15075_v17  ;;  %19620 = vst [vmem:[#allocation172_spill] sm:$0xff] %v15079_v2  ;;  %1024 = vmatpush1.msra.mxu0 %v14948_v49  ;;  %971 = vmatprep.subr.mxu1 %v14640_v58  ;;  %v15116_v58 = vand.u32 4294901760, %v141_v13  ;;  %v15122_v33 = vsub.f32 %v146_v30, %v15057_v54  ;;  %v1171_v56 = vsub.f32 %v15039_v28, %v15086_v57 }
  0x8f   :  { %19621 = vst [vmem:[#allocation173_spill] sm:$0xff] %v15081_v51  ;;  %19622 = vst [vmem:[#allocation174_spill] sm:$0xff] %v15086_v57  ;;  %1026 = vmatprep.subr.mxu0 %v14952_v61  ;;  %973 = vmatpush1.msra.mxu1 %v19559_v29  ;;  %v15126_v29 = vand.u32 4294901760, %v1153_v60  ;;  %v15133_v16 = vsub.f32 %v145_v40, %v15069_v41  ;;  %v15137_v30 = vand.u32 4294901760, %v1159_v20  ;;  %v15142_v60 = vand.u32 4294901760, %v15098_v12 }
  0x90   :  { %19623 = vst [vmem:[#allocation175_spill] sm:$0xff] %v15092_v39  ;;  %19624 = vst [vmem:[#allocation176_spill] sm:$0xff] %v15095_v62  ;;  %1028 = vmatpush1.msra.mxu0 %v14961_v27  ;;  %975 = vmatprep.subr.mxu1 %v14682_v22  ;;  %v1177_v22 = vsub.f32 %v15051_v32, %v15095_v62  ;;  %v15145_v57 = vsub.f32 %v142_v26, %v15092_v39  ;;  %v15155_v62 = vand.u32 4294901760, %v134_v15 }
  0x91   :  { %19625 = vst [vmem:[#allocation177_spill] sm:$0xff] %v15098_v12  ;;  %19626 = vst [vmem:[#allocation178_spill] sm:$0xff] %v15102_v11  ;;  %1030 = vmatprep.subr.mxu0 %v14971_v47  ;;  %977 = vmatpush1.msra.mxu1 %v14703_v23  ;;  %v1183_v40 = vsub.f32 %v15060_v24, %v15107_v7  ;;  %v15151_v23 = vand.u32 4294901760, %v137_v5  ;;  %v1189_v20 = vsub.f32 %v15063_v19, %v15110_v6 }
  0x92   :  { %19627 = vst [vmem:[#allocation179_spill] sm:$0xff] %v15104_v25  ;;  %19628 = vst [vmem:[#allocation180_spill] sm:$0xff] %v15107_v7  ;;  %1010 = vmatprep.mubr.f32.mxu1 %v19527_v35  ;;  %1032 = vmatpush1.msra.mxu0 %v14983_v4  ;;  %v15159_v26 = vand.u32 4294901760, %v1165_v1  ;;  %v1195_v31 = vsub.f32 %v15075_v17, %v15119_v46  ;;  %v15163_v21 = vand.u32 4294901760, %v133_v55  ;;  %v15166_v7 = vand.u32 4294901760, %v15122_v33  ;;  %v129_v4 = vld [vmem:[#allocation3 + $0x90] sm:$0xff] }
  0x93   :  { %19629 = vst [vmem:[#allocation181_spill] sm:$0xff] %v15110_v6  ;;  %19630 = vst [vmem:[#allocation182_spill] sm:$0xff] %v15116_v58  ;;  %1011 = vmatmul.mubr.f32.vlgmr.msra.gmra.mxu1 %v19527_v35  ;;  %1034 = vmatprep.subr.mxu0 %v14990_v63  ;;  %v15170_v6 = vand.u32 4294901760, %v1171_v56  ;;  %v15172_v63 = vand.u32 4294901760, %v130_v0  ;;  %v15175_v1 = vand.u32 4294901760, %v15133_v16  ;;  %v15182_v47 = vand.u32 4294901760, %v1177_v22 }
  0x94   :  { %19631 = vst [vmem:[#allocation183_spill] sm:$0xff] %v15119_v46  ;;  %19632 = vst [vmem:[#allocation184_spill] sm:$0xff] %v15122_v33  ;;  %1125 = vmatprep.subr.mxu1 %v15067_v36  ;;  %1036 = vmatpush1.msra.mxu0 %v15003_v52  ;;  %v126_v36 = vld [vmem:[#allocation3 + $0x78] sm:$0xff]  ;;  %v15178_v46 = vsub.f32 %v141_v13, %v15116_v58  ;;  %v15187_v56 = vand.u32 4294901760, %v15145_v57  ;;  %v125_v52 = vld [vmem:[#allocation3 + $0x70] sm:$0xff]  ;;  %v15190_v27 = vsub.f32 %v138_v10, %v15130_v18 }
  0x95   :  { %19633 = vst [vmem:[#allocation185_spill] sm:$0xff] %v15126_v29  ;;  %19634 = vst [vmem:[#allocation186_spill] sm:$0xff] %v15130_v18  ;;  %1131 = vmatpush1.msra.mxu1 %v15079_v2  ;;  %1038 = vmatprep.subr.mxu0 %v15013_v50  ;;  %v1201_v2 = vsub.f32 %v15098_v12, %v15142_v60  ;;  %v15194_v13 = vand.u32 4294901760, %v1183_v40  ;;  %v15196_v50 = vand.u32 4294901760, %v1189_v20  ;;  %v15198_v22 = vand.u32 4294901760, %v129_v4  ;;  %v122_v40 = vld [vmem:[#allocation3 + $0x58] sm:$0xff] }
  0x96   :  { %19635 = vst [vmem:[#allocation187_spill] sm:$0xff] %v15133_v16  ;;  %19636 = vst [vmem:[#allocation188_spill] sm:$0xff] %v15137_v30  ;;  %1137 = vmatprep.subr.mxu1 %v15081_v51  ;;  %1040 = vmatpush1.msra.mxu0 %v15015_v59  ;;  %v15201_v51 = vsub.f32 %v137_v5, %v15151_v23  ;;  %v1207_v10 = vsub.f32 %v15122_v33, %v15166_v7  ;;  %v15209_v59 = vand.u32 4294901760, %v126_v36  ;;  %v113_v33 = vld [vmem:[#allocation3 + $0x10] sm:$0xff] }
  0x97   :  { %19637 = vst [vmem:[#allocation189_spill] sm:$0xff] %v15142_v60  ;;  %19638 = vst [vmem:[#allocation190_spill] sm:$0xff] %v15145_v57  ;;  %1143 = vmatpush1.msra.mxu1 %v15102_v11  ;;  %1042 = vmatprep.subr.mxu0 %v15024_v43  ;;  %v15205_v60 = vand.u32 4294901760, %v1195_v31  ;;  %v121_v11 = vld [vmem:[#allocation3 + $0x50] sm:$0xff]  ;;  %v15212_v20 = vsub.f32 %v134_v15, %v15155_v62  ;;  %v1213_v5 = vsub.f32 %v15133_v16, %v15175_v1 }
  0x98   :  { %19639 = vst [vmem:[#allocation191_spill] sm:$0xff] %v15151_v23  ;;  %19640 = vst [vmem:[#allocation192_spill] sm:$0xff] %v15155_v62  ;;  %1149 = vmatprep.subr.mxu1 %v15104_v25  ;;  %1044 = vmatpush1.msra.mxu0 %v15045_v38  ;;  %v15218_v25 = vand.u32 4294901760, %v125_v52  ;;  %v15221_v31 = vand.u32 4294901760, %v15178_v46  ;;  %v15224_v43 = vsub.f32 %v133_v55, %v15163_v21  ;;  %v15228_v15 = vand.u32 4294901760, %v1201_v2  ;;  %v117_v38 = vld [vmem:[#allocation3 + $0x30] sm:$0xff] }
  0x99   :  { %19641 = vst [vmem:[#allocation193_spill] sm:$0xff] %v15159_v26  ;;  %19642 = vst [vmem:[#allocation194_spill] sm:$0xff] %v15163_v21  ;;  %1155 = vmatpush1.msra.mxu1 %v15126_v29  ;;  %1046 = vmatprep.subr.mxu0 %v15057_v54  ;;  %v1219_v29 = vsub.f32 %v15145_v57, %v15187_v56  ;;  %v15236_v16 = vsub.f32 %v130_v0, %v15172_v63  ;;  %v15240_v55 = vand.u32 4294901760, %v122_v40 }
  0x9a   :  { %19643 = vst [vmem:[#allocation195_spill] sm:$0xff] %v15166_v7  ;;  %19644 = vst [vmem:[#allocation196_spill] sm:$0xff] %v15170_v6  ;;  %v118_v7 = vld [vmem:[#allocation3 + $0x38] sm:$0xff]  ;;  %1161 = vmatprep.subr.mxu1 %v15137_v30  ;;  %1048 = vmatpush1.msra.mxu0 %v15069_v41  ;;  %v15242_v54 = vand.u32 4294901760, %v121_v11  ;;  %v15245_v2 = vand.u32 4294901760, %v15201_v51  ;;  %v15248_v30 = vsub.f32 %v129_v4, %v15198_v22  ;;  %v15252_v0 = vand.u32 4294901760, %v1207_v10 }
  0x9b   :  { %19645 = vst [vmem:[#allocation197_spill] sm:$0xff] %v15172_v63  ;;  %19646 = vst [vmem:[#allocation198_spill] sm:$0xff] %v15175_v1  ;;  %v15233_v1 = vand.u32 4294901760, %v15190_v27  ;;  %1167 = vmatpush1.msra.mxu1 %v15159_v26  ;;  %1050 = vmatprep.subr.mxu0 %v15092_v39  ;;  %v15257_v26 = vand.u32 4294901760, %v15212_v20  ;;  %v114_v41 = vld [vmem:[#allocation3 + $0x18] sm:$0xff]  ;;  %v15260_v57 = vsub.f32 %v126_v36, %v15209_v59  ;;  %v15264_v4 = vand.u32 4294901760, %v1213_v5 }
  0x9c   :  { %19647 = vst [vmem:[#allocation199_spill] sm:$0xff] %v15178_v46  ;;  %19648 = vst [vmem:[#allocation200_spill] sm:$0xff] %v15182_v47  ;;  %1173 = vmatprep.subr.mxu1 %v15170_v6  ;;  %1052 = vmatpush1.msra.mxu0 %v15116_v58  ;;  %v1225_v6 = vsub.f32 %v15178_v46, %v15221_v31  ;;  %v15268_v10 = vand.u32 4294901760, %v117_v38  ;;  %v15271_v39 = vand.u32 4294901760, %v15224_v43  ;;  %v15275_v36 = vand.u32 4294901760, %v1219_v29 }
  0x9d   :  { %19649 = vst [vmem:[#allocation201_spill] sm:$0xff] %v15187_v56  ;;  %19650 = vst [vmem:[#allocation202_spill] sm:$0xff] %v15190_v27  ;;  %v15254_v56 = vand.u32 4294901760, %v118_v7  ;;  %1179 = vmatpush1.msra.mxu1 %v15182_v47  ;;  %1054 = vmatprep.subr.mxu0 %v15130_v18  ;;  %v1231_v47 = vsub.f32 %v15190_v27, %v15233_v1  ;;  %v15280_v5 = vand.u32 4294901760, %v15236_v16  ;;  %v15289_v58 = vand.u32 4294901760, %v114_v41 }
  0x9e   :  { %19651 = vst [vmem:[#allocation203_spill] sm:$0xff] %v15194_v13  ;;  %19652 = vst [vmem:[#allocation204_spill] sm:$0xff] %v15196_v50  ;;  %1185 = vmatprep.subr.mxu1 %v15194_v13  ;;  %1056 = vmatpush1.msra.mxu0 %v15151_v23  ;;  %v1237_v18 = vsub.f32 %v15201_v51, %v15245_v2  ;;  %v15292_v29 = vand.u32 4294901760, %v15248_v30  ;;  %v15295_v13 = vsub.f32 %v122_v40, %v15240_v55 }
  0x9f   :  { %19653 = vst [vmem:[#allocation205_spill] sm:$0xff] %v15198_v22  ;;  %19654 = vst [vmem:[#allocation206_spill] sm:$0xff] %v15201_v51  ;;  %1191 = vmatpush1.msra.mxu1 %v15196_v50  ;;  %1058 = vmatprep.subr.mxu0 %v15155_v62  ;;  %v15304_v50 = vand.u32 4294901760, %v15260_v57  ;;  %v15311_v40 = vand.u32 4294901760, %v1225_v6  ;;  %v15316_v62 = vsub.f32 %v118_v7, %v15254_v56 }
  0xa0   :  { %19655 = vst [vmem:[#allocation207_spill] sm:$0xff] %v15205_v60  ;;  %19656 = vst [vmem:[#allocation208_spill] sm:$0xff] %v15209_v59  ;;  %1197 = vmatprep.subr.mxu1 %v15205_v60  ;;  %1060 = vmatpush1.msra.mxu0 %v15163_v21  ;;  %v1249_v60 = vsub.f32 %v15224_v43, %v15271_v39  ;;  %v15328_v6 = vsub.f32 %v117_v38, %v15268_v10  ;;  %v15332_v7 = vand.u32 4294901760, %v1237_v18 }
  0xa1   :  { %19657 = vst [vmem:[#allocation209_spill] sm:$0xff] %v15212_v20  ;;  %19658 = vst [vmem:[#allocation210_spill] sm:$0xff] %v15218_v25  ;;  %1203 = vmatpush1.msra.mxu1 %v15228_v15  ;;  %1062 = vmatprep.subr.mxu0 %v15172_v63 }
  0xa2   :  { %19659 = vst [vmem:[#allocation211_spill] sm:$0xff] %v15221_v31  ;;  %19660 = vst [vmem:[#allocation212_spill] sm:$0xff] %v15224_v43  ;;  %v15283_v31 = vsub.f32 %v125_v52, %v15218_v25  ;;  %v1243_v52 = vsub.f32 %v15212_v20, %v15257_v26  ;;  %1209 = vmatprep.subr.mxu1 %v15252_v0  ;;  %1064 = vmatpush1.msra.mxu0 %v15198_v22 }
  0xa3   :  { %19661 = vst [vmem:[#allocation213_spill] sm:$0xff] %v15228_v15  ;;  %19662 = vst [vmem:[#allocation214_spill] sm:$0xff] %v15233_v1  ;;  %v15301_v1 = vand.u32 4294901760, %v113_v33  ;;  %1215 = vmatpush1.msra.mxu1 %v15264_v4  ;;  %v15340_v15 = vsub.f32 %v114_v41, %v15289_v58  ;;  %1066 = vmatprep.subr.mxu0 %v15209_v59  ;;  %v15356_v41 = vand.u32 4294901760, %v1249_v60 }
  0xa4   :  { %19663 = vst [vmem:[#allocation215_spill] sm:$0xff] %v15236_v16  ;;  %19664 = vst [vmem:[#allocation216_spill] sm:$0xff] %v15240_v55  ;;  %v15325_v21 = vand.u32 4294901760, %v15283_v31  ;;  %1221 = vmatprep.subr.mxu1 %v15275_v36  ;;  %v15344_v38 = vand.u32 4294901760, %v1243_v52  ;;  %1068 = vmatpush1.msra.mxu0 %v15218_v25 }
  0xa5   :  { %19665 = vst [vmem:[#allocation217_spill] sm:$0xff] %v15242_v54  ;;  %19666 = vst [vmem:[#allocation218_spill] sm:$0xff] %v15245_v2  ;;  %v15307_v2 = vsub.f32 %v121_v11, %v15242_v54  ;;  %v1255_v11 = vsub.f32 %v15236_v16, %v15280_v5  ;;  %1227 = vmatpush1.msra.mxu1 %v15311_v40  ;;  %1070 = vmatprep.subr.mxu0 %v15240_v55 }
  0xa6   :  { %19667 = vst [vmem:[#allocation219_spill] sm:$0xff] %v15248_v30  ;;  %19668 = vst [vmem:[#allocation220_spill] sm:$0xff] %v15252_v0  ;;  %v1261_v0 = vsub.f32 %v15248_v30, %v15292_v29  ;;  %1072 = vmatpush1.msra.mxu0 %v15242_v54  ;;  %1113 = vmatprep.mubr.f32.mxu0 %v19527_v35 }
  0xa7   :  { %19669 = vst [vmem:[#allocation221_spill] sm:$0xff] %v15254_v56  ;;  %19670 = vst [vmem:[#allocation222_spill] sm:$0xff] %v15257_v26  ;;  %v15320_v26 = vand.u32 4294901760, %v1231_v47  ;;  %v15337_v47 = vand.u32 4294901760, %v15295_v13  ;;  %v15349_v18 = vand.u32 4294901760, %v15307_v2  ;;  %v15363_v52 = vand.u32 4294901760, %v1255_v11  ;;  %1074 = vmatprep.subr.mxu0 %v15254_v56  ;;  %1344 = vmatprep.mubr.f32.mxu1 %v19527_v35 }
  0xa8   :  { %19671 = vst [vmem:[#allocation223_spill] sm:$0xff] %v15260_v57  ;;  %19672 = vst [vmem:[#allocation224_spill] sm:$0xff] %v15264_v4  ;;  %v1267_v4 = vsub.f32 %v15260_v57, %v15304_v50  ;;  %v15372_v60 = vand.u32 4294901760, %v1261_v0  ;;  %1076 = vmatpush1.msra.mxu0 %v15268_v10 }
  0xa9   :  { %19673 = vst [vmem:[#allocation225_spill] sm:$0xff] %v15268_v10  ;;  %19674 = vst [vmem:[#allocation226_spill] sm:$0xff] %v15271_v39  ;;  %1233 = vmatprep.subr.mxu1 %v15320_v26  ;;  %1078 = vmatprep.subr.mxu0 %v15289_v58 }
  0xaa   :  { %19675 = vst [vmem:[#allocation227_spill] sm:$0xff] %v15275_v36  ;;  %19676 = vst [vmem:[#allocation228_spill] sm:$0xff] %v15280_v5  ;;  %v15359_v5 = vand.u32 4294901760, %v15316_v62  ;;  %v1273_v36 = vsub.f32 %v15283_v31, %v15325_v21  ;;  %1239 = vmatpush1.msra.mxu1 %v15332_v7  ;;  %v15381_v11 = vand.u32 4294901760, %v1267_v4  ;;  %1080 = vmatpush1.msra.mxu0 %v15301_v1 }
  0xab   :  { %19677 = vst [vmem:[#allocation229_spill] sm:$0xff] %v15283_v31  ;;  %19678 = vst [vmem:[#allocation230_spill] sm:$0xff] %v15289_v58  ;;  %1245 = vmatprep.subr.mxu1 %v15344_v38  ;;  %1353 = vmatprep.subr.mxu0 %v14957_v42 }
  0xac   :  { %19679 = vst [vmem:[#allocation231_spill] sm:$0xff] %v15292_v29  ;;  %19680 = vst [vmem:[#allocation232_spill] sm:$0xff] %v15295_v13  ;;  %v15352_v29 = vsub.f32 %v113_v33, %v15301_v1  ;;  %v15368_v33 = vand.u32 4294901760, %v15328_v6  ;;  %1251 = vmatpush1.msra.mxu1 %v15356_v41  ;;  %v1291_v0 = vsub.f32 %v15316_v62, %v15359_v5  ;;  %1114 = vmatmul.mubr.f32.vlgmr.msra.gmra.mxu0 %v19527_v35 }
  0xad   :  { %19681 = vst [vmem:[#allocation233_spill] sm:$0xff] %v15301_v1  ;;  %19682 = vst [vmem:[#allocation234_spill] sm:$0xff] %v15304_v50  ;;  %v15377_v50 = vand.u32 4294901760, %v15340_v15  ;;  %1257 = vmatprep.subr.mxu1 %v15363_v52  ;;  %1356 = vmatpush1.msra.mxu0 %v14964_v3  ;;  %v19782_v3 = vld [vmem:[#allocation71_spill] sm:$0xff] }
  0xae   :  { %19683 = vst [vmem:[#allocation235_spill] sm:$0xff] %v15307_v2  ;;  %19684 = vst [vmem:[#allocation236_spill] sm:$0xff] %v15311_v40  ;;  %v1279_v40 = vsub.f32 %v15295_v13, %v15337_v47  ;;  %v1297_v4 = vsub.f32 %v15328_v6, %v15368_v33  ;;  %1263 = vmatpush1.msra.mxu1 %v15372_v60  ;;  %1359 = vmatprep.subr.mxu0 %v14967_v37  ;;  %v19780_v37 = vld [vmem:[#allocation68_spill] sm:$0xff] }
  0xaf   :  { %19685 = vst [vmem:[#allocation237_spill] sm:$0xff] %v15316_v62  ;;  %19686 = vst [vmem:[#allocation238_spill] sm:$0xff] %v15320_v26  ;;  %v1285_v26 = vsub.f32 %v15307_v2, %v15349_v18  ;;  %1269 = vmatprep.subr.mxu1 %v15381_v11  ;;  %1362 = vmatpush1.msra.mxu0 %v14974_v14  ;;  %v19778_v14 = vld [vmem:[#allocation65_spill] sm:$0xff] }
  0xb0   :  { %19687 = vst [vmem:[#allocation239_spill] sm:$0xff] %v15325_v21  ;;  %19688 = vst [vmem:[#allocation240_spill] sm:$0xff] %v15328_v6  ;;  %v15386_v21 = vand.u32 4294901760, %v15352_v29  ;;  %1365 = vmatprep.subr.mxu0 %v14979_v53  ;;  %1479 = vmatprep.mubr.f32.mxu0 %v19527_v35  ;;  %v19776_v53 = vld [vmem:[#allocation62_spill] sm:$0xff] }
  0xb1   :  { %19689 = vst [vmem:[#allocation241_spill] sm:$0xff] %v15332_v7  ;;  %19690 = vst [vmem:[#allocation242_spill] sm:$0xff] %v15337_v47  ;;  %v15400_v7 = vand.u32 4294901760, %v1279_v40  ;;  %v15416_v40 = vand.u32 4294901760, %v1297_v4  ;;  %1368 = vmatpush1.msra.mxu0 %v14999_v48  ;;  %v19712_v4 = vld [vmem:[#allocation143_spill] sm:$0xff] }
  0xb2   :  { %19691 = vst [vmem:[#allocation243_spill] sm:$0xff] %v15340_v15  ;;  %19692 = vst [vmem:[#allocation244_spill] sm:$0xff] %v15344_v38  ;;  %v15394_v38 = vand.u32 4294901760, %v1273_v36  ;;  %v1309_v36 = vsub.f32 %v15352_v29, %v15386_v21  ;;  %1371 = vmatprep.subr.mxu0 %v15009_v44  ;;  %v19771_v44 = vld [vmem:[#allocation18_spill] sm:$0xff]  ;;  %v19774_v48 = vld [vmem:[#allocation59_spill] sm:$0xff] }
  0xb3   :  { %19693 = vst [vmem:[#allocation245_spill] sm:$0xff] %v15349_v18  ;;  %19694 = vst [vmem:[#allocation246_spill] sm:$0xff] %v15352_v29  ;;  %1374 = vmatpush1.msra.mxu0 %v15027_v34  ;;  %v19770_v34 = vld [vmem:[#allocation45_spill] sm:$0xff] }
  0xb4   :  { %19695 = vst [vmem:[#allocation247_spill] sm:$0xff] %v15356_v41  ;;  %19696 = vst [vmem:[#allocation248_spill] sm:$0xff] %v15359_v5  ;;  %v1303_v41 = vsub.f32 %v15340_v15, %v15377_v50  ;;  %v15406_v5 = vand.u32 4294901760, %v1285_v26  ;;  %1275 = vmatpush1.msra.mxu1 %v15394_v38  ;;  %v15424_v42 = vand.u32 4294901760, %v1309_v36  ;;  %1377 = vmatprep.subr.mxu0 %v15039_v28  ;;  %v19713_v36 = vld [vmem:[#allocation187_spill] sm:$0xff]  ;;  %v19769_v28 = vld [vmem:[#allocation16_spill] sm:$0xff] }
  0xb5   :  { %19697 = vst [vmem:[#allocation249_spill] sm:$0xff] %v15363_v52  ;;  %19698 = vst [vmem:[#allocation250_spill] sm:$0xff] %v15368_v33  ;;  %v15412_v52 = vand.u32 4294901760, %v1291_v0  ;;  %1281 = vmatprep.subr.mxu1 %v15400_v7  ;;  %1380 = vmatpush1.msra.mxu0 %v15051_v32  ;;  %v19711_v0 = vld [vmem:[#allocation184_spill] sm:$0xff]  ;;  %v19715_v32 = vld [vmem:[#allocation190_spill] sm:$0xff] }
  0xb6   :  { %19699 = vst [vmem:[#allocation251_spill] sm:$0xff] %v15372_v60  ;;  %19700 = vst [vmem:[#allocation252_spill] sm:$0xff] %v15377_v50  ;;  %v15420_v26 = vand.u32 4294901760, %v1303_v41  ;;  %1287 = vmatpush1.msra.mxu1 %v15406_v5  ;;  %1383 = vmatprep.subr.mxu0 %v15060_v24  ;;  %v19710_v41 = vld [vmem:[#allocation140_spill] sm:$0xff]  ;;  %v19714_v24 = vld [vmem:[#allocation146_spill] sm:$0xff] }
  0xb7   :  { %19701 = vst [vmem:[#allocation253_spill] sm:$0xff] %v15381_v11  ;;  %19702 = vst [vmem:[#allocation254_spill] sm:$0xff] %v15386_v21  ;;  %1293 = vmatprep.subr.mxu1 %v15412_v52  ;;  %1386 = vmatpush1.msra.mxu0 %v15063_v19  ;;  %v19716_v19 = vld [vmem:[#allocation148_spill] sm:$0xff] }
  0xb8   :  { %19703 = vst [vmem:[#allocation255_spill] sm:$0xff] %v15394_v38  ;;  %19704 = vst [vmem:[#allocation256_spill] sm:$0xff] %v15400_v7  ;;  %1299 = vmatpush1.msra.mxu1 %v15416_v40  ;;  %1389 = vmatprep.subr.mxu0 %v15075_v17  ;;  %v19717_v17 = vld [vmem:[#allocation152_spill] sm:$0xff] }
  0xb9   :  { %19705 = vst [vmem:[#allocation257_spill] sm:$0xff] %v15406_v5  ;;  %19706 = vst [vmem:[#allocation258_spill] sm:$0xff] %v15412_v52  ;;  %1305 = vmatprep.subr.mxu1 %v15420_v26  ;;  %1392 = vmatpush1.msra.mxu0 %v15098_v12  ;;  %v19718_v12 = vld [vmem:[#allocation155_spill] sm:$0xff]  ;;  %v19818_v5 = vld [vmem:[#allocation132_spill] sm:$0xff] }
  0xba   :  { %19707 = vst [vmem:[#allocation259_spill] sm:$0xff] %v15416_v40  ;;  %19708 = vst [vmem:[#allocation260_spill] sm:$0xff] %v15420_v26  ;;  %1311 = vmatpush1.msra.mxu1 %v15424_v42  ;;  %1395 = vmatprep.subr.mxu0 %v19711_v0  ;;  %v19719_v0 = vld [vmem:[#allocation156_spill] sm:$0xff]  ;;  %v19805_v26 = vld [vmem:[#allocation119_spill] sm:$0xff] }
  0xbb   :  { %19709 = vst [vmem:[#allocation261_spill] sm:$0xff] %v15424_v42  ;;  %1345 = vmatmul.mubr.f32.vlgmr.msra.gmra.mxu1 %v19527_v35  ;;  %1487 = vmatprep.subr.mxu1 %v14938_v9  ;;  %v19800_v42 = vld [vmem:[#allocation106_spill] sm:$0xff]  ;;  %v19809_v40 = vld [vmem:[#allocation124_spill] sm:$0xff]  ;;  %v19813_v52 = vld [vmem:[#allocation127_spill] sm:$0xff] }
  0xbc   :  { %1489 = vmatpush1.msra.mxu1 %v14942_v8  ;;  %1398 = vmatpush1.msra.mxu0 %v19713_v36  ;;  %v19720_v36 = vld [vmem:[#allocation158_spill] sm:$0xff] }
  0xbd   :  { %1491 = vmatprep.subr.mxu1 %v14944_v45  ;;  %1401 = vmatprep.subr.mxu0 %v19715_v32  ;;  %v19721_v32 = vld [vmem:[#allocation162_spill] sm:$0xff] }
  0xbe   :  { %1493 = vmatpush1.msra.mxu1 %v14948_v49  ;;  %1404 = vmatpush1.msra.mxu0 %v15178_v46  ;;  %v19722_v46 = vld [vmem:[#allocation165_spill] sm:$0xff] }
  0xbf   :  { %1495 = vmatprep.subr.mxu1 %v14952_v61  ;;  %1407 = vmatprep.subr.mxu0 %v15190_v27  ;;  %v19723_v27 = vld [vmem:[#allocation169_spill] sm:$0xff] }
  0xc0   :  { %1497 = vmatpush1.msra.mxu1 %v19710_v41  ;;  %1410 = vmatpush1.msra.mxu0 %v15201_v51  ;;  %v19724_v51 = vld [vmem:[#allocation175_spill] sm:$0xff] }
  0xc1   :  { %1499 = vmatprep.subr.mxu1 %v19712_v4  ;;  %1413 = vmatprep.subr.mxu0 %v15212_v20  ;;  %v19725_v20 = vld [vmem:[#allocation182_spill] sm:$0xff] }
  0xc2   :  { %1501 = vmatpush1.msra.mxu1 %v19714_v24  ;;  %1416 = vmatpush1.msra.mxu0 %v15224_v43  ;;  %v19726_v43 = vld [vmem:[#allocation186_spill] sm:$0xff] }
  0xc3   :  { %1503 = vmatprep.subr.mxu1 %v19716_v19  ;;  %1419 = vmatprep.subr.mxu0 %v15236_v16  ;;  %v19768_v16 = vld [vmem:[#allocation42_spill] sm:$0xff] }
  0xc4   :  { %1505 = vmatpush1.msra.mxu1 %v19717_v17  ;;  %1422 = vmatpush1.msra.mxu0 %v15248_v30  ;;  %v19727_v30 = vld [vmem:[#allocation192_spill] sm:$0xff] }
  0xc5   :  { %1507 = vmatprep.subr.mxu1 %v19718_v12  ;;  %1425 = vmatprep.subr.mxu0 %v15260_v57  ;;  %v19728_v57 = vld [vmem:[#allocation194_spill] sm:$0xff] }
  0xc6   :  { %1509 = vmatpush1.msra.mxu1 %v19719_v0  ;;  %1428 = vmatpush1.msra.mxu0 %v15283_v31  ;;  %v19743_v31 = vld [vmem:[#allocation195_spill] sm:$0xff] }
  0xc7   :  { %1511 = vmatprep.subr.mxu1 %v19720_v36  ;;  %1431 = vmatprep.subr.mxu0 %v15295_v13  ;;  %v19734_v13 = vld [vmem:[#allocation160_spill] sm:$0xff] }
  0xc8   :  { %1513 = vmatpush1.msra.mxu1 %v19721_v32  ;;  %1434 = vmatpush1.msra.mxu0 %v15307_v2  ;;  %v19733_v2 = vld [vmem:[#allocation157_spill] sm:$0xff] }
  0xc9   :  { %1515 = vmatprep.subr.mxu1 %v19722_v46  ;;  %1437 = vmatprep.subr.mxu0 %v15316_v62  ;;  %v19729_v62 = vld [vmem:[#allocation147_spill] sm:$0xff] }
  0xca   :  { %1517 = vmatpush1.msra.mxu1 %v19723_v27  ;;  %1440 = vmatpush1.msra.mxu0 %v15328_v6  ;;  %v19730_v6 = vld [vmem:[#allocation149_spill] sm:$0xff] }
  0xcb   :  { %1519 = vmatprep.subr.mxu1 %v19724_v51  ;;  %1443 = vmatprep.subr.mxu0 %v15340_v15  ;;  %v19731_v15 = vld [vmem:[#allocation150_spill] sm:$0xff] }
  0xcc   :  { %1521 = vmatpush1.msra.mxu1 %v19725_v20  ;;  %1446 = vmatpush1.msra.mxu0 %v15352_v29  ;;  %v19732_v29 = vld [vmem:[#allocation153_spill] sm:$0xff] }
  0xcd   :  { %1523 = vmatprep.subr.mxu1 %v19726_v43  ;;  %1480 = vmatmul.mubr.f32.vlgmr.msra.gmra.mxu0 %v19527_v35 }
  0xce   :  { %1525 = vmatpush1.msra.mxu1 %v15151_v23  ;;  %1592 = vmatprep.subr.mxu0 %v19729_v62  ;;  %v19735_v62 = vld [vmem:[#allocation163_spill] sm:$0xff] }
  0xcf   :  { %1527 = vmatprep.subr.mxu1 %v19727_v30  ;;  %1596 = vmatpush1.msra.mxu0 %v19730_v6  ;;  %v19739_v6 = vld [vmem:[#allocation180_spill] sm:$0xff] }
  0xd0   :  { %1529 = vmatpush1.msra.mxu1 %v19728_v57  ;;  %1600 = vmatprep.subr.mxu0 %v19731_v15  ;;  %v19736_v15 = vld [vmem:[#allocation170_spill] sm:$0xff] }
  0xd1   :  { %1531 = vmatprep.subr.mxu1 %v15172_v63  ;;  %1604 = vmatpush1.msra.mxu0 %v19732_v29  ;;  %v19737_v29 = vld [vmem:[#allocation174_spill] sm:$0xff] }
  0xd2   :  { %1533 = vmatpush1.msra.mxu1 %v15198_v22  ;;  %1608 = vmatprep.subr.mxu0 %v19733_v2  ;;  %v19738_v2 = vld [vmem:[#allocation176_spill] sm:$0xff] }
  0xd3   :  { %1535 = vmatprep.subr.mxu1 %v15209_v59  ;;  %1612 = vmatpush1.msra.mxu0 %v19734_v13  ;;  %v14254_v13 = vmov 0  }
  0xd4   :  { %1537 = vmatpush1.msra.mxu1 %v15218_v25  ;;  %1616 = vmatprep.subr.mxu0 %v19735_v62  ;;  %v39_v62 = vld [vmem:[%s18616_s0] sm:$0xff] }
  0xd5   :  { %1539 = vmatprep.subr.mxu1 %v15240_v55  ;;  %1582 = vmatprep.mubr.f32.mxu1 %v19527_v35 }
  0xd6   :  { %1541 = vmatpush1.msra.mxu1 %v15242_v54  ;;  %1620 = vmatpush1.msra.mxu0 %v19736_v15  ;;  %v19740_v15 = vld [vmem:[#allocation181_spill] sm:$0xff] }
  0xd7   :  { %1543 = vmatprep.subr.mxu1 %v15254_v56  ;;  %1624 = vmatprep.subr.mxu0 %v19737_v29  ;;  %v19741_v29 = vld [vmem:[#allocation183_spill] sm:$0xff] }
  0xd8   :  { %1545 = vmatpush1.msra.mxu1 %v15268_v10  ;;  %1628 = vmatpush1.msra.mxu0 %v19738_v2  ;;  %v19742_v2 = vld [vmem:[#allocation189_spill] sm:$0xff] }
  0xd9   :  { %1547 = vmatprep.subr.mxu1 %v15289_v58  ;;  %14147 = vset.pattern.permute.xlu0 %v14254_v13  ;;  %v19744_v13 = vld [vmem:[#allocation198_spill] sm:$0xff] }
  0xda   :  { %1549 = vmatpush1.msra.mxu1 %v15301_v1  ;;  %1632 = vmatprep.subr.mxu0 %v19739_v6  ;;  %v19767_v6 = vld [vmem:[#allocation14_spill] sm:$0xff] }
  0xdb   :  { %1583 = vmatmul.mubr.f32.vlgmr.msra.gmra.mxu1 %v19527_v35  ;;  %1757 = vmatprep.subr.mxu1 %v14938_v9 }
  0xdc   :  { %1759 = vmatpush1.msra.mxu1 %v14942_v8  ;;  %1636 = vmatpush1.msra.mxu0 %v19740_v15  ;;  %v19745_v15 = vld [vmem:[#allocation201_spill] sm:$0xff] }
  0xdd   :  { %1761 = vmatprep.subr.mxu1 %v14944_v45  ;;  %44 = vperm.xlu0 %14147, %v39_v62   ;;  %v19746_v62 = vld [vmem:[#allocation211_spill] sm:$0xff] }
  0xde   :  { %1763 = vmatpush1.msra.mxu1 %v14948_v49  ;;  %1640 = vmatprep.subr.mxu0 %v19741_v29  ;;  %v19747_v29 = vld [vmem:[#allocation214_spill] sm:$0xff] }
  0xdf   :  { %1765 = vmatprep.subr.mxu1 %v14952_v61  ;;  %1644 = vmatpush1.msra.mxu0 %v19742_v2  ;;  %v19748_v2 = vld [vmem:[#allocation218_spill] sm:$0xff] }
  0xe0   :  { %1767 = vmatpush1.msra.mxu1 %v19710_v41  ;;  %1648 = vmatprep.subr.mxu0 %v19743_v31  ;;  %v19749_v31 = vld [vmem:[#allocation222_spill] sm:$0xff] }
  0xe1   :  { %1769 = vmatprep.subr.mxu1 %v19712_v4  ;;  %1652 = vmatpush1.msra.mxu0 %v19744_v13  ;;  %v19766_v13 = vld [vmem:[#allocation39_spill] sm:$0xff] }
  0xe2   :  { %1771 = vmatpush1.msra.mxu1 %v19714_v24  ;;  %1656 = vmatprep.subr.mxu0 %v19745_v15  ;;  %v19750_v15 = vld [vmem:[#allocation228_spill] sm:$0xff] }
  0xe3   :  { %1773 = vmatprep.subr.mxu1 %v19716_v19  ;;  %1660 = vmatpush1.msra.mxu0 %v19746_v62  ;;  %v19751_v62 = vld [vmem:[#allocation231_spill] sm:$0xff] }
  0xe4   :  { %1775 = vmatpush1.msra.mxu1 %v19717_v17  ;;  %1664 = vmatprep.subr.mxu0 %v19747_v29  ;;  %v19752_v29 = vld [vmem:[#allocation234_spill] sm:$0xff] }
  0xe5   :  { %1777 = vmatprep.subr.mxu1 %v19718_v12  ;;  %1668 = vmatpush1.msra.mxu0 %v19748_v2  ;;  %v19753_v2 = vld [vmem:[#allocation239_spill] sm:$0xff] }
  0xe6   :  { %1779 = vmatpush1.msra.mxu1 %v19719_v0  ;;  %1672 = vmatprep.subr.mxu0 %v19749_v31  ;;  %v19765_v31 = vld [vmem:[#allocation13_spill] sm:$0xff] }
  0xe7   :  { %1781 = vmatprep.subr.mxu1 %v19720_v36  ;;  %1676 = vmatpush1.msra.mxu0 %v15271_v39  ;;  %v19764_v39 = vld [vmem:[#allocation37_spill] sm:$0xff] }
  0xe8   :  { %1783 = vmatpush1.msra.mxu1 %v19721_v32  ;;  %1680 = vmatprep.subr.mxu0 %v19750_v15  ;;  %v19754_v15 = vld [vmem:[#allocation248_spill] sm:$0xff] }
  0xe9   :  { %1785 = vmatprep.subr.mxu1 %v19722_v46  ;;  %1684 = vmatpush1.msra.mxu0 %v19751_v62  ;;  %v19763_v62 = vld [vmem:[#allocation12_spill] sm:$0xff] }
  0xea   :  { %1787 = vmatpush1.msra.mxu1 %v19723_v27  ;;  %1688 = vmatprep.subr.mxu0 %v19752_v29  ;;  %v19762_v29 = vld [vmem:[#allocation36_spill] sm:$0xff] }
  0xeb   :  { %1789 = vmatprep.subr.mxu1 %v19724_v51  ;;  %1692 = vmatpush1.msra.mxu0 %v19753_v2  ;;  %v19761_v2 = vld [vmem:[#allocation33_spill] sm:$0xff] }
  0xec   :  { %1791 = vmatpush1.msra.mxu1 %v19725_v20  ;;  %1696 = vmatprep.subr.mxu0 %v15337_v47  ;;  %v19759_v47 = vld [vmem:[#allocation10_spill] sm:$0xff] }
  0xed   :  { %1793 = vmatprep.subr.mxu1 %v19726_v43  ;;  %1700 = vmatpush1.msra.mxu0 %v15349_v18  ;;  %v40_v18 = vld [vmem:[%s18616_s0 + $0x8] sm:$0xff] }
  0xee   :  { %1795 = vmatpush1.msra.mxu1 %v15151_v23  ;;  %1704 = vmatprep.subr.mxu0 %v19754_v15  ;;  %v19758_v15 = vld [vmem:[#allocation9_spill] sm:$0xff] }
  0xef   :  { %1797 = vmatprep.subr.mxu1 %v19727_v30  ;;  %1708 = vmatpush1.msra.mxu0 %v15368_v33  ;;  %v19757_v33 = vld [vmem:[#allocation8_spill] sm:$0xff]  ;;  %v19815_v30 = vld [vmem:[#allocation129_spill] sm:$0xff] }
  0xf0   :  { %1799 = vmatpush1.msra.mxu1 %v19728_v57  ;;  %1712 = vmatprep.subr.mxu0 %v15377_v50  ;;  %v19756_v50 = vld [vmem:[#allocation7_spill] sm:$0xff]  ;;  %v19811_v57 = vld [vmem:[#allocation125_spill] sm:$0xff] }
  0xf1   :  { %1801 = vmatprep.subr.mxu1 %v15172_v63  ;;  %1716 = vmatpush1.msra.mxu0 %v15386_v21  ;;  %v19755_v21 = vld [vmem:[#allocation6_spill] sm:$0xff]  ;;  %v19807_v63 = vld [vmem:[#allocation121_spill] sm:$0xff] }
  0xf2   :  { %1749 = vmatprep.mubr.f32.mxu0 %v19527_v35  ;;  %1803 = vmatpush1.msra.mxu1 %v15198_v22  ;;  %v19803_v22 = vld [vmem:[#allocation116_spill] sm:$0xff] }
  0xf3   :  { %1750 = vmatmul.mubr.f32.vlgmr.msra.gmra.mxu0 %v19527_v35  ;;  %1805 = vmatprep.subr.mxu1 %v15209_v59  ;;  %v19798_v59 = vld [vmem:[#allocation103_spill] sm:$0xff] }
  0xf4   :  { %1852 = vmatprep.mubr.f32.mxu1 %v19527_v35  ;;  %1807 = vmatpush1.msra.mxu1 %v15218_v25  ;;  %v19796_v25 = vld [vmem:[#allocation100_spill] sm:$0xff] }
  0xf5   :  { %49 = vperm.xlu0 %14147, %v40_v18   ;;  %1809 = vmatprep.subr.mxu1 %v15240_v55  ;;  %v19760_v18 = vld [vmem:[#allocation11_spill] sm:$0xff]  ;;  %v19794_v55 = vld [vmem:[#allocation97_spill] sm:$0xff] }
  0xf6   :  { %1882 = vmatprep.subr.mxu0 %v19755_v21  ;;  %1811 = vmatpush1.msra.mxu1 %v15242_v54  ;;  %v19792_v54 = vld [vmem:[#allocation94_spill] sm:$0xff] }
  0xf7   :  { %1884 = vmatpush1.msra.mxu0 %v19756_v50  ;;  %1813 = vmatprep.subr.mxu1 %v15254_v56  ;;  %v19790_v56 = vld [vmem:[#allocation88_spill] sm:$0xff] }
  0xf8   :  { %1886 = vmatprep.subr.mxu0 %v19757_v33  ;;  %1815 = vmatpush1.msra.mxu1 %v15268_v10  ;;  %v19788_v10 = vld [vmem:[#allocation84_spill] sm:$0xff] }
  0xf9   :  { %1888 = vmatpush1.msra.mxu0 %v19758_v15  ;;  %1817 = vmatprep.subr.mxu1 %v15289_v58  ;;  %v19786_v58 = vld [vmem:[#allocation78_spill] sm:$0xff] }
  0xfa   :  { %1890 = vmatprep.subr.mxu0 %v19759_v47  ;;  %1819 = vmatpush1.msra.mxu1 %v15301_v1  ;;  %v19784_v1 = vld [vmem:[#allocation74_spill] sm:$0xff] }
  0xfb   :  { %1892 = vmatpush1.msra.mxu0 %v19760_v18  ;;  %1853 = vmatmul.mubr.f32.vlgmr.msra.gmra.mxu1 %v19527_v35 }
  0xfc   :  { %1994 = vmatprep.subr.mxu1 %v19761_v2  ;;  %1894 = vmatprep.subr.mxu0 %v19763_v62  ;;  %v19772_v2 = vld [vmem:[#allocation49_spill] sm:$0xff] }
  0xfd   :  { %2000 = vmatpush1.msra.mxu1 %v19762_v29  ;;  %1896 = vmatpush1.msra.mxu0 %v19765_v31  ;;  %v19773_v29 = vld [vmem:[#allocation21_spill] sm:$0xff] }
  0xfe   :  { %2006 = vmatprep.subr.mxu1 %v19764_v39  ;;  %1898 = vmatprep.subr.mxu0 %v19767_v6  ;;  %v19775_v39 = vld [vmem:[#allocation23_spill] sm:$0xff] }
  0xff   :  { %2012 = vmatpush1.msra.mxu1 %v19766_v13  ;;  %1900 = vmatpush1.msra.mxu0 %v19769_v28  ;;  %v19777_v13 = vld [vmem:[#allocation27_spill] sm:$0xff] }
 0x100   :  { %2018 = vmatprep.subr.mxu1 %v19768_v16  ;;  %1902 = vmatprep.subr.mxu0 %v19771_v44  ;;  %v19779_v16 = vld [vmem:[#allocation30_spill] sm:$0xff] }
 0x101   :  { %2024 = vmatpush1.msra.mxu1 %v19770_v34  ;;  %1904 = vmatpush1.msra.mxu0 %v19773_v29  ;;  %v19781_v34 = vld [vmem:[#allocation35_spill] sm:$0xff] }
 0x102   :  { %2030 = vmatprep.subr.mxu1 %v19772_v2  ;;  %1906 = vmatprep.subr.mxu0 %v19775_v39  ;;  %v19783_v2 = vld [vmem:[#allocation41_spill] sm:$0xff] }
 0x103   :  { %2036 = vmatpush1.msra.mxu1 %v19774_v48  ;;  %1908 = vmatpush1.msra.mxu0 %v19777_v13  ;;  %v19785_v48 = vld [vmem:[#allocation44_spill] sm:$0xff] }
 0x104   :  { %2042 = vmatprep.subr.mxu1 %v19776_v53  ;;  %1910 = vmatprep.subr.mxu0 %v19779_v16  ;;  %v19787_v53 = vld [vmem:[#allocation48_spill] sm:$0xff] }
 0x105   :  { %2048 = vmatpush1.msra.mxu1 %v19778_v14  ;;  %1912 = vmatpush1.msra.mxu0 %v19781_v34  ;;  %v19789_v14 = vld [vmem:[#allocation52_spill] sm:$0xff] }
 0x106   :  { %2054 = vmatprep.subr.mxu1 %v19780_v37  ;;  %1914 = vmatprep.subr.mxu0 %v19783_v2  ;;  %v19791_v37 = vld [vmem:[#allocation55_spill] sm:$0xff] }
 0x107   :  { %2060 = vmatpush1.msra.mxu1 %v19782_v3  ;;  %1916 = vmatpush1.msra.mxu0 %v19785_v48  ;;  %v19793_v3 = vld [vmem:[#allocation58_spill] sm:$0xff] }
 0x108   :  { %2066 = vmatprep.subr.mxu1 %v19784_v1  ;;  %1918 = vmatprep.subr.mxu0 %v19787_v53  ;;  %v19795_v1 = vld [vmem:[#allocation64_spill] sm:$0xff] }
 0x109   :  { %2072 = vmatpush1.msra.mxu1 %v19786_v58  ;;  %1920 = vmatpush1.msra.mxu0 %v19789_v14  ;;  %v19797_v58 = vld [vmem:[#allocation69_spill] sm:$0xff] }
 0x10a   :  { %2078 = vmatprep.subr.mxu1 %v19788_v10  ;;  %1922 = vmatprep.subr.mxu0 %v19791_v37  ;;  %v19799_v10 = vld [vmem:[#allocation73_spill] sm:$0xff] }
 0x10b   :  { %2084 = vmatpush1.msra.mxu1 %v19790_v56  ;;  %1924 = vmatpush1.msra.mxu0 %v19793_v3  ;;  %v19801_v56 = vld [vmem:[#allocation110_spill] sm:$0xff] }
 0x10c   :  { %2090 = vmatprep.subr.mxu1 %v19792_v54  ;;  %1926 = vmatprep.subr.mxu0 %v19795_v1  ;;  %v19802_v54 = vld [vmem:[#allocation77_spill] sm:$0xff] }
 0x10d   :  { %2096 = vmatpush1.msra.mxu1 %v19794_v55  ;;  %1928 = vmatpush1.msra.mxu0 %v19797_v58  ;;  %v19804_v55 = vld [vmem:[#allocation80_spill] sm:$0xff] }
 0x10e   :  { %2102 = vmatprep.subr.mxu1 %v19796_v25  ;;  %1930 = vmatprep.subr.mxu0 %v19799_v10  ;;  %v19806_v25 = vld [vmem:[#allocation83_spill] sm:$0xff] }
 0x10f   :  { %2108 = vmatpush1.msra.mxu1 %v19798_v59  ;;  %2213 = vmatprep.mubr.f32.mxu1 %v19527_v35  ;;  %v19808_v59 = vld [vmem:[#allocation87_spill] sm:$0xff] }
 0x110   :  { %2114 = vmatprep.subr.mxu1 %v19800_v42  ;;  %1932 = vmatpush1.msra.mxu0 %v19802_v54  ;;  %v19810_v42 = vld [vmem:[#allocation92_spill] sm:$0xff] }
 0x111   :  { %2120 = vmatpush1.msra.mxu1 %v19801_v56  ;;  %1934 = vmatprep.subr.mxu0 %v19804_v55  ;;  %v19812_v56 = vld [vmem:[#allocation96_spill] sm:$0xff] }
 0x112   :  { %2126 = vmatprep.subr.mxu1 %v19803_v22  ;;  %1936 = vmatpush1.msra.mxu0 %v19806_v25  ;;  %v19814_v22 = vld [vmem:[#allocation101_spill] sm:$0xff] }
 0x113   :  { %2132 = vmatpush1.msra.mxu1 %v19805_v26  ;;  %1938 = vmatprep.subr.mxu0 %v19808_v59  ;;  %v19816_v26 = vld [vmem:[#allocation131_spill] sm:$0xff] }
 0x114   :  { %2138 = vmatprep.subr.mxu1 %v19807_v63  ;;  %1940 = vmatpush1.msra.mxu0 %v19810_v42  ;;  %v19817_v63 = vld [vmem:[#allocation15_spill] sm:$0xff] }
 0x115   :  { %2144 = vmatpush1.msra.mxu1 %v19809_v40  ;;  %1942 = vmatprep.subr.mxu0 %v19812_v56  ;;  %v19819_v40 = vld [vmem:[#allocation133_spill] sm:$0xff] }
 0x116   :  { %2150 = vmatprep.subr.mxu1 %v19811_v57  ;;  %1944 = vmatpush1.msra.mxu0 %v19814_v22  ;;  %v53_v57 = vlaneseq }
 0x117   :  { %2156 = vmatpush1.msra.mxu1 %v19813_v52  ;;  %1977 = vmatprep.mubr.f32.mxu0 %v19527_v35 }
 0x118   :  { %2162 = vmatprep.subr.mxu1 %v19815_v30  ;;  %2223 = vmatprep.subr.mxu0 %v19817_v63  ;;  %v54_v23 = vshrl.u32 %v53_v57, 7  ;;  %v41_v30 = vld [vmem:[%s18617_s1] sm:$0xf] }
 0x119   :  { %2168 = vmatpush1.msra.mxu1 %v19816_v26  ;;  %v81_v63 = vld [vmem:[%s18619_s3] sm:$0xf] }
 0x11a   :  { %2174 = vmatprep.subr.mxu1 %v19818_v5  ;;  %v63_v7 = vsub.s32 2, %v54_v23  ;;  %v67_v52 = vsub.s32 3, %v54_v23  ;;  %v55_v43 = vsub.s32 0, %v54_v23  ;;  %v59_v38 = vsub.s32 1, %v54_v23 }
 0x11b   :  { %2180 = vmatpush1.msra.mxu1 %v19819_v40 }
 0x11c   :  { %2359 = vmatprep.subr.mxu1 %v19755_v21  ;;  %v15646_v5 = vrot.slane %v41_v30, %v63_v7  ;;  %v68_v40 = vrot.slane %v41_v30, %v67_v52  ;;  %v56_v26 = vrot.slane %v41_v30, %v55_v43  ;;  %v60_v11 = vrot.slane %v41_v30, %v59_v38 }
 0x11d   :  { %v15648_v57 = vrot.slane %v81_v63, %v63_v7  ;;  %v86_v51 = vrot.slane %v81_v63, %v55_v43  ;;  %v15650_v60 = vrot.slane %v81_v63, %v67_v52  ;;  %v90_v27 = vrot.slane %v81_v63, %v59_v38  ;;  %v273_v43 = vpop.f32.mrf.mxu0  ;;  %v504_v7 = vpop.f32.mrf.mxu1 }
 0x11f   :  { %v275_v52 = vpop.f32.mrf.mxu0  ;;  %v506_v63 = vpop.f32.mrf.mxu1 }
 0x126   :  { %v639_v24 = vpop.f32.mrf.mxu0 }
 0x128   :  { %v641_v4 = vpop.f32.mrf.mxu0 }
 0x132   :  { %v742_v38 = vpop.f32.mrf.mxu1 }
 0x134   :  { %v744_v61 = vpop.f32.mrf.mxu1 }
 0x14a   :  { %v909_v41 = vpop.f32.mrf.mxu0 }
 0x158   :  { %v15641_v20 = vpop.permute.xlu0 %44 }
 0x159   :  { %v73_v9 = vmul.f32 %v56_v26, %v15641_v20 }
 0x170   :  { %v50_v23 = vpop.permute.xlu0 %49 }
 0x171   :  { %v77_v46 = vmul.f32 %v56_v26, %v50_v23  ;;  %v78_v32 = vmul.f32 %v60_v11, %v50_v23  ;;  %v79_v36 = vmul.f32 %v15646_v5, %v50_v23  ;;  %v80_v0 = vmul.f32 %v68_v40, %v50_v23 }
 0x172   :  { %v507_v23 = vadd.f32 %v506_v63, %v275_v52  ;;  %v15667_v63 = vadd.f32 %v86_v51, %v73_v9 }
 0x173   :  { %v15653_v12 = vadd.f32 %v86_v51, %v77_v46  ;;  %v15655_v17 = vadd.f32 %v90_v27, %v78_v32  ;;  %v15658_v19 = vadd.f32 %v15648_v57, %v79_v36  ;;  %v15661_v30 = vadd.f32 %v15650_v60, %v80_v0  ;;  %v1012_v46 = vpop.f32.mrf.mxu1 }
 0x174   :  { %v642_v32 = vadd.f32 %v641_v4, %v507_v23  ;;  %19825 = vst [vmem:[#allocation12_spill] sm:$0xff] %v15667_v63 }
 0x175   :  { %19820 = vst [vmem:[#allocation7_spill] sm:$0xff] %v15653_v12  ;;  %19821 = vst [vmem:[#allocation8_spill] sm:$0xff] %v15655_v17  ;;  %v505_v12 = vadd.f32 %v504_v7, %v273_v43  ;;  %v911_v17 = vpop.f32.mrf.mxu0 }
 0x176   :  { %19822 = vst [vmem:[#allocation9_spill] sm:$0xff] %v15658_v19  ;;  %19823 = vst [vmem:[#allocation10_spill] sm:$0xff] %v15661_v30  ;;  %v745_v36 = vadd.f32 %v744_v61, %v642_v32  ;;  %v74_v19 = vmul.f32 %v60_v11, %v15641_v20  ;;  %v1014_v30 = vpop.f32.mrf.mxu1 }
 0x177   :  { %v640_v49 = vadd.f32 %v639_v24, %v505_v12  ;;  %v1115_v0 = vpop.f32.mrf.mxu0 }
 0x178   :  { %v912_v8 = vadd.f32 %v911_v17, %v745_v36  ;;  %v15665_v22 = vadd.f32 %v90_v27, %v74_v19  ;;  %v75_v36 = vmul.f32 %v15646_v5, %v15641_v20 }
 0x179   :  { %v743_v45 = vadd.f32 %v742_v38, %v640_v49  ;;  %v1117_v42 = vpop.f32.mrf.mxu0 }
 0x17a   :  { %19824 = vst [vmem:[#allocation11_spill] sm:$0xff] %v15665_v22  ;;  %v1015_v56 = vadd.f32 %v1014_v30, %v912_v8 }
 0x17b   :  { %v910_v21 = vadd.f32 %v909_v41, %v743_v45  ;;  %v1346_v52 = vpop.f32.mrf.mxu1 }
 0x17c   :  { %v1860_v12 = vadd.f32 %v1015_v56, %v15665_v22  ;;  %v1347_v8 = vadd.f32 %v1346_v52, %v1115_v0  ;;  %v19945_v22 = vld [vmem:[#allocation258_spill] sm:$0xff] }
 0x17d   :  { %v1013_v4 = vadd.f32 %v1012_v46, %v910_v21  ;;  %v1348_v24 = vpop.f32.mrf.mxu1  ;;  %v76_v21 = vmul.f32 %v68_v40, %v15641_v20 }
 0x17e   :  { %v1864_v17 = vmul.f32 0.5, %v1860_v12  ;;  %v1349_v26 = vadd.f32 %v1348_v24, %v1117_v42 }
 0x17f   :  { %v1859_v61 = vadd.f32 %v1013_v4, %v15667_v63  ;;  %v15673_v46 = vadd.f32 %v15650_v60, %v76_v21  ;;  %v15679_v4 = vadd.f32 %v15648_v57, %v75_v36  ;;  %v19835_v36 = vld [vmem:[#allocation40_spill] sm:$0xff]  ;;  %v19943_v63 = vld [vmem:[#allocation257_spill] sm:$0xff] }
 0x180   :  { %14148 = vtanh.f32 %v1864_v17 }
 0x181   :  { %v1863_v45 = vmul.f32 0.5, %v1859_v61  ;;  %19826 = vst [vmem:[#allocation13_spill] sm:$0xff] %v15673_v46  ;;  %19827 = vst [vmem:[#allocation14_spill] sm:$0xff] %v15679_v4 }
 0x183   :  { %14150 = vtanh.f32 %v1863_v45 }
 0x18d   :  { %v1481_v43 = vpop.f32.mrf.mxu0 }
 0x18e   :  { %v1482_v51 = vadd.f32 %v1481_v43, %v1347_v8  ;;  %v14149_v43 = vpop.eup %14148 }
 0x18f   :  { %v1483_v11 = vpop.f32.mrf.mxu0  ;;  %v1870_v24 = vmul.f32 0.5, %v14149_v43  ;;  %v19839_v43 = vld [vmem:[#allocation54_spill] sm:$0xff] }
 0x190   :  { %v1484_v27 = vadd.f32 %v1483_v11, %v1349_v26  ;;  %v14151_v12 = vpop.eup %14150 }
 0x191   :  { %v1869_v60 = vmul.f32 0.5, %v14151_v12  ;;  %v1873_v11 = vadd.f32 0.5, %v1870_v24  ;;  %v19840_v12 = vld [vmem:[#allocation57_spill] sm:$0xff] }
 0x192   :  { %v19841_v24 = vld [vmem:[#allocation61_spill] sm:$0xff] }
 0x19b   :  { %v1584_v49 = vpop.f32.mrf.mxu1 }
 0x19c   :  { %v1585_v38 = vadd.f32 %v1584_v49, %v1482_v51  ;;  %v1872_v49 = vadd.f32 0.5, %v1869_v60  ;;  %v19843_v60 = vld [vmem:[#allocation70_spill] sm:$0xff] }
 0x19d   :  { %v1586_v19 = vpop.f32.mrf.mxu1 }
 0x19e   :  { %v1587_v9 = vadd.f32 %v1586_v19, %v1484_v27 }
 0x1b3   :  { %v1751_v7 = vpop.f32.mrf.mxu0 }
 0x1b4   :  { %v1752_v42 = vadd.f32 %v1751_v7, %v1585_v38  ;;  %v1876_v7 = vmul.f32 0.0, %v1873_v11  ;;  %v19831_v38 = vld [vmem:[#allocation22_spill] sm:$0xff]  ;;  %v19844_v11 = vld [vmem:[#allocation76_spill] sm:$0xff] }
 0x1b5   :  { %v1753_v41 = vpop.f32.mrf.mxu0 }
 0x1b6   :  { %v1754_v30 = vadd.f32 %v1753_v41, %v1587_v9 }
 0x1bb   :  { %v1854_v56 = vpop.f32.mrf.mxu1 }
 0x1bc   :  { %v1855_v52 = vadd.f32 %v1854_v56, %v1752_v42  ;;  %v19829_v56 = vld [vmem:[#allocation17_spill] sm:$0xff]  ;;  %v19834_v42 = vld [vmem:[#allocation32_spill] sm:$0xff] }
 0x1bd   :  { %v1856_v23 = vpop.f32.mrf.mxu1 }
 0x1be   :  { %v1857_v32 = vadd.f32 %v1856_v23, %v1754_v30  ;;  %v1861_v40 = vadd.f32 %v1855_v52, %v15679_v4  ;;  %v19830_v30 = vld [vmem:[#allocation19_spill] sm:$0xff]  ;;  %v19832_v23 = vld [vmem:[#allocation26_spill] sm:$0xff] }
 0x1bf   :  { %v19837_v52 = vld [vmem:[#allocation47_spill] sm:$0xff] }
 0x1c0   :  { %v1862_v0 = vadd.f32 %v1857_v32, %v15673_v46  ;;  %v1865_v61 = vmul.f32 0.5, %v1861_v40  ;;  %v19833_v32 = vld [vmem:[#allocation29_spill] sm:$0xff]  ;;  %v19838_v40 = vld [vmem:[#allocation51_spill] sm:$0xff]  ;;  %v19941_v46 = vld [vmem:[#allocation256_spill] sm:$0xff] }
 0x1c1   :  { %v19939_v4 = vld [vmem:[#allocation255_spill] sm:$0xff] }
 0x1c2   :  { %14152 = vtanh.f32 %v1862_v0  ;;  %v19836_v0 = vld [vmem:[#allocation43_spill] sm:$0xff] }
 0x1c3   :  { %14154 = vtanh.f32 %v1865_v61  ;;  %v19842_v61 = vld [vmem:[#allocation67_spill] sm:$0xff] }
 0x1cf   :  { %v14153_v17 = vpop.eup %14152 }
 0x1d0   :  { %v1877_v20 = vmul.f32 %v14153_v17, %v1872_v49  ;;  %v14155_v57 = vpop.eup %14154  ;;  %v19845_v49 = vld [vmem:[#allocation79_spill] sm:$0xff]  ;;  %v19846_v17 = vld [vmem:[#allocation82_spill] sm:$0xff] }
 0x1d1   :  { %v1871_v26 = vmul.f32 0.5, %v14155_v57  ;;  %v19849_v57 = vld [vmem:[#allocation93_spill] sm:$0xff] }
 0x1d2   :  { %v15682_v5 = vadd.f32 %v1877_v20, %v1876_v7  ;;  %v19847_v7 = vld [vmem:[#allocation86_spill] sm:$0xff] }
 0x1d3   :  { %v1874_v45 = vadd.f32 0.5, %v1871_v26  ;;  %v19848_v20 = vld [vmem:[#allocation90_spill] sm:$0xff]  ;;  %v19850_v26 = vld [vmem:[#allocation92_spill] sm:$0xff] }
 0x1d4   :  { %19828 = vst [vmem:[#allocation16_spill] sm:$0xff] %v15682_v5  ;;  %14156 = vtanh.f32 %v15682_v5  ;;  %v19937_v5 = vld [vmem:[#allocation253_spill] sm:$0xff] }
 0x1e1   :  { %v14157_v19 = vpop.eup %14156 }
 0x1e2   :  { %v1880_v27 = vmul.f32 %v14157_v19, %v1874_v45  ;;  %v19851_v45 = vld [vmem:[#allocation99_spill] sm:$0xff]  ;;  %v19852_v19 = vld [vmem:[#allocation96_spill] sm:$0xff] }
 0x1e4   :  { %v15685_v8 = vand.u32 4294901760, %v1880_v27 }
 0x1e6   :  { %2215 = vmatmul.mubr.f32.vlgmr.msra.gmra.mxu1 %v15685_v8  ;;  %v15689_v41 = vsub.f32 %v1880_v27, %v15685_v8  ;;  %v19853_v27 = vld [vmem:[#allocation102_spill] sm:$0xff] }
 0x1e7   :  { %2361 = vmatpush1.msra.mxu1 %v19756_v50  ;;  %2454 = vmatprep.mubr.f32.mxu1 %v19527_v35 }
 0x1e8   :  { %2363 = vmatprep.subr.mxu1 %v19757_v33  ;;  %v15695_v9 = vand.u32 4294901760, %v15689_v41 }
 0x1e9   :  { %2365 = vmatpush1.msra.mxu1 %v19758_v15 }
 0x1ea   :  { %2367 = vmatprep.subr.mxu1 %v19759_v47  ;;  %v1981_v21 = vsub.f32 %v15689_v41, %v15695_v9 }
 0x1eb   :  { %2369 = vmatpush1.msra.mxu1 %v19760_v18 }
 0x1ec   :  { %2371 = vmatprep.subr.mxu1 %v19763_v62  ;;  %v15703_v51 = vand.u32 4294901760, %v1981_v21  ;;  %v19854_v21 = vld [vmem:[#allocation101_spill] sm:$0xff] }
 0x1ed   :  { %2373 = vmatpush1.msra.mxu1 %v19765_v31 }
 0x1ee   :  { %2375 = vmatprep.subr.mxu1 %v19767_v6  ;;  %1983 = vmatmul.mubr.f32.vlgmr.msra.gmra.mxu0 %v15703_v51 }
 0x1ef   :  { %2226 = vmatpush1.msra.mxu0 %v19829_v56  ;;  %2377 = vmatpush1.msra.mxu1 %v19769_v28  ;;  %v19935_v56 = vld [vmem:[#allocation251_spill] sm:$0xff] }
 0x1f0   :  { %2229 = vmatprep.subr.mxu0 %v19830_v30  ;;  %2379 = vmatprep.subr.mxu1 %v19771_v44  ;;  %v19933_v30 = vld [vmem:[#allocation249_spill] sm:$0xff] }
 0x1f1   :  { %2232 = vmatpush1.msra.mxu0 %v19831_v38  ;;  %2381 = vmatpush1.msra.mxu1 %v19773_v29  ;;  %v19931_v38 = vld [vmem:[#allocation247_spill] sm:$0xff] }
 0x1f2   :  { %2235 = vmatprep.subr.mxu0 %v19832_v23  ;;  %2383 = vmatprep.subr.mxu1 %v19775_v39  ;;  %v19929_v23 = vld [vmem:[#allocation244_spill] sm:$0xff] }
 0x1f3   :  { %2238 = vmatpush1.msra.mxu0 %v19833_v32  ;;  %2385 = vmatpush1.msra.mxu1 %v19777_v13  ;;  %v19927_v32 = vld [vmem:[#allocation241_spill] sm:$0xff] }
 0x1f4   :  { %2241 = vmatprep.subr.mxu0 %v19834_v42  ;;  %2387 = vmatprep.subr.mxu1 %v19779_v16  ;;  %v19925_v42 = vld [vmem:[#allocation238_spill] sm:$0xff] }
 0x1f5   :  { %2244 = vmatpush1.msra.mxu0 %v19835_v36  ;;  %2389 = vmatpush1.msra.mxu1 %v19781_v34  ;;  %v19923_v36 = vld [vmem:[#allocation236_spill] sm:$0xff] }
 0x1f6   :  { %2247 = vmatprep.subr.mxu0 %v19836_v0  ;;  %2391 = vmatprep.subr.mxu1 %v19783_v2  ;;  %v19921_v0 = vld [vmem:[#allocation227_spill] sm:$0xff] }
 0x1f7   :  { %2250 = vmatpush1.msra.mxu0 %v19837_v52  ;;  %2393 = vmatpush1.msra.mxu1 %v19785_v48  ;;  %v19919_v52 = vld [vmem:[#allocation224_spill] sm:$0xff] }
 0x1f8   :  { %2253 = vmatprep.subr.mxu0 %v19838_v40  ;;  %2395 = vmatprep.subr.mxu1 %v19787_v53  ;;  %v19917_v40 = vld [vmem:[#allocation220_spill] sm:$0xff] }
 0x1f9   :  { %2256 = vmatpush1.msra.mxu0 %v19839_v43  ;;  %2397 = vmatpush1.msra.mxu1 %v19789_v14  ;;  %v19915_v43 = vld [vmem:[#allocation213_spill] sm:$0xff] }
 0x1fa   :  { %2259 = vmatprep.subr.mxu0 %v19840_v12  ;;  %2399 = vmatprep.subr.mxu1 %v19791_v37  ;;  %v19899_v12 = vld [vmem:[#allocation185_spill] sm:$0xff] }
 0x1fb   :  { %2262 = vmatpush1.msra.mxu0 %v19841_v24  ;;  %2401 = vmatpush1.msra.mxu1 %v19793_v3  ;;  %v19897_v24 = vld [vmem:[#allocation179_spill] sm:$0xff] }
 0x1fc   :  { %2265 = vmatprep.subr.mxu0 %v19842_v61  ;;  %2403 = vmatprep.subr.mxu1 %v19795_v1  ;;  %v19896_v61 = vld [vmem:[#allocation120_spill] sm:$0xff] }
 0x1fd   :  { %2268 = vmatpush1.msra.mxu0 %v19843_v60  ;;  %2405 = vmatpush1.msra.mxu1 %v19797_v58  ;;  %v19894_v60 = vld [vmem:[#allocation117_spill] sm:$0xff] }
 0x1fe   :  { %2271 = vmatprep.subr.mxu0 %v19844_v11  ;;  %2407 = vmatprep.subr.mxu1 %v19799_v10  ;;  %v19892_v11 = vld [vmem:[#allocation114_spill] sm:$0xff] }
 0x1ff   :  { %2274 = vmatpush1.msra.mxu0 %v19845_v49  ;;  %2409 = vmatpush1.msra.mxu1 %v19802_v54  ;;  %v19862_v49 = vld [vmem:[#allocation123_spill] sm:$0xff] }
 0x200   :  { %2277 = vmatprep.subr.mxu0 %v19846_v17  ;;  %2411 = vmatprep.subr.mxu1 %v19804_v55  ;;  %v19855_v17 = vld [vmem:[#allocation105_spill] sm:$0xff] }
 0x201   :  { %2280 = vmatpush1.msra.mxu0 %v19847_v7  ;;  %2413 = vmatpush1.msra.mxu1 %v19806_v25  ;;  %v19856_v7 = vld [vmem:[#allocation6_spill] sm:$0xff] }
 0x202   :  { %2283 = vmatprep.subr.mxu0 %v19848_v20  ;;  %2415 = vmatprep.subr.mxu1 %v19808_v59  ;;  %v19857_v20 = vld [vmem:[#allocation108_spill] sm:$0xff] }
 0x203   :  { %2286 = vmatpush1.msra.mxu0 %v19849_v57  ;;  %2417 = vmatpush1.msra.mxu1 %v19850_v26  ;;  %v19858_v57 = vld [vmem:[#allocation109_spill] sm:$0xff] }
 0x204   :  { %2289 = vmatprep.subr.mxu0 %v19851_v45  ;;  %2419 = vmatprep.subr.mxu1 %v19852_v19  ;;  %v19859_v45 = vld [vmem:[#allocation112_spill] sm:$0xff] }
 0x205   :  { %2292 = vmatpush1.msra.mxu0 %v19853_v27  ;;  %2421 = vmatpush1.msra.mxu1 %v19854_v21  ;;  %v19860_v27 = vld [vmem:[#allocation115_spill] sm:$0xff] }
 0x206   :  { %2295 = vmatprep.subr.mxu0 %v19855_v17  ;;  %2458 = vmatmul.mubr.f32.vlgmr.msra.gmra.mxu1 %v15695_v9  ;;  %v19861_v17 = vld [vmem:[#allocation118_spill] sm:$0xff] }
 0x207   :  { %2633 = vmatprep.subr.mxu1 %v19856_v7  ;;  %2298 = vmatpush1.msra.mxu0 %v19857_v20  ;;  %v19863_v20 = vld [vmem:[#allocation126_spill] sm:$0xff] }
 0x208   :  { %2635 = vmatpush1.msra.mxu1 %v19756_v50  ;;  %2301 = vmatprep.subr.mxu0 %v19858_v57  ;;  %v19869_v57 = vld [vmem:[#allocation34_spill] sm:$0xff] }
 0x209   :  { %2637 = vmatprep.subr.mxu1 %v19757_v33  ;;  %2304 = vmatpush1.msra.mxu0 %v19859_v45  ;;  %v19864_v45 = vld [vmem:[#allocation20_spill] sm:$0xff] }
 0x20a   :  { %2639 = vmatpush1.msra.mxu1 %v19758_v15  ;;  %2307 = vmatprep.subr.mxu0 %v19860_v27  ;;  %v19865_v27 = vld [vmem:[#allocation24_spill] sm:$0xff] }
 0x20b   :  { %2641 = vmatprep.subr.mxu1 %v19759_v47  ;;  %2310 = vmatpush1.msra.mxu0 %v19861_v17  ;;  %v19866_v17 = vld [vmem:[#allocation25_spill] sm:$0xff] }
 0x20c   :  { %2643 = vmatpush1.msra.mxu1 %v19760_v18  ;;  %2313 = vmatprep.subr.mxu0 %v19862_v49  ;;  %v19867_v49 = vld [vmem:[#allocation28_spill] sm:$0xff] }
 0x20d   :  { %2645 = vmatprep.subr.mxu1 %v19763_v62  ;;  %2316 = vmatpush1.msra.mxu0 %v19863_v20  ;;  %v19868_v20 = vld [vmem:[#allocation31_spill] sm:$0xff] }
 0x20e   :  { %2349 = vmatprep.mubr.f32.mxu0 %v19527_v35  ;;  %2647 = vmatpush1.msra.mxu1 %v19765_v31 }
 0x20f   :  { %2352 = vmatmul.mubr.f32.vlgmr.msra.gmra.mxu0 %v15689_v41  ;;  %2467 = vmatprep.subr.mxu0 %v19864_v45  ;;  %v19870_v45 = vld [vmem:[#allocation38_spill] sm:$0xff] }
 0x210   :  { %2649 = vmatprep.subr.mxu1 %v19767_v6  ;;  %2471 = vmatpush1.msra.mxu0 %v19865_v27  ;;  %v19871_v27 = vld [vmem:[#allocation46_spill] sm:$0xff] }
 0x211   :  { %2651 = vmatpush1.msra.mxu1 %v19769_v28  ;;  %2475 = vmatprep.subr.mxu0 %v19866_v17  ;;  %v19872_v17 = vld [vmem:[#allocation50_spill] sm:$0xff] }
 0x212   :  { %2653 = vmatprep.subr.mxu1 %v19771_v44  ;;  %2479 = vmatpush1.msra.mxu0 %v19867_v49  ;;  %v19873_v49 = vld [vmem:[#allocation53_spill] sm:$0xff] }
 0x213   :  { %2655 = vmatpush1.msra.mxu1 %v19773_v29  ;;  %2483 = vmatprep.subr.mxu0 %v19868_v20  ;;  %v19874_v20 = vld [vmem:[#allocation56_spill] sm:$0xff] }
 0x214   :  { %2657 = vmatprep.subr.mxu1 %v19775_v39  ;;  %2487 = vmatpush1.msra.mxu0 %v19869_v57  ;;  %v19875_v57 = vld [vmem:[#allocation60_spill] sm:$0xff] }
 0x215   :  { %2659 = vmatpush1.msra.mxu1 %v19777_v13  ;;  %2491 = vmatprep.subr.mxu0 %v19870_v45  ;;  %v19876_v45 = vld [vmem:[#allocation63_spill] sm:$0xff] }
 0x216   :  { %2661 = vmatprep.subr.mxu1 %v19779_v16  ;;  %2495 = vmatpush1.msra.mxu0 %v19871_v27  ;;  %v19877_v27 = vld [vmem:[#allocation66_spill] sm:$0xff] }
 0x217   :  { %2663 = vmatpush1.msra.mxu1 %v19781_v34  ;;  %2499 = vmatprep.subr.mxu0 %v19872_v17  ;;  %v19878_v17 = vld [vmem:[#allocation72_spill] sm:$0xff] }
 0x218   :  { %2665 = vmatprep.subr.mxu1 %v19783_v2  ;;  %2503 = vmatpush1.msra.mxu0 %v19873_v49  ;;  %v19879_v49 = vld [vmem:[#allocation75_spill] sm:$0xff] }
 0x219   :  { %2667 = vmatpush1.msra.mxu1 %v19785_v48  ;;  %2507 = vmatprep.subr.mxu0 %v19874_v20  ;;  %v19880_v20 = vld [vmem:[#allocation81_spill] sm:$0xff] }
 0x21a   :  { %2669 = vmatprep.subr.mxu1 %v19787_v53  ;;  %2511 = vmatpush1.msra.mxu0 %v19875_v57  ;;  %v19881_v57 = vld [vmem:[#allocation85_spill] sm:$0xff] }
 0x21b   :  { %2671 = vmatpush1.msra.mxu1 %v19789_v14  ;;  %2515 = vmatprep.subr.mxu0 %v19876_v45  ;;  %v19882_v45 = vld [vmem:[#allocation89_spill] sm:$0xff] }
 0x21c   :  { %2673 = vmatprep.subr.mxu1 %v19791_v37  ;;  %2519 = vmatpush1.msra.mxu0 %v19877_v27  ;;  %v19883_v27 = vld [vmem:[#allocation91_spill] sm:$0xff] }
 0x21d   :  { %2675 = vmatpush1.msra.mxu1 %v19793_v3  ;;  %2523 = vmatprep.subr.mxu0 %v19878_v17  ;;  %v19884_v17 = vld [vmem:[#allocation95_spill] sm:$0xff] }
 0x21e   :  { %2677 = vmatprep.subr.mxu1 %v19795_v1  ;;  %2527 = vmatpush1.msra.mxu0 %v19879_v49  ;;  %v19885_v49 = vld [vmem:[#allocation98_spill] sm:$0xff]  ;;  %v19964_v1 = vld [vmem:[#allocation145_spill] sm:$0xff] }
 0x21f   :  { %2679 = vmatpush1.msra.mxu1 %v19797_v58  ;;  %2531 = vmatprep.subr.mxu0 %v19880_v20  ;;  %v19886_v20 = vld [vmem:[#allocation104_spill] sm:$0xff] }
 0x220   :  { %2681 = vmatprep.subr.mxu1 %v19799_v10  ;;  %2535 = vmatpush1.msra.mxu0 %v19881_v57  ;;  %v19887_v57 = vld [vmem:[#allocation107_spill] sm:$0xff]  ;;  %v19962_v10 = vld [vmem:[#allocation142_spill] sm:$0xff]  ;;  %v19963_v58 = vld [vmem:[#allocation144_spill] sm:$0xff] }
 0x221   :  { %2683 = vmatpush1.msra.mxu1 %v19802_v54  ;;  %2539 = vmatprep.subr.mxu0 %v19882_v45  ;;  %v19890_v45 = vld [vmem:[#allocation113_spill] sm:$0xff] }
 0x222   :  { %2685 = vmatprep.subr.mxu1 %v19804_v55  ;;  %2543 = vmatpush1.msra.mxu0 %v19883_v27  ;;  %v19888_v27 = vld [vmem:[#allocation111_spill] sm:$0xff]  ;;  %v19961_v54 = vld [vmem:[#allocation141_spill] sm:$0xff] }
 0x223   :  { %2687 = vmatpush1.msra.mxu1 %v19806_v25  ;;  %2547 = vmatprep.subr.mxu0 %v19884_v17  ;;  %v19889_v17 = vld [vmem:[#allocation168_spill] sm:$0xff]  ;;  %v19959_v25 = vld [vmem:[#allocation233_spill] sm:$0xff]  ;;  %v19960_v55 = vld [vmem:[#allocation139_spill] sm:$0xff] }
 0x224   :  { %2689 = vmatprep.subr.mxu1 %v19808_v59  ;;  %2551 = vmatpush1.msra.mxu0 %v19885_v49  ;;  %v19891_v49 = vld [vmem:[#allocation172_spill] sm:$0xff]  ;;  %v19958_v59 = vld [vmem:[#allocation230_spill] sm:$0xff] }
 0x225   :  { %2691 = vmatpush1.msra.mxu1 %v19850_v26  ;;  %2555 = vmatprep.subr.mxu0 %v19886_v20  ;;  %v19893_v20 = vld [vmem:[#allocation173_spill] sm:$0xff] }
 0x226   :  { %2693 = vmatprep.subr.mxu1 %v19852_v19  ;;  %2559 = vmatpush1.msra.mxu0 %v19887_v57  ;;  %v19895_v57 = vld [vmem:[#allocation178_spill] sm:$0xff]  ;;  %v19949_v19 = vld [vmem:[#allocation260_spill] sm:$0xff]  ;;  %v19951_v26 = vld [vmem:[#allocation261_spill] sm:$0xff] }
 0x227   :  { %2695 = vmatpush1.msra.mxu1 %v19854_v21  ;;  %2728 = vmatprep.mubr.f32.mxu1 %v19527_v35  ;;  %v19947_v21 = vld [vmem:[#allocation259_spill] sm:$0xff] }
 0x228   :  { %2563 = vmatprep.subr.mxu0 %v19888_v27  ;;  %2730 = vmatmul.mubr.f32.vlgmr.msra.gmra.mxu1 %v15685_v8  ;;  %v19898_v27 = vld [vmem:[#allocation122_spill] sm:$0xff] }
 0x229   :  { %2849 = vmatprep.subr.mxu1 %v19889_v17  ;;  %2567 = vmatpush1.msra.mxu0 %v19890_v45  ;;  %v19900_v17 = vld [vmem:[#allocation128_spill] sm:$0xff] }
 0x22a   :  { %2855 = vmatpush1.msra.mxu1 %v19891_v49  ;;  %2571 = vmatprep.subr.mxu0 %v19892_v11  ;;  %v19901_v45 = vld [vmem:[#allocation188_spill] sm:$0xff]  ;;  %v19902_v49 = vld [vmem:[#allocation130_spill] sm:$0xff] }
 0x22b   :  { %2861 = vmatprep.subr.mxu1 %v19893_v20  ;;  %2575 = vmatpush1.msra.mxu0 %v19894_v60  ;;  %v19903_v20 = vld [vmem:[#allocation193_spill] sm:$0xff]  ;;  %v19912_v60 = vld [vmem:[#allocation138_spill] sm:$0xff]  ;;  %v19914_v11 = vld [vmem:[#allocation140_spill] sm:$0xff] }
 0x22c   :  { %2867 = vmatpush1.msra.mxu1 %v19895_v57  ;;  %2579 = vmatprep.subr.mxu0 %v19896_v61  ;;  %v19904_v57 = vld [vmem:[#allocation134_spill] sm:$0xff]  ;;  %v19905_v61 = vld [vmem:[#allocation196_spill] sm:$0xff] }
 0x22d   :  { %2873 = vmatprep.subr.mxu1 %v19897_v24  ;;  %2583 = vmatpush1.msra.mxu0 %v19898_v27  ;;  %v19906_v24 = vld [vmem:[#allocation135_spill] sm:$0xff]  ;;  %v19907_v27 = vld [vmem:[#allocation200_spill] sm:$0xff] }
 0x22e   :  { %2879 = vmatpush1.msra.mxu1 %v19899_v12  ;;  %2587 = vmatprep.subr.mxu0 %v19900_v17  ;;  %v19908_v12 = vld [vmem:[#allocation136_spill] sm:$0xff]  ;;  %v19909_v17 = vld [vmem:[#allocation203_spill] sm:$0xff] }
 0x22f   :  { %2885 = vmatprep.subr.mxu1 %v19901_v45  ;;  %2591 = vmatpush1.msra.mxu0 %v19902_v49  ;;  %v19910_v45 = vld [vmem:[#allocation137_spill] sm:$0xff]  ;;  %v19911_v49 = vld [vmem:[#allocation204_spill] sm:$0xff] }
 0x230   :  { %2624 = vmatprep.mubr.f32.mxu0 %v19527_v35  ;;  %2891 = vmatpush1.msra.mxu1 %v19903_v20  ;;  %v19913_v20 = vld [vmem:[#allocation207_spill] sm:$0xff] }
 0x231   :  { %2626 = vmatmul.mubr.f32.vlgmr.msra.gmra.mxu0 %v15685_v8  ;;  %2737 = vmatprep.subr.mxu0 %v19904_v57 }
 0x232   :  { %2897 = vmatprep.subr.mxu1 %v19905_v61  ;;  %2739 = vmatpush1.msra.mxu0 %v19906_v24  ;;  %v19916_v61 = vld [vmem:[#allocation143_spill] sm:$0xff] }
 0x233   :  { %2903 = vmatpush1.msra.mxu1 %v19907_v27  ;;  %2741 = vmatprep.subr.mxu0 %v19908_v12  ;;  %v19918_v27 = vld [vmem:[#allocation146_spill] sm:$0xff] }
 0x234   :  { %2909 = vmatprep.subr.mxu1 %v19909_v17  ;;  %2743 = vmatpush1.msra.mxu0 %v19910_v45  ;;  %v19920_v17 = vld [vmem:[#allocation148_spill] sm:$0xff] }
 0x235   :  { %2915 = vmatpush1.msra.mxu1 %v19911_v49  ;;  %2745 = vmatprep.subr.mxu0 %v19912_v60  ;;  %v19922_v49 = vld [vmem:[#allocation152_spill] sm:$0xff] }
 0x236   :  { %2921 = vmatprep.subr.mxu1 %v19913_v20  ;;  %2747 = vmatpush1.msra.mxu0 %v19914_v11  ;;  %v19924_v20 = vld [vmem:[#allocation155_spill] sm:$0xff] }
 0x237   :  { %2927 = vmatpush1.msra.mxu1 %v19915_v43  ;;  %2749 = vmatprep.subr.mxu0 %v19916_v61  ;;  %v19926_v43 = vld [vmem:[#allocation156_spill] sm:$0xff] }
 0x238   :  { %2933 = vmatprep.subr.mxu1 %v19917_v40  ;;  %2751 = vmatpush1.msra.mxu0 %v19918_v27  ;;  %v19928_v40 = vld [vmem:[#allocation158_spill] sm:$0xff] }
 0x239   :  { %2939 = vmatpush1.msra.mxu1 %v19919_v52  ;;  %2753 = vmatprep.subr.mxu0 %v19920_v17  ;;  %v19930_v52 = vld [vmem:[#allocation162_spill] sm:$0xff] }
 0x23a   :  { %2945 = vmatprep.subr.mxu1 %v19921_v0  ;;  %2755 = vmatpush1.msra.mxu0 %v19922_v49  ;;  %v19932_v0 = vld [vmem:[#allocation165_spill] sm:$0xff] }
 0x23b   :  { %2951 = vmatpush1.msra.mxu1 %v19923_v36  ;;  %2757 = vmatprep.subr.mxu0 %v19924_v20  ;;  %v19934_v36 = vld [vmem:[#allocation169_spill] sm:$0xff] }
 0x23c   :  { %2957 = vmatprep.subr.mxu1 %v19925_v42  ;;  %2759 = vmatpush1.msra.mxu0 %v19926_v43  ;;  %v19936_v42 = vld [vmem:[#allocation175_spill] sm:$0xff] }
 0x23d   :  { %2963 = vmatpush1.msra.mxu1 %v19927_v32  ;;  %2761 = vmatprep.subr.mxu0 %v19928_v40  ;;  %v19938_v32 = vld [vmem:[#allocation182_spill] sm:$0xff] }
 0x23e   :  { %2969 = vmatprep.subr.mxu1 %v19929_v23  ;;  %2763 = vmatpush1.msra.mxu0 %v19930_v52  ;;  %v19940_v23 = vld [vmem:[#allocation186_spill] sm:$0xff] }
 0x23f   :  { %2975 = vmatpush1.msra.mxu1 %v19931_v38  ;;  %2765 = vmatprep.subr.mxu0 %v19932_v0  ;;  %v19942_v38 = vld [vmem:[#allocation191_spill] sm:$0xff] }
 0x240   :  { %2981 = vmatprep.subr.mxu1 %v19933_v30  ;;  %2767 = vmatpush1.msra.mxu0 %v19934_v36  ;;  %v19944_v30 = vld [vmem:[#allocation192_spill] sm:$0xff] }
 0x241   :  { %2987 = vmatpush1.msra.mxu1 %v19935_v56  ;;  %2769 = vmatprep.subr.mxu0 %v19936_v42  ;;  %v19946_v56 = vld [vmem:[#allocation194_spill] sm:$0xff] }
 0x242   :  { %2993 = vmatprep.subr.mxu1 %v19937_v5  ;;  %2771 = vmatpush1.msra.mxu0 %v19938_v32  ;;  %v19948_v5 = vld [vmem:[#allocation197_spill] sm:$0xff] }
 0x243   :  { %2999 = vmatpush1.msra.mxu1 %v19939_v4  ;;  %2773 = vmatprep.subr.mxu0 %v19940_v23  ;;  %v19950_v4 = vld [vmem:[#allocation205_spill] sm:$0xff] }
 0x244   :  { %3005 = vmatprep.subr.mxu1 %v19941_v46  ;;  %2775 = vmatpush1.msra.mxu0 %v19942_v38  ;;  %v19952_v46 = vld [vmem:[#allocation208_spill] sm:$0xff] }
 0x245   :  { %3011 = vmatpush1.msra.mxu1 %v19943_v63  ;;  %2777 = vmatprep.subr.mxu0 %v19944_v30  ;;  %v19957_v63 = vld [vmem:[#allocation225_spill] sm:$0xff] }
 0x246   :  { %3017 = vmatprep.subr.mxu1 %v19945_v22  ;;  %2779 = vmatpush1.msra.mxu0 %v19946_v56  ;;  %v19953_v22 = vld [vmem:[#allocation210_spill] sm:$0xff] }
 0x247   :  { %3023 = vmatpush1.msra.mxu1 %v19947_v21  ;;  %2781 = vmatprep.subr.mxu0 %v19948_v5  ;;  %v19954_v21 = vld [vmem:[#allocation216_spill] sm:$0xff] }
 0x248   :  { %3029 = vmatprep.subr.mxu1 %v19949_v19  ;;  %2783 = vmatpush1.msra.mxu0 %v19950_v4  ;;  %v19955_v19 = vld [vmem:[#allocation217_spill] sm:$0xff] }
 0x249   :  { %3035 = vmatpush1.msra.mxu1 %v19951_v26  ;;  %3068 = vmatprep.mubr.f32.mxu1 %v19527_v35  ;;  %v19956_v26 = vld [vmem:[#allocation221_spill] sm:$0xff] }
 0x24a   :  { %2785 = vmatprep.subr.mxu0 %v19952_v46  ;;  %3070 = vmatmul.mubr.f32.vlgmr.msra.gmra.mxu1 %v15685_v8 }
 0x24b   :  { %3214 = vmatprep.subr.mxu1 %v19904_v57  ;;  %2787 = vmatpush1.msra.mxu0 %v19953_v22 }
 0x24c   :  { %3216 = vmatpush1.msra.mxu1 %v19906_v24  ;;  %2789 = vmatprep.subr.mxu0 %v19954_v21 }
 0x24d   :  { %3218 = vmatprep.subr.mxu1 %v19908_v12  ;;  %2791 = vmatpush1.msra.mxu0 %v19955_v19 }
 0x24e   :  { %3220 = vmatpush1.msra.mxu1 %v19910_v45  ;;  %2793 = vmatprep.subr.mxu0 %v19956_v26 }
 0x24f   :  { %3222 = vmatprep.subr.mxu1 %v19912_v60  ;;  %2795 = vmatpush1.msra.mxu0 %v19957_v63 }
 0x250   :  { %3224 = vmatpush1.msra.mxu1 %v19914_v11  ;;  %2797 = vmatprep.subr.mxu0 %v19958_v59 }
 0x251   :  { %3226 = vmatprep.subr.mxu1 %v19916_v61  ;;  %2799 = vmatpush1.msra.mxu0 %v19959_v25 }
 0x252   :  { %2832 = vmatprep.mubr.f32.mxu0 %v19527_v35  ;;  %3228 = vmatpush1.msra.mxu1 %v19918_v27 }
 0x253   :  { %2838 = vmatmul.mubr.f32.vlgmr.msra.gmra.mxu0 %v15703_v51  ;;  %3078 = vmatprep.subr.mxu0 %v19960_v55  ;;  %v19965_v51 = vld [vmem:[#allocation151_spill] sm:$0xff]  ;;  %v19966_v55 = vld [vmem:[#allocation154_spill] sm:$0xff] }
 0x254   :  { %3230 = vmatprep.subr.mxu1 %v19920_v17  ;;  %3081 = vmatpush1.msra.mxu0 %v19961_v54  ;;  %v19967_v54 = vld [vmem:[#allocation159_spill] sm:$0xff] }
 0x255   :  { %3232 = vmatpush1.msra.mxu1 %v19922_v49  ;;  %3084 = vmatprep.subr.mxu0 %v19962_v10  ;;  %v19968_v10 = vld [vmem:[#allocation161_spill] sm:$0xff] }
 0x256   :  { %3234 = vmatprep.subr.mxu1 %v19924_v20  ;;  %3087 = vmatpush1.msra.mxu0 %v19963_v58  ;;  %v19969_v58 = vld [vmem:[#allocation164_spill] sm:$0xff] }
 0x257   :  { %3236 = vmatpush1.msra.mxu1 %v19926_v43  ;;  %3090 = vmatprep.subr.mxu0 %v19964_v1  ;;  %v19970_v1 = vld [vmem:[#allocation166_spill] sm:$0xff] }
 0x258   :  { %3238 = vmatprep.subr.mxu1 %v19928_v40  ;;  %3093 = vmatpush1.msra.mxu0 %v19965_v51  ;;  %v19971_v51 = vld [vmem:[#allocation167_spill] sm:$0xff] }
 0x259   :  { %3240 = vmatpush1.msra.mxu1 %v19930_v52  ;;  %3096 = vmatprep.subr.mxu0 %v19966_v55  ;;  %v19972_v55 = vld [vmem:[#allocation171_spill] sm:$0xff] }
 0x25a   :  { %3242 = vmatprep.subr.mxu1 %v19932_v0  ;;  %3099 = vmatpush1.msra.mxu0 %v19967_v54  ;;  %v19973_v54 = vld [vmem:[#allocation177_spill] sm:$0xff] }
 0x25b   :  { %3244 = vmatpush1.msra.mxu1 %v19934_v36  ;;  %3102 = vmatprep.subr.mxu0 %v19968_v10  ;;  %v19974_v10 = vld [vmem:[#allocation184_spill] sm:$0xff] }
 0x25c   :  { %3246 = vmatprep.subr.mxu1 %v19936_v42  ;;  %3105 = vmatpush1.msra.mxu0 %v19969_v58  ;;  %v19975_v58 = vld [vmem:[#allocation187_spill] sm:$0xff] }
 0x25d   :  { %3248 = vmatpush1.msra.mxu1 %v19938_v32  ;;  %3108 = vmatprep.subr.mxu0 %v19970_v1  ;;  %v19976_v1 = vld [vmem:[#allocation190_spill] sm:$0xff] }
 0x25e   :  { %3250 = vmatprep.subr.mxu1 %v19940_v23  ;;  %3111 = vmatpush1.msra.mxu0 %v19971_v51  ;;  %v19977_v51 = vld [vmem:[#allocation199_spill] sm:$0xff] }
 0x25f   :  { %3252 = vmatpush1.msra.mxu1 %v19942_v38  ;;  %3114 = vmatprep.subr.mxu0 %v19972_v55  ;;  %v19978_v55 = vld [vmem:[#allocation202_spill] sm:$0xff] }
 0x260   :  { %3254 = vmatprep.subr.mxu1 %v19944_v30  ;;  %3117 = vmatpush1.msra.mxu0 %v19973_v54  ;;  %v19979_v54 = vld [vmem:[#allocation206_spill] sm:$0xff] }
 0x261   :  { %3256 = vmatpush1.msra.mxu1 %v19946_v56  ;;  %3120 = vmatprep.subr.mxu0 %v19974_v10  ;;  %v19980_v10 = vld [vmem:[#allocation209_spill] sm:$0xff] }
 0x262   :  { %3258 = vmatprep.subr.mxu1 %v19948_v5  ;;  %3123 = vmatpush1.msra.mxu0 %v19975_v58  ;;  %v19981_v58 = vld [vmem:[#allocation212_spill] sm:$0xff] }
 0x263   :  { %3260 = vmatpush1.msra.mxu1 %v19950_v4  ;;  %3126 = vmatprep.subr.mxu0 %v19976_v1  ;;  %v19982_v1 = vld [vmem:[#allocation215_spill] sm:$0xff] }
 0x264   :  { %3262 = vmatprep.subr.mxu1 %v19952_v46  ;;  %3129 = vmatpush1.msra.mxu0 %v19977_v51  ;;  %v19983_v51 = vld [vmem:[#allocation219_spill] sm:$0xff] }
 0x265   :  { %3264 = vmatpush1.msra.mxu1 %v19953_v22  ;;  %3132 = vmatprep.subr.mxu0 %v19978_v55  ;;  %v20023_v55 = vld [vmem:[#allocation37_spill] sm:$0xff] }
 0x266   :  { %3266 = vmatprep.subr.mxu1 %v19954_v21  ;;  %3135 = vmatpush1.msra.mxu0 %v19979_v54  ;;  %v19984_v54 = vld [vmem:[#allocation223_spill] sm:$0xff] }
 0x267   :  { %3268 = vmatpush1.msra.mxu1 %v19955_v19  ;;  %3138 = vmatprep.subr.mxu0 %v19980_v10  ;;  %v19985_v10 = vld [vmem:[#allocation229_spill] sm:$0xff] }
 0x268   :  { %3270 = vmatprep.subr.mxu1 %v19956_v26  ;;  %3141 = vmatpush1.msra.mxu0 %v19981_v58  ;;  %v19986_v58 = vld [vmem:[#allocation232_spill] sm:$0xff] }
 0x269   :  { %3272 = vmatpush1.msra.mxu1 %v19957_v63  ;;  %3144 = vmatprep.subr.mxu0 %v19982_v1  ;;  %v19987_v1 = vld [vmem:[#allocation235_spill] sm:$0xff] }
 0x26a   :  { %3274 = vmatprep.subr.mxu1 %v19958_v59  ;;  %3147 = vmatpush1.msra.mxu0 %v19983_v51  ;;  %v19988_v51 = vld [vmem:[#allocation237_spill] sm:$0xff] }
 0x26b   :  { %3276 = vmatpush1.msra.mxu1 %v19959_v25  ;;  %3309 = vmatprep.mubr.f32.mxu1 %v19527_v35 }
 0x26c   :  { %3150 = vmatprep.subr.mxu0 %v19984_v54  ;;  %3313 = vmatmul.mubr.f32.vlgmr.msra.gmra.mxu1 %v15695_v9  ;;  %v19989_v54 = vld [vmem:[#allocation240_spill] sm:$0xff]  ;;  %v19990_v9 = vld [vmem:[#allocation243_spill] sm:$0xff] }
 0x26d   :  { %3488 = vmatprep.subr.mxu1 %v19904_v57  ;;  %3153 = vmatpush1.msra.mxu0 %v19985_v10  ;;  %v19991_v10 = vld [vmem:[#allocation246_spill] sm:$0xff] }
 0x26e   :  { %3490 = vmatpush1.msra.mxu1 %v19906_v24  ;;  %3156 = vmatprep.subr.mxu0 %v19986_v58  ;;  %v20021_v58 = vld [vmem:[#allocation36_spill] sm:$0xff] }
 0x26f   :  { %3492 = vmatprep.subr.mxu1 %v19908_v12  ;;  %3159 = vmatpush1.msra.mxu0 %v19987_v1  ;;  %v19992_v1 = vld [vmem:[#allocation147_spill] sm:$0xff] }
 0x270   :  { %3494 = vmatpush1.msra.mxu1 %v19910_v45  ;;  %3162 = vmatprep.subr.mxu0 %v19988_v51  ;;  %v19993_v51 = vld [vmem:[#allocation149_spill] sm:$0xff] }
 0x271   :  { %3496 = vmatprep.subr.mxu1 %v19912_v60  ;;  %3165 = vmatpush1.msra.mxu0 %v19989_v54  ;;  %v19994_v54 = vld [vmem:[#allocation150_spill] sm:$0xff] }
 0x272   :  { %3498 = vmatpush1.msra.mxu1 %v19914_v11  ;;  %3168 = vmatprep.subr.mxu0 %v19990_v9  ;;  %v19995_v9 = vld [vmem:[#allocation153_spill] sm:$0xff] }
 0x273   :  { %3500 = vmatprep.subr.mxu1 %v19916_v61  ;;  %3171 = vmatpush1.msra.mxu0 %v19991_v10  ;;  %v19996_v10 = vld [vmem:[#allocation157_spill] sm:$0xff] }
 0x274   :  { %3204 = vmatprep.mubr.f32.mxu0 %v19527_v35  ;;  %3502 = vmatpush1.msra.mxu1 %v19918_v27 }
 0x275   :  { %3207 = vmatmul.mubr.f32.vlgmr.msra.gmra.mxu0 %v15689_v41  ;;  %3322 = vmatprep.subr.mxu0 %v19992_v1  ;;  %v19997_v41 = vld [vmem:[#allocation160_spill] sm:$0xff]  ;;  %v19998_v1 = vld [vmem:[#allocation163_spill] sm:$0xff] }
 0x276   :  { %3504 = vmatprep.subr.mxu1 %v19920_v17  ;;  %3326 = vmatpush1.msra.mxu0 %v19993_v51  ;;  %v19999_v51 = vld [vmem:[#allocation170_spill] sm:$0xff] }
 0x277   :  { %3506 = vmatpush1.msra.mxu1 %v19922_v49  ;;  %3330 = vmatprep.subr.mxu0 %v19994_v54  ;;  %v20000_v54 = vld [vmem:[#allocation174_spill] sm:$0xff] }
 0x278   :  { %3508 = vmatprep.subr.mxu1 %v19924_v20  ;;  %3334 = vmatpush1.msra.mxu0 %v19995_v9  ;;  %v20001_v9 = vld [vmem:[#allocation176_spill] sm:$0xff] }
 0x279   :  { %3510 = vmatpush1.msra.mxu1 %v19926_v43  ;;  %3338 = vmatprep.subr.mxu0 %v19996_v10  ;;  %v20002_v10 = vld [vmem:[#allocation180_spill] sm:$0xff] }
 0x27a   :  { %3512 = vmatprep.subr.mxu1 %v19928_v40  ;;  %3342 = vmatpush1.msra.mxu0 %v19997_v41  ;;  %v20003_v41 = vld [vmem:[#allocation181_spill] sm:$0xff] }
 0x27b   :  { %3514 = vmatpush1.msra.mxu1 %v19930_v52  ;;  %3346 = vmatprep.subr.mxu0 %v19998_v1  ;;  %v20004_v1 = vld [vmem:[#allocation183_spill] sm:$0xff] }
 0x27c   :  { %3516 = vmatprep.subr.mxu1 %v19932_v0  ;;  %3350 = vmatpush1.msra.mxu0 %v19999_v51  ;;  %v20005_v51 = vld [vmem:[#allocation189_spill] sm:$0xff] }
 0x27d   :  { %3518 = vmatpush1.msra.mxu1 %v19934_v36  ;;  %3354 = vmatprep.subr.mxu0 %v20000_v54  ;;  %v20006_v54 = vld [vmem:[#allocation195_spill] sm:$0xff] }
 0x27e   :  { %3520 = vmatprep.subr.mxu1 %v19936_v42  ;;  %3358 = vmatpush1.msra.mxu0 %v20001_v9  ;;  %v20007_v9 = vld [vmem:[#allocation198_spill] sm:$0xff] }
 0x27f   :  { %3522 = vmatpush1.msra.mxu1 %v19938_v32  ;;  %3362 = vmatprep.subr.mxu0 %v20002_v10  ;;  %v20008_v10 = vld [vmem:[#allocation201_spill] sm:$0xff] }
 0x280   :  { %3524 = vmatprep.subr.mxu1 %v19940_v23  ;;  %3366 = vmatpush1.msra.mxu0 %v20003_v41  ;;  %v20009_v41 = vld [vmem:[#allocation211_spill] sm:$0xff] }
 0x281   :  { %3526 = vmatpush1.msra.mxu1 %v19942_v38  ;;  %3370 = vmatprep.subr.mxu0 %v20004_v1  ;;  %v20010_v1 = vld [vmem:[#allocation214_spill] sm:$0xff] }
 0x282   :  { %3528 = vmatprep.subr.mxu1 %v19944_v30  ;;  %3374 = vmatpush1.msra.mxu0 %v20005_v51  ;;  %v20011_v51 = vld [vmem:[#allocation218_spill] sm:$0xff] }
 0x283   :  { %3530 = vmatpush1.msra.mxu1 %v19946_v56  ;;  %3378 = vmatprep.subr.mxu0 %v20006_v54  ;;  %v20012_v54 = vld [vmem:[#allocation222_spill] sm:$0xff] }
 0x284   :  { %3532 = vmatprep.subr.mxu1 %v19948_v5  ;;  %3382 = vmatpush1.msra.mxu0 %v20007_v9  ;;  %v20013_v9 = vld [vmem:[#allocation226_spill] sm:$0xff] }
 0x285   :  { %3534 = vmatpush1.msra.mxu1 %v19950_v4  ;;  %3386 = vmatprep.subr.mxu0 %v20008_v10  ;;  %v20014_v10 = vld [vmem:[#allocation228_spill] sm:$0xff] }
 0x286   :  { %3536 = vmatprep.subr.mxu1 %v19952_v46  ;;  %3390 = vmatpush1.msra.mxu0 %v20009_v41  ;;  %v20015_v41 = vld [vmem:[#allocation231_spill] sm:$0xff] }
 0x287   :  { %3538 = vmatpush1.msra.mxu1 %v19953_v22  ;;  %3394 = vmatprep.subr.mxu0 %v20010_v1  ;;  %v20019_v1 = vld [vmem:[#allocation33_spill] sm:$0xff] }
 0x288   :  { %3540 = vmatprep.subr.mxu1 %v19954_v21  ;;  %3398 = vmatpush1.msra.mxu0 %v20011_v51  ;;  %v20016_v51 = vld [vmem:[#allocation234_spill] sm:$0xff] }
 0x289   :  { %3542 = vmatpush1.msra.mxu1 %v19955_v19  ;;  %3402 = vmatprep.subr.mxu0 %v20012_v54  ;;  %v20017_v54 = vld [vmem:[#allocation239_spill] sm:$0xff] }
 0x28a   :  { %3544 = vmatprep.subr.mxu1 %v19956_v26  ;;  %3406 = vmatpush1.msra.mxu0 %v20013_v9  ;;  %v20018_v9 = vld [vmem:[#allocation242_spill] sm:$0xff] }
 0x28b   :  { %3546 = vmatpush1.msra.mxu1 %v19957_v63  ;;  %3410 = vmatprep.subr.mxu0 %v20014_v10  ;;  %v20020_v10 = vld [vmem:[#allocation245_spill] sm:$0xff]  ;;  %v20028_v63 = vld [vmem:[#allocation254_spill] sm:$0xff] }
 0x28c   :  { %3548 = vmatprep.subr.mxu1 %v19958_v59  ;;  %3414 = vmatpush1.msra.mxu0 %v20015_v41  ;;  %v20022_v41 = vld [vmem:[#allocation248_spill] sm:$0xff] }
 0x28d   :  { %3550 = vmatpush1.msra.mxu1 %v19959_v25  ;;  %3583 = vmatprep.mubr.f32.mxu1 %v19527_v35  ;;  %v20024_v25 = vld [vmem:[#allocation250_spill] sm:$0xff]  ;;  %v20026_v59 = vld [vmem:[#allocation252_spill] sm:$0xff] }
 0x28e   :  { %3418 = vmatprep.subr.mxu0 %v20016_v51  ;;  %3585 = vmatmul.mubr.f32.vlgmr.msra.gmra.mxu1 %v15685_v8  ;;  %v20025_v51 = vld [vmem:[#allocation39_spill] sm:$0xff] }
 0x28f   :  { %3422 = vmatpush1.msra.mxu0 %v20017_v54  ;;  %3479 = vmatprep.mubr.f32.mxu0 %v19527_v35  ;;  %v20027_v54 = vld [vmem:[#allocation42_spill] sm:$0xff] }
 0x290   :  { %3426 = vmatprep.subr.mxu0 %v20018_v9  ;;  %3744 = vmatprep.subr.mxu1 %v20019_v1  ;;  %v20029_v9 = vld [vmem:[#allocation45_spill] sm:$0xff] }
 0x291   :  { %3430 = vmatpush1.msra.mxu0 %v20020_v10  ;;  %3750 = vmatpush1.msra.mxu1 %v20021_v58  ;;  %v20030_v10 = vld [vmem:[#allocation49_spill] sm:$0xff]  ;;  %v20031_v58 = vld [vmem:[#allocation59_spill] sm:$0xff] }
 0x292   :  { %3434 = vmatprep.subr.mxu0 %v20022_v41  ;;  %3756 = vmatprep.subr.mxu1 %v20023_v55  ;;  %v20032_v55 = vld [vmem:[#allocation62_spill] sm:$0xff]  ;;  %v20066_v41 = vld [vmem:[#allocation15_spill] sm:$0xff] }
 0x293   :  { %3438 = vmatpush1.msra.mxu0 %v20024_v25  ;;  %3762 = vmatpush1.msra.mxu1 %v20025_v51  ;;  %v20033_v51 = vld [vmem:[#allocation65_spill] sm:$0xff]  ;;  %v20064_v25 = vld [vmem:[#allocation96_spill] sm:$0xff] }
 0x294   :  { %3442 = vmatprep.subr.mxu0 %v20026_v59  ;;  %3768 = vmatprep.subr.mxu1 %v20027_v54  ;;  %v20034_v54 = vld [vmem:[#allocation68_spill] sm:$0xff]  ;;  %v20062_v59 = vld [vmem:[#allocation87_spill] sm:$0xff] }
 0x295   :  { %3446 = vmatpush1.msra.mxu0 %v20028_v63  ;;  %3774 = vmatpush1.msra.mxu1 %v20029_v9  ;;  %v20035_v9 = vld [vmem:[#allocation71_spill] sm:$0xff]  ;;  %v20057_v63 = vld [vmem:[#allocation133_spill] sm:$0xff] }
 0x296   :  { %3481 = vmatmul.mubr.f32.vlgmr.msra.gmra.mxu0 %v15685_v8  ;;  %3780 = vmatprep.subr.mxu1 %v20030_v10  ;;  %v20036_v8 = vld [vmem:[#allocation74_spill] sm:$0xff]  ;;  %v20055_v10 = vld [vmem:[#allocation132_spill] sm:$0xff] }
 0x297   :  { %3786 = vmatpush1.msra.mxu1 %v20031_v58  ;;  %3632 = vmatprep.subr.mxu0 %v19856_v7  ;;  %v20037_v58 = vld [vmem:[#allocation78_spill] sm:$0xff] }
 0x298   :  { %3792 = vmatprep.subr.mxu1 %v20032_v55  ;;  %3634 = vmatpush1.msra.mxu0 %v19756_v50  ;;  %v20038_v55 = vld [vmem:[#allocation84_spill] sm:$0xff] }
 0x299   :  { %3798 = vmatpush1.msra.mxu1 %v20033_v51  ;;  %3636 = vmatprep.subr.mxu0 %v19757_v33  ;;  %v20039_v51 = vld [vmem:[#allocation88_spill] sm:$0xff] }
 0x29a   :  { %3804 = vmatprep.subr.mxu1 %v20034_v54  ;;  %3638 = vmatpush1.msra.mxu0 %v19758_v15  ;;  %v20040_v54 = vld [vmem:[#allocation94_spill] sm:$0xff] }
 0x29b   :  { %3810 = vmatpush1.msra.mxu1 %v20035_v9  ;;  %3640 = vmatprep.subr.mxu0 %v19759_v47  ;;  %v20041_v9 = vld [vmem:[#allocation97_spill] sm:$0xff] }
 0x29c   :  { %3816 = vmatprep.subr.mxu1 %v20036_v8  ;;  %3642 = vmatpush1.msra.mxu0 %v19760_v18  ;;  %v20042_v8 = vld [vmem:[#allocation100_spill] sm:$0xff] }
 0x29d   :  { %3822 = vmatpush1.msra.mxu1 %v20037_v58  ;;  %3644 = vmatprep.subr.mxu0 %v19763_v62  ;;  %v20043_v58 = vld [vmem:[#allocation103_spill] sm:$0xff] }
 0x29e   :  { %3828 = vmatprep.subr.mxu1 %v20038_v55  ;;  %3646 = vmatpush1.msra.mxu0 %v19765_v31  ;;  %v20044_v55 = vld [vmem:[#allocation106_spill] sm:$0xff] }
 0x29f   :  { %3834 = vmatpush1.msra.mxu1 %v20039_v51  ;;  %3648 = vmatprep.subr.mxu0 %v19767_v6  ;;  %v20045_v51 = vld [vmem:[#allocation110_spill] sm:$0xff] }
 0x2a0   :  { %3840 = vmatprep.subr.mxu1 %v20040_v54  ;;  %3650 = vmatpush1.msra.mxu0 %v19769_v28  ;;  %v20046_v54 = vld [vmem:[#allocation116_spill] sm:$0xff] }
 0x2a1   :  { %3846 = vmatpush1.msra.mxu1 %v20041_v9  ;;  %3652 = vmatprep.subr.mxu0 %v19771_v44  ;;  %v20047_v9 = vld [vmem:[#allocation119_spill] sm:$0xff] }
 0x2a2   :  { %3852 = vmatprep.subr.mxu1 %v20042_v8  ;;  %3654 = vmatpush1.msra.mxu0 %v19773_v29  ;;  %v20048_v8 = vld [vmem:[#allocation121_spill] sm:$0xff] }
 0x2a3   :  { %3858 = vmatpush1.msra.mxu1 %v20043_v58  ;;  %3656 = vmatprep.subr.mxu0 %v19775_v39  ;;  %v20049_v58 = vld [vmem:[#allocation124_spill] sm:$0xff] }
 0x2a4   :  { %3864 = vmatprep.subr.mxu1 %v20044_v55  ;;  %3658 = vmatpush1.msra.mxu0 %v19777_v13  ;;  %v20050_v55 = vld [vmem:[#allocation125_spill] sm:$0xff] }
 0x2a5   :  { %3870 = vmatpush1.msra.mxu1 %v20045_v51  ;;  %3660 = vmatprep.subr.mxu0 %v19779_v16  ;;  %v20051_v51 = vld [vmem:[#allocation127_spill] sm:$0xff] }
 0x2a6   :  { %3876 = vmatprep.subr.mxu1 %v20046_v54  ;;  %3662 = vmatpush1.msra.mxu0 %v19781_v34  ;;  %v20052_v54 = vld [vmem:[#allocation129_spill] sm:$0xff]  ;;  %v2216_v19 = vpop.f32.mrf.mxu1 }
 0x2a7   :  { %3882 = vmatpush1.msra.mxu1 %v20047_v9  ;;  %3664 = vmatprep.subr.mxu0 %v19783_v2  ;;  %v20053_v9 = vld [vmem:[#allocation131_spill] sm:$0xff] }
 0x2a8   :  { %3888 = vmatprep.subr.mxu1 %v20048_v8  ;;  %3666 = vmatpush1.msra.mxu0 %v19785_v48  ;;  %v20054_v8 = vld [vmem:[#allocation64_spill] sm:$0xff]  ;;  %v2218_v22 = vpop.f32.mrf.mxu1 }
 0x2a9   :  { %3894 = vmatpush1.msra.mxu1 %v20049_v58  ;;  %3668 = vmatprep.subr.mxu0 %v19787_v53  ;;  %v20056_v58 = vld [vmem:[#allocation69_spill] sm:$0xff] }
 0x2aa   :  { %3900 = vmatprep.subr.mxu1 %v20050_v55  ;;  %3670 = vmatpush1.msra.mxu0 %v19789_v14  ;;  %v20058_v55 = vld [vmem:[#allocation73_spill] sm:$0xff] }
 0x2ab   :  { %3906 = vmatpush1.msra.mxu1 %v20051_v51  ;;  %3672 = vmatprep.subr.mxu0 %v19791_v37  ;;  %v20059_v51 = vld [vmem:[#allocation77_spill] sm:$0xff] }
 0x2ac   :  { %3912 = vmatprep.subr.mxu1 %v20052_v54  ;;  %3674 = vmatpush1.msra.mxu0 %v19793_v3  ;;  %v20060_v54 = vld [vmem:[#allocation80_spill] sm:$0xff] }
 0x2ad   :  { %3918 = vmatpush1.msra.mxu1 %v20053_v9  ;;  %3676 = vmatprep.subr.mxu0 %v20054_v8  ;;  %v20061_v9 = vld [vmem:[#allocation83_spill] sm:$0xff] }
 0x2ae   :  { %3924 = vmatprep.subr.mxu1 %v20055_v10  ;;  %3678 = vmatpush1.msra.mxu0 %v20056_v58  ;;  %v20063_v10 = vld [vmem:[#allocation92_spill] sm:$0xff]  ;;  %v1984_v1 = vpop.f32.mrf.mxu0 }
 0x2af   :  { %3930 = vmatpush1.msra.mxu1 %v20057_v63  ;;  %3680 = vmatprep.subr.mxu0 %v20058_v55  ;;  %v20065_v63 = vld [vmem:[#allocation101_spill] sm:$0xff]  ;;  %v2217_v30 = vadd.f32 %v2216_v19, %v1984_v1  ;;  %v20067_v1 = vld [vmem:[#allocation11_spill] sm:$0xff] }
 0x2b0   :  { %3963 = vmatprep.mubr.f32.mxu1 %v19527_v35  ;;  %4109 = vmatprep.subr.mxu1 %v19856_v7  ;;  %v1986_v26 = vpop.f32.mrf.mxu0 }
 0x2b1   :  { %3682 = vmatpush1.msra.mxu0 %v20059_v51  ;;  %3727 = vmatprep.mubr.f32.mxu0 %v19527_v35  ;;  %v2219_v4 = vadd.f32 %v2218_v22, %v1986_v26 }
 0x2b2   :  { %3684 = vmatprep.subr.mxu0 %v20060_v54 }
 0x2b3   :  { %3686 = vmatpush1.msra.mxu0 %v20061_v9 }
 0x2b4   :  { %3688 = vmatprep.subr.mxu0 %v20062_v59 }
 0x2b5   :  { %3690 = vmatpush1.msra.mxu0 %v20063_v10 }
 0x2b6   :  { %3692 = vmatprep.subr.mxu0 %v20064_v25 }
 0x2b7   :  { %3694 = vmatpush1.msra.mxu0 %v20065_v63 }
 0x2b8   :  { %3973 = vmatprep.subr.mxu0 %v20066_v41 }
 0x2c6   :  { %v2459_v5 = vpop.f32.mrf.mxu1 }
 0x2c8   :  { %v2461_v32 = vpop.f32.mrf.mxu1 }
 0x2cf   :  { %v2353_v21 = vpop.f32.mrf.mxu0 }
 0x2d0   :  { %v2354_v23 = vadd.f32 %v2353_v21, %v2217_v30 }
 0x2d1   :  { %v2355_v46 = vpop.f32.mrf.mxu0 }
 0x2d2   :  { %v2356_v38 = vadd.f32 %v2355_v46, %v2219_v4  ;;  %v2460_v52 = vadd.f32 %v2459_v5, %v2354_v23 }
 0x2d4   :  { %v2462_v36 = vadd.f32 %v2461_v32, %v2356_v38  ;;  %v20068_v32 = vld [vmem:[#allocation12_spill] sm:$0xff] }
 0x2e8   :  { %v2731_v0 = vpop.f32.mrf.mxu1 }
 0x2ea   :  { %v2733_v20 = vpop.f32.mrf.mxu1 }
 0x2f1   :  { %v2627_v56 = vpop.f32.mrf.mxu0 }
 0x2f2   :  { %v2628_v43 = vadd.f32 %v2627_v56, %v2460_v52 }
 0x2f3   :  { %v2629_v42 = vpop.f32.mrf.mxu0 }
 0x2f4   :  { %v2630_v40 = vadd.f32 %v2629_v42, %v2462_v36  ;;  %v2732_v17 = vadd.f32 %v2731_v0, %v2628_v43 }
 0x2f6   :  { %v2734_v49 = vadd.f32 %v2733_v20, %v2630_v40  ;;  %v3595_v26 = vrot.slane %v2732_v17, 6 }
 0x2f8   :  { %v3596_v11 = vrot.slane %v2734_v49, 6  ;;  %v3603_v5 = vadd.f32 %v3595_v26, %v20068_v32  ;;  %v20179_v32 = vld [vmem:[#allocation257_spill] sm:$0xff] }
 0x2fa   :  { %v3604_v46 = vadd.f32 %v3596_v11, %v20067_v1  ;;  %v3607_v52 = vmul.f32 0.5, %v3603_v5  ;;  %v20181_v1 = vld [vmem:[#allocation258_spill] sm:$0xff] }
 0x2fc   :  { %v3608_v42 = vmul.f32 0.5, %v3604_v46  ;;  %v20070_v46 = vld [vmem:[#allocation14_spill] sm:$0xff] }
 0x2fe   :  { %14158 = vtanh.f32 %v3608_v42 }
 0x2ff   :  { %14160 = vtanh.f32 %v3607_v52 }
 0x30a   :  { %v3071_v27 = vpop.f32.mrf.mxu1 }
 0x30c   :  { %v3073_v60 = vpop.f32.mrf.mxu1 }
 0x313   :  { %v2839_v41 = vpop.f32.mrf.mxu0 }
 0x314   :  { %v3072_v4 = vadd.f32 %v3071_v27, %v2839_v41 }
 0x315   :  { %v2841_v61 = vpop.f32.mrf.mxu0 }
 0x316   :  { %v3074_v38 = vadd.f32 %v3073_v60, %v2841_v61  ;;  %v20069_v60 = vld [vmem:[#allocation13_spill] sm:$0xff] }
 0x32c   :  { %v3314_v30 = vpop.f32.mrf.mxu1 }
 0x32e   :  { %v3316_v36 = vpop.f32.mrf.mxu1 }
 0x335   :  { %v3208_v22 = vpop.f32.mrf.mxu0 }
 0x336   :  { %v3209_v23 = vadd.f32 %v3208_v22, %v3072_v4 }
 0x337   :  { %v3210_v19 = vpop.f32.mrf.mxu0 }
 0x338   :  { %v3211_v56 = vadd.f32 %v3210_v19, %v3074_v38  ;;  %v3315_v40 = vadd.f32 %v3314_v30, %v3209_v23  ;;  %v14159_v19 = vpop.eup %14158 }
 0x339   :  { %v14161_v38 = vpop.eup %14160  ;;  %v3614_v30 = vmul.f32 0.5, %v14159_v19 }
 0x33a   :  { %v3317_v49 = vadd.f32 %v3316_v36, %v3211_v56  ;;  %v3613_v23 = vmul.f32 0.5, %v14161_v38  ;;  %v20071_v36 = vld [vmem:[#allocation16_spill] sm:$0xff]  ;;  %v20073_v38 = vld [vmem:[#allocation17_spill] sm:$0xff] }
 0x33b   :  { %v3617_v56 = vadd.f32 0.5, %v3614_v30  ;;  %v3621_v52 = vrot.slane %v20071_v36, 6  ;;  %v20074_v30 = vld [vmem:[#allocation19_spill] sm:$0xff]  ;;  %v20079_v36 = vld [vmem:[#allocation40_spill] sm:$0xff] }
 0x33c   :  { %v3616_v42 = vadd.f32 0.5, %v3613_v23  ;;  %v20076_v23 = vld [vmem:[#allocation26_spill] sm:$0xff] }
 0x34e   :  { %v3586_v0 = vpop.f32.mrf.mxu1 }
 0x350   :  { %v3588_v11 = vpop.f32.mrf.mxu1 }
 0x356   :  { %v3482_v43 = vpop.f32.mrf.mxu0 }
 0x357   :  { %v3483_v17 = vadd.f32 %v3482_v43, %v3315_v40  ;;  %v3623_v43 = vmul.f32 %v3621_v52, %v3617_v56  ;;  %v20077_v56 = vld [vmem:[#allocation29_spill] sm:$0xff]  ;;  %v20080_v52 = vld [vmem:[#allocation43_spill] sm:$0xff] }
 0x358   :  { %v3484_v20 = vpop.f32.mrf.mxu0 }
 0x359   :  { %v3485_v21 = vadd.f32 %v3484_v20, %v3317_v49  ;;  %v3587_v41 = vadd.f32 %v3586_v0, %v3483_v17 }
 0x35b   :  { %v3589_v27 = vadd.f32 %v3588_v11, %v3485_v21  ;;  %v3597_v22 = vrot.slane %v3587_v41, 6 }
 0x35d   :  { %v3598_v61 = vrot.slane %v3589_v27, 6  ;;  %v3605_v4 = vadd.f32 %v3597_v22, %v20070_v46  ;;  %v20175_v46 = vld [vmem:[#allocation255_spill] sm:$0xff] }
 0x35f   :  { %v3606_v26 = vadd.f32 %v3598_v61, %v20069_v60  ;;  %v3609_v5 = vmul.f32 0.5, %v3605_v4  ;;  %v20177_v60 = vld [vmem:[#allocation256_spill] sm:$0xff] }
 0x361   :  { %14162 = vtanh.f32 %v3606_v26 }
 0x362   :  { %14164 = vtanh.f32 %v3609_v5  ;;  %v20075_v5 = vld [vmem:[#allocation22_spill] sm:$0xff] }
 0x36e   :  { %v14163_v40 = vpop.eup %14162 }
 0x36f   :  { %v3624_v0 = vmul.f32 %v14163_v40, %v3616_v42  ;;  %v14165_v17 = vpop.eup %14164  ;;  %v20078_v42 = vld [vmem:[#allocation32_spill] sm:$0xff]  ;;  %v20081_v40 = vld [vmem:[#allocation47_spill] sm:$0xff] }
 0x370   :  { %v3615_v20 = vmul.f32 0.5, %v14165_v17  ;;  %v20084_v17 = vld [vmem:[#allocation57_spill] sm:$0xff] }
 0x371   :  { %v16110_v49 = vadd.f32 %v3624_v0, %v3623_v43  ;;  %v20082_v43 = vld [vmem:[#allocation51_spill] sm:$0xff]  ;;  %v20083_v0 = vld [vmem:[#allocation54_spill] sm:$0xff] }
 0x372   :  { %v3618_v21 = vadd.f32 0.5, %v3615_v20  ;;  %v20085_v20 = vld [vmem:[#allocation61_spill] sm:$0xff] }
 0x373   :  { %20072 = vst [vmem:[#allocation18_spill] sm:$0xff] %v16110_v49  ;;  %14166 = vtanh.f32 %v16110_v49  ;;  %v20173_v49 = vld [vmem:[#allocation253_spill] sm:$0xff] }
 0x380   :  { %v14167_v11 = vpop.eup %14166 }
 0x381   :  { %v3627_v27 = vmul.f32 %v14167_v11, %v3618_v21  ;;  %v20086_v21 = vld [vmem:[#allocation67_spill] sm:$0xff]  ;;  %v20087_v11 = vld [vmem:[#allocation70_spill] sm:$0xff] }
 0x383   :  { %v3629_v41 = vrot.slane %v3627_v27, 2  ;;  %v20088_v27 = vld [vmem:[#allocation76_spill] sm:$0xff] }
 0x385   :  { %v16113_v61 = vand.u32 4294901760, %v3629_v41 }
 0x387   :  { %3965 = vmatmul.mubr.f32.vlgmr.msra.gmra.mxu1 %v16113_v61  ;;  %v16117_v26 = vsub.f32 %v3629_v41, %v16113_v61  ;;  %v20089_v41 = vld [vmem:[#allocation79_spill] sm:$0xff] }
 0x388   :  { %4111 = vmatpush1.msra.mxu1 %v19756_v50  ;;  %4204 = vmatprep.mubr.f32.mxu1 %v19527_v35 }
 0x389   :  { %4113 = vmatprep.subr.mxu1 %v19757_v33  ;;  %v16123_v22 = vand.u32 4294901760, %v16117_v26 }
 0x38a   :  { %4115 = vmatpush1.msra.mxu1 %v19758_v15 }
 0x38b   :  { %4117 = vmatprep.subr.mxu1 %v19759_v47  ;;  %v3731_v4 = vsub.f32 %v16117_v26, %v16123_v22 }
 0x38c   :  { %4119 = vmatpush1.msra.mxu1 %v19760_v18 }
 0x38d   :  { %4121 = vmatprep.subr.mxu1 %v19763_v62  ;;  %v16131_v19 = vand.u32 4294901760, %v3731_v4  ;;  %v20090_v4 = vld [vmem:[#allocation82_spill] sm:$0xff] }
 0x38e   :  { %4123 = vmatpush1.msra.mxu1 %v19765_v31 }
 0x38f   :  { %4125 = vmatprep.subr.mxu1 %v19767_v6  ;;  %3733 = vmatmul.mubr.f32.vlgmr.msra.gmra.mxu0 %v16131_v19 }
 0x390   :  { %3976 = vmatpush1.msra.mxu0 %v20073_v38  ;;  %4127 = vmatpush1.msra.mxu1 %v19769_v28  ;;  %v20171_v38 = vld [vmem:[#allocation251_spill] sm:$0xff] }
 0x391   :  { %3979 = vmatprep.subr.mxu0 %v20074_v30  ;;  %4129 = vmatprep.subr.mxu1 %v19771_v44  ;;  %v20169_v30 = vld [vmem:[#allocation249_spill] sm:$0xff] }
 0x392   :  { %3982 = vmatpush1.msra.mxu0 %v20075_v5  ;;  %4131 = vmatpush1.msra.mxu1 %v19773_v29  ;;  %v20167_v5 = vld [vmem:[#allocation247_spill] sm:$0xff] }
 0x393   :  { %3985 = vmatprep.subr.mxu0 %v20076_v23  ;;  %4133 = vmatprep.subr.mxu1 %v19775_v39  ;;  %v20165_v23 = vld [vmem:[#allocation244_spill] sm:$0xff] }
 0x394   :  { %3988 = vmatpush1.msra.mxu0 %v20077_v56  ;;  %4135 = vmatpush1.msra.mxu1 %v19777_v13  ;;  %v20163_v56 = vld [vmem:[#allocation241_spill] sm:$0xff] }
 0x395   :  { %3991 = vmatprep.subr.mxu0 %v20078_v42  ;;  %4137 = vmatprep.subr.mxu1 %v19779_v16  ;;  %v20161_v42 = vld [vmem:[#allocation238_spill] sm:$0xff] }
 0x396   :  { %3994 = vmatpush1.msra.mxu0 %v20079_v36  ;;  %4139 = vmatpush1.msra.mxu1 %v19781_v34  ;;  %v20159_v36 = vld [vmem:[#allocation236_spill] sm:$0xff] }
 0x397   :  { %3997 = vmatprep.subr.mxu0 %v20080_v52  ;;  %4141 = vmatprep.subr.mxu1 %v19783_v2  ;;  %v20139_v52 = vld [vmem:[#allocation185_spill] sm:$0xff] }
 0x398   :  { %4000 = vmatpush1.msra.mxu0 %v20081_v40  ;;  %4143 = vmatpush1.msra.mxu1 %v19785_v48  ;;  %v20137_v40 = vld [vmem:[#allocation179_spill] sm:$0xff] }
 0x399   :  { %4003 = vmatprep.subr.mxu0 %v20082_v43  ;;  %4145 = vmatprep.subr.mxu1 %v19787_v53  ;;  %v20136_v43 = vld [vmem:[#allocation120_spill] sm:$0xff] }
 0x39a   :  { %4006 = vmatpush1.msra.mxu0 %v20083_v0  ;;  %4147 = vmatpush1.msra.mxu1 %v19789_v14  ;;  %v20134_v0 = vld [vmem:[#allocation117_spill] sm:$0xff] }
 0x39b   :  { %4009 = vmatprep.subr.mxu0 %v20084_v17  ;;  %4149 = vmatprep.subr.mxu1 %v19791_v37  ;;  %v20132_v17 = vld [vmem:[#allocation114_spill] sm:$0xff] }
 0x39c   :  { %4012 = vmatpush1.msra.mxu0 %v20085_v20  ;;  %4151 = vmatpush1.msra.mxu1 %v19793_v3  ;;  %v20091_v20 = vld [vmem:[#allocation86_spill] sm:$0xff] }
 0x39d   :  { %4015 = vmatprep.subr.mxu0 %v20086_v21  ;;  %4153 = vmatprep.subr.mxu1 %v20054_v8  ;;  %v20092_v21 = vld [vmem:[#allocation90_spill] sm:$0xff] }
 0x39e   :  { %4018 = vmatpush1.msra.mxu0 %v20087_v11  ;;  %4155 = vmatpush1.msra.mxu1 %v20056_v58  ;;  %v20093_v11 = vld [vmem:[#allocation93_spill] sm:$0xff] }
 0x39f   :  { %4021 = vmatprep.subr.mxu0 %v20088_v27  ;;  %4157 = vmatprep.subr.mxu1 %v20058_v55  ;;  %v20094_v27 = vld [vmem:[#allocation99_spill] sm:$0xff] }
 0x3a0   :  { %4024 = vmatpush1.msra.mxu0 %v20089_v41  ;;  %4159 = vmatpush1.msra.mxu1 %v20059_v51  ;;  %v20095_v41 = vld [vmem:[#allocation102_spill] sm:$0xff] }
 0x3a1   :  { %4027 = vmatprep.subr.mxu0 %v20090_v4  ;;  %4161 = vmatprep.subr.mxu1 %v20060_v54  ;;  %v20096_v4 = vld [vmem:[#allocation105_spill] sm:$0xff] }
 0x3a2   :  { %4030 = vmatpush1.msra.mxu0 %v20091_v20  ;;  %4163 = vmatpush1.msra.mxu1 %v20061_v9  ;;  %v20102_v20 = vld [vmem:[#allocation123_spill] sm:$0xff] }
 0x3a3   :  { %4033 = vmatprep.subr.mxu0 %v20092_v21  ;;  %4165 = vmatprep.subr.mxu1 %v20062_v59  ;;  %v20097_v21 = vld [vmem:[#allocation108_spill] sm:$0xff] }
 0x3a4   :  { %4036 = vmatpush1.msra.mxu0 %v20093_v11  ;;  %4167 = vmatpush1.msra.mxu1 %v20063_v10  ;;  %v20098_v11 = vld [vmem:[#allocation109_spill] sm:$0xff] }
 0x3a5   :  { %4039 = vmatprep.subr.mxu0 %v20094_v27  ;;  %4169 = vmatprep.subr.mxu1 %v20064_v25  ;;  %v20099_v27 = vld [vmem:[#allocation112_spill] sm:$0xff] }
 0x3a6   :  { %4042 = vmatpush1.msra.mxu0 %v20095_v41  ;;  %4171 = vmatpush1.msra.mxu1 %v20065_v63  ;;  %v20100_v41 = vld [vmem:[#allocation115_spill] sm:$0xff] }
 0x3a7   :  { %4045 = vmatprep.subr.mxu0 %v20096_v4  ;;  %4208 = vmatmul.mubr.f32.vlgmr.msra.gmra.mxu1 %v16123_v22  ;;  %v20101_v4 = vld [vmem:[#allocation118_spill] sm:$0xff] }
 0x3a8   :  { %4383 = vmatprep.subr.mxu1 %v19856_v7  ;;  %4048 = vmatpush1.msra.mxu0 %v20097_v21  ;;  %v20103_v21 = vld [vmem:[#allocation126_spill] sm:$0xff] }
 0x3a9   :  { %4385 = vmatpush1.msra.mxu1 %v19756_v50  ;;  %4051 = vmatprep.subr.mxu0 %v20098_v11  ;;  %v20109_v11 = vld [vmem:[#allocation34_spill] sm:$0xff] }
 0x3aa   :  { %4387 = vmatprep.subr.mxu1 %v19757_v33  ;;  %4054 = vmatpush1.msra.mxu0 %v20099_v27  ;;  %v20104_v27 = vld [vmem:[#allocation20_spill] sm:$0xff] }
 0x3ab   :  { %4389 = vmatpush1.msra.mxu1 %v19758_v15  ;;  %4057 = vmatprep.subr.mxu0 %v20100_v41  ;;  %v20105_v41 = vld [vmem:[#allocation24_spill] sm:$0xff] }
 0x3ac   :  { %4391 = vmatprep.subr.mxu1 %v19759_v47  ;;  %4060 = vmatpush1.msra.mxu0 %v20101_v4  ;;  %v20106_v4 = vld [vmem:[#allocation25_spill] sm:$0xff] }
 0x3ad   :  { %4393 = vmatpush1.msra.mxu1 %v19760_v18  ;;  %4063 = vmatprep.subr.mxu0 %v20102_v20  ;;  %v20107_v20 = vld [vmem:[#allocation28_spill] sm:$0xff] }
 0x3ae   :  { %4395 = vmatprep.subr.mxu1 %v19763_v62  ;;  %4066 = vmatpush1.msra.mxu0 %v20103_v21  ;;  %v20108_v21 = vld [vmem:[#allocation31_spill] sm:$0xff] }
 0x3af   :  { %4099 = vmatprep.mubr.f32.mxu0 %v19527_v35  ;;  %4397 = vmatpush1.msra.mxu1 %v19765_v31 }
 0x3b0   :  { %4102 = vmatmul.mubr.f32.vlgmr.msra.gmra.mxu0 %v16117_v26  ;;  %4217 = vmatprep.subr.mxu0 %v20104_v27  ;;  %v20110_v27 = vld [vmem:[#allocation38_spill] sm:$0xff] }
 0x3b1   :  { %4399 = vmatprep.subr.mxu1 %v19767_v6  ;;  %4221 = vmatpush1.msra.mxu0 %v20105_v41  ;;  %v20111_v41 = vld [vmem:[#allocation46_spill] sm:$0xff] }
 0x3b2   :  { %4401 = vmatpush1.msra.mxu1 %v19769_v28  ;;  %4225 = vmatprep.subr.mxu0 %v20106_v4  ;;  %v20112_v4 = vld [vmem:[#allocation50_spill] sm:$0xff] }
 0x3b3   :  { %4403 = vmatprep.subr.mxu1 %v19771_v44  ;;  %4229 = vmatpush1.msra.mxu0 %v20107_v20  ;;  %v20113_v20 = vld [vmem:[#allocation53_spill] sm:$0xff] }
 0x3b4   :  { %4405 = vmatpush1.msra.mxu1 %v19773_v29  ;;  %4233 = vmatprep.subr.mxu0 %v20108_v21  ;;  %v20114_v21 = vld [vmem:[#allocation56_spill] sm:$0xff] }
 0x3b5   :  { %4407 = vmatprep.subr.mxu1 %v19775_v39  ;;  %4237 = vmatpush1.msra.mxu0 %v20109_v11  ;;  %v20115_v11 = vld [vmem:[#allocation60_spill] sm:$0xff] }
 0x3b6   :  { %4409 = vmatpush1.msra.mxu1 %v19777_v13  ;;  %4241 = vmatprep.subr.mxu0 %v20110_v27  ;;  %v20116_v27 = vld [vmem:[#allocation63_spill] sm:$0xff] }
 0x3b7   :  { %4411 = vmatprep.subr.mxu1 %v19779_v16  ;;  %4245 = vmatpush1.msra.mxu0 %v20111_v41  ;;  %v20117_v41 = vld [vmem:[#allocation66_spill] sm:$0xff] }
 0x3b8   :  { %4413 = vmatpush1.msra.mxu1 %v19781_v34  ;;  %4249 = vmatprep.subr.mxu0 %v20112_v4  ;;  %v20118_v4 = vld [vmem:[#allocation72_spill] sm:$0xff] }
 0x3b9   :  { %4415 = vmatprep.subr.mxu1 %v19783_v2  ;;  %4253 = vmatpush1.msra.mxu0 %v20113_v20  ;;  %v20119_v20 = vld [vmem:[#allocation75_spill] sm:$0xff] }
 0x3ba   :  { %4417 = vmatpush1.msra.mxu1 %v19785_v48  ;;  %4257 = vmatprep.subr.mxu0 %v20114_v21  ;;  %v20120_v21 = vld [vmem:[#allocation81_spill] sm:$0xff] }
 0x3bb   :  { %4419 = vmatprep.subr.mxu1 %v19787_v53  ;;  %4261 = vmatpush1.msra.mxu0 %v20115_v11  ;;  %v20121_v11 = vld [vmem:[#allocation85_spill] sm:$0xff] }
 0x3bc   :  { %4421 = vmatpush1.msra.mxu1 %v19789_v14  ;;  %4265 = vmatprep.subr.mxu0 %v20116_v27  ;;  %v20122_v27 = vld [vmem:[#allocation89_spill] sm:$0xff] }
 0x3bd   :  { %4423 = vmatprep.subr.mxu1 %v19791_v37  ;;  %4269 = vmatpush1.msra.mxu0 %v20117_v41  ;;  %v20123_v41 = vld [vmem:[#allocation91_spill] sm:$0xff] }
 0x3be   :  { %4425 = vmatpush1.msra.mxu1 %v19793_v3  ;;  %4273 = vmatprep.subr.mxu0 %v20118_v4  ;;  %v20124_v4 = vld [vmem:[#allocation95_spill] sm:$0xff] }
 0x3bf   :  { %4427 = vmatprep.subr.mxu1 %v20054_v8  ;;  %4277 = vmatpush1.msra.mxu0 %v20119_v20  ;;  %v20125_v20 = vld [vmem:[#allocation98_spill] sm:$0xff]  ;;  %v20200_v8 = vld [vmem:[#allocation145_spill] sm:$0xff] }
 0x3c0   :  { %4429 = vmatpush1.msra.mxu1 %v20056_v58  ;;  %4281 = vmatprep.subr.mxu0 %v20120_v21  ;;  %v20126_v21 = vld [vmem:[#allocation104_spill] sm:$0xff] }
 0x3c1   :  { %4431 = vmatprep.subr.mxu1 %v20058_v55  ;;  %4285 = vmatpush1.msra.mxu0 %v20121_v11  ;;  %v20127_v11 = vld [vmem:[#allocation107_spill] sm:$0xff]  ;;  %v20198_v55 = vld [vmem:[#allocation142_spill] sm:$0xff]  ;;  %v20199_v58 = vld [vmem:[#allocation144_spill] sm:$0xff] }
 0x3c2   :  { %4433 = vmatpush1.msra.mxu1 %v20059_v51  ;;  %4289 = vmatprep.subr.mxu0 %v20122_v27  ;;  %v20130_v27 = vld [vmem:[#allocation113_spill] sm:$0xff] }
 0x3c3   :  { %4435 = vmatprep.subr.mxu1 %v20060_v54  ;;  %4293 = vmatpush1.msra.mxu0 %v20123_v41  ;;  %v20128_v41 = vld [vmem:[#allocation111_spill] sm:$0xff]  ;;  %v20197_v51 = vld [vmem:[#allocation141_spill] sm:$0xff] }
 0x3c4   :  { %4437 = vmatpush1.msra.mxu1 %v20061_v9  ;;  %4297 = vmatprep.subr.mxu0 %v20124_v4  ;;  %v20129_v4 = vld [vmem:[#allocation168_spill] sm:$0xff]  ;;  %v20195_v9 = vld [vmem:[#allocation233_spill] sm:$0xff]  ;;  %v20196_v54 = vld [vmem:[#allocation139_spill] sm:$0xff] }
 0x3c5   :  { %4439 = vmatprep.subr.mxu1 %v20062_v59  ;;  %4301 = vmatpush1.msra.mxu0 %v20125_v20  ;;  %v20131_v20 = vld [vmem:[#allocation172_spill] sm:$0xff]  ;;  %v20194_v59 = vld [vmem:[#allocation230_spill] sm:$0xff] }
 0x3c6   :  { %4441 = vmatpush1.msra.mxu1 %v20063_v10  ;;  %4305 = vmatprep.subr.mxu0 %v20126_v21  ;;  %v20133_v21 = vld [vmem:[#allocation173_spill] sm:$0xff] }
 0x3c7   :  { %4443 = vmatprep.subr.mxu1 %v20064_v25  ;;  %4309 = vmatpush1.msra.mxu0 %v20127_v11  ;;  %v20135_v11 = vld [vmem:[#allocation178_spill] sm:$0xff]  ;;  %v20185_v25 = vld [vmem:[#allocation260_spill] sm:$0xff]  ;;  %v20187_v10 = vld [vmem:[#allocation261_spill] sm:$0xff] }
 0x3c8   :  { %4445 = vmatpush1.msra.mxu1 %v20065_v63  ;;  %4478 = vmatprep.mubr.f32.mxu1 %v19527_v35  ;;  %v20183_v63 = vld [vmem:[#allocation259_spill] sm:$0xff] }
 0x3c9   :  { %4313 = vmatprep.subr.mxu0 %v20128_v41  ;;  %4480 = vmatmul.mubr.f32.vlgmr.msra.gmra.mxu1 %v16113_v61  ;;  %v20138_v41 = vld [vmem:[#allocation122_spill] sm:$0xff] }
 0x3ca   :  { %4599 = vmatprep.subr.mxu1 %v20129_v4  ;;  %4317 = vmatpush1.msra.mxu0 %v20130_v27  ;;  %v20140_v4 = vld [vmem:[#allocation128_spill] sm:$0xff] }
 0x3cb   :  { %4605 = vmatpush1.msra.mxu1 %v20131_v20  ;;  %4321 = vmatprep.subr.mxu0 %v20132_v17  ;;  %v20141_v27 = vld [vmem:[#allocation188_spill] sm:$0xff]  ;;  %v20142_v20 = vld [vmem:[#allocation130_spill] sm:$0xff]  ;;  %v20157_v17 = vld [vmem:[#allocation227_spill] sm:$0xff] }
 0x3cc   :  { %4611 = vmatprep.subr.mxu1 %v20133_v21  ;;  %4325 = vmatpush1.msra.mxu0 %v20134_v0  ;;  %v20143_v21 = vld [vmem:[#allocation193_spill] sm:$0xff]  ;;  %v20155_v0 = vld [vmem:[#allocation224_spill] sm:$0xff] }
 0x3cd   :  { %4617 = vmatpush1.msra.mxu1 %v20135_v11  ;;  %4329 = vmatprep.subr.mxu0 %v20136_v43  ;;  %v20144_v43 = vld [vmem:[#allocation196_spill] sm:$0xff] }
 0x3ce   :  { %4623 = vmatprep.subr.mxu1 %v20137_v40  ;;  %4333 = vmatpush1.msra.mxu0 %v20138_v41  ;;  %v20145_v41 = vld [vmem:[#allocation200_spill] sm:$0xff]  ;;  %v20151_v40 = vld [vmem:[#allocation213_spill] sm:$0xff] }
 0x3cf   :  { %4629 = vmatpush1.msra.mxu1 %v20139_v52  ;;  %4337 = vmatprep.subr.mxu0 %v20140_v4  ;;  %v20146_v4 = vld [vmem:[#allocation203_spill] sm:$0xff]  ;;  %v20150_v52 = vld [vmem:[#allocation140_spill] sm:$0xff] }
 0x3d0   :  { %4635 = vmatprep.subr.mxu1 %v20141_v27  ;;  %4341 = vmatpush1.msra.mxu0 %v20142_v20  ;;  %v20147_v20 = vld [vmem:[#allocation204_spill] sm:$0xff]  ;;  %v20148_v27 = vld [vmem:[#allocation138_spill] sm:$0xff] }
 0x3d1   :  { %4374 = vmatprep.mubr.f32.mxu0 %v19527_v35  ;;  %4641 = vmatpush1.msra.mxu1 %v20143_v21  ;;  %v20149_v21 = vld [vmem:[#allocation207_spill] sm:$0xff]  ;;  %v20153_v11 = vld [vmem:[#allocation220_spill] sm:$0xff] }
 0x3d2   :  { %4376 = vmatmul.mubr.f32.vlgmr.msra.gmra.mxu0 %v16113_v61  ;;  %4487 = vmatprep.subr.mxu0 %v19904_v57 }
 0x3d3   :  { %4647 = vmatprep.subr.mxu1 %v20144_v43  ;;  %4489 = vmatpush1.msra.mxu0 %v19906_v24  ;;  %v20152_v43 = vld [vmem:[#allocation143_spill] sm:$0xff] }
 0x3d4   :  { %4653 = vmatpush1.msra.mxu1 %v20145_v41  ;;  %4491 = vmatprep.subr.mxu0 %v19908_v12  ;;  %v20154_v41 = vld [vmem:[#allocation146_spill] sm:$0xff] }
 0x3d5   :  { %4659 = vmatprep.subr.mxu1 %v20146_v4  ;;  %4493 = vmatpush1.msra.mxu0 %v19910_v45  ;;  %v20156_v4 = vld [vmem:[#allocation148_spill] sm:$0xff] }
 0x3d6   :  { %4665 = vmatpush1.msra.mxu1 %v20147_v20  ;;  %4495 = vmatprep.subr.mxu0 %v20148_v27  ;;  %v20158_v20 = vld [vmem:[#allocation152_spill] sm:$0xff] }
 0x3d7   :  { %4671 = vmatprep.subr.mxu1 %v20149_v21  ;;  %4497 = vmatpush1.msra.mxu0 %v20150_v52  ;;  %v20160_v21 = vld [vmem:[#allocation155_spill] sm:$0xff] }
 0x3d8   :  { %4677 = vmatpush1.msra.mxu1 %v20151_v40  ;;  %4499 = vmatprep.subr.mxu0 %v20152_v43  ;;  %v20162_v40 = vld [vmem:[#allocation156_spill] sm:$0xff] }
 0x3d9   :  { %4683 = vmatprep.subr.mxu1 %v20153_v11  ;;  %4501 = vmatpush1.msra.mxu0 %v20154_v41  ;;  %v20164_v11 = vld [vmem:[#allocation158_spill] sm:$0xff] }
 0x3da   :  { %4689 = vmatpush1.msra.mxu1 %v20155_v0  ;;  %4503 = vmatprep.subr.mxu0 %v20156_v4  ;;  %v20166_v0 = vld [vmem:[#allocation162_spill] sm:$0xff] }
 0x3db   :  { %4695 = vmatprep.subr.mxu1 %v20157_v17  ;;  %4505 = vmatpush1.msra.mxu0 %v20158_v20  ;;  %v20168_v17 = vld [vmem:[#allocation165_spill] sm:$0xff] }
 0x3dc   :  { %4701 = vmatpush1.msra.mxu1 %v20159_v36  ;;  %4507 = vmatprep.subr.mxu0 %v20160_v21  ;;  %v20170_v36 = vld [vmem:[#allocation169_spill] sm:$0xff] }
 0x3dd   :  { %4707 = vmatprep.subr.mxu1 %v20161_v42  ;;  %4509 = vmatpush1.msra.mxu0 %v20162_v40  ;;  %v20172_v42 = vld [vmem:[#allocation175_spill] sm:$0xff] }
 0x3de   :  { %4713 = vmatpush1.msra.mxu1 %v20163_v56  ;;  %4511 = vmatprep.subr.mxu0 %v20164_v11  ;;  %v20174_v56 = vld [vmem:[#allocation182_spill] sm:$0xff] }
 0x3df   :  { %4719 = vmatprep.subr.mxu1 %v20165_v23  ;;  %4513 = vmatpush1.msra.mxu0 %v20166_v0  ;;  %v20176_v23 = vld [vmem:[#allocation186_spill] sm:$0xff] }
 0x3e0   :  { %4725 = vmatpush1.msra.mxu1 %v20167_v5  ;;  %4515 = vmatprep.subr.mxu0 %v20168_v17  ;;  %v20178_v5 = vld [vmem:[#allocation191_spill] sm:$0xff] }
 0x3e1   :  { %4731 = vmatprep.subr.mxu1 %v20169_v30  ;;  %4517 = vmatpush1.msra.mxu0 %v20170_v36  ;;  %v20180_v30 = vld [vmem:[#allocation192_spill] sm:$0xff] }
 0x3e2   :  { %4737 = vmatpush1.msra.mxu1 %v20171_v38  ;;  %4519 = vmatprep.subr.mxu0 %v20172_v42  ;;  %v20182_v38 = vld [vmem:[#allocation194_spill] sm:$0xff] }
 0x3e3   :  { %4743 = vmatprep.subr.mxu1 %v20173_v49  ;;  %4521 = vmatpush1.msra.mxu0 %v20174_v56  ;;  %v20184_v49 = vld [vmem:[#allocation197_spill] sm:$0xff] }
 0x3e4   :  { %4749 = vmatpush1.msra.mxu1 %v20175_v46  ;;  %4523 = vmatprep.subr.mxu0 %v20176_v23  ;;  %v20186_v46 = vld [vmem:[#allocation205_spill] sm:$0xff] }
 0x3e5   :  { %4755 = vmatprep.subr.mxu1 %v20177_v60  ;;  %4525 = vmatpush1.msra.mxu0 %v20178_v5  ;;  %v20188_v60 = vld [vmem:[#allocation208_spill] sm:$0xff] }
 0x3e6   :  { %4761 = vmatpush1.msra.mxu1 %v20179_v32  ;;  %4527 = vmatprep.subr.mxu0 %v20180_v30  ;;  %v20193_v32 = vld [vmem:[#allocation225_spill] sm:$0xff] }
 0x3e7   :  { %4767 = vmatprep.subr.mxu1 %v20181_v1  ;;  %4529 = vmatpush1.msra.mxu0 %v20182_v38  ;;  %v20189_v1 = vld [vmem:[#allocation210_spill] sm:$0xff] }
 0x3e8   :  { %4773 = vmatpush1.msra.mxu1 %v20183_v63  ;;  %4531 = vmatprep.subr.mxu0 %v20184_v49  ;;  %v20190_v63 = vld [vmem:[#allocation216_spill] sm:$0xff] }
 0x3e9   :  { %4779 = vmatprep.subr.mxu1 %v20185_v25  ;;  %4533 = vmatpush1.msra.mxu0 %v20186_v46  ;;  %v20191_v25 = vld [vmem:[#allocation217_spill] sm:$0xff] }
 0x3ea   :  { %4785 = vmatpush1.msra.mxu1 %v20187_v10  ;;  %4818 = vmatprep.mubr.f32.mxu1 %v19527_v35  ;;  %v20192_v10 = vld [vmem:[#allocation221_spill] sm:$0xff] }
 0x3eb   :  { %4535 = vmatprep.subr.mxu0 %v20188_v60  ;;  %4820 = vmatmul.mubr.f32.vlgmr.msra.gmra.mxu1 %v16113_v61 }
 0x3ec   :  { %4964 = vmatprep.subr.mxu1 %v19904_v57  ;;  %4537 = vmatpush1.msra.mxu0 %v20189_v1 }
 0x3ed   :  { %4966 = vmatpush1.msra.mxu1 %v19906_v24  ;;  %4539 = vmatprep.subr.mxu0 %v20190_v63 }
 0x3ee   :  { %4968 = vmatprep.subr.mxu1 %v19908_v12  ;;  %4541 = vmatpush1.msra.mxu0 %v20191_v25 }
 0x3ef   :  { %4970 = vmatpush1.msra.mxu1 %v19910_v45  ;;  %4543 = vmatprep.subr.mxu0 %v20192_v10 }
 0x3f0   :  { %4972 = vmatprep.subr.mxu1 %v20148_v27  ;;  %4545 = vmatpush1.msra.mxu0 %v20193_v32 }
 0x3f1   :  { %4974 = vmatpush1.msra.mxu1 %v20150_v52  ;;  %4547 = vmatprep.subr.mxu0 %v20194_v59 }
 0x3f2   :  { %4976 = vmatprep.subr.mxu1 %v20152_v43  ;;  %4549 = vmatpush1.msra.mxu0 %v20195_v9 }
 0x3f3   :  { %4582 = vmatprep.mubr.f32.mxu0 %v19527_v35  ;;  %4978 = vmatpush1.msra.mxu1 %v20154_v41 }
 0x3f4   :  { %4588 = vmatmul.mubr.f32.vlgmr.msra.gmra.mxu0 %v16131_v19  ;;  %4828 = vmatprep.subr.mxu0 %v20196_v54  ;;  %v20201_v19 = vld [vmem:[#allocation151_spill] sm:$0xff]  ;;  %v20202_v54 = vld [vmem:[#allocation154_spill] sm:$0xff] }
 0x3f5   :  { %4980 = vmatprep.subr.mxu1 %v20156_v4  ;;  %4831 = vmatpush1.msra.mxu0 %v20197_v51  ;;  %v20203_v51 = vld [vmem:[#allocation159_spill] sm:$0xff] }
 0x3f6   :  { %4982 = vmatpush1.msra.mxu1 %v20158_v20  ;;  %4834 = vmatprep.subr.mxu0 %v20198_v55  ;;  %v20204_v55 = vld [vmem:[#allocation161_spill] sm:$0xff] }
 0x3f7   :  { %4984 = vmatprep.subr.mxu1 %v20160_v21  ;;  %4837 = vmatpush1.msra.mxu0 %v20199_v58  ;;  %v20205_v58 = vld [vmem:[#allocation164_spill] sm:$0xff] }
 0x3f8   :  { %4986 = vmatpush1.msra.mxu1 %v20162_v40  ;;  %4840 = vmatprep.subr.mxu0 %v20200_v8  ;;  %v20206_v8 = vld [vmem:[#allocation166_spill] sm:$0xff] }
 0x3f9   :  { %4988 = vmatprep.subr.mxu1 %v20164_v11  ;;  %4843 = vmatpush1.msra.mxu0 %v20201_v19  ;;  %v20207_v19 = vld [vmem:[#allocation167_spill] sm:$0xff] }
 0x3fa   :  { %4990 = vmatpush1.msra.mxu1 %v20166_v0  ;;  %4846 = vmatprep.subr.mxu0 %v20202_v54  ;;  %v20208_v54 = vld [vmem:[#allocation171_spill] sm:$0xff] }
 0x3fb   :  { %4992 = vmatprep.subr.mxu1 %v20168_v17  ;;  %4849 = vmatpush1.msra.mxu0 %v20203_v51  ;;  %v20209_v51 = vld [vmem:[#allocation177_spill] sm:$0xff] }
 0x3fc   :  { %4994 = vmatpush1.msra.mxu1 %v20170_v36  ;;  %4852 = vmatprep.subr.mxu0 %v20204_v55  ;;  %v20210_v55 = vld [vmem:[#allocation184_spill] sm:$0xff] }
 0x3fd   :  { %4996 = vmatprep.subr.mxu1 %v20172_v42  ;;  %4855 = vmatpush1.msra.mxu0 %v20205_v58  ;;  %v20211_v58 = vld [vmem:[#allocation187_spill] sm:$0xff] }
 0x3fe   :  { %4998 = vmatpush1.msra.mxu1 %v20174_v56  ;;  %4858 = vmatprep.subr.mxu0 %v20206_v8  ;;  %v20212_v8 = vld [vmem:[#allocation190_spill] sm:$0xff] }
 0x3ff   :  { %5000 = vmatprep.subr.mxu1 %v20176_v23  ;;  %4861 = vmatpush1.msra.mxu0 %v20207_v19  ;;  %v20213_v19 = vld [vmem:[#allocation199_spill] sm:$0xff] }
 0x400   :  { %5002 = vmatpush1.msra.mxu1 %v20178_v5  ;;  %4864 = vmatprep.subr.mxu0 %v20208_v54  ;;  %v20214_v54 = vld [vmem:[#allocation202_spill] sm:$0xff] }
 0x401   :  { %5004 = vmatprep.subr.mxu1 %v20180_v30  ;;  %4867 = vmatpush1.msra.mxu0 %v20209_v51  ;;  %v20215_v51 = vld [vmem:[#allocation206_spill] sm:$0xff] }
 0x402   :  { %5006 = vmatpush1.msra.mxu1 %v20182_v38  ;;  %4870 = vmatprep.subr.mxu0 %v20210_v55  ;;  %v20216_v55 = vld [vmem:[#allocation209_spill] sm:$0xff] }
 0x403   :  { %5008 = vmatprep.subr.mxu1 %v20184_v49  ;;  %4873 = vmatpush1.msra.mxu0 %v20211_v58  ;;  %v20217_v58 = vld [vmem:[#allocation212_spill] sm:$0xff] }
 0x404   :  { %5010 = vmatpush1.msra.mxu1 %v20186_v46  ;;  %4876 = vmatprep.subr.mxu0 %v20212_v8  ;;  %v20218_v8 = vld [vmem:[#allocation215_spill] sm:$0xff] }
 0x405   :  { %5012 = vmatprep.subr.mxu1 %v20188_v60  ;;  %4879 = vmatpush1.msra.mxu0 %v20213_v19  ;;  %v20219_v19 = vld [vmem:[#allocation219_spill] sm:$0xff] }
 0x406   :  { %5014 = vmatpush1.msra.mxu1 %v20189_v1  ;;  %4882 = vmatprep.subr.mxu0 %v20214_v54  ;;  %v20259_v54 = vld [vmem:[#allocation37_spill] sm:$0xff] }
 0x407   :  { %5016 = vmatprep.subr.mxu1 %v20190_v63  ;;  %4885 = vmatpush1.msra.mxu0 %v20215_v51  ;;  %v20220_v51 = vld [vmem:[#allocation223_spill] sm:$0xff] }
 0x408   :  { %5018 = vmatpush1.msra.mxu1 %v20191_v25  ;;  %4888 = vmatprep.subr.mxu0 %v20216_v55  ;;  %v20221_v55 = vld [vmem:[#allocation229_spill] sm:$0xff] }
 0x409   :  { %5020 = vmatprep.subr.mxu1 %v20192_v10  ;;  %4891 = vmatpush1.msra.mxu0 %v20217_v58  ;;  %v20222_v58 = vld [vmem:[#allocation232_spill] sm:$0xff] }
 0x40a   :  { %5022 = vmatpush1.msra.mxu1 %v20193_v32  ;;  %4894 = vmatprep.subr.mxu0 %v20218_v8  ;;  %v20223_v8 = vld [vmem:[#allocation235_spill] sm:$0xff] }
 0x40b   :  { %5024 = vmatprep.subr.mxu1 %v20194_v59  ;;  %4897 = vmatpush1.msra.mxu0 %v20219_v19  ;;  %v20224_v19 = vld [vmem:[#allocation237_spill] sm:$0xff] }
 0x40c   :  { %5026 = vmatpush1.msra.mxu1 %v20195_v9  ;;  %5059 = vmatprep.mubr.f32.mxu1 %v19527_v35 }
 0x40d   :  { %4900 = vmatprep.subr.mxu0 %v20220_v51  ;;  %5063 = vmatmul.mubr.f32.vlgmr.msra.gmra.mxu1 %v16123_v22  ;;  %v20225_v51 = vld [vmem:[#allocation240_spill] sm:$0xff]  ;;  %v20226_v22 = vld [vmem:[#allocation243_spill] sm:$0xff] }
 0x40e   :  { %5238 = vmatprep.subr.mxu1 %v19904_v57  ;;  %4903 = vmatpush1.msra.mxu0 %v20221_v55  ;;  %v20227_v55 = vld [vmem:[#allocation246_spill] sm:$0xff] }
 0x40f   :  { %5240 = vmatpush1.msra.mxu1 %v19906_v24  ;;  %4906 = vmatprep.subr.mxu0 %v20222_v58  ;;  %v20257_v58 = vld [vmem:[#allocation36_spill] sm:$0xff] }
 0x410   :  { %5242 = vmatprep.subr.mxu1 %v19908_v12  ;;  %4909 = vmatpush1.msra.mxu0 %v20223_v8  ;;  %v20228_v8 = vld [vmem:[#allocation147_spill] sm:$0xff] }
 0x411   :  { %5244 = vmatpush1.msra.mxu1 %v19910_v45  ;;  %4912 = vmatprep.subr.mxu0 %v20224_v19  ;;  %v20229_v19 = vld [vmem:[#allocation149_spill] sm:$0xff] }
 0x412   :  { %5246 = vmatprep.subr.mxu1 %v20148_v27  ;;  %4915 = vmatpush1.msra.mxu0 %v20225_v51  ;;  %v20230_v51 = vld [vmem:[#allocation150_spill] sm:$0xff] }
 0x413   :  { %5248 = vmatpush1.msra.mxu1 %v20150_v52  ;;  %4918 = vmatprep.subr.mxu0 %v20226_v22  ;;  %v20231_v22 = vld [vmem:[#allocation153_spill] sm:$0xff] }
 0x414   :  { %5250 = vmatprep.subr.mxu1 %v20152_v43  ;;  %4921 = vmatpush1.msra.mxu0 %v20227_v55  ;;  %v20232_v55 = vld [vmem:[#allocation157_spill] sm:$0xff] }
 0x415   :  { %4954 = vmatprep.mubr.f32.mxu0 %v19527_v35  ;;  %5252 = vmatpush1.msra.mxu1 %v20154_v41 }
 0x416   :  { %4957 = vmatmul.mubr.f32.vlgmr.msra.gmra.mxu0 %v16117_v26  ;;  %5072 = vmatprep.subr.mxu0 %v20228_v8  ;;  %v20233_v26 = vld [vmem:[#allocation160_spill] sm:$0xff]  ;;  %v20234_v8 = vld [vmem:[#allocation163_spill] sm:$0xff] }
 0x417   :  { %5254 = vmatprep.subr.mxu1 %v20156_v4  ;;  %5076 = vmatpush1.msra.mxu0 %v20229_v19  ;;  %v20235_v19 = vld [vmem:[#allocation170_spill] sm:$0xff] }
 0x418   :  { %5256 = vmatpush1.msra.mxu1 %v20158_v20  ;;  %5080 = vmatprep.subr.mxu0 %v20230_v51  ;;  %v20236_v51 = vld [vmem:[#allocation174_spill] sm:$0xff] }
 0x419   :  { %5258 = vmatprep.subr.mxu1 %v20160_v21  ;;  %5084 = vmatpush1.msra.mxu0 %v20231_v22  ;;  %v20237_v22 = vld [vmem:[#allocation176_spill] sm:$0xff] }
 0x41a   :  { %5260 = vmatpush1.msra.mxu1 %v20162_v40  ;;  %5088 = vmatprep.subr.mxu0 %v20232_v55  ;;  %v20238_v55 = vld [vmem:[#allocation180_spill] sm:$0xff] }
 0x41b   :  { %5262 = vmatprep.subr.mxu1 %v20164_v11  ;;  %5092 = vmatpush1.msra.mxu0 %v20233_v26  ;;  %v20239_v26 = vld [vmem:[#allocation181_spill] sm:$0xff] }
 0x41c   :  { %5264 = vmatpush1.msra.mxu1 %v20166_v0  ;;  %5096 = vmatprep.subr.mxu0 %v20234_v8  ;;  %v20240_v8 = vld [vmem:[#allocation183_spill] sm:$0xff] }
 0x41d   :  { %5266 = vmatprep.subr.mxu1 %v20168_v17  ;;  %5100 = vmatpush1.msra.mxu0 %v20235_v19  ;;  %v20241_v19 = vld [vmem:[#allocation189_spill] sm:$0xff] }
 0x41e   :  { %5268 = vmatpush1.msra.mxu1 %v20170_v36  ;;  %5104 = vmatprep.subr.mxu0 %v20236_v51  ;;  %v20242_v51 = vld [vmem:[#allocation195_spill] sm:$0xff] }
 0x41f   :  { %5270 = vmatprep.subr.mxu1 %v20172_v42  ;;  %5108 = vmatpush1.msra.mxu0 %v20237_v22  ;;  %v20243_v22 = vld [vmem:[#allocation198_spill] sm:$0xff] }
 0x420   :  { %5272 = vmatpush1.msra.mxu1 %v20174_v56  ;;  %5112 = vmatprep.subr.mxu0 %v20238_v55  ;;  %v20244_v55 = vld [vmem:[#allocation201_spill] sm:$0xff] }
 0x421   :  { %5274 = vmatprep.subr.mxu1 %v20176_v23  ;;  %5116 = vmatpush1.msra.mxu0 %v20239_v26  ;;  %v20245_v26 = vld [vmem:[#allocation211_spill] sm:$0xff] }
 0x422   :  { %5276 = vmatpush1.msra.mxu1 %v20178_v5  ;;  %5120 = vmatprep.subr.mxu0 %v20240_v8  ;;  %v20246_v8 = vld [vmem:[#allocation214_spill] sm:$0xff] }
 0x423   :  { %5278 = vmatprep.subr.mxu1 %v20180_v30  ;;  %5124 = vmatpush1.msra.mxu0 %v20241_v19  ;;  %v20247_v19 = vld [vmem:[#allocation218_spill] sm:$0xff] }
 0x424   :  { %5280 = vmatpush1.msra.mxu1 %v20182_v38  ;;  %5128 = vmatprep.subr.mxu0 %v20242_v51  ;;  %v20248_v51 = vld [vmem:[#allocation222_spill] sm:$0xff] }
 0x425   :  { %5282 = vmatprep.subr.mxu1 %v20184_v49  ;;  %5132 = vmatpush1.msra.mxu0 %v20243_v22  ;;  %v20249_v22 = vld [vmem:[#allocation226_spill] sm:$0xff] }
 0x426   :  { %5284 = vmatpush1.msra.mxu1 %v20186_v46  ;;  %5136 = vmatprep.subr.mxu0 %v20244_v55  ;;  %v20250_v55 = vld [vmem:[#allocation228_spill] sm:$0xff] }
 0x427   :  { %5286 = vmatprep.subr.mxu1 %v20188_v60  ;;  %5140 = vmatpush1.msra.mxu0 %v20245_v26  ;;  %v20251_v26 = vld [vmem:[#allocation231_spill] sm:$0xff] }
 0x428   :  { %5288 = vmatpush1.msra.mxu1 %v20189_v1  ;;  %5144 = vmatprep.subr.mxu0 %v20246_v8  ;;  %v20255_v8 = vld [vmem:[#allocation33_spill] sm:$0xff] }
 0x429   :  { %5290 = vmatprep.subr.mxu1 %v20190_v63  ;;  %5148 = vmatpush1.msra.mxu0 %v20247_v19  ;;  %v20252_v19 = vld [vmem:[#allocation234_spill] sm:$0xff] }
 0x42a   :  { %5292 = vmatpush1.msra.mxu1 %v20191_v25  ;;  %5152 = vmatprep.subr.mxu0 %v20248_v51  ;;  %v20253_v51 = vld [vmem:[#allocation239_spill] sm:$0xff] }
 0x42b   :  { %5294 = vmatprep.subr.mxu1 %v20192_v10  ;;  %5156 = vmatpush1.msra.mxu0 %v20249_v22  ;;  %v20254_v22 = vld [vmem:[#allocation242_spill] sm:$0xff] }
 0x42c   :  { %5296 = vmatpush1.msra.mxu1 %v20193_v32  ;;  %5160 = vmatprep.subr.mxu0 %v20250_v55  ;;  %v20256_v55 = vld [vmem:[#allocation245_spill] sm:$0xff]  ;;  %v20264_v32 = vld [vmem:[#allocation254_spill] sm:$0xff] }
 0x42d   :  { %5298 = vmatprep.subr.mxu1 %v20194_v59  ;;  %5164 = vmatpush1.msra.mxu0 %v20251_v26  ;;  %v20258_v26 = vld [vmem:[#allocation248_spill] sm:$0xff] }
 0x42e   :  { %5300 = vmatpush1.msra.mxu1 %v20195_v9  ;;  %5333 = vmatprep.mubr.f32.mxu1 %v19527_v35  ;;  %v20260_v9 = vld [vmem:[#allocation250_spill] sm:$0xff]  ;;  %v20262_v59 = vld [vmem:[#allocation252_spill] sm:$0xff] }
 0x42f   :  { %5168 = vmatprep.subr.mxu0 %v20252_v19  ;;  %5335 = vmatmul.mubr.f32.vlgmr.msra.gmra.mxu1 %v16113_v61  ;;  %v20261_v19 = vld [vmem:[#allocation39_spill] sm:$0xff] }
 0x430   :  { %5172 = vmatpush1.msra.mxu0 %v20253_v51  ;;  %5229 = vmatprep.mubr.f32.mxu0 %v19527_v35  ;;  %v20263_v51 = vld [vmem:[#allocation42_spill] sm:$0xff] }
 0x431   :  { %5176 = vmatprep.subr.mxu0 %v20254_v22  ;;  %5494 = vmatprep.subr.mxu1 %v20255_v8  ;;  %v20265_v22 = vld [vmem:[#allocation45_spill] sm:$0xff] }
 0x432   :  { %5180 = vmatpush1.msra.mxu0 %v20256_v55  ;;  %5500 = vmatpush1.msra.mxu1 %v20257_v58  ;;  %v20266_v55 = vld [vmem:[#allocation49_spill] sm:$0xff]  ;;  %v20267_v58 = vld [vmem:[#allocation59_spill] sm:$0xff] }
 0x433   :  { %5184 = vmatprep.subr.mxu0 %v20258_v26  ;;  %5506 = vmatprep.subr.mxu1 %v20259_v54  ;;  %v20268_v54 = vld [vmem:[#allocation62_spill] sm:$0xff]  ;;  %v20302_v26 = vld [vmem:[#allocation15_spill] sm:$0xff] }
 0x434   :  { %5188 = vmatpush1.msra.mxu0 %v20260_v9  ;;  %5512 = vmatpush1.msra.mxu1 %v20261_v19  ;;  %v20269_v19 = vld [vmem:[#allocation65_spill] sm:$0xff]  ;;  %v20300_v9 = vld [vmem:[#allocation96_spill] sm:$0xff] }
 0x435   :  { %5192 = vmatprep.subr.mxu0 %v20262_v59  ;;  %5518 = vmatprep.subr.mxu1 %v20263_v51  ;;  %v20270_v51 = vld [vmem:[#allocation68_spill] sm:$0xff]  ;;  %v20298_v59 = vld [vmem:[#allocation87_spill] sm:$0xff] }
 0x436   :  { %5196 = vmatpush1.msra.mxu0 %v20264_v32  ;;  %5524 = vmatpush1.msra.mxu1 %v20265_v22  ;;  %v20271_v22 = vld [vmem:[#allocation71_spill] sm:$0xff]  ;;  %v20293_v32 = vld [vmem:[#allocation133_spill] sm:$0xff] }
 0x437   :  { %5231 = vmatmul.mubr.f32.vlgmr.msra.gmra.mxu0 %v16113_v61  ;;  %5530 = vmatprep.subr.mxu1 %v20266_v55  ;;  %v20272_v61 = vld [vmem:[#allocation74_spill] sm:$0xff]  ;;  %v20291_v55 = vld [vmem:[#allocation132_spill] sm:$0xff] }
 0x438   :  { %5536 = vmatpush1.msra.mxu1 %v20267_v58  ;;  %5382 = vmatprep.subr.mxu0 %v19856_v7  ;;  %v20273_v58 = vld [vmem:[#allocation78_spill] sm:$0xff] }
 0x439   :  { %5542 = vmatprep.subr.mxu1 %v20268_v54  ;;  %5384 = vmatpush1.msra.mxu0 %v19756_v50  ;;  %v20274_v54 = vld [vmem:[#allocation84_spill] sm:$0xff] }
 0x43a   :  { %5548 = vmatpush1.msra.mxu1 %v20269_v19  ;;  %5386 = vmatprep.subr.mxu0 %v19757_v33  ;;  %v20275_v19 = vld [vmem:[#allocation88_spill] sm:$0xff] }
 0x43b   :  { %5554 = vmatprep.subr.mxu1 %v20270_v51  ;;  %5388 = vmatpush1.msra.mxu0 %v19758_v15  ;;  %v20276_v51 = vld [vmem:[#allocation94_spill] sm:$0xff] }
 0x43c   :  { %5560 = vmatpush1.msra.mxu1 %v20271_v22  ;;  %5390 = vmatprep.subr.mxu0 %v19759_v47  ;;  %v20277_v22 = vld [vmem:[#allocation97_spill] sm:$0xff] }
 0x43d   :  { %5566 = vmatprep.subr.mxu1 %v20272_v61  ;;  %5392 = vmatpush1.msra.mxu0 %v19760_v18  ;;  %v20278_v61 = vld [vmem:[#allocation100_spill] sm:$0xff] }
 0x43e   :  { %5572 = vmatpush1.msra.mxu1 %v20273_v58  ;;  %5394 = vmatprep.subr.mxu0 %v19763_v62  ;;  %v20279_v58 = vld [vmem:[#allocation103_spill] sm:$0xff] }
 0x43f   :  { %5578 = vmatprep.subr.mxu1 %v20274_v54  ;;  %5396 = vmatpush1.msra.mxu0 %v19765_v31  ;;  %v20280_v54 = vld [vmem:[#allocation106_spill] sm:$0xff] }
 0x440   :  { %5584 = vmatpush1.msra.mxu1 %v20275_v19  ;;  %5398 = vmatprep.subr.mxu0 %v19767_v6  ;;  %v20281_v19 = vld [vmem:[#allocation110_spill] sm:$0xff] }
 0x441   :  { %5590 = vmatprep.subr.mxu1 %v20276_v51  ;;  %5400 = vmatpush1.msra.mxu0 %v19769_v28  ;;  %v20282_v51 = vld [vmem:[#allocation116_spill] sm:$0xff] }
 0x442   :  { %5596 = vmatpush1.msra.mxu1 %v20277_v22  ;;  %5402 = vmatprep.subr.mxu0 %v19771_v44  ;;  %v20283_v22 = vld [vmem:[#allocation119_spill] sm:$0xff] }
 0x443   :  { %5602 = vmatprep.subr.mxu1 %v20278_v61  ;;  %5404 = vmatpush1.msra.mxu0 %v19773_v29  ;;  %v20284_v61 = vld [vmem:[#allocation121_spill] sm:$0xff] }
 0x444   :  { %5608 = vmatpush1.msra.mxu1 %v20279_v58  ;;  %5406 = vmatprep.subr.mxu0 %v19775_v39  ;;  %v20285_v58 = vld [vmem:[#allocation124_spill] sm:$0xff] }
 0x445   :  { %5614 = vmatprep.subr.mxu1 %v20280_v54  ;;  %5408 = vmatpush1.msra.mxu0 %v19777_v13  ;;  %v20286_v54 = vld [vmem:[#allocation125_spill] sm:$0xff] }
 0x446   :  { %5620 = vmatpush1.msra.mxu1 %v20281_v19  ;;  %5410 = vmatprep.subr.mxu0 %v19779_v16  ;;  %v20287_v19 = vld [vmem:[#allocation127_spill] sm:$0xff] }
 0x447   :  { %5626 = vmatprep.subr.mxu1 %v20282_v51  ;;  %5412 = vmatpush1.msra.mxu0 %v19781_v34  ;;  %v20288_v51 = vld [vmem:[#allocation129_spill] sm:$0xff]  ;;  %v3966_v25 = vpop.f32.mrf.mxu1 }
 0x448   :  { %5632 = vmatpush1.msra.mxu1 %v20283_v22  ;;  %5414 = vmatprep.subr.mxu0 %v19783_v2  ;;  %v20289_v22 = vld [vmem:[#allocation131_spill] sm:$0xff] }
 0x449   :  { %5638 = vmatprep.subr.mxu1 %v20284_v61  ;;  %5416 = vmatpush1.msra.mxu0 %v19785_v48  ;;  %v20290_v61 = vld [vmem:[#allocation64_spill] sm:$0xff]  ;;  %v3968_v1 = vpop.f32.mrf.mxu1 }
 0x44a   :  { %5644 = vmatpush1.msra.mxu1 %v20285_v58  ;;  %5418 = vmatprep.subr.mxu0 %v19787_v53  ;;  %v20292_v58 = vld [vmem:[#allocation69_spill] sm:$0xff] }
 0x44b   :  { %5650 = vmatprep.subr.mxu1 %v20286_v54  ;;  %5420 = vmatpush1.msra.mxu0 %v19789_v14  ;;  %v20294_v54 = vld [vmem:[#allocation73_spill] sm:$0xff] }
 0x44c   :  { %5656 = vmatpush1.msra.mxu1 %v20287_v19  ;;  %5422 = vmatprep.subr.mxu0 %v19791_v37  ;;  %v20295_v19 = vld [vmem:[#allocation77_spill] sm:$0xff] }
 0x44d   :  { %5662 = vmatprep.subr.mxu1 %v20288_v51  ;;  %5424 = vmatpush1.msra.mxu0 %v19793_v3  ;;  %v20296_v51 = vld [vmem:[#allocation80_spill] sm:$0xff] }
 0x44e   :  { %5668 = vmatpush1.msra.mxu1 %v20289_v22  ;;  %5426 = vmatprep.subr.mxu0 %v20290_v61  ;;  %v20297_v22 = vld [vmem:[#allocation83_spill] sm:$0xff] }
 0x44f   :  { %5674 = vmatprep.subr.mxu1 %v20291_v55  ;;  %5428 = vmatpush1.msra.mxu0 %v20292_v58  ;;  %v20299_v55 = vld [vmem:[#allocation92_spill] sm:$0xff]  ;;  %v3734_v8 = vpop.f32.mrf.mxu0 }
 0x450   :  { %5680 = vmatpush1.msra.mxu1 %v20293_v32  ;;  %5430 = vmatprep.subr.mxu0 %v20294_v54  ;;  %v20301_v32 = vld [vmem:[#allocation101_spill] sm:$0xff]  ;;  %v3967_v30 = vadd.f32 %v3966_v25, %v3734_v8  ;;  %v20303_v25 = vld [vmem:[#allocation11_spill] sm:$0xff] }
 0x451   :  { %5713 = vmatprep.mubr.f32.mxu1 %v19527_v35  ;;  %5859 = vmatprep.subr.mxu1 %v19856_v7  ;;  %v3736_v10 = vpop.f32.mrf.mxu0 }
 0x452   :  { %5432 = vmatpush1.msra.mxu0 %v20295_v19  ;;  %5477 = vmatprep.mubr.f32.mxu0 %v19527_v35  ;;  %v3969_v46 = vadd.f32 %v3968_v1, %v3736_v10 }
 0x453   :  { %5434 = vmatprep.subr.mxu0 %v20296_v51 }
 0x454   :  { %5436 = vmatpush1.msra.mxu0 %v20297_v22 }
 0x455   :  { %5438 = vmatprep.subr.mxu0 %v20298_v59 }
 0x456   :  { %5440 = vmatpush1.msra.mxu0 %v20299_v55 }
 0x457   :  { %5442 = vmatprep.subr.mxu0 %v20300_v9 }
 0x458   :  { %5444 = vmatpush1.msra.mxu0 %v20301_v32 }
 0x459   :  { %5723 = vmatprep.subr.mxu0 %v20302_v26 }
 0x467   :  { %v4209_v49 = vpop.f32.mrf.mxu1 }
 0x469   :  { %v4211_v56 = vpop.f32.mrf.mxu1 }
 0x470   :  { %v4103_v63 = vpop.f32.mrf.mxu0 }
 0x471   :  { %v4104_v23 = vadd.f32 %v4103_v63, %v3967_v30 }
 0x472   :  { %v4105_v60 = vpop.f32.mrf.mxu0 }
 0x473   :  { %v4106_v5 = vadd.f32 %v4105_v60, %v3969_v46  ;;  %v4210_v0 = vadd.f32 %v4209_v49, %v4104_v23 }
 0x475   :  { %v4212_v36 = vadd.f32 %v4211_v56, %v4106_v5  ;;  %v20304_v5 = vld [vmem:[#allocation12_spill] sm:$0xff] }
 0x489   :  { %v4481_v17 = vpop.f32.mrf.mxu1 }
 0x48b   :  { %v4483_v21 = vpop.f32.mrf.mxu1 }
 0x492   :  { %v4377_v38 = vpop.f32.mrf.mxu0 }
 0x493   :  { %v4378_v40 = vadd.f32 %v4377_v38, %v4210_v0 }
 0x494   :  { %v4379_v42 = vpop.f32.mrf.mxu0 }
 0x495   :  { %v4380_v11 = vadd.f32 %v4379_v42, %v4212_v36  ;;  %v4482_v4 = vadd.f32 %v4481_v17, %v4378_v40 }
 0x497   :  { %v4484_v20 = vadd.f32 %v4483_v21, %v4380_v11  ;;  %v5345_v1 = vrot.slane %v4482_v4, 4 }
 0x499   :  { %v5346_v52 = vrot.slane %v4484_v20, 4  ;;  %v5353_v49 = vadd.f32 %v5345_v1, %v20304_v5  ;;  %v20415_v5 = vld [vmem:[#allocation257_spill] sm:$0xff] }
 0x49b   :  { %v5354_v8 = vadd.f32 %v5346_v52, %v20303_v25  ;;  %v5357_v36 = vmul.f32 0.5, %v5353_v49  ;;  %v20417_v25 = vld [vmem:[#allocation258_spill] sm:$0xff] }
 0x49d   :  { %v5358_v56 = vmul.f32 0.5, %v5354_v8  ;;  %v20306_v8 = vld [vmem:[#allocation14_spill] sm:$0xff] }
 0x49f   :  { %14168 = vtanh.f32 %v5358_v56 }
 0x4a0   :  { %14170 = vtanh.f32 %v5357_v36 }
 0x4ab   :  { %v4821_v41 = vpop.f32.mrf.mxu1 }
 0x4ad   :  { %v4823_v27 = vpop.f32.mrf.mxu1 }
 0x4b4   :  { %v4589_v26 = vpop.f32.mrf.mxu0 }
 0x4b5   :  { %v4822_v63 = vadd.f32 %v4821_v41, %v4589_v26 }
 0x4b6   :  { %v4591_v43 = vpop.f32.mrf.mxu0 }
 0x4b7   :  { %v4824_v30 = vadd.f32 %v4823_v27, %v4591_v43  ;;  %v20305_v27 = vld [vmem:[#allocation13_spill] sm:$0xff] }
 0x4cd   :  { %v5064_v60 = vpop.f32.mrf.mxu1 }
 0x4cf   :  { %v5066_v42 = vpop.f32.mrf.mxu1 }
 0x4d6   :  { %v4958_v10 = vpop.f32.mrf.mxu0 }
 0x4d7   :  { %v4959_v23 = vadd.f32 %v4958_v10, %v4822_v63 }
 0x4d8   :  { %v4960_v46 = vpop.f32.mrf.mxu0 }
 0x4d9   :  { %v4961_v38 = vadd.f32 %v4960_v46, %v4824_v30  ;;  %v5065_v0 = vadd.f32 %v5064_v60, %v4959_v23  ;;  %v14169_v46 = vpop.eup %14168 }
 0x4da   :  { %v14171_v30 = vpop.eup %14170  ;;  %v5364_v60 = vmul.f32 0.5, %v14169_v46 }
 0x4db   :  { %v5067_v20 = vadd.f32 %v5066_v42, %v4961_v38  ;;  %v5363_v23 = vmul.f32 0.5, %v14171_v30  ;;  %v20307_v42 = vld [vmem:[#allocation18_spill] sm:$0xff]  ;;  %v20309_v30 = vld [vmem:[#allocation17_spill] sm:$0xff] }
 0x4dc   :  { %v5367_v38 = vadd.f32 0.5, %v5364_v60  ;;  %v5371_v36 = vrot.slane %v20307_v42, 6  ;;  %v20310_v60 = vld [vmem:[#allocation19_spill] sm:$0xff]  ;;  %v20315_v42 = vld [vmem:[#allocation40_spill] sm:$0xff] }
 0x4dd   :  { %v5366_v56 = vadd.f32 0.5, %v5363_v23  ;;  %v20312_v23 = vld [vmem:[#allocation26_spill] sm:$0xff] }
 0x4ef   :  { %v5336_v40 = vpop.f32.mrf.mxu1 }
 0x4f1   :  { %v5338_v52 = vpop.f32.mrf.mxu1 }
 0x4f7   :  { %v5232_v17 = vpop.f32.mrf.mxu0 }
 0x4f8   :  { %v5233_v21 = vadd.f32 %v5232_v17, %v5065_v0  ;;  %v5373_v17 = vmul.f32 %v5371_v36, %v5367_v38  ;;  %v20313_v38 = vld [vmem:[#allocation29_spill] sm:$0xff]  ;;  %v20316_v36 = vld [vmem:[#allocation43_spill] sm:$0xff] }
 0x4f9   :  { %v5234_v11 = vpop.f32.mrf.mxu0 }
 0x4fa   :  { %v5235_v4 = vadd.f32 %v5234_v11, %v5067_v20  ;;  %v5337_v26 = vadd.f32 %v5336_v40, %v5233_v21 }
 0x4fc   :  { %v5339_v41 = vadd.f32 %v5338_v52, %v5235_v4  ;;  %v5347_v10 = vrot.slane %v5337_v26, 4 }
 0x4fe   :  { %v5348_v43 = vrot.slane %v5339_v41, 4  ;;  %v5355_v63 = vadd.f32 %v5347_v10, %v20306_v8  ;;  %v20411_v8 = vld [vmem:[#allocation255_spill] sm:$0xff] }
 0x500   :  { %v5356_v1 = vadd.f32 %v5348_v43, %v20305_v27  ;;  %v5359_v49 = vmul.f32 0.5, %v5355_v63  ;;  %v20413_v27 = vld [vmem:[#allocation256_spill] sm:$0xff] }
 0x502   :  { %14172 = vtanh.f32 %v5356_v1 }
 0x503   :  { %14174 = vtanh.f32 %v5359_v49  ;;  %v20311_v49 = vld [vmem:[#allocation22_spill] sm:$0xff] }
 0x50f   :  { %v14173_v0 = vpop.eup %14172 }
 0x510   :  { %v5374_v40 = vmul.f32 %v14173_v0, %v5366_v56  ;;  %v14175_v21 = vpop.eup %14174  ;;  %v20314_v56 = vld [vmem:[#allocation32_spill] sm:$0xff]  ;;  %v20317_v0 = vld [vmem:[#allocation47_spill] sm:$0xff] }
 0x511   :  { %v5365_v11 = vmul.f32 0.5, %v14175_v21  ;;  %v20320_v21 = vld [vmem:[#allocation57_spill] sm:$0xff] }
 0x512   :  { %v16538_v20 = vadd.f32 %v5374_v40, %v5373_v17  ;;  %v20318_v17 = vld [vmem:[#allocation51_spill] sm:$0xff]  ;;  %v20319_v40 = vld [vmem:[#allocation54_spill] sm:$0xff] }
 0x513   :  { %v5368_v4 = vadd.f32 0.5, %v5365_v11  ;;  %v20321_v11 = vld [vmem:[#allocation61_spill] sm:$0xff] }
 0x514   :  { %20308 = vst [vmem:[#allocation21_spill] sm:$0xff] %v16538_v20  ;;  %14176 = vtanh.f32 %v16538_v20  ;;  %v20409_v20 = vld [vmem:[#allocation253_spill] sm:$0xff] }
 0x521   :  { %v14177_v52 = vpop.eup %14176 }
 0x522   :  { %v5377_v41 = vmul.f32 %v14177_v52, %v5368_v4  ;;  %v20322_v4 = vld [vmem:[#allocation67_spill] sm:$0xff]  ;;  %v20323_v52 = vld [vmem:[#allocation70_spill] sm:$0xff] }
 0x524   :  { %v5379_v26 = vrot.slane %v5377_v41, 4  ;;  %v20324_v41 = vld [vmem:[#allocation76_spill] sm:$0xff] }
 0x526   :  { %v16541_v43 = vand.u32 4294901760, %v5379_v26 }
 0x528   :  { %5715 = vmatmul.mubr.f32.vlgmr.msra.gmra.mxu1 %v16541_v43  ;;  %v16545_v1 = vsub.f32 %v5379_v26, %v16541_v43  ;;  %v20325_v26 = vld [vmem:[#allocation79_spill] sm:$0xff] }
 0x529   :  { %5861 = vmatpush1.msra.mxu1 %v19756_v50  ;;  %5954 = vmatprep.mubr.f32.mxu1 %v19527_v35 }
 0x52a   :  { %5863 = vmatprep.subr.mxu1 %v19757_v33  ;;  %v16551_v10 = vand.u32 4294901760, %v16545_v1 }
 0x52b   :  { %5865 = vmatpush1.msra.mxu1 %v19758_v15 }
 0x52c   :  { %5867 = vmatprep.subr.mxu1 %v19759_v47  ;;  %v5481_v63 = vsub.f32 %v16545_v1, %v16551_v10 }
 0x52d   :  { %5869 = vmatpush1.msra.mxu1 %v19760_v18 }
 0x52e   :  { %5871 = vmatprep.subr.mxu1 %v19763_v62  ;;  %v16559_v46 = vand.u32 4294901760, %v5481_v63  ;;  %v20326_v63 = vld [vmem:[#allocation82_spill] sm:$0xff] }
 0x52f   :  { %5873 = vmatpush1.msra.mxu1 %v19765_v31 }
 0x530   :  { %5875 = vmatprep.subr.mxu1 %v19767_v6  ;;  %5483 = vmatmul.mubr.f32.vlgmr.msra.gmra.mxu0 %v16559_v46 }
 0x531   :  { %5726 = vmatpush1.msra.mxu0 %v20309_v30  ;;  %5877 = vmatpush1.msra.mxu1 %v19769_v28  ;;  %v20407_v30 = vld [vmem:[#allocation251_spill] sm:$0xff] }
 0x532   :  { %5729 = vmatprep.subr.mxu0 %v20310_v60  ;;  %5879 = vmatprep.subr.mxu1 %v19771_v44  ;;  %v20405_v60 = vld [vmem:[#allocation249_spill] sm:$0xff] }
 0x533   :  { %5732 = vmatpush1.msra.mxu0 %v20311_v49  ;;  %5881 = vmatpush1.msra.mxu1 %v19773_v29  ;;  %v20403_v49 = vld [vmem:[#allocation247_spill] sm:$0xff] }
 0x534   :  { %5735 = vmatprep.subr.mxu0 %v20312_v23  ;;  %5883 = vmatprep.subr.mxu1 %v19775_v39  ;;  %v20401_v23 = vld [vmem:[#allocation244_spill] sm:$0xff] }
 0x535   :  { %5738 = vmatpush1.msra.mxu0 %v20313_v38  ;;  %5885 = vmatpush1.msra.mxu1 %v19777_v13  ;;  %v20399_v38 = vld [vmem:[#allocation241_spill] sm:$0xff] }
 0x536   :  { %5741 = vmatprep.subr.mxu0 %v20314_v56  ;;  %5887 = vmatprep.subr.mxu1 %v19779_v16  ;;  %v20397_v56 = vld [vmem:[#allocation238_spill] sm:$0xff] }
 0x537   :  { %5744 = vmatpush1.msra.mxu0 %v20315_v42  ;;  %5889 = vmatpush1.msra.mxu1 %v19781_v34  ;;  %v20395_v42 = vld [vmem:[#allocation236_spill] sm:$0xff] }
 0x538   :  { %5747 = vmatprep.subr.mxu0 %v20316_v36  ;;  %5891 = vmatprep.subr.mxu1 %v19783_v2  ;;  %v20375_v36 = vld [vmem:[#allocation185_spill] sm:$0xff] }
 0x539   :  { %5750 = vmatpush1.msra.mxu0 %v20317_v0  ;;  %5893 = vmatpush1.msra.mxu1 %v19785_v48  ;;  %v20373_v0 = vld [vmem:[#allocation179_spill] sm:$0xff] }
 0x53a   :  { %5753 = vmatprep.subr.mxu0 %v20318_v17  ;;  %5895 = vmatprep.subr.mxu1 %v19787_v53  ;;  %v20372_v17 = vld [vmem:[#allocation120_spill] sm:$0xff] }
 0x53b   :  { %5756 = vmatpush1.msra.mxu0 %v20319_v40  ;;  %5897 = vmatpush1.msra.mxu1 %v19789_v14  ;;  %v20370_v40 = vld [vmem:[#allocation117_spill] sm:$0xff] }
 0x53c   :  { %5759 = vmatprep.subr.mxu0 %v20320_v21  ;;  %5899 = vmatprep.subr.mxu1 %v19791_v37  ;;  %v20368_v21 = vld [vmem:[#allocation114_spill] sm:$0xff] }
 0x53d   :  { %5762 = vmatpush1.msra.mxu0 %v20321_v11  ;;  %5901 = vmatpush1.msra.mxu1 %v19793_v3  ;;  %v20327_v11 = vld [vmem:[#allocation86_spill] sm:$0xff] }
 0x53e   :  { %5765 = vmatprep.subr.mxu0 %v20322_v4  ;;  %5903 = vmatprep.subr.mxu1 %v20290_v61  ;;  %v20328_v4 = vld [vmem:[#allocation90_spill] sm:$0xff] }
 0x53f   :  { %5768 = vmatpush1.msra.mxu0 %v20323_v52  ;;  %5905 = vmatpush1.msra.mxu1 %v20292_v58  ;;  %v20329_v52 = vld [vmem:[#allocation93_spill] sm:$0xff] }
 0x540   :  { %5771 = vmatprep.subr.mxu0 %v20324_v41  ;;  %5907 = vmatprep.subr.mxu1 %v20294_v54  ;;  %v20330_v41 = vld [vmem:[#allocation99_spill] sm:$0xff] }
 0x541   :  { %5774 = vmatpush1.msra.mxu0 %v20325_v26  ;;  %5909 = vmatpush1.msra.mxu1 %v20295_v19  ;;  %v20331_v26 = vld [vmem:[#allocation102_spill] sm:$0xff] }
 0x542   :  { %5777 = vmatprep.subr.mxu0 %v20326_v63  ;;  %5911 = vmatprep.subr.mxu1 %v20296_v51  ;;  %v20332_v63 = vld [vmem:[#allocation105_spill] sm:$0xff] }
 0x543   :  { %5780 = vmatpush1.msra.mxu0 %v20327_v11  ;;  %5913 = vmatpush1.msra.mxu1 %v20297_v22  ;;  %v20338_v11 = vld [vmem:[#allocation123_spill] sm:$0xff] }
 0x544   :  { %5783 = vmatprep.subr.mxu0 %v20328_v4  ;;  %5915 = vmatprep.subr.mxu1 %v20298_v59  ;;  %v20333_v4 = vld [vmem:[#allocation108_spill] sm:$0xff] }
 0x545   :  { %5786 = vmatpush1.msra.mxu0 %v20329_v52  ;;  %5917 = vmatpush1.msra.mxu1 %v20299_v55  ;;  %v20334_v52 = vld [vmem:[#allocation109_spill] sm:$0xff] }
 0x546   :  { %5789 = vmatprep.subr.mxu0 %v20330_v41  ;;  %5919 = vmatprep.subr.mxu1 %v20300_v9  ;;  %v20335_v41 = vld [vmem:[#allocation112_spill] sm:$0xff] }
 0x547   :  { %5792 = vmatpush1.msra.mxu0 %v20331_v26  ;;  %5921 = vmatpush1.msra.mxu1 %v20301_v32  ;;  %v20336_v26 = vld [vmem:[#allocation115_spill] sm:$0xff] }
 0x548   :  { %5795 = vmatprep.subr.mxu0 %v20332_v63  ;;  %5958 = vmatmul.mubr.f32.vlgmr.msra.gmra.mxu1 %v16551_v10  ;;  %v20337_v63 = vld [vmem:[#allocation118_spill] sm:$0xff] }
 0x549   :  { %6133 = vmatprep.subr.mxu1 %v19856_v7  ;;  %5798 = vmatpush1.msra.mxu0 %v20333_v4  ;;  %v20339_v4 = vld [vmem:[#allocation126_spill] sm:$0xff] }
 0x54a   :  { %6135 = vmatpush1.msra.mxu1 %v19756_v50  ;;  %5801 = vmatprep.subr.mxu0 %v20334_v52  ;;  %v20345_v52 = vld [vmem:[#allocation34_spill] sm:$0xff] }
 0x54b   :  { %6137 = vmatprep.subr.mxu1 %v19757_v33  ;;  %5804 = vmatpush1.msra.mxu0 %v20335_v41  ;;  %v20340_v41 = vld [vmem:[#allocation20_spill] sm:$0xff] }
 0x54c   :  { %6139 = vmatpush1.msra.mxu1 %v19758_v15  ;;  %5807 = vmatprep.subr.mxu0 %v20336_v26  ;;  %v20341_v26 = vld [vmem:[#allocation24_spill] sm:$0xff] }
 0x54d   :  { %6141 = vmatprep.subr.mxu1 %v19759_v47  ;;  %5810 = vmatpush1.msra.mxu0 %v20337_v63  ;;  %v20342_v63 = vld [vmem:[#allocation25_spill] sm:$0xff] }
 0x54e   :  { %6143 = vmatpush1.msra.mxu1 %v19760_v18  ;;  %5813 = vmatprep.subr.mxu0 %v20338_v11  ;;  %v20343_v11 = vld [vmem:[#allocation28_spill] sm:$0xff] }
 0x54f   :  { %6145 = vmatprep.subr.mxu1 %v19763_v62  ;;  %5816 = vmatpush1.msra.mxu0 %v20339_v4  ;;  %v20344_v4 = vld [vmem:[#allocation31_spill] sm:$0xff] }
 0x550   :  { %5849 = vmatprep.mubr.f32.mxu0 %v19527_v35  ;;  %6147 = vmatpush1.msra.mxu1 %v19765_v31 }
 0x551   :  { %5852 = vmatmul.mubr.f32.vlgmr.msra.gmra.mxu0 %v16545_v1  ;;  %5967 = vmatprep.subr.mxu0 %v20340_v41  ;;  %v20346_v41 = vld [vmem:[#allocation38_spill] sm:$0xff] }
 0x552   :  { %6149 = vmatprep.subr.mxu1 %v19767_v6  ;;  %5971 = vmatpush1.msra.mxu0 %v20341_v26  ;;  %v20347_v26 = vld [vmem:[#allocation46_spill] sm:$0xff] }
 0x553   :  { %6151 = vmatpush1.msra.mxu1 %v19769_v28  ;;  %5975 = vmatprep.subr.mxu0 %v20342_v63  ;;  %v20348_v63 = vld [vmem:[#allocation50_spill] sm:$0xff] }
 0x554   :  { %6153 = vmatprep.subr.mxu1 %v19771_v44  ;;  %5979 = vmatpush1.msra.mxu0 %v20343_v11  ;;  %v20349_v11 = vld [vmem:[#allocation53_spill] sm:$0xff] }
 0x555   :  { %6155 = vmatpush1.msra.mxu1 %v19773_v29  ;;  %5983 = vmatprep.subr.mxu0 %v20344_v4  ;;  %v20350_v4 = vld [vmem:[#allocation56_spill] sm:$0xff] }
 0x556   :  { %6157 = vmatprep.subr.mxu1 %v19775_v39  ;;  %5987 = vmatpush1.msra.mxu0 %v20345_v52  ;;  %v20351_v52 = vld [vmem:[#allocation60_spill] sm:$0xff] }
 0x557   :  { %6159 = vmatpush1.msra.mxu1 %v19777_v13  ;;  %5991 = vmatprep.subr.mxu0 %v20346_v41  ;;  %v20352_v41 = vld [vmem:[#allocation63_spill] sm:$0xff] }
 0x558   :  { %6161 = vmatprep.subr.mxu1 %v19779_v16  ;;  %5995 = vmatpush1.msra.mxu0 %v20347_v26  ;;  %v20353_v26 = vld [vmem:[#allocation66_spill] sm:$0xff] }
 0x559   :  { %6163 = vmatpush1.msra.mxu1 %v19781_v34  ;;  %5999 = vmatprep.subr.mxu0 %v20348_v63  ;;  %v20354_v63 = vld [vmem:[#allocation72_spill] sm:$0xff] }
 0x55a   :  { %6165 = vmatprep.subr.mxu1 %v19783_v2  ;;  %6003 = vmatpush1.msra.mxu0 %v20349_v11  ;;  %v20355_v11 = vld [vmem:[#allocation75_spill] sm:$0xff] }
 0x55b   :  { %6167 = vmatpush1.msra.mxu1 %v19785_v48  ;;  %6007 = vmatprep.subr.mxu0 %v20350_v4  ;;  %v20356_v4 = vld [vmem:[#allocation81_spill] sm:$0xff] }
 0x55c   :  { %6169 = vmatprep.subr.mxu1 %v19787_v53  ;;  %6011 = vmatpush1.msra.mxu0 %v20351_v52  ;;  %v20357_v52 = vld [vmem:[#allocation85_spill] sm:$0xff] }
 0x55d   :  { %6171 = vmatpush1.msra.mxu1 %v19789_v14  ;;  %6015 = vmatprep.subr.mxu0 %v20352_v41  ;;  %v20358_v41 = vld [vmem:[#allocation89_spill] sm:$0xff] }
 0x55e   :  { %6173 = vmatprep.subr.mxu1 %v19791_v37  ;;  %6019 = vmatpush1.msra.mxu0 %v20353_v26  ;;  %v20359_v26 = vld [vmem:[#allocation91_spill] sm:$0xff] }
 0x55f   :  { %6175 = vmatpush1.msra.mxu1 %v19793_v3  ;;  %6023 = vmatprep.subr.mxu0 %v20354_v63  ;;  %v20360_v63 = vld [vmem:[#allocation95_spill] sm:$0xff] }
 0x560   :  { %6177 = vmatprep.subr.mxu1 %v20290_v61  ;;  %6027 = vmatpush1.msra.mxu0 %v20355_v11  ;;  %v20361_v11 = vld [vmem:[#allocation98_spill] sm:$0xff]  ;;  %v20436_v61 = vld [vmem:[#allocation145_spill] sm:$0xff] }
 0x561   :  { %6179 = vmatpush1.msra.mxu1 %v20292_v58  ;;  %6031 = vmatprep.subr.mxu0 %v20356_v4  ;;  %v20362_v4 = vld [vmem:[#allocation104_spill] sm:$0xff] }
 0x562   :  { %6181 = vmatprep.subr.mxu1 %v20294_v54  ;;  %6035 = vmatpush1.msra.mxu0 %v20357_v52  ;;  %v20363_v52 = vld [vmem:[#allocation107_spill] sm:$0xff]  ;;  %v20434_v54 = vld [vmem:[#allocation142_spill] sm:$0xff]  ;;  %v20435_v58 = vld [vmem:[#allocation144_spill] sm:$0xff] }
 0x563   :  { %6183 = vmatpush1.msra.mxu1 %v20295_v19  ;;  %6039 = vmatprep.subr.mxu0 %v20358_v41  ;;  %v20366_v41 = vld [vmem:[#allocation113_spill] sm:$0xff] }
 0x564   :  { %6185 = vmatprep.subr.mxu1 %v20296_v51  ;;  %6043 = vmatpush1.msra.mxu0 %v20359_v26  ;;  %v20364_v26 = vld [vmem:[#allocation111_spill] sm:$0xff]  ;;  %v20433_v19 = vld [vmem:[#allocation141_spill] sm:$0xff] }
 0x565   :  { %6187 = vmatpush1.msra.mxu1 %v20297_v22  ;;  %6047 = vmatprep.subr.mxu0 %v20360_v63  ;;  %v20365_v63 = vld [vmem:[#allocation168_spill] sm:$0xff]  ;;  %v20431_v22 = vld [vmem:[#allocation233_spill] sm:$0xff]  ;;  %v20432_v51 = vld [vmem:[#allocation139_spill] sm:$0xff] }
 0x566   :  { %6189 = vmatprep.subr.mxu1 %v20298_v59  ;;  %6051 = vmatpush1.msra.mxu0 %v20361_v11  ;;  %v20367_v11 = vld [vmem:[#allocation172_spill] sm:$0xff]  ;;  %v20430_v59 = vld [vmem:[#allocation230_spill] sm:$0xff] }
 0x567   :  { %6191 = vmatpush1.msra.mxu1 %v20299_v55  ;;  %6055 = vmatprep.subr.mxu0 %v20362_v4  ;;  %v20369_v4 = vld [vmem:[#allocation173_spill] sm:$0xff] }
 0x568   :  { %6193 = vmatprep.subr.mxu1 %v20300_v9  ;;  %6059 = vmatpush1.msra.mxu0 %v20363_v52  ;;  %v20371_v52 = vld [vmem:[#allocation178_spill] sm:$0xff]  ;;  %v20421_v9 = vld [vmem:[#allocation260_spill] sm:$0xff]  ;;  %v20423_v55 = vld [vmem:[#allocation261_spill] sm:$0xff] }
 0x569   :  { %6195 = vmatpush1.msra.mxu1 %v20301_v32  ;;  %6228 = vmatprep.mubr.f32.mxu1 %v19527_v35  ;;  %v20419_v32 = vld [vmem:[#allocation259_spill] sm:$0xff] }
 0x56a   :  { %6063 = vmatprep.subr.mxu0 %v20364_v26  ;;  %6230 = vmatmul.mubr.f32.vlgmr.msra.gmra.mxu1 %v16541_v43  ;;  %v20374_v26 = vld [vmem:[#allocation122_spill] sm:$0xff] }
 0x56b   :  { %6349 = vmatprep.subr.mxu1 %v20365_v63  ;;  %6067 = vmatpush1.msra.mxu0 %v20366_v41  ;;  %v20376_v63 = vld [vmem:[#allocation128_spill] sm:$0xff] }
 0x56c   :  { %6355 = vmatpush1.msra.mxu1 %v20367_v11  ;;  %6071 = vmatprep.subr.mxu0 %v20368_v21  ;;  %v20377_v41 = vld [vmem:[#allocation188_spill] sm:$0xff]  ;;  %v20378_v11 = vld [vmem:[#allocation130_spill] sm:$0xff]  ;;  %v20393_v21 = vld [vmem:[#allocation227_spill] sm:$0xff] }
 0x56d   :  { %6361 = vmatprep.subr.mxu1 %v20369_v4  ;;  %6075 = vmatpush1.msra.mxu0 %v20370_v40  ;;  %v20379_v4 = vld [vmem:[#allocation193_spill] sm:$0xff]  ;;  %v20391_v40 = vld [vmem:[#allocation224_spill] sm:$0xff] }
 0x56e   :  { %6367 = vmatpush1.msra.mxu1 %v20371_v52  ;;  %6079 = vmatprep.subr.mxu0 %v20372_v17  ;;  %v20380_v17 = vld [vmem:[#allocation196_spill] sm:$0xff] }
 0x56f   :  { %6373 = vmatprep.subr.mxu1 %v20373_v0  ;;  %6083 = vmatpush1.msra.mxu0 %v20374_v26  ;;  %v20381_v26 = vld [vmem:[#allocation200_spill] sm:$0xff]  ;;  %v20387_v0 = vld [vmem:[#allocation213_spill] sm:$0xff] }
 0x570   :  { %6379 = vmatpush1.msra.mxu1 %v20375_v36  ;;  %6087 = vmatprep.subr.mxu0 %v20376_v63  ;;  %v20382_v63 = vld [vmem:[#allocation203_spill] sm:$0xff]  ;;  %v20386_v36 = vld [vmem:[#allocation140_spill] sm:$0xff] }
 0x571   :  { %6385 = vmatprep.subr.mxu1 %v20377_v41  ;;  %6091 = vmatpush1.msra.mxu0 %v20378_v11  ;;  %v20383_v11 = vld [vmem:[#allocation204_spill] sm:$0xff]  ;;  %v20384_v41 = vld [vmem:[#allocation138_spill] sm:$0xff] }
 0x572   :  { %6124 = vmatprep.mubr.f32.mxu0 %v19527_v35  ;;  %6391 = vmatpush1.msra.mxu1 %v20379_v4  ;;  %v20385_v4 = vld [vmem:[#allocation207_spill] sm:$0xff]  ;;  %v20389_v52 = vld [vmem:[#allocation220_spill] sm:$0xff] }
 0x573   :  { %6126 = vmatmul.mubr.f32.vlgmr.msra.gmra.mxu0 %v16541_v43  ;;  %6237 = vmatprep.subr.mxu0 %v19904_v57 }
 0x574   :  { %6397 = vmatprep.subr.mxu1 %v20380_v17  ;;  %6239 = vmatpush1.msra.mxu0 %v19906_v24  ;;  %v20388_v17 = vld [vmem:[#allocation143_spill] sm:$0xff] }
 0x575   :  { %6403 = vmatpush1.msra.mxu1 %v20381_v26  ;;  %6241 = vmatprep.subr.mxu0 %v19908_v12  ;;  %v20390_v26 = vld [vmem:[#allocation146_spill] sm:$0xff] }
 0x576   :  { %6409 = vmatprep.subr.mxu1 %v20382_v63  ;;  %6243 = vmatpush1.msra.mxu0 %v19910_v45  ;;  %v20392_v63 = vld [vmem:[#allocation148_spill] sm:$0xff] }
 0x577   :  { %6415 = vmatpush1.msra.mxu1 %v20383_v11  ;;  %6245 = vmatprep.subr.mxu0 %v20384_v41  ;;  %v20394_v11 = vld [vmem:[#allocation152_spill] sm:$0xff] }
 0x578   :  { %6421 = vmatprep.subr.mxu1 %v20385_v4  ;;  %6247 = vmatpush1.msra.mxu0 %v20386_v36  ;;  %v20396_v4 = vld [vmem:[#allocation155_spill] sm:$0xff] }
 0x579   :  { %6427 = vmatpush1.msra.mxu1 %v20387_v0  ;;  %6249 = vmatprep.subr.mxu0 %v20388_v17  ;;  %v20398_v0 = vld [vmem:[#allocation156_spill] sm:$0xff] }
 0x57a   :  { %6433 = vmatprep.subr.mxu1 %v20389_v52  ;;  %6251 = vmatpush1.msra.mxu0 %v20390_v26  ;;  %v20400_v52 = vld [vmem:[#allocation158_spill] sm:$0xff] }
 0x57b   :  { %6439 = vmatpush1.msra.mxu1 %v20391_v40  ;;  %6253 = vmatprep.subr.mxu0 %v20392_v63  ;;  %v20402_v40 = vld [vmem:[#allocation162_spill] sm:$0xff] }
 0x57c   :  { %6445 = vmatprep.subr.mxu1 %v20393_v21  ;;  %6255 = vmatpush1.msra.mxu0 %v20394_v11  ;;  %v20404_v21 = vld [vmem:[#allocation165_spill] sm:$0xff] }
 0x57d   :  { %6451 = vmatpush1.msra.mxu1 %v20395_v42  ;;  %6257 = vmatprep.subr.mxu0 %v20396_v4  ;;  %v20406_v42 = vld [vmem:[#allocation169_spill] sm:$0xff] }
 0x57e   :  { %6457 = vmatprep.subr.mxu1 %v20397_v56  ;;  %6259 = vmatpush1.msra.mxu0 %v20398_v0  ;;  %v20408_v56 = vld [vmem:[#allocation175_spill] sm:$0xff] }
 0x57f   :  { %6463 = vmatpush1.msra.mxu1 %v20399_v38  ;;  %6261 = vmatprep.subr.mxu0 %v20400_v52  ;;  %v20410_v38 = vld [vmem:[#allocation182_spill] sm:$0xff] }
 0x580   :  { %6469 = vmatprep.subr.mxu1 %v20401_v23  ;;  %6263 = vmatpush1.msra.mxu0 %v20402_v40  ;;  %v20412_v23 = vld [vmem:[#allocation186_spill] sm:$0xff] }
 0x581   :  { %6475 = vmatpush1.msra.mxu1 %v20403_v49  ;;  %6265 = vmatprep.subr.mxu0 %v20404_v21  ;;  %v20414_v49 = vld [vmem:[#allocation191_spill] sm:$0xff] }
 0x582   :  { %6481 = vmatprep.subr.mxu1 %v20405_v60  ;;  %6267 = vmatpush1.msra.mxu0 %v20406_v42  ;;  %v20416_v60 = vld [vmem:[#allocation192_spill] sm:$0xff] }
 0x583   :  { %6487 = vmatpush1.msra.mxu1 %v20407_v30  ;;  %6269 = vmatprep.subr.mxu0 %v20408_v56  ;;  %v20418_v30 = vld [vmem:[#allocation194_spill] sm:$0xff] }
 0x584   :  { %6493 = vmatprep.subr.mxu1 %v20409_v20  ;;  %6271 = vmatpush1.msra.mxu0 %v20410_v38  ;;  %v20420_v20 = vld [vmem:[#allocation197_spill] sm:$0xff] }
 0x585   :  { %6499 = vmatpush1.msra.mxu1 %v20411_v8  ;;  %6273 = vmatprep.subr.mxu0 %v20412_v23  ;;  %v20422_v8 = vld [vmem:[#allocation205_spill] sm:$0xff] }
 0x586   :  { %6505 = vmatprep.subr.mxu1 %v20413_v27  ;;  %6275 = vmatpush1.msra.mxu0 %v20414_v49  ;;  %v20424_v27 = vld [vmem:[#allocation208_spill] sm:$0xff] }
 0x587   :  { %6511 = vmatpush1.msra.mxu1 %v20415_v5  ;;  %6277 = vmatprep.subr.mxu0 %v20416_v60  ;;  %v20429_v5 = vld [vmem:[#allocation225_spill] sm:$0xff] }
 0x588   :  { %6517 = vmatprep.subr.mxu1 %v20417_v25  ;;  %6279 = vmatpush1.msra.mxu0 %v20418_v30  ;;  %v20425_v25 = vld [vmem:[#allocation210_spill] sm:$0xff] }
 0x589   :  { %6523 = vmatpush1.msra.mxu1 %v20419_v32  ;;  %6281 = vmatprep.subr.mxu0 %v20420_v20  ;;  %v20426_v32 = vld [vmem:[#allocation216_spill] sm:$0xff] }
 0x58a   :  { %6529 = vmatprep.subr.mxu1 %v20421_v9  ;;  %6283 = vmatpush1.msra.mxu0 %v20422_v8  ;;  %v20427_v9 = vld [vmem:[#allocation217_spill] sm:$0xff] }
 0x58b   :  { %6535 = vmatpush1.msra.mxu1 %v20423_v55  ;;  %6568 = vmatprep.mubr.f32.mxu1 %v19527_v35  ;;  %v20428_v55 = vld [vmem:[#allocation221_spill] sm:$0xff] }
 0x58c   :  { %6285 = vmatprep.subr.mxu0 %v20424_v27  ;;  %6570 = vmatmul.mubr.f32.vlgmr.msra.gmra.mxu1 %v16541_v43 }
 0x58d   :  { %6714 = vmatprep.subr.mxu1 %v19904_v57  ;;  %6287 = vmatpush1.msra.mxu0 %v20425_v25 }
 0x58e   :  { %6716 = vmatpush1.msra.mxu1 %v19906_v24  ;;  %6289 = vmatprep.subr.mxu0 %v20426_v32 }
 0x58f   :  { %6718 = vmatprep.subr.mxu1 %v19908_v12  ;;  %6291 = vmatpush1.msra.mxu0 %v20427_v9 }
 0x590   :  { %6720 = vmatpush1.msra.mxu1 %v19910_v45  ;;  %6293 = vmatprep.subr.mxu0 %v20428_v55 }
 0x591   :  { %6722 = vmatprep.subr.mxu1 %v20384_v41  ;;  %6295 = vmatpush1.msra.mxu0 %v20429_v5 }
 0x592   :  { %6724 = vmatpush1.msra.mxu1 %v20386_v36  ;;  %6297 = vmatprep.subr.mxu0 %v20430_v59 }
 0x593   :  { %6726 = vmatprep.subr.mxu1 %v20388_v17  ;;  %6299 = vmatpush1.msra.mxu0 %v20431_v22 }
 0x594   :  { %6332 = vmatprep.mubr.f32.mxu0 %v19527_v35  ;;  %6728 = vmatpush1.msra.mxu1 %v20390_v26 }
 0x595   :  { %6338 = vmatmul.mubr.f32.vlgmr.msra.gmra.mxu0 %v16559_v46  ;;  %6578 = vmatprep.subr.mxu0 %v20432_v51  ;;  %v20437_v46 = vld [vmem:[#allocation151_spill] sm:$0xff]  ;;  %v20438_v51 = vld [vmem:[#allocation154_spill] sm:$0xff] }
 0x596   :  { %6730 = vmatprep.subr.mxu1 %v20392_v63  ;;  %6581 = vmatpush1.msra.mxu0 %v20433_v19  ;;  %v20439_v19 = vld [vmem:[#allocation159_spill] sm:$0xff] }
 0x597   :  { %6732 = vmatpush1.msra.mxu1 %v20394_v11  ;;  %6584 = vmatprep.subr.mxu0 %v20434_v54  ;;  %v20440_v54 = vld [vmem:[#allocation161_spill] sm:$0xff] }
 0x598   :  { %6734 = vmatprep.subr.mxu1 %v20396_v4  ;;  %6587 = vmatpush1.msra.mxu0 %v20435_v58  ;;  %v20441_v58 = vld [vmem:[#allocation164_spill] sm:$0xff] }
 0x599   :  { %6736 = vmatpush1.msra.mxu1 %v20398_v0  ;;  %6590 = vmatprep.subr.mxu0 %v20436_v61  ;;  %v20442_v61 = vld [vmem:[#allocation166_spill] sm:$0xff] }
 0x59a   :  { %6738 = vmatprep.subr.mxu1 %v20400_v52  ;;  %6593 = vmatpush1.msra.mxu0 %v20437_v46  ;;  %v20443_v46 = vld [vmem:[#allocation167_spill] sm:$0xff] }
 0x59b   :  { %6740 = vmatpush1.msra.mxu1 %v20402_v40  ;;  %6596 = vmatprep.subr.mxu0 %v20438_v51  ;;  %v20444_v51 = vld [vmem:[#allocation171_spill] sm:$0xff] }
 0x59c   :  { %6742 = vmatprep.subr.mxu1 %v20404_v21  ;;  %6599 = vmatpush1.msra.mxu0 %v20439_v19  ;;  %v20445_v19 = vld [vmem:[#allocation177_spill] sm:$0xff] }
 0x59d   :  { %6744 = vmatpush1.msra.mxu1 %v20406_v42  ;;  %6602 = vmatprep.subr.mxu0 %v20440_v54  ;;  %v20446_v54 = vld [vmem:[#allocation184_spill] sm:$0xff] }
 0x59e   :  { %6746 = vmatprep.subr.mxu1 %v20408_v56  ;;  %6605 = vmatpush1.msra.mxu0 %v20441_v58  ;;  %v20447_v58 = vld [vmem:[#allocation187_spill] sm:$0xff] }
 0x59f   :  { %6748 = vmatpush1.msra.mxu1 %v20410_v38  ;;  %6608 = vmatprep.subr.mxu0 %v20442_v61  ;;  %v20448_v61 = vld [vmem:[#allocation190_spill] sm:$0xff] }
 0x5a0   :  { %6750 = vmatprep.subr.mxu1 %v20412_v23  ;;  %6611 = vmatpush1.msra.mxu0 %v20443_v46  ;;  %v20449_v46 = vld [vmem:[#allocation199_spill] sm:$0xff] }
 0x5a1   :  { %6752 = vmatpush1.msra.mxu1 %v20414_v49  ;;  %6614 = vmatprep.subr.mxu0 %v20444_v51  ;;  %v20450_v51 = vld [vmem:[#allocation202_spill] sm:$0xff] }
 0x5a2   :  { %6754 = vmatprep.subr.mxu1 %v20416_v60  ;;  %6617 = vmatpush1.msra.mxu0 %v20445_v19  ;;  %v20451_v19 = vld [vmem:[#allocation206_spill] sm:$0xff] }
 0x5a3   :  { %6756 = vmatpush1.msra.mxu1 %v20418_v30  ;;  %6620 = vmatprep.subr.mxu0 %v20446_v54  ;;  %v20452_v54 = vld [vmem:[#allocation209_spill] sm:$0xff] }
 0x5a4   :  { %6758 = vmatprep.subr.mxu1 %v20420_v20  ;;  %6623 = vmatpush1.msra.mxu0 %v20447_v58  ;;  %v20453_v58 = vld [vmem:[#allocation212_spill] sm:$0xff] }
 0x5a5   :  { %6760 = vmatpush1.msra.mxu1 %v20422_v8  ;;  %6626 = vmatprep.subr.mxu0 %v20448_v61  ;;  %v20454_v61 = vld [vmem:[#allocation215_spill] sm:$0xff] }
 0x5a6   :  { %6762 = vmatprep.subr.mxu1 %v20424_v27  ;;  %6629 = vmatpush1.msra.mxu0 %v20449_v46  ;;  %v20455_v46 = vld [vmem:[#allocation219_spill] sm:$0xff] }
 0x5a7   :  { %6764 = vmatpush1.msra.mxu1 %v20425_v25  ;;  %6632 = vmatprep.subr.mxu0 %v20450_v51  ;;  %v20495_v51 = vld [vmem:[#allocation37_spill] sm:$0xff] }
 0x5a8   :  { %6766 = vmatprep.subr.mxu1 %v20426_v32  ;;  %6635 = vmatpush1.msra.mxu0 %v20451_v19  ;;  %v20456_v19 = vld [vmem:[#allocation223_spill] sm:$0xff] }
 0x5a9   :  { %6768 = vmatpush1.msra.mxu1 %v20427_v9  ;;  %6638 = vmatprep.subr.mxu0 %v20452_v54  ;;  %v20457_v54 = vld [vmem:[#allocation229_spill] sm:$0xff] }
 0x5aa   :  { %6770 = vmatprep.subr.mxu1 %v20428_v55  ;;  %6641 = vmatpush1.msra.mxu0 %v20453_v58  ;;  %v20458_v58 = vld [vmem:[#allocation232_spill] sm:$0xff] }
 0x5ab   :  { %6772 = vmatpush1.msra.mxu1 %v20429_v5  ;;  %6644 = vmatprep.subr.mxu0 %v20454_v61  ;;  %v20459_v61 = vld [vmem:[#allocation235_spill] sm:$0xff] }
 0x5ac   :  { %6774 = vmatprep.subr.mxu1 %v20430_v59  ;;  %6647 = vmatpush1.msra.mxu0 %v20455_v46  ;;  %v20460_v46 = vld [vmem:[#allocation237_spill] sm:$0xff] }
 0x5ad   :  { %6776 = vmatpush1.msra.mxu1 %v20431_v22  ;;  %6809 = vmatprep.mubr.f32.mxu1 %v19527_v35 }
 0x5ae   :  { %6650 = vmatprep.subr.mxu0 %v20456_v19  ;;  %6813 = vmatmul.mubr.f32.vlgmr.msra.gmra.mxu1 %v16551_v10  ;;  %v20461_v19 = vld [vmem:[#allocation240_spill] sm:$0xff]  ;;  %v20462_v10 = vld [vmem:[#allocation243_spill] sm:$0xff] }
 0x5af   :  { %6988 = vmatprep.subr.mxu1 %v19904_v57  ;;  %6653 = vmatpush1.msra.mxu0 %v20457_v54  ;;  %v20463_v54 = vld [vmem:[#allocation246_spill] sm:$0xff] }
 0x5b0   :  { %6990 = vmatpush1.msra.mxu1 %v19906_v24  ;;  %6656 = vmatprep.subr.mxu0 %v20458_v58  ;;  %v20493_v58 = vld [vmem:[#allocation36_spill] sm:$0xff] }
 0x5b1   :  { %6992 = vmatprep.subr.mxu1 %v19908_v12  ;;  %6659 = vmatpush1.msra.mxu0 %v20459_v61  ;;  %v20464_v61 = vld [vmem:[#allocation147_spill] sm:$0xff] }
 0x5b2   :  { %6994 = vmatpush1.msra.mxu1 %v19910_v45  ;;  %6662 = vmatprep.subr.mxu0 %v20460_v46  ;;  %v20465_v46 = vld [vmem:[#allocation149_spill] sm:$0xff] }
 0x5b3   :  { %6996 = vmatprep.subr.mxu1 %v20384_v41  ;;  %6665 = vmatpush1.msra.mxu0 %v20461_v19  ;;  %v20466_v19 = vld [vmem:[#allocation150_spill] sm:$0xff] }
 0x5b4   :  { %6998 = vmatpush1.msra.mxu1 %v20386_v36  ;;  %6668 = vmatprep.subr.mxu0 %v20462_v10  ;;  %v20467_v10 = vld [vmem:[#allocation153_spill] sm:$0xff] }
 0x5b5   :  { %7000 = vmatprep.subr.mxu1 %v20388_v17  ;;  %6671 = vmatpush1.msra.mxu0 %v20463_v54  ;;  %v20468_v54 = vld [vmem:[#allocation157_spill] sm:$0xff] }
 0x5b6   :  { %6704 = vmatprep.mubr.f32.mxu0 %v19527_v35  ;;  %7002 = vmatpush1.msra.mxu1 %v20390_v26 }
 0x5b7   :  { %6707 = vmatmul.mubr.f32.vlgmr.msra.gmra.mxu0 %v16545_v1  ;;  %6822 = vmatprep.subr.mxu0 %v20464_v61  ;;  %v20469_v1 = vld [vmem:[#allocation160_spill] sm:$0xff]  ;;  %v20470_v61 = vld [vmem:[#allocation163_spill] sm:$0xff] }
 0x5b8   :  { %7004 = vmatprep.subr.mxu1 %v20392_v63  ;;  %6826 = vmatpush1.msra.mxu0 %v20465_v46  ;;  %v20471_v46 = vld [vmem:[#allocation170_spill] sm:$0xff] }
 0x5b9   :  { %7006 = vmatpush1.msra.mxu1 %v20394_v11  ;;  %6830 = vmatprep.subr.mxu0 %v20466_v19  ;;  %v20472_v19 = vld [vmem:[#allocation174_spill] sm:$0xff] }
 0x5ba   :  { %7008 = vmatprep.subr.mxu1 %v20396_v4  ;;  %6834 = vmatpush1.msra.mxu0 %v20467_v10  ;;  %v20473_v10 = vld [vmem:[#allocation176_spill] sm:$0xff] }
 0x5bb   :  { %7010 = vmatpush1.msra.mxu1 %v20398_v0  ;;  %6838 = vmatprep.subr.mxu0 %v20468_v54  ;;  %v20474_v54 = vld [vmem:[#allocation180_spill] sm:$0xff] }
 0x5bc   :  { %7012 = vmatprep.subr.mxu1 %v20400_v52  ;;  %6842 = vmatpush1.msra.mxu0 %v20469_v1  ;;  %v20475_v1 = vld [vmem:[#allocation181_spill] sm:$0xff] }
 0x5bd   :  { %7014 = vmatpush1.msra.mxu1 %v20402_v40  ;;  %6846 = vmatprep.subr.mxu0 %v20470_v61  ;;  %v20476_v61 = vld [vmem:[#allocation183_spill] sm:$0xff] }
 0x5be   :  { %7016 = vmatprep.subr.mxu1 %v20404_v21  ;;  %6850 = vmatpush1.msra.mxu0 %v20471_v46  ;;  %v20477_v46 = vld [vmem:[#allocation189_spill] sm:$0xff] }
 0x5bf   :  { %7018 = vmatpush1.msra.mxu1 %v20406_v42  ;;  %6854 = vmatprep.subr.mxu0 %v20472_v19  ;;  %v20478_v19 = vld [vmem:[#allocation195_spill] sm:$0xff] }
 0x5c0   :  { %7020 = vmatprep.subr.mxu1 %v20408_v56  ;;  %6858 = vmatpush1.msra.mxu0 %v20473_v10  ;;  %v20479_v10 = vld [vmem:[#allocation198_spill] sm:$0xff] }
 0x5c1   :  { %7022 = vmatpush1.msra.mxu1 %v20410_v38  ;;  %6862 = vmatprep.subr.mxu0 %v20474_v54  ;;  %v20480_v54 = vld [vmem:[#allocation201_spill] sm:$0xff] }
 0x5c2   :  { %7024 = vmatprep.subr.mxu1 %v20412_v23  ;;  %6866 = vmatpush1.msra.mxu0 %v20475_v1  ;;  %v20481_v1 = vld [vmem:[#allocation211_spill] sm:$0xff] }
 0x5c3   :  { %7026 = vmatpush1.msra.mxu1 %v20414_v49  ;;  %6870 = vmatprep.subr.mxu0 %v20476_v61  ;;  %v20482_v61 = vld [vmem:[#allocation214_spill] sm:$0xff] }
 0x5c4   :  { %7028 = vmatprep.subr.mxu1 %v20416_v60  ;;  %6874 = vmatpush1.msra.mxu0 %v20477_v46  ;;  %v20483_v46 = vld [vmem:[#allocation218_spill] sm:$0xff] }
 0x5c5   :  { %7030 = vmatpush1.msra.mxu1 %v20418_v30  ;;  %6878 = vmatprep.subr.mxu0 %v20478_v19  ;;  %v20484_v19 = vld [vmem:[#allocation222_spill] sm:$0xff] }
 0x5c6   :  { %7032 = vmatprep.subr.mxu1 %v20420_v20  ;;  %6882 = vmatpush1.msra.mxu0 %v20479_v10  ;;  %v20485_v10 = vld [vmem:[#allocation226_spill] sm:$0xff] }
 0x5c7   :  { %7034 = vmatpush1.msra.mxu1 %v20422_v8  ;;  %6886 = vmatprep.subr.mxu0 %v20480_v54  ;;  %v20486_v54 = vld [vmem:[#allocation228_spill] sm:$0xff] }
 0x5c8   :  { %7036 = vmatprep.subr.mxu1 %v20424_v27  ;;  %6890 = vmatpush1.msra.mxu0 %v20481_v1  ;;  %v20487_v1 = vld [vmem:[#allocation231_spill] sm:$0xff] }
 0x5c9   :  { %7038 = vmatpush1.msra.mxu1 %v20425_v25  ;;  %6894 = vmatprep.subr.mxu0 %v20482_v61  ;;  %v20491_v61 = vld [vmem:[#allocation33_spill] sm:$0xff] }
 0x5ca   :  { %7040 = vmatprep.subr.mxu1 %v20426_v32  ;;  %6898 = vmatpush1.msra.mxu0 %v20483_v46  ;;  %v20488_v46 = vld [vmem:[#allocation234_spill] sm:$0xff] }
 0x5cb   :  { %7042 = vmatpush1.msra.mxu1 %v20427_v9  ;;  %6902 = vmatprep.subr.mxu0 %v20484_v19  ;;  %v20489_v19 = vld [vmem:[#allocation239_spill] sm:$0xff] }
 0x5cc   :  { %7044 = vmatprep.subr.mxu1 %v20428_v55  ;;  %6906 = vmatpush1.msra.mxu0 %v20485_v10  ;;  %v20490_v10 = vld [vmem:[#allocation242_spill] sm:$0xff] }
 0x5cd   :  { %7046 = vmatpush1.msra.mxu1 %v20429_v5  ;;  %6910 = vmatprep.subr.mxu0 %v20486_v54  ;;  %v20492_v54 = vld [vmem:[#allocation245_spill] sm:$0xff]  ;;  %v20500_v5 = vld [vmem:[#allocation254_spill] sm:$0xff] }
 0x5ce   :  { %7048 = vmatprep.subr.mxu1 %v20430_v59  ;;  %6914 = vmatpush1.msra.mxu0 %v20487_v1  ;;  %v20494_v1 = vld [vmem:[#allocation248_spill] sm:$0xff] }
 0x5cf   :  { %7050 = vmatpush1.msra.mxu1 %v20431_v22  ;;  %7083 = vmatprep.mubr.f32.mxu1 %v19527_v35  ;;  %v20496_v22 = vld [vmem:[#allocation250_spill] sm:$0xff]  ;;  %v20498_v59 = vld [vmem:[#allocation252_spill] sm:$0xff] }
 0x5d0   :  { %6918 = vmatprep.subr.mxu0 %v20488_v46  ;;  %7085 = vmatmul.mubr.f32.vlgmr.msra.gmra.mxu1 %v16541_v43  ;;  %v20497_v46 = vld [vmem:[#allocation39_spill] sm:$0xff] }
 0x5d1   :  { %6922 = vmatpush1.msra.mxu0 %v20489_v19  ;;  %6979 = vmatprep.mubr.f32.mxu0 %v19527_v35  ;;  %v20499_v19 = vld [vmem:[#allocation42_spill] sm:$0xff] }
 0x5d2   :  { %6926 = vmatprep.subr.mxu0 %v20490_v10  ;;  %7244 = vmatprep.subr.mxu1 %v20491_v61  ;;  %v20501_v10 = vld [vmem:[#allocation45_spill] sm:$0xff] }
 0x5d3   :  { %6930 = vmatpush1.msra.mxu0 %v20492_v54  ;;  %7250 = vmatpush1.msra.mxu1 %v20493_v58  ;;  %v20502_v54 = vld [vmem:[#allocation49_spill] sm:$0xff]  ;;  %v20503_v58 = vld [vmem:[#allocation59_spill] sm:$0xff] }
 0x5d4   :  { %6934 = vmatprep.subr.mxu0 %v20494_v1  ;;  %7256 = vmatprep.subr.mxu1 %v20495_v51  ;;  %v20504_v51 = vld [vmem:[#allocation62_spill] sm:$0xff]  ;;  %v20538_v1 = vld [vmem:[#allocation15_spill] sm:$0xff] }
 0x5d5   :  { %6938 = vmatpush1.msra.mxu0 %v20496_v22  ;;  %7262 = vmatpush1.msra.mxu1 %v20497_v46  ;;  %v20505_v46 = vld [vmem:[#allocation65_spill] sm:$0xff]  ;;  %v20536_v22 = vld [vmem:[#allocation96_spill] sm:$0xff] }
 0x5d6   :  { %6942 = vmatprep.subr.mxu0 %v20498_v59  ;;  %7268 = vmatprep.subr.mxu1 %v20499_v19  ;;  %v20506_v19 = vld [vmem:[#allocation68_spill] sm:$0xff]  ;;  %v20534_v59 = vld [vmem:[#allocation87_spill] sm:$0xff] }
 0x5d7   :  { %6946 = vmatpush1.msra.mxu0 %v20500_v5  ;;  %7274 = vmatpush1.msra.mxu1 %v20501_v10  ;;  %v20507_v10 = vld [vmem:[#allocation71_spill] sm:$0xff]  ;;  %v20529_v5 = vld [vmem:[#allocation133_spill] sm:$0xff] }
 0x5d8   :  { %6981 = vmatmul.mubr.f32.vlgmr.msra.gmra.mxu0 %v16541_v43  ;;  %7280 = vmatprep.subr.mxu1 %v20502_v54  ;;  %v20508_v43 = vld [vmem:[#allocation74_spill] sm:$0xff]  ;;  %v20527_v54 = vld [vmem:[#allocation132_spill] sm:$0xff] }
 0x5d9   :  { %7286 = vmatpush1.msra.mxu1 %v20503_v58  ;;  %7132 = vmatprep.subr.mxu0 %v19856_v7  ;;  %v20509_v58 = vld [vmem:[#allocation78_spill] sm:$0xff] }
 0x5da   :  { %7292 = vmatprep.subr.mxu1 %v20504_v51  ;;  %7134 = vmatpush1.msra.mxu0 %v19756_v50  ;;  %v20510_v51 = vld [vmem:[#allocation84_spill] sm:$0xff] }
 0x5db   :  { %7298 = vmatpush1.msra.mxu1 %v20505_v46  ;;  %7136 = vmatprep.subr.mxu0 %v19757_v33  ;;  %v20511_v46 = vld [vmem:[#allocation88_spill] sm:$0xff] }
 0x5dc   :  { %7304 = vmatprep.subr.mxu1 %v20506_v19  ;;  %7138 = vmatpush1.msra.mxu0 %v19758_v15  ;;  %v20512_v19 = vld [vmem:[#allocation94_spill] sm:$0xff] }
 0x5dd   :  { %7310 = vmatpush1.msra.mxu1 %v20507_v10  ;;  %7140 = vmatprep.subr.mxu0 %v19759_v47  ;;  %v20513_v10 = vld [vmem:[#allocation97_spill] sm:$0xff] }
 0x5de   :  { %7316 = vmatprep.subr.mxu1 %v20508_v43  ;;  %7142 = vmatpush1.msra.mxu0 %v19760_v18  ;;  %v20514_v43 = vld [vmem:[#allocation100_spill] sm:$0xff] }
 0x5df   :  { %7322 = vmatpush1.msra.mxu1 %v20509_v58  ;;  %7144 = vmatprep.subr.mxu0 %v19763_v62  ;;  %v20515_v58 = vld [vmem:[#allocation103_spill] sm:$0xff] }
 0x5e0   :  { %7328 = vmatprep.subr.mxu1 %v20510_v51  ;;  %7146 = vmatpush1.msra.mxu0 %v19765_v31  ;;  %v20516_v51 = vld [vmem:[#allocation106_spill] sm:$0xff] }
 0x5e1   :  { %7334 = vmatpush1.msra.mxu1 %v20511_v46  ;;  %7148 = vmatprep.subr.mxu0 %v19767_v6  ;;  %v20517_v46 = vld [vmem:[#allocation110_spill] sm:$0xff] }
 0x5e2   :  { %7340 = vmatprep.subr.mxu1 %v20512_v19  ;;  %7150 = vmatpush1.msra.mxu0 %v19769_v28  ;;  %v20518_v19 = vld [vmem:[#allocation116_spill] sm:$0xff] }
 0x5e3   :  { %7346 = vmatpush1.msra.mxu1 %v20513_v10  ;;  %7152 = vmatprep.subr.mxu0 %v19771_v44  ;;  %v20519_v10 = vld [vmem:[#allocation119_spill] sm:$0xff] }
 0x5e4   :  { %7352 = vmatprep.subr.mxu1 %v20514_v43  ;;  %7154 = vmatpush1.msra.mxu0 %v19773_v29  ;;  %v20520_v43 = vld [vmem:[#allocation121_spill] sm:$0xff] }
 0x5e5   :  { %7358 = vmatpush1.msra.mxu1 %v20515_v58  ;;  %7156 = vmatprep.subr.mxu0 %v19775_v39  ;;  %v20521_v58 = vld [vmem:[#allocation124_spill] sm:$0xff] }
 0x5e6   :  { %7364 = vmatprep.subr.mxu1 %v20516_v51  ;;  %7158 = vmatpush1.msra.mxu0 %v19777_v13  ;;  %v20522_v51 = vld [vmem:[#allocation125_spill] sm:$0xff] }
 0x5e7   :  { %7370 = vmatpush1.msra.mxu1 %v20517_v46  ;;  %7160 = vmatprep.subr.mxu0 %v19779_v16  ;;  %v20523_v46 = vld [vmem:[#allocation127_spill] sm:$0xff] }
 0x5e8   :  { %7376 = vmatprep.subr.mxu1 %v20518_v19  ;;  %7162 = vmatpush1.msra.mxu0 %v19781_v34  ;;  %v20524_v19 = vld [vmem:[#allocation129_spill] sm:$0xff]  ;;  %v5716_v9 = vpop.f32.mrf.mxu1 }
 0x5e9   :  { %7382 = vmatpush1.msra.mxu1 %v20519_v10  ;;  %7164 = vmatprep.subr.mxu0 %v19783_v2  ;;  %v20525_v10 = vld [vmem:[#allocation131_spill] sm:$0xff] }
 0x5ea   :  { %7388 = vmatprep.subr.mxu1 %v20520_v43  ;;  %7166 = vmatpush1.msra.mxu0 %v19785_v48  ;;  %v20526_v43 = vld [vmem:[#allocation64_spill] sm:$0xff]  ;;  %v5718_v25 = vpop.f32.mrf.mxu1 }
 0x5eb   :  { %7394 = vmatpush1.msra.mxu1 %v20521_v58  ;;  %7168 = vmatprep.subr.mxu0 %v19787_v53  ;;  %v20528_v58 = vld [vmem:[#allocation69_spill] sm:$0xff] }
 0x5ec   :  { %7400 = vmatprep.subr.mxu1 %v20522_v51  ;;  %7170 = vmatpush1.msra.mxu0 %v19789_v14  ;;  %v20530_v51 = vld [vmem:[#allocation73_spill] sm:$0xff] }
 0x5ed   :  { %7406 = vmatpush1.msra.mxu1 %v20523_v46  ;;  %7172 = vmatprep.subr.mxu0 %v19791_v37  ;;  %v20531_v46 = vld [vmem:[#allocation77_spill] sm:$0xff] }
 0x5ee   :  { %7412 = vmatprep.subr.mxu1 %v20524_v19  ;;  %7174 = vmatpush1.msra.mxu0 %v19793_v3  ;;  %v20532_v19 = vld [vmem:[#allocation80_spill] sm:$0xff] }
 0x5ef   :  { %7418 = vmatpush1.msra.mxu1 %v20525_v10  ;;  %7176 = vmatprep.subr.mxu0 %v20526_v43  ;;  %v20533_v10 = vld [vmem:[#allocation83_spill] sm:$0xff] }
 0x5f0   :  { %7424 = vmatprep.subr.mxu1 %v20527_v54  ;;  %7178 = vmatpush1.msra.mxu0 %v20528_v58  ;;  %v20535_v54 = vld [vmem:[#allocation92_spill] sm:$0xff]  ;;  %v5484_v61 = vpop.f32.mrf.mxu0 }
 0x5f1   :  { %7430 = vmatpush1.msra.mxu1 %v20529_v5  ;;  %7180 = vmatprep.subr.mxu0 %v20530_v51  ;;  %v20537_v5 = vld [vmem:[#allocation101_spill] sm:$0xff]  ;;  %v5717_v60 = vadd.f32 %v5716_v9, %v5484_v61  ;;  %v20539_v9 = vld [vmem:[#allocation11_spill] sm:$0xff] }
 0x5f2   :  { %7463 = vmatprep.mubr.f32.mxu1 %v19527_v35  ;;  %7609 = vmatprep.subr.mxu1 %v19856_v7  ;;  %v5486_v55 = vpop.f32.mrf.mxu0 }
 0x5f3   :  { %7182 = vmatpush1.msra.mxu0 %v20531_v46  ;;  %7227 = vmatprep.mubr.f32.mxu0 %v19527_v35  ;;  %v5719_v8 = vadd.f32 %v5718_v25, %v5486_v55 }
 0x5f4   :  { %7184 = vmatprep.subr.mxu0 %v20532_v19 }
 0x5f5   :  { %7186 = vmatpush1.msra.mxu0 %v20533_v10 }
 0x5f6   :  { %7188 = vmatprep.subr.mxu0 %v20534_v59 }
 0x5f7   :  { %7190 = vmatpush1.msra.mxu0 %v20535_v54 }
 0x5f8   :  { %7192 = vmatprep.subr.mxu0 %v20536_v22 }
 0x5f9   :  { %7194 = vmatpush1.msra.mxu0 %v20537_v5 }
 0x5fa   :  { %7473 = vmatprep.subr.mxu0 %v20538_v1 }
 0x608   :  { %v5959_v20 = vpop.f32.mrf.mxu1 }
 0x60a   :  { %v5961_v38 = vpop.f32.mrf.mxu1 }
 0x611   :  { %v5853_v32 = vpop.f32.mrf.mxu0 }
 0x612   :  { %v5854_v23 = vadd.f32 %v5853_v32, %v5717_v60 }
 0x613   :  { %v5855_v27 = vpop.f32.mrf.mxu0 }
 0x614   :  { %v5856_v49 = vadd.f32 %v5855_v27, %v5719_v8  ;;  %v5960_v40 = vadd.f32 %v5959_v20, %v5854_v23 }
 0x616   :  { %v5962_v42 = vadd.f32 %v5961_v38, %v5856_v49  ;;  %v20540_v49 = vld [vmem:[#allocation12_spill] sm:$0xff] }
 0x62a   :  { %v6231_v21 = vpop.f32.mrf.mxu1 }
 0x62c   :  { %v6233_v4 = vpop.f32.mrf.mxu1 }
 0x633   :  { %v6127_v30 = vpop.f32.mrf.mxu0 }
 0x634   :  { %v6128_v0 = vadd.f32 %v6127_v30, %v5960_v40 }
 0x635   :  { %v6129_v56 = vpop.f32.mrf.mxu0 }
 0x636   :  { %v6130_v52 = vadd.f32 %v6129_v56, %v5962_v42  ;;  %v6232_v63 = vadd.f32 %v6231_v21, %v6128_v0 }
 0x638   :  { %v6234_v11 = vadd.f32 %v6233_v4, %v6130_v52  ;;  %v7095_v25 = vrot.slane %v6232_v63, 2 }
 0x63a   :  { %v7096_v36 = vrot.slane %v6234_v11, 2  ;;  %v7103_v20 = vadd.f32 %v7095_v25, %v20540_v49 }
 0x63c   :  { %v7104_v61 = vadd.f32 %v7096_v36, %v20539_v9  ;;  %v7107_v42 = vmul.f32 0.5, %v7103_v20  ;;  %v20542_v9 = vld [vmem:[#allocation14_spill] sm:$0xff] }
 0x63e   :  { %v7108_v38 = vmul.f32 0.5, %v7104_v61 }
 0x640   :  { %14178 = vtanh.f32 %v7108_v38 }
 0x641   :  { %14180 = vtanh.f32 %v7107_v42 }
 0x64c   :  { %v6571_v26 = vpop.f32.mrf.mxu1 }
 0x64e   :  { %v6573_v41 = vpop.f32.mrf.mxu1 }
 0x655   :  { %v6339_v1 = vpop.f32.mrf.mxu0 }
 0x656   :  { %v6572_v32 = vadd.f32 %v6571_v26, %v6339_v1 }
 0x657   :  { %v6341_v17 = vpop.f32.mrf.mxu0 }
 0x658   :  { %v6574_v60 = vadd.f32 %v6573_v41, %v6341_v17  ;;  %v20541_v41 = vld [vmem:[#allocation13_spill] sm:$0xff] }
 0x66e   :  { %v6814_v27 = vpop.f32.mrf.mxu1 }
 0x670   :  { %v6816_v56 = vpop.f32.mrf.mxu1 }
 0x677   :  { %v6708_v55 = vpop.f32.mrf.mxu0 }
 0x678   :  { %v6709_v23 = vadd.f32 %v6708_v55, %v6572_v32  ;;  %v14179_v32 = vpop.eup %14178 }
 0x679   :  { %v6710_v8 = vpop.f32.mrf.mxu0 }
 0x67a   :  { %v6711_v30 = vadd.f32 %v6710_v8, %v6574_v60  ;;  %v6815_v40 = vadd.f32 %v6814_v27, %v6709_v23  ;;  %v14181_v8 = vpop.eup %14180  ;;  %v7114_v27 = vmul.f32 0.5, %v14179_v32  ;;  %v20548_v32 = vld [vmem:[#allocation26_spill] sm:$0xff] }
 0x67b   :  { %v7113_v49 = vmul.f32 0.5, %v14181_v8  ;;  %v20549_v8 = vld [vmem:[#allocation29_spill] sm:$0xff] }
 0x67c   :  { %v6817_v11 = vadd.f32 %v6816_v56, %v6711_v30  ;;  %v7117_v20 = vadd.f32 0.5, %v7114_v27  ;;  %v20543_v30 = vld [vmem:[#allocation21_spill] sm:$0xff]  ;;  %v20550_v27 = vld [vmem:[#allocation32_spill] sm:$0xff] }
 0x67d   :  { %v7116_v23 = vadd.f32 0.5, %v7113_v49  ;;  %v7121_v38 = vrot.slane %v20543_v30, 6  ;;  %v20552_v49 = vld [vmem:[#allocation43_spill] sm:$0xff]  ;;  %v20555_v30 = vld [vmem:[#allocation54_spill] sm:$0xff] }
 0x67f   :  { %v7123_v42 = vmul.f32 %v7121_v38, %v7117_v20  ;;  %v20553_v20 = vld [vmem:[#allocation47_spill] sm:$0xff]  ;;  %v20556_v38 = vld [vmem:[#allocation57_spill] sm:$0xff] }
 0x690   :  { %v7086_v0 = vpop.f32.mrf.mxu1 }
 0x692   :  { %v7088_v36 = vpop.f32.mrf.mxu1 }
 0x698   :  { %v6982_v21 = vpop.f32.mrf.mxu0 }
 0x699   :  { %v6983_v4 = vadd.f32 %v6982_v21, %v6815_v40 }
 0x69a   :  { %v6984_v52 = vpop.f32.mrf.mxu0 }
 0x69b   :  { %v6985_v63 = vadd.f32 %v6984_v52, %v6817_v11  ;;  %v7087_v1 = vadd.f32 %v7086_v0, %v6983_v4 }
 0x69d   :  { %v7089_v26 = vadd.f32 %v7088_v36, %v6985_v63  ;;  %v7097_v55 = vrot.slane %v7087_v1, 2 }
 0x69f   :  { %v7098_v17 = vrot.slane %v7089_v26, 2  ;;  %v7105_v61 = vadd.f32 %v7097_v55, %v20542_v9  ;;  %v20545_v55 = vld [vmem:[#allocation17_spill] sm:$0xff]  ;;  %v20546_v9 = vld [vmem:[#allocation19_spill] sm:$0xff] }
 0x6a1   :  { %v7106_v25 = vadd.f32 %v7098_v17, %v20541_v41  ;;  %v7109_v60 = vmul.f32 0.5, %v7105_v61  ;;  %v20547_v61 = vld [vmem:[#allocation22_spill] sm:$0xff] }
 0x6a3   :  { %14182 = vtanh.f32 %v7106_v25 }
 0x6a4   :  { %14184 = vtanh.f32 %v7109_v60  ;;  %v20551_v60 = vld [vmem:[#allocation40_spill] sm:$0xff] }
 0x6b0   :  { %v14183_v56 = vpop.eup %14182 }
 0x6b1   :  { %v7124_v0 = vmul.f32 %v14183_v56, %v7116_v23  ;;  %v14185_v21 = vpop.eup %14184  ;;  %v20554_v23 = vld [vmem:[#allocation51_spill] sm:$0xff]  ;;  %v20557_v56 = vld [vmem:[#allocation61_spill] sm:$0xff] }
 0x6b2   :  { %v7115_v11 = vmul.f32 0.5, %v14185_v21  ;;  %v20560_v21 = vld [vmem:[#allocation76_spill] sm:$0xff] }
 0x6b3   :  { %v16966_v40 = vadd.f32 %v7124_v0, %v7123_v42  ;;  %v20558_v42 = vld [vmem:[#allocation67_spill] sm:$0xff]  ;;  %v20559_v0 = vld [vmem:[#allocation70_spill] sm:$0xff] }
 0x6b4   :  { %v7118_v4 = vadd.f32 0.5, %v7115_v11  ;;  %v20561_v11 = vld [vmem:[#allocation79_spill] sm:$0xff] }
 0x6b5   :  { %20544 = vst [vmem:[#allocation23_spill] sm:$0xff] %v16966_v40  ;;  %14186 = vtanh.f32 %v16966_v40  ;;  %v20653_v40 = vld [vmem:[#allocation258_spill] sm:$0xff] }
 0x6c2   :  { %v14187_v52 = vpop.eup %14186 }
 0x6c3   :  { %v7127_v63 = vmul.f32 %v14187_v52, %v7118_v4  ;;  %v20562_v4 = vld [vmem:[#allocation82_spill] sm:$0xff] }
 0x6c4   :  { %v20563_v52 = vld [vmem:[#allocation86_spill] sm:$0xff] }
 0x6c5   :  { %v7129_v36 = vrot.slane %v7127_v63, 6  ;;  %v20564_v63 = vld [vmem:[#allocation90_spill] sm:$0xff] }
 0x6c7   :  { %v16969_v26 = vand.u32 4294901760, %v7129_v36 }
 0x6c9   :  { %7465 = vmatmul.mubr.f32.vlgmr.msra.gmra.mxu1 %v16969_v26  ;;  %v16973_v1 = vsub.f32 %v7129_v36, %v16969_v26  ;;  %v20565_v36 = vld [vmem:[#allocation93_spill] sm:$0xff] }
 0x6ca   :  { %7611 = vmatpush1.msra.mxu1 %v19756_v50  ;;  %7704 = vmatprep.mubr.f32.mxu1 %v19527_v35 }
 0x6cb   :  { %7613 = vmatprep.subr.mxu1 %v19757_v33  ;;  %v16979_v17 = vand.u32 4294901760, %v16973_v1 }
 0x6cc   :  { %7615 = vmatpush1.msra.mxu1 %v19758_v15 }
 0x6cd   :  { %7617 = vmatprep.subr.mxu1 %v19759_v47  ;;  %v7231_v41 = vsub.f32 %v16973_v1, %v16979_v17 }
 0x6ce   :  { %7619 = vmatpush1.msra.mxu1 %v19760_v18 }
 0x6cf   :  { %7621 = vmatprep.subr.mxu1 %v19763_v62  ;;  %v16987_v25 = vand.u32 4294901760, %v7231_v41  ;;  %v20566_v41 = vld [vmem:[#allocation99_spill] sm:$0xff] }
 0x6d0   :  { %7623 = vmatpush1.msra.mxu1 %v19765_v31 }
 0x6d1   :  { %7625 = vmatprep.subr.mxu1 %v19767_v6  ;;  %7233 = vmatmul.mubr.f32.vlgmr.msra.gmra.mxu0 %v16987_v25 }
 0x6d2   :  { %7476 = vmatpush1.msra.mxu0 %v20545_v55  ;;  %7627 = vmatpush1.msra.mxu1 %v19769_v28  ;;  %v20651_v55 = vld [vmem:[#allocation257_spill] sm:$0xff] }
 0x6d3   :  { %7479 = vmatprep.subr.mxu0 %v20546_v9  ;;  %7629 = vmatprep.subr.mxu1 %v19771_v44  ;;  %v20649_v9 = vld [vmem:[#allocation256_spill] sm:$0xff] }
 0x6d4   :  { %7482 = vmatpush1.msra.mxu0 %v20547_v61  ;;  %7631 = vmatpush1.msra.mxu1 %v19773_v29  ;;  %v20647_v61 = vld [vmem:[#allocation255_spill] sm:$0xff] }
 0x6d5   :  { %7485 = vmatprep.subr.mxu0 %v20548_v32  ;;  %7633 = vmatprep.subr.mxu1 %v19775_v39  ;;  %v20645_v32 = vld [vmem:[#allocation253_spill] sm:$0xff] }
 0x6d6   :  { %7488 = vmatpush1.msra.mxu0 %v20549_v8  ;;  %7635 = vmatpush1.msra.mxu1 %v19777_v13  ;;  %v20643_v8 = vld [vmem:[#allocation251_spill] sm:$0xff] }
 0x6d7   :  { %7491 = vmatprep.subr.mxu0 %v20550_v27  ;;  %7637 = vmatprep.subr.mxu1 %v19779_v16  ;;  %v20641_v27 = vld [vmem:[#allocation249_spill] sm:$0xff] }
 0x6d8   :  { %7494 = vmatpush1.msra.mxu0 %v20551_v60  ;;  %7639 = vmatpush1.msra.mxu1 %v19781_v34  ;;  %v20639_v60 = vld [vmem:[#allocation247_spill] sm:$0xff] }
 0x6d9   :  { %7497 = vmatprep.subr.mxu0 %v20552_v49  ;;  %7641 = vmatprep.subr.mxu1 %v19783_v2  ;;  %v20637_v49 = vld [vmem:[#allocation244_spill] sm:$0xff] }
 0x6da   :  { %7500 = vmatpush1.msra.mxu0 %v20553_v20  ;;  %7643 = vmatpush1.msra.mxu1 %v19785_v48  ;;  %v20635_v20 = vld [vmem:[#allocation241_spill] sm:$0xff] }
 0x6db   :  { %7503 = vmatprep.subr.mxu0 %v20554_v23  ;;  %7645 = vmatprep.subr.mxu1 %v19787_v53  ;;  %v20633_v23 = vld [vmem:[#allocation238_spill] sm:$0xff] }
 0x6dc   :  { %7506 = vmatpush1.msra.mxu0 %v20555_v30  ;;  %7647 = vmatpush1.msra.mxu1 %v19789_v14  ;;  %v20631_v30 = vld [vmem:[#allocation236_spill] sm:$0xff] }
 0x6dd   :  { %7509 = vmatprep.subr.mxu0 %v20556_v38  ;;  %7649 = vmatprep.subr.mxu1 %v19791_v37  ;;  %v20611_v38 = vld [vmem:[#allocation185_spill] sm:$0xff] }
 0x6de   :  { %7512 = vmatpush1.msra.mxu0 %v20557_v56  ;;  %7651 = vmatpush1.msra.mxu1 %v19793_v3  ;;  %v20609_v56 = vld [vmem:[#allocation179_spill] sm:$0xff] }
 0x6df   :  { %7515 = vmatprep.subr.mxu0 %v20558_v42  ;;  %7653 = vmatprep.subr.mxu1 %v20526_v43  ;;  %v20608_v42 = vld [vmem:[#allocation120_spill] sm:$0xff] }
 0x6e0   :  { %7518 = vmatpush1.msra.mxu0 %v20559_v0  ;;  %7655 = vmatpush1.msra.mxu1 %v20528_v58  ;;  %v20606_v0 = vld [vmem:[#allocation117_spill] sm:$0xff] }
 0x6e1   :  { %7521 = vmatprep.subr.mxu0 %v20560_v21  ;;  %7657 = vmatprep.subr.mxu1 %v20530_v51  ;;  %v20604_v21 = vld [vmem:[#allocation114_spill] sm:$0xff] }
 0x6e2   :  { %7524 = vmatpush1.msra.mxu0 %v20561_v11  ;;  %7659 = vmatpush1.msra.mxu1 %v20531_v46  ;;  %v20567_v11 = vld [vmem:[#allocation102_spill] sm:$0xff] }
 0x6e3   :  { %7527 = vmatprep.subr.mxu0 %v20562_v4  ;;  %7661 = vmatprep.subr.mxu1 %v20532_v19  ;;  %v20568_v4 = vld [vmem:[#allocation105_spill] sm:$0xff] }
 0x6e4   :  { %7530 = vmatpush1.msra.mxu0 %v20563_v52  ;;  %7663 = vmatpush1.msra.mxu1 %v20533_v10  ;;  %v20574_v52 = vld [vmem:[#allocation123_spill] sm:$0xff] }
 0x6e5   :  { %7533 = vmatprep.subr.mxu0 %v20564_v63  ;;  %7665 = vmatprep.subr.mxu1 %v20534_v59  ;;  %v20569_v63 = vld [vmem:[#allocation108_spill] sm:$0xff] }
 0x6e6   :  { %7536 = vmatpush1.msra.mxu0 %v20565_v36  ;;  %7667 = vmatpush1.msra.mxu1 %v20535_v54  ;;  %v20570_v36 = vld [vmem:[#allocation109_spill] sm:$0xff] }
 0x6e7   :  { %7539 = vmatprep.subr.mxu0 %v20566_v41  ;;  %7669 = vmatprep.subr.mxu1 %v20536_v22  ;;  %v20571_v41 = vld [vmem:[#allocation112_spill] sm:$0xff] }
 0x6e8   :  { %7542 = vmatpush1.msra.mxu0 %v20567_v11  ;;  %7671 = vmatpush1.msra.mxu1 %v20537_v5  ;;  %v20572_v11 = vld [vmem:[#allocation115_spill] sm:$0xff] }
 0x6e9   :  { %7545 = vmatprep.subr.mxu0 %v20568_v4  ;;  %7708 = vmatmul.mubr.f32.vlgmr.msra.gmra.mxu1 %v16979_v17  ;;  %v20573_v4 = vld [vmem:[#allocation118_spill] sm:$0xff] }
 0x6ea   :  { %7883 = vmatprep.subr.mxu1 %v19856_v7  ;;  %7548 = vmatpush1.msra.mxu0 %v20569_v63  ;;  %v20575_v63 = vld [vmem:[#allocation126_spill] sm:$0xff] }
 0x6eb   :  { %7885 = vmatpush1.msra.mxu1 %v19756_v50  ;;  %7551 = vmatprep.subr.mxu0 %v20570_v36  ;;  %v20581_v36 = vld [vmem:[#allocation34_spill] sm:$0xff] }
 0x6ec   :  { %7887 = vmatprep.subr.mxu1 %v19757_v33  ;;  %7554 = vmatpush1.msra.mxu0 %v20571_v41  ;;  %v20576_v41 = vld [vmem:[#allocation20_spill] sm:$0xff] }
 0x6ed   :  { %7889 = vmatpush1.msra.mxu1 %v19758_v15  ;;  %7557 = vmatprep.subr.mxu0 %v20572_v11  ;;  %v20577_v11 = vld [vmem:[#allocation24_spill] sm:$0xff] }
 0x6ee   :  { %7891 = vmatprep.subr.mxu1 %v19759_v47  ;;  %7560 = vmatpush1.msra.mxu0 %v20573_v4  ;;  %v20578_v4 = vld [vmem:[#allocation25_spill] sm:$0xff] }
 0x6ef   :  { %7893 = vmatpush1.msra.mxu1 %v19760_v18  ;;  %7563 = vmatprep.subr.mxu0 %v20574_v52  ;;  %v20579_v52 = vld [vmem:[#allocation28_spill] sm:$0xff] }
 0x6f0   :  { %7895 = vmatprep.subr.mxu1 %v19763_v62  ;;  %7566 = vmatpush1.msra.mxu0 %v20575_v63  ;;  %v20580_v63 = vld [vmem:[#allocation31_spill] sm:$0xff] }
 0x6f1   :  { %7599 = vmatprep.mubr.f32.mxu0 %v19527_v35  ;;  %7897 = vmatpush1.msra.mxu1 %v19765_v31 }
 0x6f2   :  { %7602 = vmatmul.mubr.f32.vlgmr.msra.gmra.mxu0 %v16973_v1  ;;  %7717 = vmatprep.subr.mxu0 %v20576_v41  ;;  %v20582_v41 = vld [vmem:[#allocation38_spill] sm:$0xff] }
 0x6f3   :  { %7899 = vmatprep.subr.mxu1 %v19767_v6  ;;  %7721 = vmatpush1.msra.mxu0 %v20577_v11  ;;  %v20583_v11 = vld [vmem:[#allocation46_spill] sm:$0xff] }
 0x6f4   :  { %7901 = vmatpush1.msra.mxu1 %v19769_v28  ;;  %7725 = vmatprep.subr.mxu0 %v20578_v4  ;;  %v20584_v4 = vld [vmem:[#allocation50_spill] sm:$0xff] }
 0x6f5   :  { %7903 = vmatprep.subr.mxu1 %v19771_v44  ;;  %7729 = vmatpush1.msra.mxu0 %v20579_v52  ;;  %v20585_v52 = vld [vmem:[#allocation53_spill] sm:$0xff] }
 0x6f6   :  { %7905 = vmatpush1.msra.mxu1 %v19773_v29  ;;  %7733 = vmatprep.subr.mxu0 %v20580_v63  ;;  %v20586_v63 = vld [vmem:[#allocation56_spill] sm:$0xff] }
 0x6f7   :  { %7907 = vmatprep.subr.mxu1 %v19775_v39  ;;  %7737 = vmatpush1.msra.mxu0 %v20581_v36  ;;  %v20587_v36 = vld [vmem:[#allocation60_spill] sm:$0xff] }
 0x6f8   :  { %7909 = vmatpush1.msra.mxu1 %v19777_v13  ;;  %7741 = vmatprep.subr.mxu0 %v20582_v41  ;;  %v20588_v41 = vld [vmem:[#allocation63_spill] sm:$0xff] }
 0x6f9   :  { %7911 = vmatprep.subr.mxu1 %v19779_v16  ;;  %7745 = vmatpush1.msra.mxu0 %v20583_v11  ;;  %v20589_v11 = vld [vmem:[#allocation66_spill] sm:$0xff] }
 0x6fa   :  { %7913 = vmatpush1.msra.mxu1 %v19781_v34  ;;  %7749 = vmatprep.subr.mxu0 %v20584_v4  ;;  %v20590_v4 = vld [vmem:[#allocation72_spill] sm:$0xff] }
 0x6fb   :  { %7915 = vmatprep.subr.mxu1 %v19783_v2  ;;  %7753 = vmatpush1.msra.mxu0 %v20585_v52  ;;  %v20591_v52 = vld [vmem:[#allocation75_spill] sm:$0xff] }
 0x6fc   :  { %7917 = vmatpush1.msra.mxu1 %v19785_v48  ;;  %7757 = vmatprep.subr.mxu0 %v20586_v63  ;;  %v20592_v63 = vld [vmem:[#allocation81_spill] sm:$0xff] }
 0x6fd   :  { %7919 = vmatprep.subr.mxu1 %v19787_v53  ;;  %7761 = vmatpush1.msra.mxu0 %v20587_v36  ;;  %v20593_v36 = vld [vmem:[#allocation85_spill] sm:$0xff] }
 0x6fe   :  { %7921 = vmatpush1.msra.mxu1 %v19789_v14  ;;  %7765 = vmatprep.subr.mxu0 %v20588_v41  ;;  %v20594_v41 = vld [vmem:[#allocation89_spill] sm:$0xff] }
 0x6ff   :  { %7923 = vmatprep.subr.mxu1 %v19791_v37  ;;  %7769 = vmatpush1.msra.mxu0 %v20589_v11  ;;  %v20595_v11 = vld [vmem:[#allocation91_spill] sm:$0xff] }
 0x700   :  { %7925 = vmatpush1.msra.mxu1 %v19793_v3  ;;  %7773 = vmatprep.subr.mxu0 %v20590_v4  ;;  %v20596_v4 = vld [vmem:[#allocation95_spill] sm:$0xff] }
 0x701   :  { %7927 = vmatprep.subr.mxu1 %v20526_v43  ;;  %7777 = vmatpush1.msra.mxu0 %v20591_v52  ;;  %v20597_v52 = vld [vmem:[#allocation98_spill] sm:$0xff]  ;;  %v20672_v43 = vld [vmem:[#allocation145_spill] sm:$0xff] }
 0x702   :  { %7929 = vmatpush1.msra.mxu1 %v20528_v58  ;;  %7781 = vmatprep.subr.mxu0 %v20592_v63  ;;  %v20598_v63 = vld [vmem:[#allocation104_spill] sm:$0xff] }
 0x703   :  { %7931 = vmatprep.subr.mxu1 %v20530_v51  ;;  %7785 = vmatpush1.msra.mxu0 %v20593_v36  ;;  %v20599_v36 = vld [vmem:[#allocation107_spill] sm:$0xff]  ;;  %v20670_v51 = vld [vmem:[#allocation142_spill] sm:$0xff]  ;;  %v20671_v58 = vld [vmem:[#allocation144_spill] sm:$0xff] }
 0x704   :  { %7933 = vmatpush1.msra.mxu1 %v20531_v46  ;;  %7789 = vmatprep.subr.mxu0 %v20594_v41  ;;  %v20602_v41 = vld [vmem:[#allocation113_spill] sm:$0xff] }
 0x705   :  { %7935 = vmatprep.subr.mxu1 %v20532_v19  ;;  %7793 = vmatpush1.msra.mxu0 %v20595_v11  ;;  %v20600_v11 = vld [vmem:[#allocation111_spill] sm:$0xff]  ;;  %v20669_v46 = vld [vmem:[#allocation141_spill] sm:$0xff] }
 0x706   :  { %7937 = vmatpush1.msra.mxu1 %v20533_v10  ;;  %7797 = vmatprep.subr.mxu0 %v20596_v4  ;;  %v20601_v4 = vld [vmem:[#allocation168_spill] sm:$0xff]  ;;  %v20667_v10 = vld [vmem:[#allocation233_spill] sm:$0xff]  ;;  %v20668_v19 = vld [vmem:[#allocation139_spill] sm:$0xff] }
 0x707   :  { %7939 = vmatprep.subr.mxu1 %v20534_v59  ;;  %7801 = vmatpush1.msra.mxu0 %v20597_v52  ;;  %v20603_v52 = vld [vmem:[#allocation172_spill] sm:$0xff]  ;;  %v20666_v59 = vld [vmem:[#allocation230_spill] sm:$0xff] }
 0x708   :  { %7941 = vmatpush1.msra.mxu1 %v20535_v54  ;;  %7805 = vmatprep.subr.mxu0 %v20598_v63  ;;  %v20605_v63 = vld [vmem:[#allocation173_spill] sm:$0xff] }
 0x709   :  { %7943 = vmatprep.subr.mxu1 %v20536_v22  ;;  %7809 = vmatpush1.msra.mxu0 %v20599_v36  ;;  %v20607_v36 = vld [vmem:[#allocation178_spill] sm:$0xff]  ;;  %v20657_v22 = vld [vmem:[#allocation260_spill] sm:$0xff]  ;;  %v20659_v54 = vld [vmem:[#allocation261_spill] sm:$0xff] }
 0x70a   :  { %7945 = vmatpush1.msra.mxu1 %v20537_v5  ;;  %7978 = vmatprep.mubr.f32.mxu1 %v19527_v35  ;;  %v20655_v5 = vld [vmem:[#allocation259_spill] sm:$0xff] }
 0x70b   :  { %7813 = vmatprep.subr.mxu0 %v20600_v11  ;;  %7980 = vmatmul.mubr.f32.vlgmr.msra.gmra.mxu1 %v16969_v26  ;;  %v20610_v11 = vld [vmem:[#allocation122_spill] sm:$0xff] }
 0x70c   :  { %8099 = vmatprep.subr.mxu1 %v20601_v4  ;;  %7817 = vmatpush1.msra.mxu0 %v20602_v41  ;;  %v20612_v4 = vld [vmem:[#allocation128_spill] sm:$0xff] }
 0x70d   :  { %8105 = vmatpush1.msra.mxu1 %v20603_v52  ;;  %7821 = vmatprep.subr.mxu0 %v20604_v21  ;;  %v20613_v41 = vld [vmem:[#allocation188_spill] sm:$0xff]  ;;  %v20614_v52 = vld [vmem:[#allocation130_spill] sm:$0xff]  ;;  %v20629_v21 = vld [vmem:[#allocation227_spill] sm:$0xff] }
 0x70e   :  { %8111 = vmatprep.subr.mxu1 %v20605_v63  ;;  %7825 = vmatpush1.msra.mxu0 %v20606_v0  ;;  %v20615_v63 = vld [vmem:[#allocation193_spill] sm:$0xff]  ;;  %v20627_v0 = vld [vmem:[#allocation224_spill] sm:$0xff] }
 0x70f   :  { %8117 = vmatpush1.msra.mxu1 %v20607_v36  ;;  %7829 = vmatprep.subr.mxu0 %v20608_v42  ;;  %v20616_v42 = vld [vmem:[#allocation196_spill] sm:$0xff] }
 0x710   :  { %8123 = vmatprep.subr.mxu1 %v20609_v56  ;;  %7833 = vmatpush1.msra.mxu0 %v20610_v11  ;;  %v20617_v11 = vld [vmem:[#allocation200_spill] sm:$0xff]  ;;  %v20623_v56 = vld [vmem:[#allocation213_spill] sm:$0xff] }
 0x711   :  { %8129 = vmatpush1.msra.mxu1 %v20611_v38  ;;  %7837 = vmatprep.subr.mxu0 %v20612_v4  ;;  %v20618_v4 = vld [vmem:[#allocation203_spill] sm:$0xff]  ;;  %v20622_v38 = vld [vmem:[#allocation140_spill] sm:$0xff] }
 0x712   :  { %8135 = vmatprep.subr.mxu1 %v20613_v41  ;;  %7841 = vmatpush1.msra.mxu0 %v20614_v52  ;;  %v20619_v52 = vld [vmem:[#allocation204_spill] sm:$0xff]  ;;  %v20620_v41 = vld [vmem:[#allocation138_spill] sm:$0xff] }
 0x713   :  { %7874 = vmatprep.mubr.f32.mxu0 %v19527_v35  ;;  %8141 = vmatpush1.msra.mxu1 %v20615_v63  ;;  %v20621_v63 = vld [vmem:[#allocation207_spill] sm:$0xff]  ;;  %v20625_v36 = vld [vmem:[#allocation220_spill] sm:$0xff] }
 0x714   :  { %7876 = vmatmul.mubr.f32.vlgmr.msra.gmra.mxu0 %v16969_v26  ;;  %7987 = vmatprep.subr.mxu0 %v19904_v57 }
 0x715   :  { %8147 = vmatprep.subr.mxu1 %v20616_v42  ;;  %7989 = vmatpush1.msra.mxu0 %v19906_v24  ;;  %v20624_v42 = vld [vmem:[#allocation143_spill] sm:$0xff] }
 0x716   :  { %8153 = vmatpush1.msra.mxu1 %v20617_v11  ;;  %7991 = vmatprep.subr.mxu0 %v19908_v12  ;;  %v20626_v11 = vld [vmem:[#allocation146_spill] sm:$0xff] }
 0x717   :  { %8159 = vmatprep.subr.mxu1 %v20618_v4  ;;  %7993 = vmatpush1.msra.mxu0 %v19910_v45  ;;  %v20628_v4 = vld [vmem:[#allocation148_spill] sm:$0xff] }
 0x718   :  { %8165 = vmatpush1.msra.mxu1 %v20619_v52  ;;  %7995 = vmatprep.subr.mxu0 %v20620_v41  ;;  %v20630_v52 = vld [vmem:[#allocation152_spill] sm:$0xff] }
 0x719   :  { %8171 = vmatprep.subr.mxu1 %v20621_v63  ;;  %7997 = vmatpush1.msra.mxu0 %v20622_v38  ;;  %v20632_v63 = vld [vmem:[#allocation155_spill] sm:$0xff] }
 0x71a   :  { %8177 = vmatpush1.msra.mxu1 %v20623_v56  ;;  %7999 = vmatprep.subr.mxu0 %v20624_v42  ;;  %v20634_v56 = vld [vmem:[#allocation156_spill] sm:$0xff] }
 0x71b   :  { %8183 = vmatprep.subr.mxu1 %v20625_v36  ;;  %8001 = vmatpush1.msra.mxu0 %v20626_v11  ;;  %v20636_v36 = vld [vmem:[#allocation158_spill] sm:$0xff] }
 0x71c   :  { %8189 = vmatpush1.msra.mxu1 %v20627_v0  ;;  %8003 = vmatprep.subr.mxu0 %v20628_v4  ;;  %v20638_v0 = vld [vmem:[#allocation162_spill] sm:$0xff] }
 0x71d   :  { %8195 = vmatprep.subr.mxu1 %v20629_v21  ;;  %8005 = vmatpush1.msra.mxu0 %v20630_v52  ;;  %v20640_v21 = vld [vmem:[#allocation165_spill] sm:$0xff] }
 0x71e   :  { %8201 = vmatpush1.msra.mxu1 %v20631_v30  ;;  %8007 = vmatprep.subr.mxu0 %v20632_v63  ;;  %v20642_v30 = vld [vmem:[#allocation169_spill] sm:$0xff] }
 0x71f   :  { %8207 = vmatprep.subr.mxu1 %v20633_v23  ;;  %8009 = vmatpush1.msra.mxu0 %v20634_v56  ;;  %v20644_v23 = vld [vmem:[#allocation175_spill] sm:$0xff] }
 0x720   :  { %8213 = vmatpush1.msra.mxu1 %v20635_v20  ;;  %8011 = vmatprep.subr.mxu0 %v20636_v36  ;;  %v20646_v20 = vld [vmem:[#allocation182_spill] sm:$0xff] }
 0x721   :  { %8219 = vmatprep.subr.mxu1 %v20637_v49  ;;  %8013 = vmatpush1.msra.mxu0 %v20638_v0  ;;  %v20648_v49 = vld [vmem:[#allocation186_spill] sm:$0xff] }
 0x722   :  { %8225 = vmatpush1.msra.mxu1 %v20639_v60  ;;  %8015 = vmatprep.subr.mxu0 %v20640_v21  ;;  %v20650_v60 = vld [vmem:[#allocation191_spill] sm:$0xff] }
 0x723   :  { %8231 = vmatprep.subr.mxu1 %v20641_v27  ;;  %8017 = vmatpush1.msra.mxu0 %v20642_v30  ;;  %v20652_v27 = vld [vmem:[#allocation192_spill] sm:$0xff] }
 0x724   :  { %8237 = vmatpush1.msra.mxu1 %v20643_v8  ;;  %8019 = vmatprep.subr.mxu0 %v20644_v23  ;;  %v20654_v8 = vld [vmem:[#allocation194_spill] sm:$0xff] }
 0x725   :  { %8243 = vmatprep.subr.mxu1 %v20645_v32  ;;  %8021 = vmatpush1.msra.mxu0 %v20646_v20  ;;  %v20656_v32 = vld [vmem:[#allocation197_spill] sm:$0xff] }
 0x726   :  { %8249 = vmatpush1.msra.mxu1 %v20647_v61  ;;  %8023 = vmatprep.subr.mxu0 %v20648_v49  ;;  %v20658_v61 = vld [vmem:[#allocation205_spill] sm:$0xff] }
 0x727   :  { %8255 = vmatprep.subr.mxu1 %v20649_v9  ;;  %8025 = vmatpush1.msra.mxu0 %v20650_v60  ;;  %v20660_v9 = vld [vmem:[#allocation208_spill] sm:$0xff] }
 0x728   :  { %8261 = vmatpush1.msra.mxu1 %v20651_v55  ;;  %8027 = vmatprep.subr.mxu0 %v20652_v27  ;;  %v20665_v55 = vld [vmem:[#allocation225_spill] sm:$0xff] }
 0x729   :  { %8267 = vmatprep.subr.mxu1 %v20653_v40  ;;  %8029 = vmatpush1.msra.mxu0 %v20654_v8  ;;  %v20661_v40 = vld [vmem:[#allocation210_spill] sm:$0xff] }
 0x72a   :  { %8273 = vmatpush1.msra.mxu1 %v20655_v5  ;;  %8031 = vmatprep.subr.mxu0 %v20656_v32  ;;  %v20662_v5 = vld [vmem:[#allocation216_spill] sm:$0xff] }
 0x72b   :  { %8279 = vmatprep.subr.mxu1 %v20657_v22  ;;  %8033 = vmatpush1.msra.mxu0 %v20658_v61  ;;  %v20663_v22 = vld [vmem:[#allocation217_spill] sm:$0xff] }
 0x72c   :  { %8285 = vmatpush1.msra.mxu1 %v20659_v54  ;;  %8318 = vmatprep.mubr.f32.mxu1 %v19527_v35  ;;  %v20664_v54 = vld [vmem:[#allocation221_spill] sm:$0xff] }
 0x72d   :  { %8035 = vmatprep.subr.mxu0 %v20660_v9  ;;  %8320 = vmatmul.mubr.f32.vlgmr.msra.gmra.mxu1 %v16969_v26 }
 0x72e   :  { %8464 = vmatprep.subr.mxu1 %v19904_v57  ;;  %8037 = vmatpush1.msra.mxu0 %v20661_v40 }
 0x72f   :  { %8466 = vmatpush1.msra.mxu1 %v19906_v24  ;;  %8039 = vmatprep.subr.mxu0 %v20662_v5 }
 0x730   :  { %8468 = vmatprep.subr.mxu1 %v19908_v12  ;;  %8041 = vmatpush1.msra.mxu0 %v20663_v22 }
 0x731   :  { %8470 = vmatpush1.msra.mxu1 %v19910_v45  ;;  %8043 = vmatprep.subr.mxu0 %v20664_v54 }
 0x732   :  { %8472 = vmatprep.subr.mxu1 %v20620_v41  ;;  %8045 = vmatpush1.msra.mxu0 %v20665_v55 }
 0x733   :  { %8474 = vmatpush1.msra.mxu1 %v20622_v38  ;;  %8047 = vmatprep.subr.mxu0 %v20666_v59 }
 0x734   :  { %8476 = vmatprep.subr.mxu1 %v20624_v42  ;;  %8049 = vmatpush1.msra.mxu0 %v20667_v10 }
 0x735   :  { %8082 = vmatprep.mubr.f32.mxu0 %v19527_v35  ;;  %8478 = vmatpush1.msra.mxu1 %v20626_v11 }
 0x736   :  { %8088 = vmatmul.mubr.f32.vlgmr.msra.gmra.mxu0 %v16987_v25  ;;  %8328 = vmatprep.subr.mxu0 %v20668_v19  ;;  %v20673_v25 = vld [vmem:[#allocation151_spill] sm:$0xff]  ;;  %v20674_v19 = vld [vmem:[#allocation154_spill] sm:$0xff] }
 0x737   :  { %8480 = vmatprep.subr.mxu1 %v20628_v4  ;;  %8331 = vmatpush1.msra.mxu0 %v20669_v46  ;;  %v20675_v46 = vld [vmem:[#allocation159_spill] sm:$0xff] }
 0x738   :  { %8482 = vmatpush1.msra.mxu1 %v20630_v52  ;;  %8334 = vmatprep.subr.mxu0 %v20670_v51  ;;  %v20676_v51 = vld [vmem:[#allocation161_spill] sm:$0xff] }
 0x739   :  { %8484 = vmatprep.subr.mxu1 %v20632_v63  ;;  %8337 = vmatpush1.msra.mxu0 %v20671_v58  ;;  %v20677_v58 = vld [vmem:[#allocation164_spill] sm:$0xff] }
 0x73a   :  { %8486 = vmatpush1.msra.mxu1 %v20634_v56  ;;  %8340 = vmatprep.subr.mxu0 %v20672_v43  ;;  %v20678_v43 = vld [vmem:[#allocation166_spill] sm:$0xff] }
 0x73b   :  { %8488 = vmatprep.subr.mxu1 %v20636_v36  ;;  %8343 = vmatpush1.msra.mxu0 %v20673_v25  ;;  %v20679_v25 = vld [vmem:[#allocation167_spill] sm:$0xff] }
 0x73c   :  { %8490 = vmatpush1.msra.mxu1 %v20638_v0  ;;  %8346 = vmatprep.subr.mxu0 %v20674_v19  ;;  %v20680_v19 = vld [vmem:[#allocation171_spill] sm:$0xff] }
 0x73d   :  { %8492 = vmatprep.subr.mxu1 %v20640_v21  ;;  %8349 = vmatpush1.msra.mxu0 %v20675_v46  ;;  %v20681_v46 = vld [vmem:[#allocation177_spill] sm:$0xff] }
 0x73e   :  { %8494 = vmatpush1.msra.mxu1 %v20642_v30  ;;  %8352 = vmatprep.subr.mxu0 %v20676_v51  ;;  %v20682_v51 = vld [vmem:[#allocation184_spill] sm:$0xff] }
 0x73f   :  { %8496 = vmatprep.subr.mxu1 %v20644_v23  ;;  %8355 = vmatpush1.msra.mxu0 %v20677_v58  ;;  %v20683_v58 = vld [vmem:[#allocation187_spill] sm:$0xff] }
 0x740   :  { %8498 = vmatpush1.msra.mxu1 %v20646_v20  ;;  %8358 = vmatprep.subr.mxu0 %v20678_v43  ;;  %v20684_v43 = vld [vmem:[#allocation190_spill] sm:$0xff] }
 0x741   :  { %8500 = vmatprep.subr.mxu1 %v20648_v49  ;;  %8361 = vmatpush1.msra.mxu0 %v20679_v25  ;;  %v20685_v25 = vld [vmem:[#allocation199_spill] sm:$0xff] }
 0x742   :  { %8502 = vmatpush1.msra.mxu1 %v20650_v60  ;;  %8364 = vmatprep.subr.mxu0 %v20680_v19  ;;  %v20686_v19 = vld [vmem:[#allocation202_spill] sm:$0xff] }
 0x743   :  { %8504 = vmatprep.subr.mxu1 %v20652_v27  ;;  %8367 = vmatpush1.msra.mxu0 %v20681_v46  ;;  %v20687_v46 = vld [vmem:[#allocation206_spill] sm:$0xff] }
 0x744   :  { %8506 = vmatpush1.msra.mxu1 %v20654_v8  ;;  %8370 = vmatprep.subr.mxu0 %v20682_v51  ;;  %v20688_v51 = vld [vmem:[#allocation209_spill] sm:$0xff] }
 0x745   :  { %8508 = vmatprep.subr.mxu1 %v20656_v32  ;;  %8373 = vmatpush1.msra.mxu0 %v20683_v58  ;;  %v20689_v58 = vld [vmem:[#allocation212_spill] sm:$0xff] }
 0x746   :  { %8510 = vmatpush1.msra.mxu1 %v20658_v61  ;;  %8376 = vmatprep.subr.mxu0 %v20684_v43  ;;  %v20690_v43 = vld [vmem:[#allocation215_spill] sm:$0xff] }
 0x747   :  { %8512 = vmatprep.subr.mxu1 %v20660_v9  ;;  %8379 = vmatpush1.msra.mxu0 %v20685_v25  ;;  %v20691_v25 = vld [vmem:[#allocation219_spill] sm:$0xff] }
 0x748   :  { %8514 = vmatpush1.msra.mxu1 %v20661_v40  ;;  %8382 = vmatprep.subr.mxu0 %v20686_v19  ;;  %v20731_v19 = vld [vmem:[#allocation37_spill] sm:$0xff] }
 0x749   :  { %8516 = vmatprep.subr.mxu1 %v20662_v5  ;;  %8385 = vmatpush1.msra.mxu0 %v20687_v46  ;;  %v20692_v46 = vld [vmem:[#allocation223_spill] sm:$0xff] }
 0x74a   :  { %8518 = vmatpush1.msra.mxu1 %v20663_v22  ;;  %8388 = vmatprep.subr.mxu0 %v20688_v51  ;;  %v20693_v51 = vld [vmem:[#allocation229_spill] sm:$0xff] }
 0x74b   :  { %8520 = vmatprep.subr.mxu1 %v20664_v54  ;;  %8391 = vmatpush1.msra.mxu0 %v20689_v58  ;;  %v20694_v58 = vld [vmem:[#allocation232_spill] sm:$0xff] }
 0x74c   :  { %8522 = vmatpush1.msra.mxu1 %v20665_v55  ;;  %8394 = vmatprep.subr.mxu0 %v20690_v43  ;;  %v20695_v43 = vld [vmem:[#allocation235_spill] sm:$0xff] }
 0x74d   :  { %8524 = vmatprep.subr.mxu1 %v20666_v59  ;;  %8397 = vmatpush1.msra.mxu0 %v20691_v25  ;;  %v20696_v25 = vld [vmem:[#allocation237_spill] sm:$0xff] }
 0x74e   :  { %8526 = vmatpush1.msra.mxu1 %v20667_v10  ;;  %8559 = vmatprep.mubr.f32.mxu1 %v19527_v35 }
 0x74f   :  { %8400 = vmatprep.subr.mxu0 %v20692_v46  ;;  %8563 = vmatmul.mubr.f32.vlgmr.msra.gmra.mxu1 %v16979_v17  ;;  %v20697_v46 = vld [vmem:[#allocation240_spill] sm:$0xff]  ;;  %v20698_v17 = vld [vmem:[#allocation243_spill] sm:$0xff] }
 0x750   :  { %8738 = vmatprep.subr.mxu1 %v19904_v57  ;;  %8403 = vmatpush1.msra.mxu0 %v20693_v51  ;;  %v20699_v51 = vld [vmem:[#allocation246_spill] sm:$0xff] }
 0x751   :  { %8740 = vmatpush1.msra.mxu1 %v19906_v24  ;;  %8406 = vmatprep.subr.mxu0 %v20694_v58  ;;  %v20729_v58 = vld [vmem:[#allocation36_spill] sm:$0xff] }
 0x752   :  { %8742 = vmatprep.subr.mxu1 %v19908_v12  ;;  %8409 = vmatpush1.msra.mxu0 %v20695_v43  ;;  %v20700_v43 = vld [vmem:[#allocation147_spill] sm:$0xff] }
 0x753   :  { %8744 = vmatpush1.msra.mxu1 %v19910_v45  ;;  %8412 = vmatprep.subr.mxu0 %v20696_v25  ;;  %v20701_v25 = vld [vmem:[#allocation149_spill] sm:$0xff] }
 0x754   :  { %8746 = vmatprep.subr.mxu1 %v20620_v41  ;;  %8415 = vmatpush1.msra.mxu0 %v20697_v46  ;;  %v20702_v46 = vld [vmem:[#allocation150_spill] sm:$0xff] }
 0x755   :  { %8748 = vmatpush1.msra.mxu1 %v20622_v38  ;;  %8418 = vmatprep.subr.mxu0 %v20698_v17  ;;  %v20703_v17 = vld [vmem:[#allocation153_spill] sm:$0xff] }
 0x756   :  { %8750 = vmatprep.subr.mxu1 %v20624_v42  ;;  %8421 = vmatpush1.msra.mxu0 %v20699_v51  ;;  %v20704_v51 = vld [vmem:[#allocation157_spill] sm:$0xff] }
 0x757   :  { %8454 = vmatprep.mubr.f32.mxu0 %v19527_v35  ;;  %8752 = vmatpush1.msra.mxu1 %v20626_v11 }
 0x758   :  { %8457 = vmatmul.mubr.f32.vlgmr.msra.gmra.mxu0 %v16973_v1  ;;  %8572 = vmatprep.subr.mxu0 %v20700_v43  ;;  %v20705_v1 = vld [vmem:[#allocation160_spill] sm:$0xff]  ;;  %v20706_v43 = vld [vmem:[#allocation163_spill] sm:$0xff] }
 0x759   :  { %8754 = vmatprep.subr.mxu1 %v20628_v4  ;;  %8576 = vmatpush1.msra.mxu0 %v20701_v25  ;;  %v20707_v25 = vld [vmem:[#allocation170_spill] sm:$0xff] }
 0x75a   :  { %8756 = vmatpush1.msra.mxu1 %v20630_v52  ;;  %8580 = vmatprep.subr.mxu0 %v20702_v46  ;;  %v20708_v46 = vld [vmem:[#allocation174_spill] sm:$0xff] }
 0x75b   :  { %8758 = vmatprep.subr.mxu1 %v20632_v63  ;;  %8584 = vmatpush1.msra.mxu0 %v20703_v17  ;;  %v20709_v17 = vld [vmem:[#allocation176_spill] sm:$0xff] }
 0x75c   :  { %8760 = vmatpush1.msra.mxu1 %v20634_v56  ;;  %8588 = vmatprep.subr.mxu0 %v20704_v51  ;;  %v20710_v51 = vld [vmem:[#allocation180_spill] sm:$0xff] }
 0x75d   :  { %8762 = vmatprep.subr.mxu1 %v20636_v36  ;;  %8592 = vmatpush1.msra.mxu0 %v20705_v1  ;;  %v20711_v1 = vld [vmem:[#allocation181_spill] sm:$0xff] }
 0x75e   :  { %8764 = vmatpush1.msra.mxu1 %v20638_v0  ;;  %8596 = vmatprep.subr.mxu0 %v20706_v43  ;;  %v20712_v43 = vld [vmem:[#allocation183_spill] sm:$0xff] }
 0x75f   :  { %8766 = vmatprep.subr.mxu1 %v20640_v21  ;;  %8600 = vmatpush1.msra.mxu0 %v20707_v25  ;;  %v20713_v25 = vld [vmem:[#allocation189_spill] sm:$0xff] }
 0x760   :  { %8768 = vmatpush1.msra.mxu1 %v20642_v30  ;;  %8604 = vmatprep.subr.mxu0 %v20708_v46  ;;  %v20714_v46 = vld [vmem:[#allocation195_spill] sm:$0xff] }
 0x761   :  { %8770 = vmatprep.subr.mxu1 %v20644_v23  ;;  %8608 = vmatpush1.msra.mxu0 %v20709_v17  ;;  %v20715_v17 = vld [vmem:[#allocation198_spill] sm:$0xff] }
 0x762   :  { %8772 = vmatpush1.msra.mxu1 %v20646_v20  ;;  %8612 = vmatprep.subr.mxu0 %v20710_v51  ;;  %v20716_v51 = vld [vmem:[#allocation201_spill] sm:$0xff] }
 0x763   :  { %8774 = vmatprep.subr.mxu1 %v20648_v49  ;;  %8616 = vmatpush1.msra.mxu0 %v20711_v1  ;;  %v20717_v1 = vld [vmem:[#allocation211_spill] sm:$0xff] }
 0x764   :  { %8776 = vmatpush1.msra.mxu1 %v20650_v60  ;;  %8620 = vmatprep.subr.mxu0 %v20712_v43  ;;  %v20718_v43 = vld [vmem:[#allocation214_spill] sm:$0xff] }
 0x765   :  { %8778 = vmatprep.subr.mxu1 %v20652_v27  ;;  %8624 = vmatpush1.msra.mxu0 %v20713_v25  ;;  %v20719_v25 = vld [vmem:[#allocation218_spill] sm:$0xff] }
 0x766   :  { %8780 = vmatpush1.msra.mxu1 %v20654_v8  ;;  %8628 = vmatprep.subr.mxu0 %v20714_v46  ;;  %v20720_v46 = vld [vmem:[#allocation222_spill] sm:$0xff] }
 0x767   :  { %8782 = vmatprep.subr.mxu1 %v20656_v32  ;;  %8632 = vmatpush1.msra.mxu0 %v20715_v17  ;;  %v20721_v17 = vld [vmem:[#allocation226_spill] sm:$0xff] }
 0x768   :  { %8784 = vmatpush1.msra.mxu1 %v20658_v61  ;;  %8636 = vmatprep.subr.mxu0 %v20716_v51  ;;  %v20722_v51 = vld [vmem:[#allocation228_spill] sm:$0xff] }
 0x769   :  { %8786 = vmatprep.subr.mxu1 %v20660_v9  ;;  %8640 = vmatpush1.msra.mxu0 %v20717_v1  ;;  %v20723_v1 = vld [vmem:[#allocation231_spill] sm:$0xff] }
 0x76a   :  { %8788 = vmatpush1.msra.mxu1 %v20661_v40  ;;  %8644 = vmatprep.subr.mxu0 %v20718_v43  ;;  %v20727_v43 = vld [vmem:[#allocation33_spill] sm:$0xff] }
 0x76b   :  { %8790 = vmatprep.subr.mxu1 %v20662_v5  ;;  %8648 = vmatpush1.msra.mxu0 %v20719_v25  ;;  %v20724_v25 = vld [vmem:[#allocation234_spill] sm:$0xff] }
 0x76c   :  { %8792 = vmatpush1.msra.mxu1 %v20663_v22  ;;  %8652 = vmatprep.subr.mxu0 %v20720_v46  ;;  %v20725_v46 = vld [vmem:[#allocation239_spill] sm:$0xff] }
 0x76d   :  { %8794 = vmatprep.subr.mxu1 %v20664_v54  ;;  %8656 = vmatpush1.msra.mxu0 %v20721_v17  ;;  %v20726_v17 = vld [vmem:[#allocation242_spill] sm:$0xff] }
 0x76e   :  { %8796 = vmatpush1.msra.mxu1 %v20665_v55  ;;  %8660 = vmatprep.subr.mxu0 %v20722_v51  ;;  %v20728_v51 = vld [vmem:[#allocation245_spill] sm:$0xff]  ;;  %v20736_v55 = vld [vmem:[#allocation254_spill] sm:$0xff] }
 0x76f   :  { %8798 = vmatprep.subr.mxu1 %v20666_v59  ;;  %8664 = vmatpush1.msra.mxu0 %v20723_v1  ;;  %v20730_v1 = vld [vmem:[#allocation248_spill] sm:$0xff] }
 0x770   :  { %8800 = vmatpush1.msra.mxu1 %v20667_v10  ;;  %8833 = vmatprep.mubr.f32.mxu1 %v19527_v35  ;;  %v20732_v10 = vld [vmem:[#allocation250_spill] sm:$0xff]  ;;  %v20734_v59 = vld [vmem:[#allocation252_spill] sm:$0xff] }
 0x771   :  { %8668 = vmatprep.subr.mxu0 %v20724_v25  ;;  %8835 = vmatmul.mubr.f32.vlgmr.msra.gmra.mxu1 %v16969_v26  ;;  %v20733_v25 = vld [vmem:[#allocation39_spill] sm:$0xff] }
 0x772   :  { %8672 = vmatpush1.msra.mxu0 %v20725_v46  ;;  %8729 = vmatprep.mubr.f32.mxu0 %v19527_v35  ;;  %v20735_v46 = vld [vmem:[#allocation42_spill] sm:$0xff] }
 0x773   :  { %8676 = vmatprep.subr.mxu0 %v20726_v17  ;;  %8979 = vmatprep.subr.mxu1 %v20727_v43  ;;  %v20737_v17 = vld [vmem:[#allocation45_spill] sm:$0xff] }
 0x774   :  { %8680 = vmatpush1.msra.mxu0 %v20728_v51  ;;  %8985 = vmatpush1.msra.mxu1 %v20729_v58  ;;  %v20738_v51 = vld [vmem:[#allocation49_spill] sm:$0xff]  ;;  %v20739_v58 = vld [vmem:[#allocation59_spill] sm:$0xff] }
 0x775   :  { %8684 = vmatprep.subr.mxu0 %v20730_v1  ;;  %8991 = vmatprep.subr.mxu1 %v20731_v19  ;;  %v20740_v19 = vld [vmem:[#allocation62_spill] sm:$0xff]  ;;  %v20774_v1 = vld [vmem:[#allocation15_spill] sm:$0xff] }
 0x776   :  { %8688 = vmatpush1.msra.mxu0 %v20732_v10  ;;  %8997 = vmatpush1.msra.mxu1 %v20733_v25  ;;  %v20741_v25 = vld [vmem:[#allocation65_spill] sm:$0xff]  ;;  %v20772_v10 = vld [vmem:[#allocation96_spill] sm:$0xff] }
 0x777   :  { %8692 = vmatprep.subr.mxu0 %v20734_v59  ;;  %9003 = vmatprep.subr.mxu1 %v20735_v46  ;;  %v20742_v46 = vld [vmem:[#allocation68_spill] sm:$0xff]  ;;  %v20770_v59 = vld [vmem:[#allocation87_spill] sm:$0xff] }
 0x778   :  { %8696 = vmatpush1.msra.mxu0 %v20736_v55  ;;  %9009 = vmatpush1.msra.mxu1 %v20737_v17  ;;  %v20743_v17 = vld [vmem:[#allocation71_spill] sm:$0xff]  ;;  %v20765_v55 = vld [vmem:[#allocation133_spill] sm:$0xff] }
 0x779   :  { %8731 = vmatmul.mubr.f32.vlgmr.msra.gmra.mxu0 %v16969_v26  ;;  %9015 = vmatprep.subr.mxu1 %v20738_v51  ;;  %v20744_v26 = vld [vmem:[#allocation74_spill] sm:$0xff]  ;;  %v20763_v51 = vld [vmem:[#allocation132_spill] sm:$0xff] }
 0x77a   :  { %9021 = vmatpush1.msra.mxu1 %v20739_v58  ;;  %8867 = vmatprep.subr.mxu0 %v19856_v7  ;;  %v20745_v58 = vld [vmem:[#allocation78_spill] sm:$0xff] }
 0x77b   :  { %9027 = vmatprep.subr.mxu1 %v20740_v19  ;;  %8869 = vmatpush1.msra.mxu0 %v19756_v50  ;;  %v20746_v19 = vld [vmem:[#allocation84_spill] sm:$0xff] }
 0x77c   :  { %9033 = vmatpush1.msra.mxu1 %v20741_v25  ;;  %8871 = vmatprep.subr.mxu0 %v19757_v33  ;;  %v20747_v25 = vld [vmem:[#allocation88_spill] sm:$0xff] }
 0x77d   :  { %9039 = vmatprep.subr.mxu1 %v20742_v46  ;;  %8873 = vmatpush1.msra.mxu0 %v19758_v15  ;;  %v20748_v46 = vld [vmem:[#allocation94_spill] sm:$0xff] }
 0x77e   :  { %9045 = vmatpush1.msra.mxu1 %v20743_v17  ;;  %8875 = vmatprep.subr.mxu0 %v19759_v47  ;;  %v20749_v17 = vld [vmem:[#allocation97_spill] sm:$0xff] }
 0x77f   :  { %9051 = vmatprep.subr.mxu1 %v20744_v26  ;;  %8877 = vmatpush1.msra.mxu0 %v19760_v18  ;;  %v20750_v26 = vld [vmem:[#allocation100_spill] sm:$0xff] }
 0x780   :  { %9057 = vmatpush1.msra.mxu1 %v20745_v58  ;;  %8879 = vmatprep.subr.mxu0 %v19763_v62  ;;  %v20751_v58 = vld [vmem:[#allocation103_spill] sm:$0xff] }
 0x781   :  { %9063 = vmatprep.subr.mxu1 %v20746_v19  ;;  %8881 = vmatpush1.msra.mxu0 %v19765_v31  ;;  %v20752_v19 = vld [vmem:[#allocation106_spill] sm:$0xff] }
 0x782   :  { %9069 = vmatpush1.msra.mxu1 %v20747_v25  ;;  %8883 = vmatprep.subr.mxu0 %v19767_v6  ;;  %v20753_v25 = vld [vmem:[#allocation110_spill] sm:$0xff] }
 0x783   :  { %9075 = vmatprep.subr.mxu1 %v20748_v46  ;;  %8885 = vmatpush1.msra.mxu0 %v19769_v28  ;;  %v20754_v46 = vld [vmem:[#allocation116_spill] sm:$0xff] }
 0x784   :  { %9081 = vmatpush1.msra.mxu1 %v20749_v17  ;;  %8887 = vmatprep.subr.mxu0 %v19771_v44  ;;  %v20755_v17 = vld [vmem:[#allocation119_spill] sm:$0xff] }
 0x785   :  { %9087 = vmatprep.subr.mxu1 %v20750_v26  ;;  %8889 = vmatpush1.msra.mxu0 %v19773_v29  ;;  %v20756_v26 = vld [vmem:[#allocation121_spill] sm:$0xff] }
 0x786   :  { %9093 = vmatpush1.msra.mxu1 %v20751_v58  ;;  %8891 = vmatprep.subr.mxu0 %v19775_v39  ;;  %v20757_v58 = vld [vmem:[#allocation124_spill] sm:$0xff] }
 0x787   :  { %9099 = vmatprep.subr.mxu1 %v20752_v19  ;;  %8893 = vmatpush1.msra.mxu0 %v19777_v13  ;;  %v20758_v19 = vld [vmem:[#allocation125_spill] sm:$0xff] }
 0x788   :  { %9105 = vmatpush1.msra.mxu1 %v20753_v25  ;;  %8895 = vmatprep.subr.mxu0 %v19779_v16  ;;  %v20759_v25 = vld [vmem:[#allocation127_spill] sm:$0xff] }
 0x789   :  { %9111 = vmatprep.subr.mxu1 %v20754_v46  ;;  %8897 = vmatpush1.msra.mxu0 %v19781_v34  ;;  %v20760_v46 = vld [vmem:[#allocation129_spill] sm:$0xff]  ;;  %v7466_v22 = vpop.f32.mrf.mxu1 }
 0x78a   :  { %9117 = vmatpush1.msra.mxu1 %v20755_v17  ;;  %8899 = vmatprep.subr.mxu0 %v19783_v2  ;;  %v20761_v17 = vld [vmem:[#allocation131_spill] sm:$0xff] }
 0x78b   :  { %9123 = vmatprep.subr.mxu1 %v20756_v26  ;;  %8901 = vmatpush1.msra.mxu0 %v19785_v48  ;;  %v20762_v26 = vld [vmem:[#allocation64_spill] sm:$0xff]  ;;  %v7468_v40 = vpop.f32.mrf.mxu1 }
 0x78c   :  { %9129 = vmatpush1.msra.mxu1 %v20757_v58  ;;  %8903 = vmatprep.subr.mxu0 %v19787_v53  ;;  %v20764_v58 = vld [vmem:[#allocation69_spill] sm:$0xff] }
 0x78d   :  { %9135 = vmatprep.subr.mxu1 %v20758_v19  ;;  %8905 = vmatpush1.msra.mxu0 %v19789_v14  ;;  %v20766_v19 = vld [vmem:[#allocation73_spill] sm:$0xff] }
 0x78e   :  { %9141 = vmatpush1.msra.mxu1 %v20759_v25  ;;  %8907 = vmatprep.subr.mxu0 %v19791_v37  ;;  %v20767_v25 = vld [vmem:[#allocation77_spill] sm:$0xff] }
 0x78f   :  { %9147 = vmatprep.subr.mxu1 %v20760_v46  ;;  %8909 = vmatpush1.msra.mxu0 %v19793_v3  ;;  %v20768_v46 = vld [vmem:[#allocation80_spill] sm:$0xff] }
 0x790   :  { %9153 = vmatpush1.msra.mxu1 %v20761_v17  ;;  %8911 = vmatprep.subr.mxu0 %v20762_v26  ;;  %v20769_v17 = vld [vmem:[#allocation83_spill] sm:$0xff] }
 0x791   :  { %9159 = vmatprep.subr.mxu1 %v20763_v51  ;;  %8913 = vmatpush1.msra.mxu0 %v20764_v58  ;;  %v20771_v51 = vld [vmem:[#allocation92_spill] sm:$0xff]  ;;  %v7234_v43 = vpop.f32.mrf.mxu0 }
 0x792   :  { %9165 = vmatpush1.msra.mxu1 %v20765_v55  ;;  %8915 = vmatprep.subr.mxu0 %v20766_v19  ;;  %v20773_v55 = vld [vmem:[#allocation101_spill] sm:$0xff]  ;;  %v7467_v27 = vadd.f32 %v7466_v22, %v7234_v43  ;;  %v20776_v22 = vld [vmem:[#allocation7_spill] sm:$0xff] }
 0x793   :  { %9198 = vmatprep.mubr.f32.mxu1 %v19527_v35  ;;  %9344 = vmatprep.subr.mxu1 %v19856_v7  ;;  %v7236_v54 = vpop.f32.mrf.mxu0 }
 0x794   :  { %8917 = vmatpush1.msra.mxu0 %v20767_v25  ;;  %8962 = vmatprep.mubr.f32.mxu0 %v19527_v35  ;;  %v7469_v61 = vadd.f32 %v7468_v40, %v7236_v54  ;;  %v20775_v54 = vld [vmem:[#allocation8_spill] sm:$0xff] }
 0x795   :  { %8919 = vmatprep.subr.mxu0 %v20768_v46 }
 0x796   :  { %8921 = vmatpush1.msra.mxu0 %v20769_v17 }
 0x797   :  { %8923 = vmatprep.subr.mxu0 %v20770_v59 }
 0x798   :  { %8925 = vmatpush1.msra.mxu0 %v20771_v51 }
 0x799   :  { %8927 = vmatprep.subr.mxu0 %v20772_v10 }
 0x79a   :  { %8929 = vmatpush1.msra.mxu0 %v20773_v55 }
 0x79b   :  { %9208 = vmatprep.subr.mxu0 %v20774_v1 }
 0x7a9   :  { %v7709_v32 = vpop.f32.mrf.mxu1 }
 0x7ab   :  { %v7711_v49 = vpop.f32.mrf.mxu1 }
 0x7b2   :  { %v7603_v5 = vpop.f32.mrf.mxu0 }
 0x7b3   :  { %v7604_v20 = vadd.f32 %v7603_v5, %v7467_v27 }
 0x7b4   :  { %v7605_v9 = vpop.f32.mrf.mxu0 }
 0x7b5   :  { %v7606_v60 = vadd.f32 %v7605_v9, %v7469_v61  ;;  %v7710_v0 = vadd.f32 %v7709_v32, %v7604_v20 }
 0x7b7   :  { %v7712_v21 = vadd.f32 %v7711_v49, %v7606_v60 }
 0x7cb   :  { %v7981_v30 = vpop.f32.mrf.mxu1 }
 0x7cd   :  { %v7983_v1 = vpop.f32.mrf.mxu1 }
 0x7d4   :  { %v7877_v8 = vpop.f32.mrf.mxu0 }
 0x7d5   :  { %v7878_v63 = vadd.f32 %v7877_v8, %v7710_v0 }
 0x7d6   :  { %v7879_v23 = vpop.f32.mrf.mxu0 }
 0x7d7   :  { %v7880_v36 = vadd.f32 %v7879_v23, %v7712_v21  ;;  %v7982_v42 = vadd.f32 %v7981_v30, %v7878_v63 }
 0x7d9   :  { %v7984_v52 = vadd.f32 %v7983_v1, %v7880_v36  ;;  %v8841_v43 = vadd.f32 %v7982_v42, %v20776_v22  ;;  %v20777_v22 = vld [vmem:[#allocation10_spill] sm:$0xff] }
 0x7db   :  { %v8842_v40 = vadd.f32 %v7984_v52, %v20775_v54  ;;  %v8845_v49 = vmul.f32 0.5, %v8841_v43 }
 0x7dd   :  { %v8846_v27 = vmul.f32 0.5, %v8842_v40 }
 0x7df   :  { %14188 = vtanh.f32 %v8846_v27 }
 0x7e0   :  { %14190 = vtanh.f32 %v8845_v49 }
 0x7ed   :  { %v8321_v4 = vpop.f32.mrf.mxu1 }
 0x7ef   :  { %v8323_v41 = vpop.f32.mrf.mxu1 }
 0x7f6   :  { %v8089_v56 = vpop.f32.mrf.mxu0 }
 0x7f7   :  { %v8322_v60 = vadd.f32 %v8321_v4, %v8089_v56  ;;  %v20778_v56 = vld [vmem:[#allocation9_spill] sm:$0xff] }
 0x7f8   :  { %v8091_v11 = vpop.f32.mrf.mxu0 }
 0x7f9   :  { %v8324_v61 = vadd.f32 %v8323_v41, %v8091_v11  ;;  %v14189_v41 = vpop.eup %14188 }
 0x7fa   :  { %v14191_v40 = vpop.eup %14190 }
 0x80f   :  { %v8564_v9 = vpop.f32.mrf.mxu1 }
 0x811   :  { %v8566_v20 = vpop.f32.mrf.mxu1 }
 0x818   :  { %v8458_v38 = vpop.f32.mrf.mxu0 }
 0x819   :  { %v8459_v23 = vadd.f32 %v8458_v38, %v8322_v60  ;;  %v8852_v38 = vmul.f32 0.5, %v14189_v41  ;;  %v20783_v41 = vld [vmem:[#allocation22_spill] sm:$0xff] }
 0x81a   :  { %v8460_v5 = vpop.f32.mrf.mxu0 }
 0x81b   :  { %v8461_v32 = vadd.f32 %v8460_v5, %v8324_v61  ;;  %v8565_v30 = vadd.f32 %v8564_v9, %v8459_v23  ;;  %v8851_v5 = vmul.f32 0.5, %v14191_v40  ;;  %v8855_v61 = vadd.f32 0.5, %v8852_v38  ;;  %v20779_v9 = vld [vmem:[#allocation23_spill] sm:$0xff]  ;;  %v20784_v40 = vld [vmem:[#allocation26_spill] sm:$0xff]  ;;  %v20785_v38 = vld [vmem:[#allocation29_spill] sm:$0xff] }
 0x81c   :  { %v8859_v60 = vrot.slane %v20779_v9, 6  ;;  %v20790_v9 = vld [vmem:[#allocation51_spill] sm:$0xff] }
 0x81d   :  { %v8567_v21 = vadd.f32 %v8566_v20, %v8461_v32  ;;  %v8854_v27 = vadd.f32 0.5, %v8851_v5  ;;  %v20787_v5 = vld [vmem:[#allocation40_spill] sm:$0xff] }
 0x81e   :  { %v8861_v49 = vmul.f32 %v8859_v60, %v8855_v61  ;;  %v20788_v61 = vld [vmem:[#allocation43_spill] sm:$0xff]  ;;  %v20791_v60 = vld [vmem:[#allocation54_spill] sm:$0xff] }
 0x831   :  { %v8836_v8 = vpop.f32.mrf.mxu1 }
 0x833   :  { %v8838_v36 = vpop.f32.mrf.mxu1 }
 0x839   :  { %v8732_v0 = vpop.f32.mrf.mxu0 }
 0x83a   :  { %v8733_v1 = vadd.f32 %v8732_v0, %v8565_v30 }
 0x83b   :  { %v8734_v63 = vpop.f32.mrf.mxu0 }
 0x83c   :  { %v8735_v52 = vadd.f32 %v8734_v63, %v8567_v21  ;;  %v8837_v11 = vadd.f32 %v8836_v8, %v8733_v1 }
 0x83e   :  { %v8839_v42 = vadd.f32 %v8838_v36, %v8735_v52  ;;  %v8843_v4 = vadd.f32 %v8837_v11, %v20778_v56  ;;  %v20781_v11 = vld [vmem:[#allocation17_spill] sm:$0xff] }
 0x83f   :  { %v20887_v56 = vld [vmem:[#allocation257_spill] sm:$0xff] }
 0x840   :  { %v8844_v54 = vadd.f32 %v8839_v42, %v20777_v22  ;;  %v8847_v43 = vmul.f32 0.5, %v8843_v4  ;;  %v20782_v4 = vld [vmem:[#allocation19_spill] sm:$0xff]  ;;  %v20889_v22 = vld [vmem:[#allocation258_spill] sm:$0xff] }
 0x842   :  { %14192 = vtanh.f32 %v8844_v54 }
 0x843   :  { %14194 = vtanh.f32 %v8847_v43  ;;  %v20786_v43 = vld [vmem:[#allocation32_spill] sm:$0xff] }
 0x84f   :  { %v14193_v32 = vpop.eup %14192 }
 0x850   :  { %v8862_v20 = vmul.f32 %v14193_v32, %v8854_v27  ;;  %v14195_v54 = vpop.eup %14194  ;;  %v20789_v27 = vld [vmem:[#allocation47_spill] sm:$0xff]  ;;  %v20792_v32 = vld [vmem:[#allocation57_spill] sm:$0xff] }
 0x851   :  { %v8853_v8 = vmul.f32 0.5, %v14195_v54  ;;  %v20795_v54 = vld [vmem:[#allocation70_spill] sm:$0xff] }
 0x852   :  { %v17394_v23 = vadd.f32 %v8862_v20, %v8861_v49  ;;  %v20793_v49 = vld [vmem:[#allocation61_spill] sm:$0xff]  ;;  %v20794_v20 = vld [vmem:[#allocation67_spill] sm:$0xff] }
 0x853   :  { %v8856_v0 = vadd.f32 0.5, %v8853_v8  ;;  %v20796_v8 = vld [vmem:[#allocation76_spill] sm:$0xff] }
 0x854   :  { %20780 = vst [vmem:[#allocation27_spill] sm:$0xff] %v17394_v23  ;;  %14196 = vtanh.f32 %v17394_v23  ;;  %v20885_v23 = vld [vmem:[#allocation256_spill] sm:$0xff] }
 0x861   :  { %v14197_v21 = vpop.eup %14196 }
 0x862   :  { %v8865_v30 = vmul.f32 %v14197_v21, %v8856_v0  ;;  %v20797_v0 = vld [vmem:[#allocation79_spill] sm:$0xff]  ;;  %v20798_v21 = vld [vmem:[#allocation82_spill] sm:$0xff] }
 0x864   :  { %v17397_v63 = vand.u32 4294901760, %v8865_v30 }
 0x866   :  { %9200 = vmatmul.mubr.f32.vlgmr.msra.gmra.mxu1 %v17397_v63  ;;  %v17401_v52 = vsub.f32 %v8865_v30, %v17397_v63  ;;  %v20799_v30 = vld [vmem:[#allocation86_spill] sm:$0xff] }
 0x867   :  { %9346 = vmatpush1.msra.mxu1 %v19756_v50  ;;  %9439 = vmatprep.mubr.f32.mxu1 %v19527_v35 }
 0x868   :  { %9348 = vmatprep.subr.mxu1 %v19757_v33  ;;  %v17407_v36 = vand.u32 4294901760, %v17401_v52 }
 0x869   :  { %9350 = vmatpush1.msra.mxu1 %v19758_v15 }
 0x86a   :  { %9352 = vmatprep.subr.mxu1 %v19759_v47  ;;  %v8966_v1 = vsub.f32 %v17401_v52, %v17407_v36 }
 0x86b   :  { %9354 = vmatpush1.msra.mxu1 %v19760_v18 }
 0x86c   :  { %9356 = vmatprep.subr.mxu1 %v19763_v62  ;;  %v17415_v42 = vand.u32 4294901760, %v8966_v1  ;;  %v20800_v1 = vld [vmem:[#allocation90_spill] sm:$0xff] }
 0x86d   :  { %9358 = vmatpush1.msra.mxu1 %v19765_v31 }
 0x86e   :  { %9360 = vmatprep.subr.mxu1 %v19767_v6  ;;  %8968 = vmatmul.mubr.f32.vlgmr.msra.gmra.mxu0 %v17415_v42 }
 0x86f   :  { %9211 = vmatpush1.msra.mxu0 %v20781_v11  ;;  %9362 = vmatpush1.msra.mxu1 %v19769_v28  ;;  %v20883_v11 = vld [vmem:[#allocation255_spill] sm:$0xff] }
 0x870   :  { %9214 = vmatprep.subr.mxu0 %v20782_v4  ;;  %9364 = vmatprep.subr.mxu1 %v19771_v44  ;;  %v20881_v4 = vld [vmem:[#allocation253_spill] sm:$0xff] }
 0x871   :  { %9217 = vmatpush1.msra.mxu0 %v20783_v41  ;;  %9366 = vmatpush1.msra.mxu1 %v19773_v29  ;;  %v20879_v41 = vld [vmem:[#allocation251_spill] sm:$0xff] }
 0x872   :  { %9220 = vmatprep.subr.mxu0 %v20784_v40  ;;  %9368 = vmatprep.subr.mxu1 %v19775_v39  ;;  %v20877_v40 = vld [vmem:[#allocation249_spill] sm:$0xff] }
 0x873   :  { %9223 = vmatpush1.msra.mxu0 %v20785_v38  ;;  %9370 = vmatpush1.msra.mxu1 %v19777_v13  ;;  %v20875_v38 = vld [vmem:[#allocation247_spill] sm:$0xff] }
 0x874   :  { %9226 = vmatprep.subr.mxu0 %v20786_v43  ;;  %9372 = vmatprep.subr.mxu1 %v19779_v16  ;;  %v20873_v43 = vld [vmem:[#allocation244_spill] sm:$0xff] }
 0x875   :  { %9229 = vmatpush1.msra.mxu0 %v20787_v5  ;;  %9374 = vmatpush1.msra.mxu1 %v19781_v34  ;;  %v20871_v5 = vld [vmem:[#allocation241_spill] sm:$0xff] }
 0x876   :  { %9232 = vmatprep.subr.mxu0 %v20788_v61  ;;  %9376 = vmatprep.subr.mxu1 %v19783_v2  ;;  %v20869_v61 = vld [vmem:[#allocation238_spill] sm:$0xff] }
 0x877   :  { %9235 = vmatpush1.msra.mxu0 %v20789_v27  ;;  %9378 = vmatpush1.msra.mxu1 %v19785_v48  ;;  %v20867_v27 = vld [vmem:[#allocation236_spill] sm:$0xff] }
 0x878   :  { %9238 = vmatprep.subr.mxu0 %v20790_v9  ;;  %9380 = vmatprep.subr.mxu1 %v19787_v53  ;;  %v20847_v9 = vld [vmem:[#allocation185_spill] sm:$0xff] }
 0x879   :  { %9241 = vmatpush1.msra.mxu0 %v20791_v60  ;;  %9382 = vmatpush1.msra.mxu1 %v19789_v14  ;;  %v20845_v60 = vld [vmem:[#allocation179_spill] sm:$0xff] }
 0x87a   :  { %9244 = vmatprep.subr.mxu0 %v20792_v32  ;;  %9384 = vmatprep.subr.mxu1 %v19791_v37  ;;  %v20844_v32 = vld [vmem:[#allocation120_spill] sm:$0xff] }
 0x87b   :  { %9247 = vmatpush1.msra.mxu0 %v20793_v49  ;;  %9386 = vmatpush1.msra.mxu1 %v19793_v3  ;;  %v20842_v49 = vld [vmem:[#allocation117_spill] sm:$0xff] }
 0x87c   :  { %9250 = vmatprep.subr.mxu0 %v20794_v20  ;;  %9388 = vmatprep.subr.mxu1 %v20762_v26  ;;  %v20840_v20 = vld [vmem:[#allocation114_spill] sm:$0xff] }
 0x87d   :  { %9253 = vmatpush1.msra.mxu0 %v20795_v54  ;;  %9390 = vmatpush1.msra.mxu1 %v20764_v58  ;;  %v20801_v54 = vld [vmem:[#allocation93_spill] sm:$0xff] }
 0x87e   :  { %9256 = vmatprep.subr.mxu0 %v20796_v8  ;;  %9392 = vmatprep.subr.mxu1 %v20766_v19  ;;  %v20802_v8 = vld [vmem:[#allocation99_spill] sm:$0xff] }
 0x87f   :  { %9259 = vmatpush1.msra.mxu0 %v20797_v0  ;;  %9394 = vmatpush1.msra.mxu1 %v20767_v25  ;;  %v20803_v0 = vld [vmem:[#allocation102_spill] sm:$0xff] }
 0x880   :  { %9262 = vmatprep.subr.mxu0 %v20798_v21  ;;  %9396 = vmatprep.subr.mxu1 %v20768_v46  ;;  %v20804_v21 = vld [vmem:[#allocation105_spill] sm:$0xff] }
 0x881   :  { %9265 = vmatpush1.msra.mxu0 %v20799_v30  ;;  %9398 = vmatpush1.msra.mxu1 %v20769_v17  ;;  %v20810_v30 = vld [vmem:[#allocation123_spill] sm:$0xff] }
 0x882   :  { %9268 = vmatprep.subr.mxu0 %v20800_v1  ;;  %9400 = vmatprep.subr.mxu1 %v20770_v59  ;;  %v20805_v1 = vld [vmem:[#allocation108_spill] sm:$0xff] }
 0x883   :  { %9271 = vmatpush1.msra.mxu0 %v20801_v54  ;;  %9402 = vmatpush1.msra.mxu1 %v20771_v51  ;;  %v20806_v54 = vld [vmem:[#allocation109_spill] sm:$0xff] }
 0x884   :  { %9274 = vmatprep.subr.mxu0 %v20802_v8  ;;  %9404 = vmatprep.subr.mxu1 %v20772_v10  ;;  %v20807_v8 = vld [vmem:[#allocation112_spill] sm:$0xff] }
 0x885   :  { %9277 = vmatpush1.msra.mxu0 %v20803_v0  ;;  %9406 = vmatpush1.msra.mxu1 %v20773_v55  ;;  %v20808_v0 = vld [vmem:[#allocation115_spill] sm:$0xff] }
 0x886   :  { %9280 = vmatprep.subr.mxu0 %v20804_v21  ;;  %9443 = vmatmul.mubr.f32.vlgmr.msra.gmra.mxu1 %v17407_v36  ;;  %v20809_v21 = vld [vmem:[#allocation118_spill] sm:$0xff] }
 0x887   :  { %9618 = vmatprep.subr.mxu1 %v19856_v7  ;;  %9283 = vmatpush1.msra.mxu0 %v20805_v1  ;;  %v20811_v1 = vld [vmem:[#allocation126_spill] sm:$0xff] }
 0x888   :  { %9620 = vmatpush1.msra.mxu1 %v19756_v50  ;;  %9286 = vmatprep.subr.mxu0 %v20806_v54  ;;  %v20817_v54 = vld [vmem:[#allocation34_spill] sm:$0xff] }
 0x889   :  { %9622 = vmatprep.subr.mxu1 %v19757_v33  ;;  %9289 = vmatpush1.msra.mxu0 %v20807_v8  ;;  %v20812_v8 = vld [vmem:[#allocation20_spill] sm:$0xff] }
 0x88a   :  { %9624 = vmatpush1.msra.mxu1 %v19758_v15  ;;  %9292 = vmatprep.subr.mxu0 %v20808_v0  ;;  %v20813_v0 = vld [vmem:[#allocation24_spill] sm:$0xff] }
 0x88b   :  { %9626 = vmatprep.subr.mxu1 %v19759_v47  ;;  %9295 = vmatpush1.msra.mxu0 %v20809_v21  ;;  %v20814_v21 = vld [vmem:[#allocation25_spill] sm:$0xff] }
 0x88c   :  { %9628 = vmatpush1.msra.mxu1 %v19760_v18  ;;  %9298 = vmatprep.subr.mxu0 %v20810_v30  ;;  %v20815_v30 = vld [vmem:[#allocation28_spill] sm:$0xff] }
 0x88d   :  { %9630 = vmatprep.subr.mxu1 %v19763_v62  ;;  %9301 = vmatpush1.msra.mxu0 %v20811_v1  ;;  %v20816_v1 = vld [vmem:[#allocation31_spill] sm:$0xff] }
 0x88e   :  { %9334 = vmatprep.mubr.f32.mxu0 %v19527_v35  ;;  %9632 = vmatpush1.msra.mxu1 %v19765_v31 }
 0x88f   :  { %9337 = vmatmul.mubr.f32.vlgmr.msra.gmra.mxu0 %v17401_v52  ;;  %9452 = vmatprep.subr.mxu0 %v20812_v8  ;;  %v20818_v8 = vld [vmem:[#allocation38_spill] sm:$0xff] }
 0x890   :  { %9634 = vmatprep.subr.mxu1 %v19767_v6  ;;  %9456 = vmatpush1.msra.mxu0 %v20813_v0  ;;  %v20819_v0 = vld [vmem:[#allocation46_spill] sm:$0xff] }
 0x891   :  { %9636 = vmatpush1.msra.mxu1 %v19769_v28  ;;  %9460 = vmatprep.subr.mxu0 %v20814_v21  ;;  %v20820_v21 = vld [vmem:[#allocation50_spill] sm:$0xff] }
 0x892   :  { %9638 = vmatprep.subr.mxu1 %v19771_v44  ;;  %9464 = vmatpush1.msra.mxu0 %v20815_v30  ;;  %v20821_v30 = vld [vmem:[#allocation53_spill] sm:$0xff] }
 0x893   :  { %9640 = vmatpush1.msra.mxu1 %v19773_v29  ;;  %9468 = vmatprep.subr.mxu0 %v20816_v1  ;;  %v20822_v1 = vld [vmem:[#allocation56_spill] sm:$0xff] }
 0x894   :  { %9642 = vmatprep.subr.mxu1 %v19775_v39  ;;  %9472 = vmatpush1.msra.mxu0 %v20817_v54  ;;  %v20823_v54 = vld [vmem:[#allocation60_spill] sm:$0xff] }
 0x895   :  { %9644 = vmatpush1.msra.mxu1 %v19777_v13  ;;  %9476 = vmatprep.subr.mxu0 %v20818_v8  ;;  %v20824_v8 = vld [vmem:[#allocation63_spill] sm:$0xff] }
 0x896   :  { %9646 = vmatprep.subr.mxu1 %v19779_v16  ;;  %9480 = vmatpush1.msra.mxu0 %v20819_v0  ;;  %v20825_v0 = vld [vmem:[#allocation66_spill] sm:$0xff] }
 0x897   :  { %9648 = vmatpush1.msra.mxu1 %v19781_v34  ;;  %9484 = vmatprep.subr.mxu0 %v20820_v21  ;;  %v20826_v21 = vld [vmem:[#allocation72_spill] sm:$0xff] }
 0x898   :  { %9650 = vmatprep.subr.mxu1 %v19783_v2  ;;  %9488 = vmatpush1.msra.mxu0 %v20821_v30  ;;  %v20827_v30 = vld [vmem:[#allocation75_spill] sm:$0xff] }
 0x899   :  { %9652 = vmatpush1.msra.mxu1 %v19785_v48  ;;  %9492 = vmatprep.subr.mxu0 %v20822_v1  ;;  %v20828_v1 = vld [vmem:[#allocation81_spill] sm:$0xff] }
 0x89a   :  { %9654 = vmatprep.subr.mxu1 %v19787_v53  ;;  %9496 = vmatpush1.msra.mxu0 %v20823_v54  ;;  %v20829_v54 = vld [vmem:[#allocation85_spill] sm:$0xff] }
 0x89b   :  { %9656 = vmatpush1.msra.mxu1 %v19789_v14  ;;  %9500 = vmatprep.subr.mxu0 %v20824_v8  ;;  %v20830_v8 = vld [vmem:[#allocation89_spill] sm:$0xff] }
 0x89c   :  { %9658 = vmatprep.subr.mxu1 %v19791_v37  ;;  %9504 = vmatpush1.msra.mxu0 %v20825_v0  ;;  %v20831_v0 = vld [vmem:[#allocation91_spill] sm:$0xff] }
 0x89d   :  { %9660 = vmatpush1.msra.mxu1 %v19793_v3  ;;  %9508 = vmatprep.subr.mxu0 %v20826_v21  ;;  %v20832_v21 = vld [vmem:[#allocation95_spill] sm:$0xff] }
 0x89e   :  { %9662 = vmatprep.subr.mxu1 %v20762_v26  ;;  %9512 = vmatpush1.msra.mxu0 %v20827_v30  ;;  %v20833_v30 = vld [vmem:[#allocation98_spill] sm:$0xff]  ;;  %v20908_v26 = vld [vmem:[#allocation145_spill] sm:$0xff] }
 0x89f   :  { %9664 = vmatpush1.msra.mxu1 %v20764_v58  ;;  %9516 = vmatprep.subr.mxu0 %v20828_v1  ;;  %v20834_v1 = vld [vmem:[#allocation104_spill] sm:$0xff] }
 0x8a0   :  { %9666 = vmatprep.subr.mxu1 %v20766_v19  ;;  %9520 = vmatpush1.msra.mxu0 %v20829_v54  ;;  %v20835_v54 = vld [vmem:[#allocation107_spill] sm:$0xff]  ;;  %v20906_v19 = vld [vmem:[#allocation142_spill] sm:$0xff]  ;;  %v20907_v58 = vld [vmem:[#allocation144_spill] sm:$0xff] }
 0x8a1   :  { %9668 = vmatpush1.msra.mxu1 %v20767_v25  ;;  %9524 = vmatprep.subr.mxu0 %v20830_v8  ;;  %v20838_v8 = vld [vmem:[#allocation113_spill] sm:$0xff] }
 0x8a2   :  { %9670 = vmatprep.subr.mxu1 %v20768_v46  ;;  %9528 = vmatpush1.msra.mxu0 %v20831_v0  ;;  %v20836_v0 = vld [vmem:[#allocation111_spill] sm:$0xff]  ;;  %v20905_v25 = vld [vmem:[#allocation141_spill] sm:$0xff] }
 0x8a3   :  { %9672 = vmatpush1.msra.mxu1 %v20769_v17  ;;  %9532 = vmatprep.subr.mxu0 %v20832_v21  ;;  %v20837_v21 = vld [vmem:[#allocation168_spill] sm:$0xff]  ;;  %v20903_v17 = vld [vmem:[#allocation233_spill] sm:$0xff]  ;;  %v20904_v46 = vld [vmem:[#allocation139_spill] sm:$0xff] }
 0x8a4   :  { %9674 = vmatprep.subr.mxu1 %v20770_v59  ;;  %9536 = vmatpush1.msra.mxu0 %v20833_v30  ;;  %v20839_v30 = vld [vmem:[#allocation172_spill] sm:$0xff]  ;;  %v20902_v59 = vld [vmem:[#allocation230_spill] sm:$0xff] }
 0x8a5   :  { %9676 = vmatpush1.msra.mxu1 %v20771_v51  ;;  %9540 = vmatprep.subr.mxu0 %v20834_v1  ;;  %v20841_v1 = vld [vmem:[#allocation173_spill] sm:$0xff] }
 0x8a6   :  { %9678 = vmatprep.subr.mxu1 %v20772_v10  ;;  %9544 = vmatpush1.msra.mxu0 %v20835_v54  ;;  %v20843_v54 = vld [vmem:[#allocation178_spill] sm:$0xff]  ;;  %v20893_v10 = vld [vmem:[#allocation260_spill] sm:$0xff]  ;;  %v20895_v51 = vld [vmem:[#allocation261_spill] sm:$0xff] }
 0x8a7   :  { %9680 = vmatpush1.msra.mxu1 %v20773_v55  ;;  %9713 = vmatprep.mubr.f32.mxu1 %v19527_v35  ;;  %v20891_v55 = vld [vmem:[#allocation259_spill] sm:$0xff] }
 0x8a8   :  { %9548 = vmatprep.subr.mxu0 %v20836_v0  ;;  %9715 = vmatmul.mubr.f32.vlgmr.msra.gmra.mxu1 %v17397_v63  ;;  %v20846_v0 = vld [vmem:[#allocation122_spill] sm:$0xff] }
 0x8a9   :  { %9834 = vmatprep.subr.mxu1 %v20837_v21  ;;  %9552 = vmatpush1.msra.mxu0 %v20838_v8  ;;  %v20848_v21 = vld [vmem:[#allocation128_spill] sm:$0xff] }
 0x8aa   :  { %9840 = vmatpush1.msra.mxu1 %v20839_v30  ;;  %9556 = vmatprep.subr.mxu0 %v20840_v20  ;;  %v20849_v8 = vld [vmem:[#allocation188_spill] sm:$0xff]  ;;  %v20850_v30 = vld [vmem:[#allocation130_spill] sm:$0xff]  ;;  %v20865_v20 = vld [vmem:[#allocation227_spill] sm:$0xff] }
 0x8ab   :  { %9846 = vmatprep.subr.mxu1 %v20841_v1  ;;  %9560 = vmatpush1.msra.mxu0 %v20842_v49  ;;  %v20851_v1 = vld [vmem:[#allocation193_spill] sm:$0xff]  ;;  %v20863_v49 = vld [vmem:[#allocation224_spill] sm:$0xff] }
 0x8ac   :  { %9852 = vmatpush1.msra.mxu1 %v20843_v54  ;;  %9564 = vmatprep.subr.mxu0 %v20844_v32  ;;  %v20852_v32 = vld [vmem:[#allocation196_spill] sm:$0xff] }
 0x8ad   :  { %9858 = vmatprep.subr.mxu1 %v20845_v60  ;;  %9568 = vmatpush1.msra.mxu0 %v20846_v0  ;;  %v20853_v0 = vld [vmem:[#allocation200_spill] sm:$0xff]  ;;  %v20859_v60 = vld [vmem:[#allocation213_spill] sm:$0xff] }
 0x8ae   :  { %9864 = vmatpush1.msra.mxu1 %v20847_v9  ;;  %9572 = vmatprep.subr.mxu0 %v20848_v21  ;;  %v20854_v21 = vld [vmem:[#allocation203_spill] sm:$0xff]  ;;  %v20858_v9 = vld [vmem:[#allocation140_spill] sm:$0xff] }
 0x8af   :  { %9870 = vmatprep.subr.mxu1 %v20849_v8  ;;  %9576 = vmatpush1.msra.mxu0 %v20850_v30  ;;  %v20855_v30 = vld [vmem:[#allocation204_spill] sm:$0xff]  ;;  %v20856_v8 = vld [vmem:[#allocation138_spill] sm:$0xff] }
 0x8b0   :  { %9609 = vmatprep.mubr.f32.mxu0 %v19527_v35  ;;  %9876 = vmatpush1.msra.mxu1 %v20851_v1  ;;  %v20857_v1 = vld [vmem:[#allocation207_spill] sm:$0xff]  ;;  %v20861_v54 = vld [vmem:[#allocation220_spill] sm:$0xff] }
 0x8b1   :  { %9611 = vmatmul.mubr.f32.vlgmr.msra.gmra.mxu0 %v17397_v63  ;;  %9722 = vmatprep.subr.mxu0 %v19904_v57 }
 0x8b2   :  { %9882 = vmatprep.subr.mxu1 %v20852_v32  ;;  %9724 = vmatpush1.msra.mxu0 %v19906_v24  ;;  %v20860_v32 = vld [vmem:[#allocation143_spill] sm:$0xff] }
 0x8b3   :  { %9888 = vmatpush1.msra.mxu1 %v20853_v0  ;;  %9726 = vmatprep.subr.mxu0 %v19908_v12  ;;  %v20862_v0 = vld [vmem:[#allocation146_spill] sm:$0xff] }
 0x8b4   :  { %9894 = vmatprep.subr.mxu1 %v20854_v21  ;;  %9728 = vmatpush1.msra.mxu0 %v19910_v45  ;;  %v20864_v21 = vld [vmem:[#allocation148_spill] sm:$0xff] }
 0x8b5   :  { %9900 = vmatpush1.msra.mxu1 %v20855_v30  ;;  %9730 = vmatprep.subr.mxu0 %v20856_v8  ;;  %v20866_v30 = vld [vmem:[#allocation152_spill] sm:$0xff] }
 0x8b6   :  { %9906 = vmatprep.subr.mxu1 %v20857_v1  ;;  %9732 = vmatpush1.msra.mxu0 %v20858_v9  ;;  %v20868_v1 = vld [vmem:[#allocation155_spill] sm:$0xff] }
 0x8b7   :  { %9912 = vmatpush1.msra.mxu1 %v20859_v60  ;;  %9734 = vmatprep.subr.mxu0 %v20860_v32  ;;  %v20870_v60 = vld [vmem:[#allocation156_spill] sm:$0xff] }
 0x8b8   :  { %9918 = vmatprep.subr.mxu1 %v20861_v54  ;;  %9736 = vmatpush1.msra.mxu0 %v20862_v0  ;;  %v20872_v54 = vld [vmem:[#allocation158_spill] sm:$0xff] }
 0x8b9   :  { %9924 = vmatpush1.msra.mxu1 %v20863_v49  ;;  %9738 = vmatprep.subr.mxu0 %v20864_v21  ;;  %v20874_v49 = vld [vmem:[#allocation162_spill] sm:$0xff] }
 0x8ba   :  { %9930 = vmatprep.subr.mxu1 %v20865_v20  ;;  %9740 = vmatpush1.msra.mxu0 %v20866_v30  ;;  %v20876_v20 = vld [vmem:[#allocation165_spill] sm:$0xff] }
 0x8bb   :  { %9936 = vmatpush1.msra.mxu1 %v20867_v27  ;;  %9742 = vmatprep.subr.mxu0 %v20868_v1  ;;  %v20878_v27 = vld [vmem:[#allocation169_spill] sm:$0xff] }
 0x8bc   :  { %9942 = vmatprep.subr.mxu1 %v20869_v61  ;;  %9744 = vmatpush1.msra.mxu0 %v20870_v60  ;;  %v20880_v61 = vld [vmem:[#allocation175_spill] sm:$0xff] }
 0x8bd   :  { %9948 = vmatpush1.msra.mxu1 %v20871_v5  ;;  %9746 = vmatprep.subr.mxu0 %v20872_v54  ;;  %v20882_v5 = vld [vmem:[#allocation182_spill] sm:$0xff] }
 0x8be   :  { %9954 = vmatprep.subr.mxu1 %v20873_v43  ;;  %9748 = vmatpush1.msra.mxu0 %v20874_v49  ;;  %v20884_v43 = vld [vmem:[#allocation186_spill] sm:$0xff] }
 0x8bf   :  { %9960 = vmatpush1.msra.mxu1 %v20875_v38  ;;  %9750 = vmatprep.subr.mxu0 %v20876_v20  ;;  %v20886_v38 = vld [vmem:[#allocation191_spill] sm:$0xff] }
 0x8c0   :  { %9966 = vmatprep.subr.mxu1 %v20877_v40  ;;  %9752 = vmatpush1.msra.mxu0 %v20878_v27  ;;  %v20888_v40 = vld [vmem:[#allocation192_spill] sm:$0xff] }
 0x8c1   :  { %9972 = vmatpush1.msra.mxu1 %v20879_v41  ;;  %9754 = vmatprep.subr.mxu0 %v20880_v61  ;;  %v20890_v41 = vld [vmem:[#allocation194_spill] sm:$0xff] }
 0x8c2   :  { %9978 = vmatprep.subr.mxu1 %v20881_v4  ;;  %9756 = vmatpush1.msra.mxu0 %v20882_v5  ;;  %v20892_v4 = vld [vmem:[#allocation197_spill] sm:$0xff] }
 0x8c3   :  { %9984 = vmatpush1.msra.mxu1 %v20883_v11  ;;  %9758 = vmatprep.subr.mxu0 %v20884_v43  ;;  %v20894_v11 = vld [vmem:[#allocation205_spill] sm:$0xff] }
 0x8c4   :  { %9990 = vmatprep.subr.mxu1 %v20885_v23  ;;  %9760 = vmatpush1.msra.mxu0 %v20886_v38  ;;  %v20896_v23 = vld [vmem:[#allocation208_spill] sm:$0xff] }
 0x8c5   :  { %9996 = vmatpush1.msra.mxu1 %v20887_v56  ;;  %9762 = vmatprep.subr.mxu0 %v20888_v40  ;;  %v20901_v56 = vld [vmem:[#allocation225_spill] sm:$0xff] }
 0x8c6   :  { %10002 = vmatprep.subr.mxu1 %v20889_v22  ;;  %9764 = vmatpush1.msra.mxu0 %v20890_v41  ;;  %v20897_v22 = vld [vmem:[#allocation210_spill] sm:$0xff] }
 0x8c7   :  { %10008 = vmatpush1.msra.mxu1 %v20891_v55  ;;  %9766 = vmatprep.subr.mxu0 %v20892_v4  ;;  %v20898_v55 = vld [vmem:[#allocation216_spill] sm:$0xff] }
 0x8c8   :  { %10014 = vmatprep.subr.mxu1 %v20893_v10  ;;  %9768 = vmatpush1.msra.mxu0 %v20894_v11  ;;  %v20899_v10 = vld [vmem:[#allocation217_spill] sm:$0xff] }
 0x8c9   :  { %10020 = vmatpush1.msra.mxu1 %v20895_v51  ;;  %10053 = vmatprep.mubr.f32.mxu1 %v19527_v35  ;;  %v20900_v51 = vld [vmem:[#allocation221_spill] sm:$0xff] }
 0x8ca   :  { %9770 = vmatprep.subr.mxu0 %v20896_v23  ;;  %10055 = vmatmul.mubr.f32.vlgmr.msra.gmra.mxu1 %v17397_v63 }
 0x8cb   :  { %10199 = vmatprep.subr.mxu1 %v19904_v57  ;;  %9772 = vmatpush1.msra.mxu0 %v20897_v22 }
 0x8cc   :  { %10201 = vmatpush1.msra.mxu1 %v19906_v24  ;;  %9774 = vmatprep.subr.mxu0 %v20898_v55 }
 0x8cd   :  { %10203 = vmatprep.subr.mxu1 %v19908_v12  ;;  %9776 = vmatpush1.msra.mxu0 %v20899_v10 }
 0x8ce   :  { %10205 = vmatpush1.msra.mxu1 %v19910_v45  ;;  %9778 = vmatprep.subr.mxu0 %v20900_v51 }
 0x8cf   :  { %10207 = vmatprep.subr.mxu1 %v20856_v8  ;;  %9780 = vmatpush1.msra.mxu0 %v20901_v56 }
 0x8d0   :  { %10209 = vmatpush1.msra.mxu1 %v20858_v9  ;;  %9782 = vmatprep.subr.mxu0 %v20902_v59 }
 0x8d1   :  { %10211 = vmatprep.subr.mxu1 %v20860_v32  ;;  %9784 = vmatpush1.msra.mxu0 %v20903_v17 }
 0x8d2   :  { %9817 = vmatprep.mubr.f32.mxu0 %v19527_v35  ;;  %10213 = vmatpush1.msra.mxu1 %v20862_v0 }
 0x8d3   :  { %9823 = vmatmul.mubr.f32.vlgmr.msra.gmra.mxu0 %v17415_v42  ;;  %10063 = vmatprep.subr.mxu0 %v20904_v46  ;;  %v20909_v42 = vld [vmem:[#allocation151_spill] sm:$0xff]  ;;  %v20910_v46 = vld [vmem:[#allocation154_spill] sm:$0xff] }
 0x8d4   :  { %10215 = vmatprep.subr.mxu1 %v20864_v21  ;;  %10066 = vmatpush1.msra.mxu0 %v20905_v25  ;;  %v20911_v25 = vld [vmem:[#allocation159_spill] sm:$0xff] }
 0x8d5   :  { %10217 = vmatpush1.msra.mxu1 %v20866_v30  ;;  %10069 = vmatprep.subr.mxu0 %v20906_v19  ;;  %v20912_v19 = vld [vmem:[#allocation161_spill] sm:$0xff] }
 0x8d6   :  { %10219 = vmatprep.subr.mxu1 %v20868_v1  ;;  %10072 = vmatpush1.msra.mxu0 %v20907_v58  ;;  %v20913_v58 = vld [vmem:[#allocation164_spill] sm:$0xff] }
 0x8d7   :  { %10221 = vmatpush1.msra.mxu1 %v20870_v60  ;;  %10075 = vmatprep.subr.mxu0 %v20908_v26  ;;  %v20914_v26 = vld [vmem:[#allocation166_spill] sm:$0xff] }
 0x8d8   :  { %10223 = vmatprep.subr.mxu1 %v20872_v54  ;;  %10078 = vmatpush1.msra.mxu0 %v20909_v42  ;;  %v20915_v42 = vld [vmem:[#allocation167_spill] sm:$0xff] }
 0x8d9   :  { %10225 = vmatpush1.msra.mxu1 %v20874_v49  ;;  %10081 = vmatprep.subr.mxu0 %v20910_v46  ;;  %v20916_v46 = vld [vmem:[#allocation171_spill] sm:$0xff] }
 0x8da   :  { %10227 = vmatprep.subr.mxu1 %v20876_v20  ;;  %10084 = vmatpush1.msra.mxu0 %v20911_v25  ;;  %v20917_v25 = vld [vmem:[#allocation177_spill] sm:$0xff] }
 0x8db   :  { %10229 = vmatpush1.msra.mxu1 %v20878_v27  ;;  %10087 = vmatprep.subr.mxu0 %v20912_v19  ;;  %v20918_v19 = vld [vmem:[#allocation184_spill] sm:$0xff] }
 0x8dc   :  { %10231 = vmatprep.subr.mxu1 %v20880_v61  ;;  %10090 = vmatpush1.msra.mxu0 %v20913_v58  ;;  %v20919_v58 = vld [vmem:[#allocation187_spill] sm:$0xff] }
 0x8dd   :  { %10233 = vmatpush1.msra.mxu1 %v20882_v5  ;;  %10093 = vmatprep.subr.mxu0 %v20914_v26  ;;  %v20920_v26 = vld [vmem:[#allocation190_spill] sm:$0xff] }
 0x8de   :  { %10235 = vmatprep.subr.mxu1 %v20884_v43  ;;  %10096 = vmatpush1.msra.mxu0 %v20915_v42  ;;  %v20921_v42 = vld [vmem:[#allocation199_spill] sm:$0xff] }
 0x8df   :  { %10237 = vmatpush1.msra.mxu1 %v20886_v38  ;;  %10099 = vmatprep.subr.mxu0 %v20916_v46  ;;  %v20922_v46 = vld [vmem:[#allocation202_spill] sm:$0xff] }
 0x8e0   :  { %10239 = vmatprep.subr.mxu1 %v20888_v40  ;;  %10102 = vmatpush1.msra.mxu0 %v20917_v25  ;;  %v20923_v25 = vld [vmem:[#allocation206_spill] sm:$0xff] }
 0x8e1   :  { %10241 = vmatpush1.msra.mxu1 %v20890_v41  ;;  %10105 = vmatprep.subr.mxu0 %v20918_v19  ;;  %v20924_v19 = vld [vmem:[#allocation209_spill] sm:$0xff] }
 0x8e2   :  { %10243 = vmatprep.subr.mxu1 %v20892_v4  ;;  %10108 = vmatpush1.msra.mxu0 %v20919_v58  ;;  %v20925_v58 = vld [vmem:[#allocation212_spill] sm:$0xff] }
 0x8e3   :  { %10245 = vmatpush1.msra.mxu1 %v20894_v11  ;;  %10111 = vmatprep.subr.mxu0 %v20920_v26  ;;  %v20926_v26 = vld [vmem:[#allocation215_spill] sm:$0xff] }
 0x8e4   :  { %10247 = vmatprep.subr.mxu1 %v20896_v23  ;;  %10114 = vmatpush1.msra.mxu0 %v20921_v42  ;;  %v20927_v42 = vld [vmem:[#allocation219_spill] sm:$0xff] }
 0x8e5   :  { %10249 = vmatpush1.msra.mxu1 %v20897_v22  ;;  %10117 = vmatprep.subr.mxu0 %v20922_v46  ;;  %v20967_v46 = vld [vmem:[#allocation37_spill] sm:$0xff] }
 0x8e6   :  { %10251 = vmatprep.subr.mxu1 %v20898_v55  ;;  %10120 = vmatpush1.msra.mxu0 %v20923_v25  ;;  %v20928_v25 = vld [vmem:[#allocation223_spill] sm:$0xff] }
 0x8e7   :  { %10253 = vmatpush1.msra.mxu1 %v20899_v10  ;;  %10123 = vmatprep.subr.mxu0 %v20924_v19  ;;  %v20929_v19 = vld [vmem:[#allocation229_spill] sm:$0xff] }
 0x8e8   :  { %10255 = vmatprep.subr.mxu1 %v20900_v51  ;;  %10126 = vmatpush1.msra.mxu0 %v20925_v58  ;;  %v20930_v58 = vld [vmem:[#allocation232_spill] sm:$0xff] }
 0x8e9   :  { %10257 = vmatpush1.msra.mxu1 %v20901_v56  ;;  %10129 = vmatprep.subr.mxu0 %v20926_v26  ;;  %v20931_v26 = vld [vmem:[#allocation235_spill] sm:$0xff] }
 0x8ea   :  { %10259 = vmatprep.subr.mxu1 %v20902_v59  ;;  %10132 = vmatpush1.msra.mxu0 %v20927_v42  ;;  %v20932_v42 = vld [vmem:[#allocation237_spill] sm:$0xff] }
 0x8eb   :  { %10261 = vmatpush1.msra.mxu1 %v20903_v17  ;;  %10294 = vmatprep.mubr.f32.mxu1 %v19527_v35 }
 0x8ec   :  { %10135 = vmatprep.subr.mxu0 %v20928_v25  ;;  %10298 = vmatmul.mubr.f32.vlgmr.msra.gmra.mxu1 %v17407_v36  ;;  %v20933_v25 = vld [vmem:[#allocation240_spill] sm:$0xff]  ;;  %v20934_v36 = vld [vmem:[#allocation243_spill] sm:$0xff] }
 0x8ed   :  { %10473 = vmatprep.subr.mxu1 %v19904_v57  ;;  %10138 = vmatpush1.msra.mxu0 %v20929_v19  ;;  %v20935_v19 = vld [vmem:[#allocation246_spill] sm:$0xff] }
 0x8ee   :  { %10475 = vmatpush1.msra.mxu1 %v19906_v24  ;;  %10141 = vmatprep.subr.mxu0 %v20930_v58  ;;  %v20965_v58 = vld [vmem:[#allocation36_spill] sm:$0xff] }
 0x8ef   :  { %10477 = vmatprep.subr.mxu1 %v19908_v12  ;;  %10144 = vmatpush1.msra.mxu0 %v20931_v26  ;;  %v20936_v26 = vld [vmem:[#allocation147_spill] sm:$0xff] }
 0x8f0   :  { %10479 = vmatpush1.msra.mxu1 %v19910_v45  ;;  %10147 = vmatprep.subr.mxu0 %v20932_v42  ;;  %v20937_v42 = vld [vmem:[#allocation149_spill] sm:$0xff] }
 0x8f1   :  { %10481 = vmatprep.subr.mxu1 %v20856_v8  ;;  %10150 = vmatpush1.msra.mxu0 %v20933_v25  ;;  %v20938_v25 = vld [vmem:[#allocation150_spill] sm:$0xff] }
 0x8f2   :  { %10483 = vmatpush1.msra.mxu1 %v20858_v9  ;;  %10153 = vmatprep.subr.mxu0 %v20934_v36  ;;  %v20939_v36 = vld [vmem:[#allocation153_spill] sm:$0xff] }
 0x8f3   :  { %10485 = vmatprep.subr.mxu1 %v20860_v32  ;;  %10156 = vmatpush1.msra.mxu0 %v20935_v19  ;;  %v20940_v19 = vld [vmem:[#allocation157_spill] sm:$0xff] }
 0x8f4   :  { %10189 = vmatprep.mubr.f32.mxu0 %v19527_v35  ;;  %10487 = vmatpush1.msra.mxu1 %v20862_v0 }
 0x8f5   :  { %10192 = vmatmul.mubr.f32.vlgmr.msra.gmra.mxu0 %v17401_v52  ;;  %10307 = vmatprep.subr.mxu0 %v20936_v26  ;;  %v20941_v52 = vld [vmem:[#allocation160_spill] sm:$0xff]  ;;  %v20942_v26 = vld [vmem:[#allocation163_spill] sm:$0xff] }
 0x8f6   :  { %10489 = vmatprep.subr.mxu1 %v20864_v21  ;;  %10311 = vmatpush1.msra.mxu0 %v20937_v42  ;;  %v20943_v42 = vld [vmem:[#allocation170_spill] sm:$0xff] }
 0x8f7   :  { %10491 = vmatpush1.msra.mxu1 %v20866_v30  ;;  %10315 = vmatprep.subr.mxu0 %v20938_v25  ;;  %v20944_v25 = vld [vmem:[#allocation174_spill] sm:$0xff] }
 0x8f8   :  { %10493 = vmatprep.subr.mxu1 %v20868_v1  ;;  %10319 = vmatpush1.msra.mxu0 %v20939_v36  ;;  %v20945_v36 = vld [vmem:[#allocation176_spill] sm:$0xff] }
 0x8f9   :  { %10495 = vmatpush1.msra.mxu1 %v20870_v60  ;;  %10323 = vmatprep.subr.mxu0 %v20940_v19  ;;  %v20946_v19 = vld [vmem:[#allocation180_spill] sm:$0xff] }
 0x8fa   :  { %10497 = vmatprep.subr.mxu1 %v20872_v54  ;;  %10327 = vmatpush1.msra.mxu0 %v20941_v52  ;;  %v20947_v52 = vld [vmem:[#allocation181_spill] sm:$0xff] }
 0x8fb   :  { %10499 = vmatpush1.msra.mxu1 %v20874_v49  ;;  %10331 = vmatprep.subr.mxu0 %v20942_v26  ;;  %v20948_v26 = vld [vmem:[#allocation183_spill] sm:$0xff] }
 0x8fc   :  { %10501 = vmatprep.subr.mxu1 %v20876_v20  ;;  %10335 = vmatpush1.msra.mxu0 %v20943_v42  ;;  %v20949_v42 = vld [vmem:[#allocation189_spill] sm:$0xff] }
 0x8fd   :  { %10503 = vmatpush1.msra.mxu1 %v20878_v27  ;;  %10339 = vmatprep.subr.mxu0 %v20944_v25  ;;  %v20950_v25 = vld [vmem:[#allocation195_spill] sm:$0xff] }
 0x8fe   :  { %10505 = vmatprep.subr.mxu1 %v20880_v61  ;;  %10343 = vmatpush1.msra.mxu0 %v20945_v36  ;;  %v20951_v36 = vld [vmem:[#allocation198_spill] sm:$0xff] }
 0x8ff   :  { %10507 = vmatpush1.msra.mxu1 %v20882_v5  ;;  %10347 = vmatprep.subr.mxu0 %v20946_v19  ;;  %v20952_v19 = vld [vmem:[#allocation201_spill] sm:$0xff] }
 0x900   :  { %10509 = vmatprep.subr.mxu1 %v20884_v43  ;;  %10351 = vmatpush1.msra.mxu0 %v20947_v52  ;;  %v20953_v52 = vld [vmem:[#allocation211_spill] sm:$0xff] }
 0x901   :  { %10511 = vmatpush1.msra.mxu1 %v20886_v38  ;;  %10355 = vmatprep.subr.mxu0 %v20948_v26  ;;  %v20954_v26 = vld [vmem:[#allocation214_spill] sm:$0xff] }
 0x902   :  { %10513 = vmatprep.subr.mxu1 %v20888_v40  ;;  %10359 = vmatpush1.msra.mxu0 %v20949_v42  ;;  %v20955_v42 = vld [vmem:[#allocation218_spill] sm:$0xff] }
 0x903   :  { %10515 = vmatpush1.msra.mxu1 %v20890_v41  ;;  %10363 = vmatprep.subr.mxu0 %v20950_v25  ;;  %v20956_v25 = vld [vmem:[#allocation222_spill] sm:$0xff] }
 0x904   :  { %10517 = vmatprep.subr.mxu1 %v20892_v4  ;;  %10367 = vmatpush1.msra.mxu0 %v20951_v36  ;;  %v20957_v36 = vld [vmem:[#allocation226_spill] sm:$0xff] }
 0x905   :  { %10519 = vmatpush1.msra.mxu1 %v20894_v11  ;;  %10371 = vmatprep.subr.mxu0 %v20952_v19  ;;  %v20958_v19 = vld [vmem:[#allocation228_spill] sm:$0xff] }
 0x906   :  { %10521 = vmatprep.subr.mxu1 %v20896_v23  ;;  %10375 = vmatpush1.msra.mxu0 %v20953_v52  ;;  %v20959_v52 = vld [vmem:[#allocation231_spill] sm:$0xff] }
 0x907   :  { %10523 = vmatpush1.msra.mxu1 %v20897_v22  ;;  %10379 = vmatprep.subr.mxu0 %v20954_v26  ;;  %v20963_v26 = vld [vmem:[#allocation33_spill] sm:$0xff] }
 0x908   :  { %10525 = vmatprep.subr.mxu1 %v20898_v55  ;;  %10383 = vmatpush1.msra.mxu0 %v20955_v42  ;;  %v20960_v42 = vld [vmem:[#allocation234_spill] sm:$0xff] }
 0x909   :  { %10527 = vmatpush1.msra.mxu1 %v20899_v10  ;;  %10387 = vmatprep.subr.mxu0 %v20956_v25  ;;  %v20961_v25 = vld [vmem:[#allocation239_spill] sm:$0xff] }
 0x90a   :  { %10529 = vmatprep.subr.mxu1 %v20900_v51  ;;  %10391 = vmatpush1.msra.mxu0 %v20957_v36  ;;  %v20962_v36 = vld [vmem:[#allocation242_spill] sm:$0xff] }
 0x90b   :  { %10531 = vmatpush1.msra.mxu1 %v20901_v56  ;;  %10395 = vmatprep.subr.mxu0 %v20958_v19  ;;  %v20964_v19 = vld [vmem:[#allocation245_spill] sm:$0xff]  ;;  %v20972_v56 = vld [vmem:[#allocation254_spill] sm:$0xff] }
 0x90c   :  { %10533 = vmatprep.subr.mxu1 %v20902_v59  ;;  %10399 = vmatpush1.msra.mxu0 %v20959_v52  ;;  %v20966_v52 = vld [vmem:[#allocation248_spill] sm:$0xff] }
 0x90d   :  { %10535 = vmatpush1.msra.mxu1 %v20903_v17  ;;  %10568 = vmatprep.mubr.f32.mxu1 %v19527_v35  ;;  %v20968_v17 = vld [vmem:[#allocation250_spill] sm:$0xff]  ;;  %v20970_v59 = vld [vmem:[#allocation252_spill] sm:$0xff] }
 0x90e   :  { %10403 = vmatprep.subr.mxu0 %v20960_v42  ;;  %10570 = vmatmul.mubr.f32.vlgmr.msra.gmra.mxu1 %v17397_v63  ;;  %v20969_v42 = vld [vmem:[#allocation39_spill] sm:$0xff] }
 0x90f   :  { %10407 = vmatpush1.msra.mxu0 %v20961_v25  ;;  %10464 = vmatprep.mubr.f32.mxu0 %v19527_v35  ;;  %v20971_v25 = vld [vmem:[#allocation42_spill] sm:$0xff] }
 0x910   :  { %10411 = vmatprep.subr.mxu0 %v20962_v36  ;;  %10729 = vmatprep.subr.mxu1 %v20963_v26  ;;  %v20973_v36 = vld [vmem:[#allocation45_spill] sm:$0xff] }
 0x911   :  { %10415 = vmatpush1.msra.mxu0 %v20964_v19  ;;  %10735 = vmatpush1.msra.mxu1 %v20965_v58  ;;  %v20974_v19 = vld [vmem:[#allocation49_spill] sm:$0xff]  ;;  %v20975_v58 = vld [vmem:[#allocation59_spill] sm:$0xff] }
 0x912   :  { %10419 = vmatprep.subr.mxu0 %v20966_v52  ;;  %10741 = vmatprep.subr.mxu1 %v20967_v46  ;;  %v20976_v46 = vld [vmem:[#allocation62_spill] sm:$0xff]  ;;  %v21010_v52 = vld [vmem:[#allocation15_spill] sm:$0xff] }
 0x913   :  { %10423 = vmatpush1.msra.mxu0 %v20968_v17  ;;  %10747 = vmatpush1.msra.mxu1 %v20969_v42  ;;  %v20977_v42 = vld [vmem:[#allocation65_spill] sm:$0xff]  ;;  %v21008_v17 = vld [vmem:[#allocation96_spill] sm:$0xff] }
 0x914   :  { %10427 = vmatprep.subr.mxu0 %v20970_v59  ;;  %10753 = vmatprep.subr.mxu1 %v20971_v25  ;;  %v20978_v25 = vld [vmem:[#allocation68_spill] sm:$0xff]  ;;  %v21006_v59 = vld [vmem:[#allocation87_spill] sm:$0xff] }
 0x915   :  { %10431 = vmatpush1.msra.mxu0 %v20972_v56  ;;  %10759 = vmatpush1.msra.mxu1 %v20973_v36  ;;  %v20979_v36 = vld [vmem:[#allocation71_spill] sm:$0xff]  ;;  %v21001_v56 = vld [vmem:[#allocation133_spill] sm:$0xff] }
 0x916   :  { %10466 = vmatmul.mubr.f32.vlgmr.msra.gmra.mxu0 %v17397_v63  ;;  %10765 = vmatprep.subr.mxu1 %v20974_v19  ;;  %v20980_v63 = vld [vmem:[#allocation74_spill] sm:$0xff]  ;;  %v20999_v19 = vld [vmem:[#allocation132_spill] sm:$0xff] }
 0x917   :  { %10771 = vmatpush1.msra.mxu1 %v20975_v58  ;;  %10617 = vmatprep.subr.mxu0 %v19856_v7  ;;  %v20981_v58 = vld [vmem:[#allocation78_spill] sm:$0xff] }
 0x918   :  { %10777 = vmatprep.subr.mxu1 %v20976_v46  ;;  %10619 = vmatpush1.msra.mxu0 %v19756_v50  ;;  %v20982_v46 = vld [vmem:[#allocation84_spill] sm:$0xff] }
 0x919   :  { %10783 = vmatpush1.msra.mxu1 %v20977_v42  ;;  %10621 = vmatprep.subr.mxu0 %v19757_v33  ;;  %v20983_v42 = vld [vmem:[#allocation88_spill] sm:$0xff] }
 0x91a   :  { %10789 = vmatprep.subr.mxu1 %v20978_v25  ;;  %10623 = vmatpush1.msra.mxu0 %v19758_v15  ;;  %v20984_v25 = vld [vmem:[#allocation94_spill] sm:$0xff] }
 0x91b   :  { %10795 = vmatpush1.msra.mxu1 %v20979_v36  ;;  %10625 = vmatprep.subr.mxu0 %v19759_v47  ;;  %v20985_v36 = vld [vmem:[#allocation97_spill] sm:$0xff] }
 0x91c   :  { %10801 = vmatprep.subr.mxu1 %v20980_v63  ;;  %10627 = vmatpush1.msra.mxu0 %v19760_v18  ;;  %v20986_v63 = vld [vmem:[#allocation100_spill] sm:$0xff] }
 0x91d   :  { %10807 = vmatpush1.msra.mxu1 %v20981_v58  ;;  %10629 = vmatprep.subr.mxu0 %v19763_v62  ;;  %v20987_v58 = vld [vmem:[#allocation103_spill] sm:$0xff] }
 0x91e   :  { %10813 = vmatprep.subr.mxu1 %v20982_v46  ;;  %10631 = vmatpush1.msra.mxu0 %v19765_v31  ;;  %v20988_v46 = vld [vmem:[#allocation106_spill] sm:$0xff] }
 0x91f   :  { %10819 = vmatpush1.msra.mxu1 %v20983_v42  ;;  %10633 = vmatprep.subr.mxu0 %v19767_v6  ;;  %v20989_v42 = vld [vmem:[#allocation110_spill] sm:$0xff] }
 0x920   :  { %10825 = vmatprep.subr.mxu1 %v20984_v25  ;;  %10635 = vmatpush1.msra.mxu0 %v19769_v28  ;;  %v20990_v25 = vld [vmem:[#allocation116_spill] sm:$0xff] }
 0x921   :  { %10831 = vmatpush1.msra.mxu1 %v20985_v36  ;;  %10637 = vmatprep.subr.mxu0 %v19771_v44  ;;  %v20991_v36 = vld [vmem:[#allocation119_spill] sm:$0xff] }
 0x922   :  { %10837 = vmatprep.subr.mxu1 %v20986_v63  ;;  %10639 = vmatpush1.msra.mxu0 %v19773_v29  ;;  %v20992_v63 = vld [vmem:[#allocation121_spill] sm:$0xff] }
 0x923   :  { %10843 = vmatpush1.msra.mxu1 %v20987_v58  ;;  %10641 = vmatprep.subr.mxu0 %v19775_v39  ;;  %v20993_v58 = vld [vmem:[#allocation124_spill] sm:$0xff] }
 0x924   :  { %10849 = vmatprep.subr.mxu1 %v20988_v46  ;;  %10643 = vmatpush1.msra.mxu0 %v19777_v13  ;;  %v20994_v46 = vld [vmem:[#allocation125_spill] sm:$0xff] }
 0x925   :  { %10855 = vmatpush1.msra.mxu1 %v20989_v42  ;;  %10645 = vmatprep.subr.mxu0 %v19779_v16  ;;  %v20995_v42 = vld [vmem:[#allocation127_spill] sm:$0xff] }
 0x926   :  { %10861 = vmatprep.subr.mxu1 %v20990_v25  ;;  %10647 = vmatpush1.msra.mxu0 %v19781_v34  ;;  %v20996_v25 = vld [vmem:[#allocation129_spill] sm:$0xff]  ;;  %v9201_v10 = vpop.f32.mrf.mxu1 }
 0x927   :  { %10867 = vmatpush1.msra.mxu1 %v20991_v36  ;;  %10649 = vmatprep.subr.mxu0 %v19783_v2  ;;  %v20997_v36 = vld [vmem:[#allocation131_spill] sm:$0xff] }
 0x928   :  { %10873 = vmatprep.subr.mxu1 %v20992_v63  ;;  %10651 = vmatpush1.msra.mxu0 %v19785_v48  ;;  %v20998_v63 = vld [vmem:[#allocation64_spill] sm:$0xff]  ;;  %v9203_v22 = vpop.f32.mrf.mxu1 }
 0x929   :  { %10879 = vmatpush1.msra.mxu1 %v20993_v58  ;;  %10653 = vmatprep.subr.mxu0 %v19787_v53  ;;  %v21000_v58 = vld [vmem:[#allocation69_spill] sm:$0xff] }
 0x92a   :  { %10885 = vmatprep.subr.mxu1 %v20994_v46  ;;  %10655 = vmatpush1.msra.mxu0 %v19789_v14  ;;  %v21002_v46 = vld [vmem:[#allocation73_spill] sm:$0xff] }
 0x92b   :  { %10891 = vmatpush1.msra.mxu1 %v20995_v42  ;;  %10657 = vmatprep.subr.mxu0 %v19791_v37  ;;  %v21003_v42 = vld [vmem:[#allocation77_spill] sm:$0xff] }
 0x92c   :  { %10897 = vmatprep.subr.mxu1 %v20996_v25  ;;  %10659 = vmatpush1.msra.mxu0 %v19793_v3  ;;  %v21004_v25 = vld [vmem:[#allocation80_spill] sm:$0xff] }
 0x92d   :  { %10903 = vmatpush1.msra.mxu1 %v20997_v36  ;;  %10661 = vmatprep.subr.mxu0 %v20998_v63  ;;  %v21005_v36 = vld [vmem:[#allocation83_spill] sm:$0xff] }
 0x92e   :  { %10909 = vmatprep.subr.mxu1 %v20999_v19  ;;  %10663 = vmatpush1.msra.mxu0 %v21000_v58  ;;  %v21007_v19 = vld [vmem:[#allocation92_spill] sm:$0xff]  ;;  %v8969_v26 = vpop.f32.mrf.mxu0 }
 0x92f   :  { %10915 = vmatpush1.msra.mxu1 %v21001_v56  ;;  %10665 = vmatprep.subr.mxu0 %v21002_v46  ;;  %v21009_v56 = vld [vmem:[#allocation101_spill] sm:$0xff]  ;;  %v9202_v40 = vadd.f32 %v9201_v10, %v8969_v26  ;;  %v21011_v10 = vld [vmem:[#allocation8_spill] sm:$0xff] }
 0x930   :  { %10948 = vmatprep.mubr.f32.mxu1 %v19527_v35  ;;  %11094 = vmatprep.subr.mxu1 %v19856_v7  ;;  %v8971_v51 = vpop.f32.mrf.mxu0 }
 0x931   :  { %10667 = vmatpush1.msra.mxu0 %v21003_v42  ;;  %10712 = vmatprep.mubr.f32.mxu0 %v19527_v35  ;;  %v9204_v11 = vadd.f32 %v9203_v22, %v8971_v51 }
 0x932   :  { %10669 = vmatprep.subr.mxu0 %v21004_v25 }
 0x933   :  { %10671 = vmatpush1.msra.mxu0 %v21005_v36 }
 0x934   :  { %10673 = vmatprep.subr.mxu0 %v21006_v59 }
 0x935   :  { %10675 = vmatpush1.msra.mxu0 %v21007_v19 }
 0x936   :  { %10677 = vmatprep.subr.mxu0 %v21008_v17 }
 0x937   :  { %10679 = vmatpush1.msra.mxu0 %v21009_v56 }
 0x938   :  { %10958 = vmatprep.subr.mxu0 %v21010_v52 }
 0x946   :  { %v9444_v4 = vpop.f32.mrf.mxu1 }
 0x948   :  { %v9446_v5 = vpop.f32.mrf.mxu1 }
 0x94f   :  { %v9338_v55 = vpop.f32.mrf.mxu0 }
 0x950   :  { %v9339_v43 = vadd.f32 %v9338_v55, %v9202_v40 }
 0x951   :  { %v9340_v23 = vpop.f32.mrf.mxu0 }
 0x952   :  { %v9341_v38 = vadd.f32 %v9340_v23, %v9204_v11  ;;  %v9445_v49 = vadd.f32 %v9444_v4, %v9339_v43 }
 0x954   :  { %v9447_v27 = vadd.f32 %v9446_v5, %v9341_v38  ;;  %v21012_v38 = vld [vmem:[#allocation7_spill] sm:$0xff] }
 0x968   :  { %v9716_v20 = vpop.f32.mrf.mxu1 }
 0x96a   :  { %v9718_v1 = vpop.f32.mrf.mxu1 }
 0x971   :  { %v9612_v41 = vpop.f32.mrf.mxu0 }
 0x972   :  { %v9613_v60 = vadd.f32 %v9612_v41, %v9445_v49 }
 0x973   :  { %v9614_v61 = vpop.f32.mrf.mxu0 }
 0x974   :  { %v9615_v54 = vadd.f32 %v9614_v61, %v9447_v27  ;;  %v9717_v21 = vadd.f32 %v9716_v20, %v9613_v60 }
 0x976   :  { %v9719_v30 = vadd.f32 %v9718_v1, %v9615_v54  ;;  %v10580_v22 = vrot.slane %v9717_v21, 6 }
 0x978   :  { %v10581_v9 = vrot.slane %v9719_v30, 6  ;;  %v10588_v4 = vadd.f32 %v10580_v22, %v21012_v38  ;;  %v21123_v38 = vld [vmem:[#allocation257_spill] sm:$0xff] }
 0x97a   :  { %v10589_v26 = vadd.f32 %v10581_v9, %v21011_v10  ;;  %v10592_v27 = vmul.f32 0.5, %v10588_v4  ;;  %v21125_v10 = vld [vmem:[#allocation258_spill] sm:$0xff] }
 0x97c   :  { %v10593_v5 = vmul.f32 0.5, %v10589_v26  ;;  %v21014_v26 = vld [vmem:[#allocation9_spill] sm:$0xff] }
 0x97e   :  { %14198 = vtanh.f32 %v10593_v5 }
 0x97f   :  { %14200 = vtanh.f32 %v10592_v27 }
 0x98a   :  { %v10056_v0 = vpop.f32.mrf.mxu1 }
 0x98c   :  { %v10058_v8 = vpop.f32.mrf.mxu1 }
 0x993   :  { %v9824_v52 = vpop.f32.mrf.mxu0 }
 0x994   :  { %v10057_v55 = vadd.f32 %v10056_v0, %v9824_v52 }
 0x995   :  { %v9826_v32 = vpop.f32.mrf.mxu0 }
 0x996   :  { %v10059_v40 = vadd.f32 %v10058_v8, %v9826_v32  ;;  %v21013_v8 = vld [vmem:[#allocation10_spill] sm:$0xff] }
 0x9ac   :  { %v10299_v23 = vpop.f32.mrf.mxu1 }
 0x9ae   :  { %v10301_v61 = vpop.f32.mrf.mxu1 }
 0x9b5   :  { %v10193_v51 = vpop.f32.mrf.mxu0 }
 0x9b6   :  { %v10194_v43 = vadd.f32 %v10193_v51, %v10057_v55 }
 0x9b7   :  { %v10195_v11 = vpop.f32.mrf.mxu0 }
 0x9b8   :  { %v10196_v41 = vadd.f32 %v10195_v11, %v10059_v40  ;;  %v10300_v49 = vadd.f32 %v10299_v23, %v10194_v43  ;;  %v14199_v11 = vpop.eup %14198 }
 0x9b9   :  { %v14201_v40 = vpop.eup %14200  ;;  %v10599_v23 = vmul.f32 0.5, %v14199_v11 }
 0x9ba   :  { %v10302_v54 = vadd.f32 %v10301_v61, %v10196_v41  ;;  %v10598_v43 = vmul.f32 0.5, %v14201_v40  ;;  %v21015_v61 = vld [vmem:[#allocation27_spill] sm:$0xff]  ;;  %v21017_v40 = vld [vmem:[#allocation17_spill] sm:$0xff] }
 0x9bb   :  { %v10602_v41 = vadd.f32 0.5, %v10599_v23  ;;  %v10606_v27 = vrot.slane %v21015_v61, 6  ;;  %v21018_v23 = vld [vmem:[#allocation19_spill] sm:$0xff]  ;;  %v21023_v61 = vld [vmem:[#allocation40_spill] sm:$0xff] }
 0x9bc   :  { %v10601_v5 = vadd.f32 0.5, %v10598_v43  ;;  %v21020_v43 = vld [vmem:[#allocation26_spill] sm:$0xff] }
 0x9ce   :  { %v10571_v60 = vpop.f32.mrf.mxu1 }
 0x9d0   :  { %v10573_v9 = vpop.f32.mrf.mxu1 }
 0x9d6   :  { %v10467_v20 = vpop.f32.mrf.mxu0 }
 0x9d7   :  { %v10468_v21 = vadd.f32 %v10467_v20, %v10300_v49  ;;  %v10608_v20 = vmul.f32 %v10606_v27, %v10602_v41  ;;  %v21021_v41 = vld [vmem:[#allocation29_spill] sm:$0xff]  ;;  %v21024_v27 = vld [vmem:[#allocation43_spill] sm:$0xff] }
 0x9d8   :  { %v10469_v30 = vpop.f32.mrf.mxu0 }
 0x9d9   :  { %v10470_v1 = vadd.f32 %v10469_v30, %v10302_v54  ;;  %v10572_v52 = vadd.f32 %v10571_v60, %v10468_v21 }
 0x9db   :  { %v10574_v0 = vadd.f32 %v10573_v9, %v10470_v1  ;;  %v10582_v51 = vrot.slane %v10572_v52, 6 }
 0x9dd   :  { %v10583_v32 = vrot.slane %v10574_v0, 6  ;;  %v10590_v55 = vadd.f32 %v10582_v51, %v21014_v26  ;;  %v21119_v26 = vld [vmem:[#allocation255_spill] sm:$0xff] }
 0x9df   :  { %v10591_v22 = vadd.f32 %v10583_v32, %v21013_v8  ;;  %v10594_v4 = vmul.f32 0.5, %v10590_v55  ;;  %v21121_v8 = vld [vmem:[#allocation256_spill] sm:$0xff] }
 0x9e1   :  { %14202 = vtanh.f32 %v10591_v22 }
 0x9e2   :  { %14204 = vtanh.f32 %v10594_v4  ;;  %v21019_v4 = vld [vmem:[#allocation22_spill] sm:$0xff] }
 0x9ee   :  { %v14203_v49 = vpop.eup %14202 }
 0x9ef   :  { %v10609_v60 = vmul.f32 %v14203_v49, %v10601_v5  ;;  %v14205_v21 = vpop.eup %14204  ;;  %v21022_v5 = vld [vmem:[#allocation32_spill] sm:$0xff]  ;;  %v21025_v49 = vld [vmem:[#allocation47_spill] sm:$0xff] }
 0x9f0   :  { %v10600_v30 = vmul.f32 0.5, %v14205_v21  ;;  %v21028_v21 = vld [vmem:[#allocation57_spill] sm:$0xff] }
 0x9f1   :  { %v17822_v54 = vadd.f32 %v10609_v60, %v10608_v20  ;;  %v21026_v20 = vld [vmem:[#allocation51_spill] sm:$0xff]  ;;  %v21027_v60 = vld [vmem:[#allocation54_spill] sm:$0xff] }
 0x9f2   :  { %v10603_v1 = vadd.f32 0.5, %v10600_v30  ;;  %v21029_v30 = vld [vmem:[#allocation61_spill] sm:$0xff] }
 0x9f3   :  { %21016 = vst [vmem:[#allocation30_spill] sm:$0xff] %v17822_v54  ;;  %14206 = vtanh.f32 %v17822_v54  ;;  %v21117_v54 = vld [vmem:[#allocation253_spill] sm:$0xff] }
 0xa00   :  { %v14207_v9 = vpop.eup %14206 }
 0xa01   :  { %v10612_v0 = vmul.f32 %v14207_v9, %v10603_v1  ;;  %v21030_v1 = vld [vmem:[#allocation67_spill] sm:$0xff]  ;;  %v21031_v9 = vld [vmem:[#allocation70_spill] sm:$0xff] }
 0xa03   :  { %v10614_v52 = vrot.slane %v10612_v0, 2  ;;  %v21032_v0 = vld [vmem:[#allocation76_spill] sm:$0xff] }
 0xa05   :  { %v17825_v32 = vand.u32 4294901760, %v10614_v52 }
 0xa07   :  { %10950 = vmatmul.mubr.f32.vlgmr.msra.gmra.mxu1 %v17825_v32  ;;  %v17829_v22 = vsub.f32 %v10614_v52, %v17825_v32  ;;  %v21033_v52 = vld [vmem:[#allocation79_spill] sm:$0xff] }
 0xa08   :  { %11096 = vmatpush1.msra.mxu1 %v19756_v50  ;;  %11189 = vmatprep.mubr.f32.mxu1 %v19527_v35 }
 0xa09   :  { %11098 = vmatprep.subr.mxu1 %v19757_v33  ;;  %v17835_v51 = vand.u32 4294901760, %v17829_v22 }
 0xa0a   :  { %11100 = vmatpush1.msra.mxu1 %v19758_v15 }
 0xa0b   :  { %11102 = vmatprep.subr.mxu1 %v19759_v47  ;;  %v10716_v55 = vsub.f32 %v17829_v22, %v17835_v51 }
 0xa0c   :  { %11104 = vmatpush1.msra.mxu1 %v19760_v18 }
 0xa0d   :  { %11106 = vmatprep.subr.mxu1 %v19763_v62  ;;  %v17843_v11 = vand.u32 4294901760, %v10716_v55  ;;  %v21034_v55 = vld [vmem:[#allocation82_spill] sm:$0xff] }
 0xa0e   :  { %11108 = vmatpush1.msra.mxu1 %v19765_v31 }
 0xa0f   :  { %11110 = vmatprep.subr.mxu1 %v19767_v6  ;;  %10718 = vmatmul.mubr.f32.vlgmr.msra.gmra.mxu0 %v17843_v11 }
 0xa10   :  { %10961 = vmatpush1.msra.mxu0 %v21017_v40  ;;  %11112 = vmatpush1.msra.mxu1 %v19769_v28  ;;  %v21115_v40 = vld [vmem:[#allocation251_spill] sm:$0xff] }
 0xa11   :  { %10964 = vmatprep.subr.mxu0 %v21018_v23  ;;  %11114 = vmatprep.subr.mxu1 %v19771_v44  ;;  %v21113_v23 = vld [vmem:[#allocation249_spill] sm:$0xff] }
 0xa12   :  { %10967 = vmatpush1.msra.mxu0 %v21019_v4  ;;  %11116 = vmatpush1.msra.mxu1 %v19773_v29  ;;  %v21111_v4 = vld [vmem:[#allocation247_spill] sm:$0xff] }
 0xa13   :  { %10970 = vmatprep.subr.mxu0 %v21020_v43  ;;  %11118 = vmatprep.subr.mxu1 %v19775_v39  ;;  %v21109_v43 = vld [vmem:[#allocation244_spill] sm:$0xff] }
 0xa14   :  { %10973 = vmatpush1.msra.mxu0 %v21021_v41  ;;  %11120 = vmatpush1.msra.mxu1 %v19777_v13  ;;  %v21107_v41 = vld [vmem:[#allocation241_spill] sm:$0xff] }
 0xa15   :  { %10976 = vmatprep.subr.mxu0 %v21022_v5  ;;  %11122 = vmatprep.subr.mxu1 %v19779_v16  ;;  %v21105_v5 = vld [vmem:[#allocation238_spill] sm:$0xff] }
 0xa16   :  { %10979 = vmatpush1.msra.mxu0 %v21023_v61  ;;  %11124 = vmatpush1.msra.mxu1 %v19781_v34  ;;  %v21103_v61 = vld [vmem:[#allocation236_spill] sm:$0xff] }
 0xa17   :  { %10982 = vmatprep.subr.mxu0 %v21024_v27  ;;  %11126 = vmatprep.subr.mxu1 %v19783_v2  ;;  %v21083_v27 = vld [vmem:[#allocation185_spill] sm:$0xff] }
 0xa18   :  { %10985 = vmatpush1.msra.mxu0 %v21025_v49  ;;  %11128 = vmatpush1.msra.mxu1 %v19785_v48  ;;  %v21081_v49 = vld [vmem:[#allocation179_spill] sm:$0xff] }
 0xa19   :  { %10988 = vmatprep.subr.mxu0 %v21026_v20  ;;  %11130 = vmatprep.subr.mxu1 %v19787_v53  ;;  %v21080_v20 = vld [vmem:[#allocation120_spill] sm:$0xff] }
 0xa1a   :  { %10991 = vmatpush1.msra.mxu0 %v21027_v60  ;;  %11132 = vmatpush1.msra.mxu1 %v19789_v14  ;;  %v21078_v60 = vld [vmem:[#allocation117_spill] sm:$0xff] }
 0xa1b   :  { %10994 = vmatprep.subr.mxu0 %v21028_v21  ;;  %11134 = vmatprep.subr.mxu1 %v19791_v37  ;;  %v21076_v21 = vld [vmem:[#allocation114_spill] sm:$0xff] }
 0xa1c   :  { %10997 = vmatpush1.msra.mxu0 %v21029_v30  ;;  %11136 = vmatpush1.msra.mxu1 %v19793_v3  ;;  %v21035_v30 = vld [vmem:[#allocation86_spill] sm:$0xff] }
 0xa1d   :  { %11000 = vmatprep.subr.mxu0 %v21030_v1  ;;  %11138 = vmatprep.subr.mxu1 %v20998_v63  ;;  %v21036_v1 = vld [vmem:[#allocation90_spill] sm:$0xff] }
 0xa1e   :  { %11003 = vmatpush1.msra.mxu0 %v21031_v9  ;;  %11140 = vmatpush1.msra.mxu1 %v21000_v58  ;;  %v21037_v9 = vld [vmem:[#allocation93_spill] sm:$0xff] }
 0xa1f   :  { %11006 = vmatprep.subr.mxu0 %v21032_v0  ;;  %11142 = vmatprep.subr.mxu1 %v21002_v46  ;;  %v21038_v0 = vld [vmem:[#allocation99_spill] sm:$0xff] }
 0xa20   :  { %11009 = vmatpush1.msra.mxu0 %v21033_v52  ;;  %11144 = vmatpush1.msra.mxu1 %v21003_v42  ;;  %v21039_v52 = vld [vmem:[#allocation102_spill] sm:$0xff] }
 0xa21   :  { %11012 = vmatprep.subr.mxu0 %v21034_v55  ;;  %11146 = vmatprep.subr.mxu1 %v21004_v25  ;;  %v21040_v55 = vld [vmem:[#allocation105_spill] sm:$0xff] }
 0xa22   :  { %11015 = vmatpush1.msra.mxu0 %v21035_v30  ;;  %11148 = vmatpush1.msra.mxu1 %v21005_v36  ;;  %v21046_v30 = vld [vmem:[#allocation123_spill] sm:$0xff] }
 0xa23   :  { %11018 = vmatprep.subr.mxu0 %v21036_v1  ;;  %11150 = vmatprep.subr.mxu1 %v21006_v59  ;;  %v21041_v1 = vld [vmem:[#allocation108_spill] sm:$0xff] }
 0xa24   :  { %11021 = vmatpush1.msra.mxu0 %v21037_v9  ;;  %11152 = vmatpush1.msra.mxu1 %v21007_v19  ;;  %v21042_v9 = vld [vmem:[#allocation109_spill] sm:$0xff] }
 0xa25   :  { %11024 = vmatprep.subr.mxu0 %v21038_v0  ;;  %11154 = vmatprep.subr.mxu1 %v21008_v17  ;;  %v21043_v0 = vld [vmem:[#allocation112_spill] sm:$0xff] }
 0xa26   :  { %11027 = vmatpush1.msra.mxu0 %v21039_v52  ;;  %11156 = vmatpush1.msra.mxu1 %v21009_v56  ;;  %v21044_v52 = vld [vmem:[#allocation115_spill] sm:$0xff] }
 0xa27   :  { %11030 = vmatprep.subr.mxu0 %v21040_v55  ;;  %11193 = vmatmul.mubr.f32.vlgmr.msra.gmra.mxu1 %v17835_v51  ;;  %v21045_v55 = vld [vmem:[#allocation118_spill] sm:$0xff] }
 0xa28   :  { %11368 = vmatprep.subr.mxu1 %v19856_v7  ;;  %11033 = vmatpush1.msra.mxu0 %v21041_v1  ;;  %v21047_v1 = vld [vmem:[#allocation126_spill] sm:$0xff] }
 0xa29   :  { %11370 = vmatpush1.msra.mxu1 %v19756_v50  ;;  %11036 = vmatprep.subr.mxu0 %v21042_v9  ;;  %v21053_v9 = vld [vmem:[#allocation34_spill] sm:$0xff] }
 0xa2a   :  { %11372 = vmatprep.subr.mxu1 %v19757_v33  ;;  %11039 = vmatpush1.msra.mxu0 %v21043_v0  ;;  %v21048_v0 = vld [vmem:[#allocation20_spill] sm:$0xff] }
 0xa2b   :  { %11374 = vmatpush1.msra.mxu1 %v19758_v15  ;;  %11042 = vmatprep.subr.mxu0 %v21044_v52  ;;  %v21049_v52 = vld [vmem:[#allocation24_spill] sm:$0xff] }
 0xa2c   :  { %11376 = vmatprep.subr.mxu1 %v19759_v47  ;;  %11045 = vmatpush1.msra.mxu0 %v21045_v55  ;;  %v21050_v55 = vld [vmem:[#allocation25_spill] sm:$0xff] }
 0xa2d   :  { %11378 = vmatpush1.msra.mxu1 %v19760_v18  ;;  %11048 = vmatprep.subr.mxu0 %v21046_v30  ;;  %v21051_v30 = vld [vmem:[#allocation28_spill] sm:$0xff] }
 0xa2e   :  { %11380 = vmatprep.subr.mxu1 %v19763_v62  ;;  %11051 = vmatpush1.msra.mxu0 %v21047_v1  ;;  %v21052_v1 = vld [vmem:[#allocation31_spill] sm:$0xff] }
 0xa2f   :  { %11084 = vmatprep.mubr.f32.mxu0 %v19527_v35  ;;  %11382 = vmatpush1.msra.mxu1 %v19765_v31 }
 0xa30   :  { %11087 = vmatmul.mubr.f32.vlgmr.msra.gmra.mxu0 %v17829_v22  ;;  %11202 = vmatprep.subr.mxu0 %v21048_v0  ;;  %v21054_v0 = vld [vmem:[#allocation38_spill] sm:$0xff] }
 0xa31   :  { %11384 = vmatprep.subr.mxu1 %v19767_v6  ;;  %11206 = vmatpush1.msra.mxu0 %v21049_v52  ;;  %v21055_v52 = vld [vmem:[#allocation46_spill] sm:$0xff] }
 0xa32   :  { %11386 = vmatpush1.msra.mxu1 %v19769_v28  ;;  %11210 = vmatprep.subr.mxu0 %v21050_v55  ;;  %v21056_v55 = vld [vmem:[#allocation50_spill] sm:$0xff] }
 0xa33   :  { %11388 = vmatprep.subr.mxu1 %v19771_v44  ;;  %11214 = vmatpush1.msra.mxu0 %v21051_v30  ;;  %v21057_v30 = vld [vmem:[#allocation53_spill] sm:$0xff] }
 0xa34   :  { %11390 = vmatpush1.msra.mxu1 %v19773_v29  ;;  %11218 = vmatprep.subr.mxu0 %v21052_v1  ;;  %v21058_v1 = vld [vmem:[#allocation56_spill] sm:$0xff] }
 0xa35   :  { %11392 = vmatprep.subr.mxu1 %v19775_v39  ;;  %11222 = vmatpush1.msra.mxu0 %v21053_v9  ;;  %v21059_v9 = vld [vmem:[#allocation60_spill] sm:$0xff] }
 0xa36   :  { %11394 = vmatpush1.msra.mxu1 %v19777_v13  ;;  %11226 = vmatprep.subr.mxu0 %v21054_v0  ;;  %v21060_v0 = vld [vmem:[#allocation63_spill] sm:$0xff] }
 0xa37   :  { %11396 = vmatprep.subr.mxu1 %v19779_v16  ;;  %11230 = vmatpush1.msra.mxu0 %v21055_v52  ;;  %v21061_v52 = vld [vmem:[#allocation66_spill] sm:$0xff] }
 0xa38   :  { %11398 = vmatpush1.msra.mxu1 %v19781_v34  ;;  %11234 = vmatprep.subr.mxu0 %v21056_v55  ;;  %v21062_v55 = vld [vmem:[#allocation72_spill] sm:$0xff] }
 0xa39   :  { %11400 = vmatprep.subr.mxu1 %v19783_v2  ;;  %11238 = vmatpush1.msra.mxu0 %v21057_v30  ;;  %v21063_v30 = vld [vmem:[#allocation75_spill] sm:$0xff] }
 0xa3a   :  { %11402 = vmatpush1.msra.mxu1 %v19785_v48  ;;  %11242 = vmatprep.subr.mxu0 %v21058_v1  ;;  %v21064_v1 = vld [vmem:[#allocation81_spill] sm:$0xff] }
 0xa3b   :  { %11404 = vmatprep.subr.mxu1 %v19787_v53  ;;  %11246 = vmatpush1.msra.mxu0 %v21059_v9  ;;  %v21065_v9 = vld [vmem:[#allocation85_spill] sm:$0xff] }
 0xa3c   :  { %11406 = vmatpush1.msra.mxu1 %v19789_v14  ;;  %11250 = vmatprep.subr.mxu0 %v21060_v0  ;;  %v21066_v0 = vld [vmem:[#allocation89_spill] sm:$0xff] }
 0xa3d   :  { %11408 = vmatprep.subr.mxu1 %v19791_v37  ;;  %11254 = vmatpush1.msra.mxu0 %v21061_v52  ;;  %v21067_v52 = vld [vmem:[#allocation91_spill] sm:$0xff] }
 0xa3e   :  { %11410 = vmatpush1.msra.mxu1 %v19793_v3  ;;  %11258 = vmatprep.subr.mxu0 %v21062_v55  ;;  %v21068_v55 = vld [vmem:[#allocation95_spill] sm:$0xff] }
 0xa3f   :  { %11412 = vmatprep.subr.mxu1 %v20998_v63  ;;  %11262 = vmatpush1.msra.mxu0 %v21063_v30  ;;  %v21069_v30 = vld [vmem:[#allocation98_spill] sm:$0xff]  ;;  %v21144_v63 = vld [vmem:[#allocation145_spill] sm:$0xff] }
 0xa40   :  { %11414 = vmatpush1.msra.mxu1 %v21000_v58  ;;  %11266 = vmatprep.subr.mxu0 %v21064_v1  ;;  %v21070_v1 = vld [vmem:[#allocation104_spill] sm:$0xff] }
 0xa41   :  { %11416 = vmatprep.subr.mxu1 %v21002_v46  ;;  %11270 = vmatpush1.msra.mxu0 %v21065_v9  ;;  %v21071_v9 = vld [vmem:[#allocation107_spill] sm:$0xff]  ;;  %v21142_v46 = vld [vmem:[#allocation142_spill] sm:$0xff]  ;;  %v21143_v58 = vld [vmem:[#allocation144_spill] sm:$0xff] }
 0xa42   :  { %11418 = vmatpush1.msra.mxu1 %v21003_v42  ;;  %11274 = vmatprep.subr.mxu0 %v21066_v0  ;;  %v21074_v0 = vld [vmem:[#allocation113_spill] sm:$0xff] }
 0xa43   :  { %11420 = vmatprep.subr.mxu1 %v21004_v25  ;;  %11278 = vmatpush1.msra.mxu0 %v21067_v52  ;;  %v21072_v52 = vld [vmem:[#allocation111_spill] sm:$0xff]  ;;  %v21141_v42 = vld [vmem:[#allocation141_spill] sm:$0xff] }
 0xa44   :  { %11422 = vmatpush1.msra.mxu1 %v21005_v36  ;;  %11282 = vmatprep.subr.mxu0 %v21068_v55  ;;  %v21073_v55 = vld [vmem:[#allocation168_spill] sm:$0xff]  ;;  %v21139_v36 = vld [vmem:[#allocation233_spill] sm:$0xff]  ;;  %v21140_v25 = vld [vmem:[#allocation139_spill] sm:$0xff] }
 0xa45   :  { %11424 = vmatprep.subr.mxu1 %v21006_v59  ;;  %11286 = vmatpush1.msra.mxu0 %v21069_v30  ;;  %v21075_v30 = vld [vmem:[#allocation172_spill] sm:$0xff]  ;;  %v21138_v59 = vld [vmem:[#allocation230_spill] sm:$0xff] }
 0xa46   :  { %11426 = vmatpush1.msra.mxu1 %v21007_v19  ;;  %11290 = vmatprep.subr.mxu0 %v21070_v1  ;;  %v21077_v1 = vld [vmem:[#allocation173_spill] sm:$0xff] }
 0xa47   :  { %11428 = vmatprep.subr.mxu1 %v21008_v17  ;;  %11294 = vmatpush1.msra.mxu0 %v21071_v9  ;;  %v21079_v9 = vld [vmem:[#allocation178_spill] sm:$0xff]  ;;  %v21129_v17 = vld [vmem:[#allocation260_spill] sm:$0xff]  ;;  %v21131_v19 = vld [vmem:[#allocation261_spill] sm:$0xff] }
 0xa48   :  { %11430 = vmatpush1.msra.mxu1 %v21009_v56  ;;  %11463 = vmatprep.mubr.f32.mxu1 %v19527_v35  ;;  %v21127_v56 = vld [vmem:[#allocation259_spill] sm:$0xff] }
 0xa49   :  { %11298 = vmatprep.subr.mxu0 %v21072_v52  ;;  %11465 = vmatmul.mubr.f32.vlgmr.msra.gmra.mxu1 %v17825_v32  ;;  %v21082_v52 = vld [vmem:[#allocation122_spill] sm:$0xff] }
 0xa4a   :  { %11584 = vmatprep.subr.mxu1 %v21073_v55  ;;  %11302 = vmatpush1.msra.mxu0 %v21074_v0  ;;  %v21084_v55 = vld [vmem:[#allocation128_spill] sm:$0xff] }
 0xa4b   :  { %11590 = vmatpush1.msra.mxu1 %v21075_v30  ;;  %11306 = vmatprep.subr.mxu0 %v21076_v21  ;;  %v21085_v0 = vld [vmem:[#allocation188_spill] sm:$0xff]  ;;  %v21086_v30 = vld [vmem:[#allocation130_spill] sm:$0xff]  ;;  %v21101_v21 = vld [vmem:[#allocation227_spill] sm:$0xff] }
 0xa4c   :  { %11596 = vmatprep.subr.mxu1 %v21077_v1  ;;  %11310 = vmatpush1.msra.mxu0 %v21078_v60  ;;  %v21087_v1 = vld [vmem:[#allocation193_spill] sm:$0xff]  ;;  %v21099_v60 = vld [vmem:[#allocation224_spill] sm:$0xff] }
 0xa4d   :  { %11602 = vmatpush1.msra.mxu1 %v21079_v9  ;;  %11314 = vmatprep.subr.mxu0 %v21080_v20  ;;  %v21088_v20 = vld [vmem:[#allocation196_spill] sm:$0xff] }
 0xa4e   :  { %11608 = vmatprep.subr.mxu1 %v21081_v49  ;;  %11318 = vmatpush1.msra.mxu0 %v21082_v52  ;;  %v21089_v52 = vld [vmem:[#allocation200_spill] sm:$0xff]  ;;  %v21095_v49 = vld [vmem:[#allocation213_spill] sm:$0xff] }
 0xa4f   :  { %11614 = vmatpush1.msra.mxu1 %v21083_v27  ;;  %11322 = vmatprep.subr.mxu0 %v21084_v55  ;;  %v21090_v55 = vld [vmem:[#allocation203_spill] sm:$0xff]  ;;  %v21094_v27 = vld [vmem:[#allocation140_spill] sm:$0xff] }
 0xa50   :  { %11620 = vmatprep.subr.mxu1 %v21085_v0  ;;  %11326 = vmatpush1.msra.mxu0 %v21086_v30  ;;  %v21091_v30 = vld [vmem:[#allocation204_spill] sm:$0xff]  ;;  %v21092_v0 = vld [vmem:[#allocation138_spill] sm:$0xff] }
 0xa51   :  { %11359 = vmatprep.mubr.f32.mxu0 %v19527_v35  ;;  %11626 = vmatpush1.msra.mxu1 %v21087_v1  ;;  %v21093_v1 = vld [vmem:[#allocation207_spill] sm:$0xff]  ;;  %v21097_v9 = vld [vmem:[#allocation220_spill] sm:$0xff] }
 0xa52   :  { %11361 = vmatmul.mubr.f32.vlgmr.msra.gmra.mxu0 %v17825_v32  ;;  %11472 = vmatprep.subr.mxu0 %v19904_v57 }
 0xa53   :  { %11632 = vmatprep.subr.mxu1 %v21088_v20  ;;  %11474 = vmatpush1.msra.mxu0 %v19906_v24  ;;  %v21096_v20 = vld [vmem:[#allocation143_spill] sm:$0xff] }
 0xa54   :  { %11638 = vmatpush1.msra.mxu1 %v21089_v52  ;;  %11476 = vmatprep.subr.mxu0 %v19908_v12  ;;  %v21098_v52 = vld [vmem:[#allocation146_spill] sm:$0xff] }
 0xa55   :  { %11644 = vmatprep.subr.mxu1 %v21090_v55  ;;  %11478 = vmatpush1.msra.mxu0 %v19910_v45  ;;  %v21100_v55 = vld [vmem:[#allocation148_spill] sm:$0xff] }
 0xa56   :  { %11650 = vmatpush1.msra.mxu1 %v21091_v30  ;;  %11480 = vmatprep.subr.mxu0 %v21092_v0  ;;  %v21102_v30 = vld [vmem:[#allocation152_spill] sm:$0xff] }
 0xa57   :  { %11656 = vmatprep.subr.mxu1 %v21093_v1  ;;  %11482 = vmatpush1.msra.mxu0 %v21094_v27  ;;  %v21104_v1 = vld [vmem:[#allocation155_spill] sm:$0xff] }
 0xa58   :  { %11662 = vmatpush1.msra.mxu1 %v21095_v49  ;;  %11484 = vmatprep.subr.mxu0 %v21096_v20  ;;  %v21106_v49 = vld [vmem:[#allocation156_spill] sm:$0xff] }
 0xa59   :  { %11668 = vmatprep.subr.mxu1 %v21097_v9  ;;  %11486 = vmatpush1.msra.mxu0 %v21098_v52  ;;  %v21108_v9 = vld [vmem:[#allocation158_spill] sm:$0xff] }
 0xa5a   :  { %11674 = vmatpush1.msra.mxu1 %v21099_v60  ;;  %11488 = vmatprep.subr.mxu0 %v21100_v55  ;;  %v21110_v60 = vld [vmem:[#allocation162_spill] sm:$0xff] }
 0xa5b   :  { %11680 = vmatprep.subr.mxu1 %v21101_v21  ;;  %11490 = vmatpush1.msra.mxu0 %v21102_v30  ;;  %v21112_v21 = vld [vmem:[#allocation165_spill] sm:$0xff] }
 0xa5c   :  { %11686 = vmatpush1.msra.mxu1 %v21103_v61  ;;  %11492 = vmatprep.subr.mxu0 %v21104_v1  ;;  %v21114_v61 = vld [vmem:[#allocation169_spill] sm:$0xff] }
 0xa5d   :  { %11692 = vmatprep.subr.mxu1 %v21105_v5  ;;  %11494 = vmatpush1.msra.mxu0 %v21106_v49  ;;  %v21116_v5 = vld [vmem:[#allocation175_spill] sm:$0xff] }
 0xa5e   :  { %11698 = vmatpush1.msra.mxu1 %v21107_v41  ;;  %11496 = vmatprep.subr.mxu0 %v21108_v9  ;;  %v21118_v41 = vld [vmem:[#allocation182_spill] sm:$0xff] }
 0xa5f   :  { %11704 = vmatprep.subr.mxu1 %v21109_v43  ;;  %11498 = vmatpush1.msra.mxu0 %v21110_v60  ;;  %v21120_v43 = vld [vmem:[#allocation186_spill] sm:$0xff] }
 0xa60   :  { %11710 = vmatpush1.msra.mxu1 %v21111_v4  ;;  %11500 = vmatprep.subr.mxu0 %v21112_v21  ;;  %v21122_v4 = vld [vmem:[#allocation191_spill] sm:$0xff] }
 0xa61   :  { %11716 = vmatprep.subr.mxu1 %v21113_v23  ;;  %11502 = vmatpush1.msra.mxu0 %v21114_v61  ;;  %v21124_v23 = vld [vmem:[#allocation192_spill] sm:$0xff] }
 0xa62   :  { %11722 = vmatpush1.msra.mxu1 %v21115_v40  ;;  %11504 = vmatprep.subr.mxu0 %v21116_v5  ;;  %v21126_v40 = vld [vmem:[#allocation194_spill] sm:$0xff] }
 0xa63   :  { %11728 = vmatprep.subr.mxu1 %v21117_v54  ;;  %11506 = vmatpush1.msra.mxu0 %v21118_v41  ;;  %v21128_v54 = vld [vmem:[#allocation197_spill] sm:$0xff] }
 0xa64   :  { %11734 = vmatpush1.msra.mxu1 %v21119_v26  ;;  %11508 = vmatprep.subr.mxu0 %v21120_v43  ;;  %v21130_v26 = vld [vmem:[#allocation205_spill] sm:$0xff] }
 0xa65   :  { %11740 = vmatprep.subr.mxu1 %v21121_v8  ;;  %11510 = vmatpush1.msra.mxu0 %v21122_v4  ;;  %v21132_v8 = vld [vmem:[#allocation208_spill] sm:$0xff] }
 0xa66   :  { %11746 = vmatpush1.msra.mxu1 %v21123_v38  ;;  %11512 = vmatprep.subr.mxu0 %v21124_v23  ;;  %v21137_v38 = vld [vmem:[#allocation225_spill] sm:$0xff] }
 0xa67   :  { %11752 = vmatprep.subr.mxu1 %v21125_v10  ;;  %11514 = vmatpush1.msra.mxu0 %v21126_v40  ;;  %v21133_v10 = vld [vmem:[#allocation210_spill] sm:$0xff] }
 0xa68   :  { %11758 = vmatpush1.msra.mxu1 %v21127_v56  ;;  %11516 = vmatprep.subr.mxu0 %v21128_v54  ;;  %v21134_v56 = vld [vmem:[#allocation216_spill] sm:$0xff] }
 0xa69   :  { %11764 = vmatprep.subr.mxu1 %v21129_v17  ;;  %11518 = vmatpush1.msra.mxu0 %v21130_v26  ;;  %v21135_v17 = vld [vmem:[#allocation217_spill] sm:$0xff] }
 0xa6a   :  { %11770 = vmatpush1.msra.mxu1 %v21131_v19  ;;  %11803 = vmatprep.mubr.f32.mxu1 %v19527_v35  ;;  %v21136_v19 = vld [vmem:[#allocation221_spill] sm:$0xff] }
 0xa6b   :  { %11520 = vmatprep.subr.mxu0 %v21132_v8  ;;  %11805 = vmatmul.mubr.f32.vlgmr.msra.gmra.mxu1 %v17825_v32 }
 0xa6c   :  { %11949 = vmatprep.subr.mxu1 %v19904_v57  ;;  %11522 = vmatpush1.msra.mxu0 %v21133_v10 }
 0xa6d   :  { %11951 = vmatpush1.msra.mxu1 %v19906_v24  ;;  %11524 = vmatprep.subr.mxu0 %v21134_v56 }
 0xa6e   :  { %11953 = vmatprep.subr.mxu1 %v19908_v12  ;;  %11526 = vmatpush1.msra.mxu0 %v21135_v17 }
 0xa6f   :  { %11955 = vmatpush1.msra.mxu1 %v19910_v45  ;;  %11528 = vmatprep.subr.mxu0 %v21136_v19 }
 0xa70   :  { %11957 = vmatprep.subr.mxu1 %v21092_v0  ;;  %11530 = vmatpush1.msra.mxu0 %v21137_v38 }
 0xa71   :  { %11959 = vmatpush1.msra.mxu1 %v21094_v27  ;;  %11532 = vmatprep.subr.mxu0 %v21138_v59 }
 0xa72   :  { %11961 = vmatprep.subr.mxu1 %v21096_v20  ;;  %11534 = vmatpush1.msra.mxu0 %v21139_v36 }
 0xa73   :  { %11567 = vmatprep.mubr.f32.mxu0 %v19527_v35  ;;  %11963 = vmatpush1.msra.mxu1 %v21098_v52 }
 0xa74   :  { %11573 = vmatmul.mubr.f32.vlgmr.msra.gmra.mxu0 %v17843_v11  ;;  %11813 = vmatprep.subr.mxu0 %v21140_v25  ;;  %v21145_v11 = vld [vmem:[#allocation151_spill] sm:$0xff]  ;;  %v21146_v25 = vld [vmem:[#allocation154_spill] sm:$0xff] }
 0xa75   :  { %11965 = vmatprep.subr.mxu1 %v21100_v55  ;;  %11816 = vmatpush1.msra.mxu0 %v21141_v42  ;;  %v21147_v42 = vld [vmem:[#allocation159_spill] sm:$0xff] }
 0xa76   :  { %11967 = vmatpush1.msra.mxu1 %v21102_v30  ;;  %11819 = vmatprep.subr.mxu0 %v21142_v46  ;;  %v21148_v46 = vld [vmem:[#allocation161_spill] sm:$0xff] }
 0xa77   :  { %11969 = vmatprep.subr.mxu1 %v21104_v1  ;;  %11822 = vmatpush1.msra.mxu0 %v21143_v58  ;;  %v21149_v58 = vld [vmem:[#allocation164_spill] sm:$0xff] }
 0xa78   :  { %11971 = vmatpush1.msra.mxu1 %v21106_v49  ;;  %11825 = vmatprep.subr.mxu0 %v21144_v63  ;;  %v21150_v63 = vld [vmem:[#allocation166_spill] sm:$0xff] }
 0xa79   :  { %11973 = vmatprep.subr.mxu1 %v21108_v9  ;;  %11828 = vmatpush1.msra.mxu0 %v21145_v11  ;;  %v21151_v11 = vld [vmem:[#allocation167_spill] sm:$0xff] }
 0xa7a   :  { %11975 = vmatpush1.msra.mxu1 %v21110_v60  ;;  %11831 = vmatprep.subr.mxu0 %v21146_v25  ;;  %v21152_v25 = vld [vmem:[#allocation171_spill] sm:$0xff] }
 0xa7b   :  { %11977 = vmatprep.subr.mxu1 %v21112_v21  ;;  %11834 = vmatpush1.msra.mxu0 %v21147_v42  ;;  %v21153_v42 = vld [vmem:[#allocation177_spill] sm:$0xff] }
 0xa7c   :  { %11979 = vmatpush1.msra.mxu1 %v21114_v61  ;;  %11837 = vmatprep.subr.mxu0 %v21148_v46  ;;  %v21154_v46 = vld [vmem:[#allocation184_spill] sm:$0xff] }
 0xa7d   :  { %11981 = vmatprep.subr.mxu1 %v21116_v5  ;;  %11840 = vmatpush1.msra.mxu0 %v21149_v58  ;;  %v21155_v58 = vld [vmem:[#allocation187_spill] sm:$0xff] }
 0xa7e   :  { %11983 = vmatpush1.msra.mxu1 %v21118_v41  ;;  %11843 = vmatprep.subr.mxu0 %v21150_v63  ;;  %v21156_v63 = vld [vmem:[#allocation190_spill] sm:$0xff] }
 0xa7f   :  { %11985 = vmatprep.subr.mxu1 %v21120_v43  ;;  %11846 = vmatpush1.msra.mxu0 %v21151_v11  ;;  %v21157_v11 = vld [vmem:[#allocation199_spill] sm:$0xff] }
 0xa80   :  { %11987 = vmatpush1.msra.mxu1 %v21122_v4  ;;  %11849 = vmatprep.subr.mxu0 %v21152_v25  ;;  %v21158_v25 = vld [vmem:[#allocation202_spill] sm:$0xff] }
 0xa81   :  { %11989 = vmatprep.subr.mxu1 %v21124_v23  ;;  %11852 = vmatpush1.msra.mxu0 %v21153_v42  ;;  %v21159_v42 = vld [vmem:[#allocation206_spill] sm:$0xff] }
 0xa82   :  { %11991 = vmatpush1.msra.mxu1 %v21126_v40  ;;  %11855 = vmatprep.subr.mxu0 %v21154_v46  ;;  %v21160_v46 = vld [vmem:[#allocation209_spill] sm:$0xff] }
 0xa83   :  { %11993 = vmatprep.subr.mxu1 %v21128_v54  ;;  %11858 = vmatpush1.msra.mxu0 %v21155_v58  ;;  %v21161_v58 = vld [vmem:[#allocation212_spill] sm:$0xff] }
 0xa84   :  { %11995 = vmatpush1.msra.mxu1 %v21130_v26  ;;  %11861 = vmatprep.subr.mxu0 %v21156_v63  ;;  %v21162_v63 = vld [vmem:[#allocation215_spill] sm:$0xff] }
 0xa85   :  { %11997 = vmatprep.subr.mxu1 %v21132_v8  ;;  %11864 = vmatpush1.msra.mxu0 %v21157_v11  ;;  %v21163_v11 = vld [vmem:[#allocation219_spill] sm:$0xff] }
 0xa86   :  { %11999 = vmatpush1.msra.mxu1 %v21133_v10  ;;  %11867 = vmatprep.subr.mxu0 %v21158_v25  ;;  %v21203_v25 = vld [vmem:[#allocation37_spill] sm:$0xff] }
 0xa87   :  { %12001 = vmatprep.subr.mxu1 %v21134_v56  ;;  %11870 = vmatpush1.msra.mxu0 %v21159_v42  ;;  %v21164_v42 = vld [vmem:[#allocation223_spill] sm:$0xff] }
 0xa88   :  { %12003 = vmatpush1.msra.mxu1 %v21135_v17  ;;  %11873 = vmatprep.subr.mxu0 %v21160_v46  ;;  %v21165_v46 = vld [vmem:[#allocation229_spill] sm:$0xff] }
 0xa89   :  { %12005 = vmatprep.subr.mxu1 %v21136_v19  ;;  %11876 = vmatpush1.msra.mxu0 %v21161_v58  ;;  %v21166_v58 = vld [vmem:[#allocation232_spill] sm:$0xff] }
 0xa8a   :  { %12007 = vmatpush1.msra.mxu1 %v21137_v38  ;;  %11879 = vmatprep.subr.mxu0 %v21162_v63  ;;  %v21167_v63 = vld [vmem:[#allocation235_spill] sm:$0xff] }
 0xa8b   :  { %12009 = vmatprep.subr.mxu1 %v21138_v59  ;;  %11882 = vmatpush1.msra.mxu0 %v21163_v11  ;;  %v21168_v11 = vld [vmem:[#allocation237_spill] sm:$0xff] }
 0xa8c   :  { %12011 = vmatpush1.msra.mxu1 %v21139_v36  ;;  %12044 = vmatprep.mubr.f32.mxu1 %v19527_v35 }
 0xa8d   :  { %11885 = vmatprep.subr.mxu0 %v21164_v42  ;;  %12048 = vmatmul.mubr.f32.vlgmr.msra.gmra.mxu1 %v17835_v51  ;;  %v21169_v42 = vld [vmem:[#allocation240_spill] sm:$0xff]  ;;  %v21170_v51 = vld [vmem:[#allocation243_spill] sm:$0xff] }
 0xa8e   :  { %12223 = vmatprep.subr.mxu1 %v19904_v57  ;;  %11888 = vmatpush1.msra.mxu0 %v21165_v46  ;;  %v21171_v46 = vld [vmem:[#allocation246_spill] sm:$0xff] }
 0xa8f   :  { %12225 = vmatpush1.msra.mxu1 %v19906_v24  ;;  %11891 = vmatprep.subr.mxu0 %v21166_v58  ;;  %v21201_v58 = vld [vmem:[#allocation36_spill] sm:$0xff] }
 0xa90   :  { %12227 = vmatprep.subr.mxu1 %v19908_v12  ;;  %11894 = vmatpush1.msra.mxu0 %v21167_v63  ;;  %v21172_v63 = vld [vmem:[#allocation147_spill] sm:$0xff] }
 0xa91   :  { %12229 = vmatpush1.msra.mxu1 %v19910_v45  ;;  %11897 = vmatprep.subr.mxu0 %v21168_v11  ;;  %v21173_v11 = vld [vmem:[#allocation149_spill] sm:$0xff] }
 0xa92   :  { %12231 = vmatprep.subr.mxu1 %v21092_v0  ;;  %11900 = vmatpush1.msra.mxu0 %v21169_v42  ;;  %v21174_v42 = vld [vmem:[#allocation150_spill] sm:$0xff] }
 0xa93   :  { %12233 = vmatpush1.msra.mxu1 %v21094_v27  ;;  %11903 = vmatprep.subr.mxu0 %v21170_v51  ;;  %v21175_v51 = vld [vmem:[#allocation153_spill] sm:$0xff] }
 0xa94   :  { %12235 = vmatprep.subr.mxu1 %v21096_v20  ;;  %11906 = vmatpush1.msra.mxu0 %v21171_v46  ;;  %v21176_v46 = vld [vmem:[#allocation157_spill] sm:$0xff] }
 0xa95   :  { %11939 = vmatprep.mubr.f32.mxu0 %v19527_v35  ;;  %12237 = vmatpush1.msra.mxu1 %v21098_v52 }
 0xa96   :  { %11942 = vmatmul.mubr.f32.vlgmr.msra.gmra.mxu0 %v17829_v22  ;;  %12057 = vmatprep.subr.mxu0 %v21172_v63  ;;  %v21177_v22 = vld [vmem:[#allocation160_spill] sm:$0xff]  ;;  %v21178_v63 = vld [vmem:[#allocation163_spill] sm:$0xff] }
 0xa97   :  { %12239 = vmatprep.subr.mxu1 %v21100_v55  ;;  %12061 = vmatpush1.msra.mxu0 %v21173_v11  ;;  %v21179_v11 = vld [vmem:[#allocation170_spill] sm:$0xff] }
 0xa98   :  { %12241 = vmatpush1.msra.mxu1 %v21102_v30  ;;  %12065 = vmatprep.subr.mxu0 %v21174_v42  ;;  %v21180_v42 = vld [vmem:[#allocation174_spill] sm:$0xff] }
 0xa99   :  { %12243 = vmatprep.subr.mxu1 %v21104_v1  ;;  %12069 = vmatpush1.msra.mxu0 %v21175_v51  ;;  %v21181_v51 = vld [vmem:[#allocation176_spill] sm:$0xff] }
 0xa9a   :  { %12245 = vmatpush1.msra.mxu1 %v21106_v49  ;;  %12073 = vmatprep.subr.mxu0 %v21176_v46  ;;  %v21182_v46 = vld [vmem:[#allocation180_spill] sm:$0xff] }
 0xa9b   :  { %12247 = vmatprep.subr.mxu1 %v21108_v9  ;;  %12077 = vmatpush1.msra.mxu0 %v21177_v22  ;;  %v21183_v22 = vld [vmem:[#allocation181_spill] sm:$0xff] }
 0xa9c   :  { %12249 = vmatpush1.msra.mxu1 %v21110_v60  ;;  %12081 = vmatprep.subr.mxu0 %v21178_v63  ;;  %v21184_v63 = vld [vmem:[#allocation183_spill] sm:$0xff] }
 0xa9d   :  { %12251 = vmatprep.subr.mxu1 %v21112_v21  ;;  %12085 = vmatpush1.msra.mxu0 %v21179_v11  ;;  %v21185_v11 = vld [vmem:[#allocation189_spill] sm:$0xff] }
 0xa9e   :  { %12253 = vmatpush1.msra.mxu1 %v21114_v61  ;;  %12089 = vmatprep.subr.mxu0 %v21180_v42  ;;  %v21186_v42 = vld [vmem:[#allocation195_spill] sm:$0xff] }
 0xa9f   :  { %12255 = vmatprep.subr.mxu1 %v21116_v5  ;;  %12093 = vmatpush1.msra.mxu0 %v21181_v51  ;;  %v21187_v51 = vld [vmem:[#allocation198_spill] sm:$0xff] }
 0xaa0   :  { %12257 = vmatpush1.msra.mxu1 %v21118_v41  ;;  %12097 = vmatprep.subr.mxu0 %v21182_v46  ;;  %v21188_v46 = vld [vmem:[#allocation201_spill] sm:$0xff] }
 0xaa1   :  { %12259 = vmatprep.subr.mxu1 %v21120_v43  ;;  %12101 = vmatpush1.msra.mxu0 %v21183_v22  ;;  %v21189_v22 = vld [vmem:[#allocation211_spill] sm:$0xff] }
 0xaa2   :  { %12261 = vmatpush1.msra.mxu1 %v21122_v4  ;;  %12105 = vmatprep.subr.mxu0 %v21184_v63  ;;  %v21190_v63 = vld [vmem:[#allocation214_spill] sm:$0xff] }
 0xaa3   :  { %12263 = vmatprep.subr.mxu1 %v21124_v23  ;;  %12109 = vmatpush1.msra.mxu0 %v21185_v11  ;;  %v21191_v11 = vld [vmem:[#allocation218_spill] sm:$0xff] }
 0xaa4   :  { %12265 = vmatpush1.msra.mxu1 %v21126_v40  ;;  %12113 = vmatprep.subr.mxu0 %v21186_v42  ;;  %v21192_v42 = vld [vmem:[#allocation222_spill] sm:$0xff] }
 0xaa5   :  { %12267 = vmatprep.subr.mxu1 %v21128_v54  ;;  %12117 = vmatpush1.msra.mxu0 %v21187_v51  ;;  %v21193_v51 = vld [vmem:[#allocation226_spill] sm:$0xff] }
 0xaa6   :  { %12269 = vmatpush1.msra.mxu1 %v21130_v26  ;;  %12121 = vmatprep.subr.mxu0 %v21188_v46  ;;  %v21194_v46 = vld [vmem:[#allocation228_spill] sm:$0xff] }
 0xaa7   :  { %12271 = vmatprep.subr.mxu1 %v21132_v8  ;;  %12125 = vmatpush1.msra.mxu0 %v21189_v22  ;;  %v21195_v22 = vld [vmem:[#allocation231_spill] sm:$0xff] }
 0xaa8   :  { %12273 = vmatpush1.msra.mxu1 %v21133_v10  ;;  %12129 = vmatprep.subr.mxu0 %v21190_v63  ;;  %v21199_v63 = vld [vmem:[#allocation33_spill] sm:$0xff] }
 0xaa9   :  { %12275 = vmatprep.subr.mxu1 %v21134_v56  ;;  %12133 = vmatpush1.msra.mxu0 %v21191_v11  ;;  %v21196_v11 = vld [vmem:[#allocation234_spill] sm:$0xff] }
 0xaaa   :  { %12277 = vmatpush1.msra.mxu1 %v21135_v17  ;;  %12137 = vmatprep.subr.mxu0 %v21192_v42  ;;  %v21197_v42 = vld [vmem:[#allocation239_spill] sm:$0xff] }
 0xaab   :  { %12279 = vmatprep.subr.mxu1 %v21136_v19  ;;  %12141 = vmatpush1.msra.mxu0 %v21193_v51  ;;  %v21198_v51 = vld [vmem:[#allocation242_spill] sm:$0xff] }
 0xaac   :  { %12281 = vmatpush1.msra.mxu1 %v21137_v38  ;;  %12145 = vmatprep.subr.mxu0 %v21194_v46  ;;  %v21200_v46 = vld [vmem:[#allocation245_spill] sm:$0xff]  ;;  %v21208_v38 = vld [vmem:[#allocation254_spill] sm:$0xff] }
 0xaad   :  { %12283 = vmatprep.subr.mxu1 %v21138_v59  ;;  %12149 = vmatpush1.msra.mxu0 %v21195_v22  ;;  %v21202_v22 = vld [vmem:[#allocation248_spill] sm:$0xff] }
 0xaae   :  { %12285 = vmatpush1.msra.mxu1 %v21139_v36  ;;  %12318 = vmatprep.mubr.f32.mxu1 %v19527_v35  ;;  %v21204_v36 = vld [vmem:[#allocation250_spill] sm:$0xff]  ;;  %v21206_v59 = vld [vmem:[#allocation252_spill] sm:$0xff] }
 0xaaf   :  { %12153 = vmatprep.subr.mxu0 %v21196_v11  ;;  %12320 = vmatmul.mubr.f32.vlgmr.msra.gmra.mxu1 %v17825_v32  ;;  %v21205_v11 = vld [vmem:[#allocation39_spill] sm:$0xff] }
 0xab0   :  { %12157 = vmatpush1.msra.mxu0 %v21197_v42  ;;  %12214 = vmatprep.mubr.f32.mxu0 %v19527_v35  ;;  %v21207_v42 = vld [vmem:[#allocation42_spill] sm:$0xff] }
 0xab1   :  { %12161 = vmatprep.subr.mxu0 %v21198_v51  ;;  %12479 = vmatprep.subr.mxu1 %v21199_v63  ;;  %v21209_v51 = vld [vmem:[#allocation45_spill] sm:$0xff] }
 0xab2   :  { %12165 = vmatpush1.msra.mxu0 %v21200_v46  ;;  %12485 = vmatpush1.msra.mxu1 %v21201_v58  ;;  %v21210_v63 = vld [vmem:[#allocation49_spill] sm:$0xff]  ;;  %v21211_v58 = vld [vmem:[#allocation59_spill] sm:$0xff] }
 0xab3   :  { %12169 = vmatprep.subr.mxu0 %v21202_v22  ;;  %12491 = vmatprep.subr.mxu1 %v21203_v25  ;;  %v21212_v25 = vld [vmem:[#allocation62_spill] sm:$0xff]  ;;  %v21246_v22 = vld [vmem:[#allocation15_spill] sm:$0xff] }
 0xab4   :  { %12173 = vmatpush1.msra.mxu0 %v21204_v36  ;;  %12497 = vmatpush1.msra.mxu1 %v21205_v11  ;;  %v21213_v11 = vld [vmem:[#allocation65_spill] sm:$0xff]  ;;  %v21244_v36 = vld [vmem:[#allocation96_spill] sm:$0xff] }
 0xab5   :  { %12177 = vmatprep.subr.mxu0 %v21206_v59  ;;  %12503 = vmatprep.subr.mxu1 %v21207_v42  ;;  %v21214_v42 = vld [vmem:[#allocation68_spill] sm:$0xff]  ;;  %v21242_v59 = vld [vmem:[#allocation87_spill] sm:$0xff] }
 0xab6   :  { %12181 = vmatpush1.msra.mxu0 %v21208_v38  ;;  %12509 = vmatpush1.msra.mxu1 %v21209_v51  ;;  %v21215_v51 = vld [vmem:[#allocation71_spill] sm:$0xff]  ;;  %v21237_v38 = vld [vmem:[#allocation133_spill] sm:$0xff] }
 0xab7   :  { %12216 = vmatmul.mubr.f32.vlgmr.msra.gmra.mxu0 %v17825_v32  ;;  %12515 = vmatprep.subr.mxu1 %v21210_v63  ;;  %v21216_v32 = vld [vmem:[#allocation74_spill] sm:$0xff] }
 0xab8   :  { %12521 = vmatpush1.msra.mxu1 %v21211_v58  ;;  %12367 = vmatprep.subr.mxu0 %v19856_v7  ;;  %v21217_v63 = vld [vmem:[#allocation78_spill] sm:$0xff]  ;;  %v21218_v58 = vld [vmem:[#allocation84_spill] sm:$0xff] }
 0xab9   :  { %12527 = vmatprep.subr.mxu1 %v21212_v25  ;;  %12369 = vmatpush1.msra.mxu0 %v19756_v50  ;;  %v21219_v25 = vld [vmem:[#allocation88_spill] sm:$0xff] }
 0xaba   :  { %12533 = vmatpush1.msra.mxu1 %v21213_v11  ;;  %12371 = vmatprep.subr.mxu0 %v19757_v33  ;;  %v21220_v11 = vld [vmem:[#allocation94_spill] sm:$0xff] }
 0xabb   :  { %12539 = vmatprep.subr.mxu1 %v21214_v42  ;;  %12373 = vmatpush1.msra.mxu0 %v19758_v15  ;;  %v21221_v42 = vld [vmem:[#allocation97_spill] sm:$0xff] }
 0xabc   :  { %12545 = vmatpush1.msra.mxu1 %v21215_v51  ;;  %12375 = vmatprep.subr.mxu0 %v19759_v47  ;;  %v21222_v51 = vld [vmem:[#allocation100_spill] sm:$0xff] }
 0xabd   :  { %12551 = vmatprep.subr.mxu1 %v21216_v32  ;;  %12377 = vmatpush1.msra.mxu0 %v19760_v18  ;;  %v21223_v32 = vld [vmem:[#allocation103_spill] sm:$0xff] }
 0xabe   :  { %12557 = vmatpush1.msra.mxu1 %v21217_v63  ;;  %12379 = vmatprep.subr.mxu0 %v19763_v62  ;;  %v21224_v63 = vld [vmem:[#allocation106_spill] sm:$0xff] }
 0xabf   :  { %12563 = vmatprep.subr.mxu1 %v21218_v58  ;;  %12381 = vmatpush1.msra.mxu0 %v19765_v31  ;;  %v21225_v58 = vld [vmem:[#allocation110_spill] sm:$0xff] }
 0xac0   :  { %12569 = vmatpush1.msra.mxu1 %v21219_v25  ;;  %12383 = vmatprep.subr.mxu0 %v19767_v6  ;;  %v21226_v25 = vld [vmem:[#allocation116_spill] sm:$0xff] }
 0xac1   :  { %12575 = vmatprep.subr.mxu1 %v21220_v11  ;;  %12385 = vmatpush1.msra.mxu0 %v19769_v28  ;;  %v21227_v11 = vld [vmem:[#allocation119_spill] sm:$0xff] }
 0xac2   :  { %12581 = vmatpush1.msra.mxu1 %v21221_v42  ;;  %12387 = vmatprep.subr.mxu0 %v19771_v44  ;;  %v21228_v42 = vld [vmem:[#allocation121_spill] sm:$0xff] }
 0xac3   :  { %12587 = vmatprep.subr.mxu1 %v21222_v51  ;;  %12389 = vmatpush1.msra.mxu0 %v19773_v29  ;;  %v21229_v51 = vld [vmem:[#allocation124_spill] sm:$0xff] }
 0xac4   :  { %12593 = vmatpush1.msra.mxu1 %v21223_v32  ;;  %12391 = vmatprep.subr.mxu0 %v19775_v39  ;;  %v21230_v32 = vld [vmem:[#allocation125_spill] sm:$0xff] }
 0xac5   :  { %12599 = vmatprep.subr.mxu1 %v21224_v63  ;;  %12393 = vmatpush1.msra.mxu0 %v19777_v13  ;;  %v21231_v63 = vld [vmem:[#allocation127_spill] sm:$0xff] }
 0xac6   :  { %12605 = vmatpush1.msra.mxu1 %v21225_v58  ;;  %12395 = vmatprep.subr.mxu0 %v19779_v16  ;;  %v21232_v58 = vld [vmem:[#allocation129_spill] sm:$0xff] }
 0xac7   :  { %12611 = vmatprep.subr.mxu1 %v21226_v25  ;;  %12397 = vmatpush1.msra.mxu0 %v19781_v34  ;;  %v21233_v25 = vld [vmem:[#allocation131_spill] sm:$0xff]  ;;  %v10951_v17 = vpop.f32.mrf.mxu1 }
 0xac8   :  { %12617 = vmatpush1.msra.mxu1 %v21227_v11  ;;  %12399 = vmatprep.subr.mxu0 %v19783_v2  ;;  %v21234_v11 = vld [vmem:[#allocation64_spill] sm:$0xff] }
 0xac9   :  { %12623 = vmatprep.subr.mxu1 %v21228_v42  ;;  %12401 = vmatpush1.msra.mxu0 %v19785_v48  ;;  %v21235_v42 = vld [vmem:[#allocation132_spill] sm:$0xff]  ;;  %v10953_v10 = vpop.f32.mrf.mxu1 }
 0xaca   :  { %12629 = vmatpush1.msra.mxu1 %v21229_v51  ;;  %12403 = vmatprep.subr.mxu0 %v19787_v53  ;;  %v21236_v51 = vld [vmem:[#allocation69_spill] sm:$0xff] }
 0xacb   :  { %12635 = vmatprep.subr.mxu1 %v21230_v32  ;;  %12405 = vmatpush1.msra.mxu0 %v19789_v14  ;;  %v21238_v32 = vld [vmem:[#allocation73_spill] sm:$0xff] }
 0xacc   :  { %12641 = vmatpush1.msra.mxu1 %v21231_v63  ;;  %12407 = vmatprep.subr.mxu0 %v19791_v37  ;;  %v21239_v63 = vld [vmem:[#allocation77_spill] sm:$0xff] }
 0xacd   :  { %12647 = vmatprep.subr.mxu1 %v21232_v58  ;;  %12409 = vmatpush1.msra.mxu0 %v19793_v3  ;;  %v21240_v58 = vld [vmem:[#allocation80_spill] sm:$0xff] }
 0xace   :  { %12653 = vmatpush1.msra.mxu1 %v21233_v25  ;;  %12411 = vmatprep.subr.mxu0 %v21234_v11  ;;  %v21241_v25 = vld [vmem:[#allocation83_spill] sm:$0xff] }
 0xacf   :  { %12659 = vmatprep.subr.mxu1 %v21235_v42  ;;  %12413 = vmatpush1.msra.mxu0 %v21236_v51  ;;  %v21243_v42 = vld [vmem:[#allocation92_spill] sm:$0xff]  ;;  %v10719_v46 = vpop.f32.mrf.mxu0 }
 0xad0   :  { %12665 = vmatpush1.msra.mxu1 %v21237_v38  ;;  %12415 = vmatprep.subr.mxu0 %v21238_v32  ;;  %v21245_v38 = vld [vmem:[#allocation101_spill] sm:$0xff]  ;;  %v10952_v23 = vadd.f32 %v10951_v17, %v10719_v46  ;;  %v21247_v46 = vld [vmem:[#allocation8_spill] sm:$0xff] }
 0xad1   :  { %12698 = vmatprep.mubr.f32.mxu1 %v19527_v35  ;;  %12844 = vmatprep.subr.mxu1 %v19856_v7  ;;  %v10721_v19 = vpop.f32.mrf.mxu0 }
 0xad2   :  { %12417 = vmatpush1.msra.mxu0 %v21239_v63  ;;  %12462 = vmatprep.mubr.f32.mxu0 %v19527_v35  ;;  %v10954_v26 = vadd.f32 %v10953_v10, %v10721_v19 }
 0xad3   :  { %12419 = vmatprep.subr.mxu0 %v21240_v58 }
 0xad4   :  { %12421 = vmatpush1.msra.mxu0 %v21241_v25 }
 0xad5   :  { %12423 = vmatprep.subr.mxu0 %v21242_v59 }
 0xad6   :  { %12425 = vmatpush1.msra.mxu0 %v21243_v42 }
 0xad7   :  { %12427 = vmatprep.subr.mxu0 %v21244_v36 }
 0xad8   :  { %12429 = vmatpush1.msra.mxu0 %v21245_v38 }
 0xad9   :  { %12708 = vmatprep.subr.mxu0 %v21246_v22 }
 0xae7   :  { %v11194_v54 = vpop.f32.mrf.mxu1 }
 0xae9   :  { %v11196_v41 = vpop.f32.mrf.mxu1 }
 0xaf0   :  { %v11088_v56 = vpop.f32.mrf.mxu0 }
 0xaf1   :  { %v11089_v43 = vadd.f32 %v11088_v56, %v10952_v23 }
 0xaf2   :  { %v11090_v8 = vpop.f32.mrf.mxu0 }
 0xaf3   :  { %v11091_v4 = vadd.f32 %v11090_v8, %v10954_v26  ;;  %v11195_v60 = vadd.f32 %v11194_v54, %v11089_v43 }
 0xaf5   :  { %v11197_v61 = vadd.f32 %v11196_v41, %v11091_v4  ;;  %v21248_v4 = vld [vmem:[#allocation7_spill] sm:$0xff] }
 0xb09   :  { %v11466_v21 = vpop.f32.mrf.mxu1 }
 0xb0b   :  { %v11468_v1 = vpop.f32.mrf.mxu1 }
 0xb12   :  { %v11362_v40 = vpop.f32.mrf.mxu0 }
 0xb13   :  { %v11363_v49 = vadd.f32 %v11362_v40, %v11195_v60 }
 0xb14   :  { %v11364_v5 = vpop.f32.mrf.mxu0 }
 0xb15   :  { %v11365_v9 = vadd.f32 %v11364_v5, %v11197_v61  ;;  %v11467_v55 = vadd.f32 %v11466_v21, %v11363_v49 }
 0xb17   :  { %v11469_v30 = vadd.f32 %v11468_v1, %v11365_v9  ;;  %v12330_v10 = vrot.slane %v11467_v55, 4 }
 0xb19   :  { %v12331_v27 = vrot.slane %v11469_v30, 4  ;;  %v12338_v54 = vadd.f32 %v12330_v10, %v21248_v4 }
 0xb1b   :  { %v12339_v17 = vadd.f32 %v12331_v27, %v21247_v46  ;;  %v12342_v61 = vmul.f32 0.5, %v12338_v54 }
 0xb1d   :  { %v12343_v41 = vmul.f32 0.5, %v12339_v17  ;;  %v21250_v17 = vld [vmem:[#allocation9_spill] sm:$0xff] }
 0xb1f   :  { %14208 = vtanh.f32 %v12343_v41 }
 0xb20   :  { %14210 = vtanh.f32 %v12342_v61 }
 0xb2b   :  { %v11806_v52 = vpop.f32.mrf.mxu1 }
 0xb2d   :  { %v11808_v0 = vpop.f32.mrf.mxu1 }
 0xb34   :  { %v11574_v22 = vpop.f32.mrf.mxu0 }
 0xb35   :  { %v11807_v56 = vadd.f32 %v11806_v52, %v11574_v22 }
 0xb36   :  { %v11576_v20 = vpop.f32.mrf.mxu0 }
 0xb37   :  { %v11809_v23 = vadd.f32 %v11808_v0, %v11576_v20  ;;  %v21249_v0 = vld [vmem:[#allocation10_spill] sm:$0xff] }
 0xb4d   :  { %v12049_v8 = vpop.f32.mrf.mxu1 }
 0xb4f   :  { %v12051_v5 = vpop.f32.mrf.mxu1 }
 0xb56   :  { %v11943_v19 = vpop.f32.mrf.mxu0 }
 0xb57   :  { %v11944_v43 = vadd.f32 %v11943_v19, %v11807_v56 }
 0xb58   :  { %v11945_v26 = vpop.f32.mrf.mxu0 }
 0xb59   :  { %v11946_v40 = vadd.f32 %v11945_v26, %v11809_v23  ;;  %v12050_v60 = vadd.f32 %v12049_v8, %v11944_v43  ;;  %v14209_v26 = vpop.eup %14208 }
 0xb5a   :  { %v14211_v23 = vpop.eup %14210  ;;  %v12349_v8 = vmul.f32 0.5, %v14209_v26 }
 0xb5b   :  { %v12052_v30 = vadd.f32 %v12051_v5, %v11946_v40  ;;  %v12348_v43 = vmul.f32 0.5, %v14211_v23  ;;  %v21251_v5 = vld [vmem:[#allocation30_spill] sm:$0xff]  ;;  %v21252_v23 = vld [vmem:[#allocation17_spill] sm:$0xff] }
 0xb5c   :  { %v12352_v40 = vadd.f32 0.5, %v12349_v8  ;;  %v12356_v61 = vrot.slane %v21251_v5, 6  ;;  %v21253_v8 = vld [vmem:[#allocation19_spill] sm:$0xff]  ;;  %v21258_v5 = vld [vmem:[#allocation40_spill] sm:$0xff] }
 0xb5d   :  { %v12351_v41 = vadd.f32 0.5, %v12348_v43  ;;  %v21255_v43 = vld [vmem:[#allocation26_spill] sm:$0xff] }
 0xb6f   :  { %v12321_v49 = vpop.f32.mrf.mxu1 }
 0xb71   :  { %v12323_v27 = vpop.f32.mrf.mxu1 }
 0xb77   :  { %v12217_v21 = vpop.f32.mrf.mxu0 }
 0xb78   :  { %v12218_v1 = vadd.f32 %v12217_v21, %v12050_v60  ;;  %v12358_v21 = vmul.f32 %v12356_v61, %v12352_v40  ;;  %v21256_v40 = vld [vmem:[#allocation29_spill] sm:$0xff]  ;;  %v21259_v61 = vld [vmem:[#allocation43_spill] sm:$0xff] }
 0xb79   :  { %v12219_v9 = vpop.f32.mrf.mxu0 }
 0xb7a   :  { %v12220_v55 = vadd.f32 %v12219_v9, %v12052_v30  ;;  %v12322_v22 = vadd.f32 %v12321_v49, %v12218_v1 }
 0xb7c   :  { %v12324_v52 = vadd.f32 %v12323_v27, %v12220_v55  ;;  %v12332_v19 = vrot.slane %v12322_v22, 4 }
 0xb7e   :  { %v12333_v20 = vrot.slane %v12324_v52, 4  ;;  %v12340_v56 = vadd.f32 %v12332_v19, %v21250_v17 }
 0xb80   :  { %v12341_v10 = vadd.f32 %v12333_v20, %v21249_v0  ;;  %v12344_v54 = vmul.f32 0.5, %v12340_v56 }
 0xb82   :  { %14212 = vtanh.f32 %v12341_v10 }
 0xb83   :  { %14214 = vtanh.f32 %v12344_v54  ;;  %v21254_v54 = vld [vmem:[#allocation22_spill] sm:$0xff] }
 0xb8f   :  { %v14213_v60 = vpop.eup %14212 }
 0xb90   :  { %v12359_v49 = vmul.f32 %v14213_v60, %v12351_v41  ;;  %v14215_v1 = vpop.eup %14214  ;;  %v21257_v41 = vld [vmem:[#allocation32_spill] sm:$0xff]  ;;  %v21260_v60 = vld [vmem:[#allocation47_spill] sm:$0xff] }
 0xb91   :  { %v12350_v9 = vmul.f32 0.5, %v14215_v1  ;;  %v21263_v1 = vld [vmem:[#allocation57_spill] sm:$0xff] }
 0xb92   :  { %v18250_v30 = vadd.f32 %v12359_v49, %v12358_v21  ;;  %v21261_v21 = vld [vmem:[#allocation51_spill] sm:$0xff]  ;;  %v21262_v49 = vld [vmem:[#allocation54_spill] sm:$0xff] }
 0xb93   :  { %v12353_v55 = vadd.f32 0.5, %v12350_v9  ;;  %v21264_v9 = vld [vmem:[#allocation61_spill] sm:$0xff] }
 0xb94   :  { %14216 = vtanh.f32 %v18250_v30 }
 0xba1   :  { %v14217_v27 = vpop.eup %14216 }
 0xba2   :  { %v12362_v52 = vmul.f32 %v14217_v27, %v12353_v55  ;;  %v21265_v55 = vld [vmem:[#allocation67_spill] sm:$0xff]  ;;  %v21266_v27 = vld [vmem:[#allocation70_spill] sm:$0xff] }
 0xba4   :  { %v12364_v22 = vrot.slane %v12362_v52, 4  ;;  %v21267_v52 = vld [vmem:[#allocation76_spill] sm:$0xff] }
 0xba6   :  { %v18253_v20 = vand.u32 4294901760, %v12364_v22 }
 0xba8   :  { %12700 = vmatmul.mubr.f32.vlgmr.msra.gmra.mxu1 %v18253_v20  ;;  %v18257_v10 = vsub.f32 %v12364_v22, %v18253_v20  ;;  %v21268_v22 = vld [vmem:[#allocation79_spill] sm:$0xff] }
 0xba9   :  { %12846 = vmatpush1.msra.mxu1 %v19756_v50  ;;  %12939 = vmatprep.mubr.f32.mxu1 %v19527_v35 }
 0xbaa   :  { %12848 = vmatprep.subr.mxu1 %v19757_v33  ;;  %v18263_v19 = vand.u32 4294901760, %v18257_v10 }
 0xbab   :  { %12850 = vmatpush1.msra.mxu1 %v19758_v15 }
 0xbac   :  { %12852 = vmatprep.subr.mxu1 %v19759_v47  ;;  %v12466_v56 = vsub.f32 %v18257_v10, %v18263_v19 }
 0xbad   :  { %12854 = vmatpush1.msra.mxu1 %v19760_v18 }
 0xbae   :  { %12856 = vmatprep.subr.mxu1 %v19763_v62  ;;  %v18271_v26 = vand.u32 4294901760, %v12466_v56  ;;  %v21269_v56 = vld [vmem:[#allocation82_spill] sm:$0xff] }
 0xbaf   :  { %12858 = vmatpush1.msra.mxu1 %v19765_v31 }
 0xbb0   :  { %12860 = vmatprep.subr.mxu1 %v19767_v6  ;;  %12468 = vmatmul.mubr.f32.vlgmr.msra.gmra.mxu0 %v18271_v26 }
 0xbb1   :  { %12711 = vmatpush1.msra.mxu0 %v21252_v23  ;;  %12862 = vmatpush1.msra.mxu1 %v19769_v28  ;;  %v21270_v23 = vld [vmem:[#allocation86_spill] sm:$0xff] }
 0xbb2   :  { %12714 = vmatprep.subr.mxu0 %v21253_v8  ;;  %12864 = vmatprep.subr.mxu1 %v19771_v44  ;;  %v21271_v8 = vld [vmem:[#allocation90_spill] sm:$0xff] }
 0xbb3   :  { %12717 = vmatpush1.msra.mxu0 %v21254_v54  ;;  %12866 = vmatpush1.msra.mxu1 %v19773_v29  ;;  %v21272_v54 = vld [vmem:[#allocation93_spill] sm:$0xff] }
 0xbb4   :  { %12720 = vmatprep.subr.mxu0 %v21255_v43  ;;  %12868 = vmatprep.subr.mxu1 %v19775_v39  ;;  %v21273_v43 = vld [vmem:[#allocation99_spill] sm:$0xff] }
 0xbb5   :  { %12723 = vmatpush1.msra.mxu0 %v21256_v40  ;;  %12870 = vmatpush1.msra.mxu1 %v19777_v13  ;;  %v21274_v40 = vld [vmem:[#allocation102_spill] sm:$0xff] }
 0xbb6   :  { %12726 = vmatprep.subr.mxu0 %v21257_v41  ;;  %12872 = vmatprep.subr.mxu1 %v19779_v16  ;;  %v21275_v41 = vld [vmem:[#allocation105_spill] sm:$0xff] }
 0xbb7   :  { %12729 = vmatpush1.msra.mxu0 %v21258_v5  ;;  %12874 = vmatpush1.msra.mxu1 %v19781_v34  ;;  %v21276_v5 = vld [vmem:[#allocation108_spill] sm:$0xff] }
 0xbb8   :  { %12732 = vmatprep.subr.mxu0 %v21259_v61  ;;  %12876 = vmatprep.subr.mxu1 %v19783_v2  ;;  %v21277_v61 = vld [vmem:[#allocation109_spill] sm:$0xff] }
 0xbb9   :  { %12735 = vmatpush1.msra.mxu0 %v21260_v60  ;;  %12878 = vmatpush1.msra.mxu1 %v19785_v48  ;;  %v21278_v60 = vld [vmem:[#allocation112_spill] sm:$0xff] }
 0xbba   :  { %12738 = vmatprep.subr.mxu0 %v21261_v21  ;;  %12880 = vmatprep.subr.mxu1 %v19787_v53  ;;  %v21279_v21 = vld [vmem:[#allocation115_spill] sm:$0xff] }
 0xbbb   :  { %12741 = vmatpush1.msra.mxu0 %v21262_v49  ;;  %12882 = vmatpush1.msra.mxu1 %v19789_v14  ;;  %v21280_v49 = vld [vmem:[#allocation118_spill] sm:$0xff] }
 0xbbc   :  { %12744 = vmatprep.subr.mxu0 %v21263_v1  ;;  %12884 = vmatprep.subr.mxu1 %v19791_v37  ;;  %v21310_v1 = vld [vmem:[#allocation172_spill] sm:$0xff] }
 0xbbd   :  { %12747 = vmatpush1.msra.mxu0 %v21264_v9  ;;  %12886 = vmatpush1.msra.mxu1 %v19793_v3  ;;  %v21312_v9 = vld [vmem:[#allocation173_spill] sm:$0xff] }
 0xbbe   :  { %12750 = vmatprep.subr.mxu0 %v21265_v55  ;;  %12888 = vmatprep.subr.mxu1 %v21234_v11  ;;  %v21314_v55 = vld [vmem:[#allocation178_spill] sm:$0xff] }
 0xbbf   :  { %12753 = vmatpush1.msra.mxu0 %v21266_v27  ;;  %12890 = vmatpush1.msra.mxu1 %v21236_v51  ;;  %v21316_v27 = vld [vmem:[#allocation179_spill] sm:$0xff] }
 0xbc0   :  { %12756 = vmatprep.subr.mxu0 %v21267_v52  ;;  %12892 = vmatprep.subr.mxu1 %v21238_v32  ;;  %v21317_v52 = vld [vmem:[#allocation122_spill] sm:$0xff] }
 0xbc1   :  { %12759 = vmatpush1.msra.mxu0 %v21268_v22  ;;  %12894 = vmatpush1.msra.mxu1 %v21239_v63  ;;  %v21318_v22 = vld [vmem:[#allocation185_spill] sm:$0xff] }
 0xbc2   :  { %12762 = vmatprep.subr.mxu0 %v21269_v56  ;;  %12896 = vmatprep.subr.mxu1 %v21240_v58  ;;  %v21319_v56 = vld [vmem:[#allocation128_spill] sm:$0xff] }
 0xbc3   :  { %12765 = vmatpush1.msra.mxu0 %v21270_v23  ;;  %12898 = vmatpush1.msra.mxu1 %v21241_v25  ;;  %v21320_v23 = vld [vmem:[#allocation188_spill] sm:$0xff] }
 0xbc4   :  { %12768 = vmatprep.subr.mxu0 %v21271_v8  ;;  %12900 = vmatprep.subr.mxu1 %v21242_v59  ;;  %v21321_v8 = vld [vmem:[#allocation130_spill] sm:$0xff] }
 0xbc5   :  { %12771 = vmatpush1.msra.mxu0 %v21272_v54  ;;  %12902 = vmatpush1.msra.mxu1 %v21243_v42  ;;  %v21322_v54 = vld [vmem:[#allocation193_spill] sm:$0xff] }
 0xbc6   :  { %12774 = vmatprep.subr.mxu0 %v21273_v43  ;;  %12904 = vmatprep.subr.mxu1 %v21244_v36  ;;  %v21323_v43 = vld [vmem:[#allocation196_spill] sm:$0xff] }
 0xbc7   :  { %12777 = vmatpush1.msra.mxu0 %v21274_v40  ;;  %12906 = vmatpush1.msra.mxu1 %v21245_v38  ;;  %v21324_v40 = vld [vmem:[#allocation200_spill] sm:$0xff] }
 0xbc8   :  { %12780 = vmatprep.subr.mxu0 %v21275_v41  ;;  %12943 = vmatmul.mubr.f32.vlgmr.msra.gmra.mxu1 %v18263_v19  ;;  %v21325_v41 = vld [vmem:[#allocation203_spill] sm:$0xff] }
 0xbc9   :  { %13118 = vmatprep.subr.mxu1 %v19856_v7  ;;  %12783 = vmatpush1.msra.mxu0 %v21276_v5  ;;  %v21281_v7 = vld [vmem:[#allocation123_spill] sm:$0xff]  ;;  %v21326_v5 = vld [vmem:[#allocation204_spill] sm:$0xff] }
 0xbca   :  { %13120 = vmatpush1.msra.mxu1 %v19756_v50  ;;  %12786 = vmatprep.subr.mxu0 %v21277_v61  ;;  %v21282_v50 = vld [vmem:[#allocation126_spill] sm:$0xff] }
 0xbcb   :  { %13122 = vmatprep.subr.mxu1 %v19757_v33  ;;  %12789 = vmatpush1.msra.mxu0 %v21278_v60  ;;  %v21285_v33 = vld [vmem:[#allocation25_spill] sm:$0xff]  ;;  %v21327_v61 = vld [vmem:[#allocation138_spill] sm:$0xff]  ;;  %v21328_v60 = vld [vmem:[#allocation207_spill] sm:$0xff] }
 0xbcc   :  { %13124 = vmatpush1.msra.mxu1 %v19758_v15  ;;  %12792 = vmatprep.subr.mxu0 %v21279_v21  ;;  %v21283_v15 = vld [vmem:[#allocation20_spill] sm:$0xff] }
 0xbcd   :  { %13126 = vmatprep.subr.mxu1 %v19759_v47  ;;  %12795 = vmatpush1.msra.mxu0 %v21280_v49  ;;  %v21284_v47 = vld [vmem:[#allocation24_spill] sm:$0xff]  ;;  %v21330_v49 = vld [vmem:[#allocation213_spill] sm:$0xff] }
 0xbce   :  { %13128 = vmatpush1.msra.mxu1 %v19760_v18  ;;  %12798 = vmatprep.subr.mxu0 %v21281_v7  ;;  %v21287_v18 = vld [vmem:[#allocation31_spill] sm:$0xff]  ;;  %v21329_v21 = vld [vmem:[#allocation140_spill] sm:$0xff] }
 0xbcf   :  { %13130 = vmatprep.subr.mxu1 %v19763_v62  ;;  %12801 = vmatpush1.msra.mxu0 %v21282_v50  ;;  %v21286_v62 = vld [vmem:[#allocation28_spill] sm:$0xff]  ;;  %v21331_v7 = vld [vmem:[#allocation143_spill] sm:$0xff] }
 0xbd0   :  { %12834 = vmatprep.mubr.f32.mxu0 %v19527_v35  ;;  %13132 = vmatpush1.msra.mxu1 %v19765_v31  ;;  %v21288_v31 = vld [vmem:[#allocation34_spill] sm:$0xff]  ;;  %v21332_v50 = vld [vmem:[#allocation220_spill] sm:$0xff] }
 0xbd1   :  { %12837 = vmatmul.mubr.f32.vlgmr.msra.gmra.mxu0 %v18257_v10  ;;  %12952 = vmatprep.subr.mxu0 %v21283_v15  ;;  %v21333_v15 = vld [vmem:[#allocation146_spill] sm:$0xff] }
 0xbd2   :  { %13134 = vmatprep.subr.mxu1 %v19767_v6  ;;  %12956 = vmatpush1.msra.mxu0 %v21284_v47  ;;  %v21289_v6 = vld [vmem:[#allocation38_spill] sm:$0xff]  ;;  %v21334_v47 = vld [vmem:[#allocation224_spill] sm:$0xff] }
 0xbd3   :  { %13136 = vmatpush1.msra.mxu1 %v19769_v28  ;;  %12960 = vmatprep.subr.mxu0 %v21285_v33  ;;  %v21290_v28 = vld [vmem:[#allocation46_spill] sm:$0xff]  ;;  %v21335_v33 = vld [vmem:[#allocation148_spill] sm:$0xff] }
 0xbd4   :  { %13138 = vmatprep.subr.mxu1 %v19771_v44  ;;  %12964 = vmatpush1.msra.mxu0 %v21286_v62  ;;  %v21291_v44 = vld [vmem:[#allocation50_spill] sm:$0xff]  ;;  %v21336_v62 = vld [vmem:[#allocation227_spill] sm:$0xff] }
 0xbd5   :  { %13140 = vmatpush1.msra.mxu1 %v19773_v29  ;;  %12968 = vmatprep.subr.mxu0 %v21287_v18  ;;  %v21292_v29 = vld [vmem:[#allocation53_spill] sm:$0xff]  ;;  %v21337_v18 = vld [vmem:[#allocation152_spill] sm:$0xff] }
 0xbd6   :  { %13142 = vmatprep.subr.mxu1 %v19775_v39  ;;  %12972 = vmatpush1.msra.mxu0 %v21288_v31  ;;  %v21293_v39 = vld [vmem:[#allocation56_spill] sm:$0xff] }
 0xbd7   :  { %13144 = vmatpush1.msra.mxu1 %v19777_v13  ;;  %12976 = vmatprep.subr.mxu0 %v21289_v6  ;;  %v21294_v13 = vld [vmem:[#allocation60_spill] sm:$0xff]  ;;  %v21339_v6 = vld [vmem:[#allocation155_spill] sm:$0xff] }
 0xbd8   :  { %13146 = vmatprep.subr.mxu1 %v19779_v16  ;;  %12980 = vmatpush1.msra.mxu0 %v21290_v28  ;;  %v21295_v16 = vld [vmem:[#allocation63_spill] sm:$0xff]  ;;  %v21338_v31 = vld [vmem:[#allocation236_spill] sm:$0xff]  ;;  %v21340_v28 = vld [vmem:[#allocation238_spill] sm:$0xff] }
 0xbd9   :  { %13148 = vmatpush1.msra.mxu1 %v19781_v34  ;;  %12984 = vmatprep.subr.mxu0 %v21291_v44  ;;  %v21296_v34 = vld [vmem:[#allocation66_spill] sm:$0xff]  ;;  %v21341_v44 = vld [vmem:[#allocation156_spill] sm:$0xff] }
 0xbda   :  { %13150 = vmatprep.subr.mxu1 %v19783_v2  ;;  %12988 = vmatpush1.msra.mxu0 %v21292_v29  ;;  %v21297_v2 = vld [vmem:[#allocation72_spill] sm:$0xff]  ;;  %v21342_v29 = vld [vmem:[#allocation241_spill] sm:$0xff] }
 0xbdb   :  { %13152 = vmatpush1.msra.mxu1 %v19785_v48  ;;  %12992 = vmatprep.subr.mxu0 %v21293_v39  ;;  %v21298_v48 = vld [vmem:[#allocation75_spill] sm:$0xff]  ;;  %v21343_v39 = vld [vmem:[#allocation158_spill] sm:$0xff] }
 0xbdc   :  { %13154 = vmatprep.subr.mxu1 %v19787_v53  ;;  %12996 = vmatpush1.msra.mxu0 %v21294_v13  ;;  %v21299_v53 = vld [vmem:[#allocation81_spill] sm:$0xff]  ;;  %v21344_v13 = vld [vmem:[#allocation244_spill] sm:$0xff] }
 0xbdd   :  { %13156 = vmatpush1.msra.mxu1 %v19789_v14  ;;  %13000 = vmatprep.subr.mxu0 %v21295_v16  ;;  %v21300_v14 = vld [vmem:[#allocation85_spill] sm:$0xff]  ;;  %v21345_v16 = vld [vmem:[#allocation162_spill] sm:$0xff] }
 0xbde   :  { %13158 = vmatprep.subr.mxu1 %v19791_v37  ;;  %13004 = vmatpush1.msra.mxu0 %v21296_v34  ;;  %v21301_v37 = vld [vmem:[#allocation89_spill] sm:$0xff]  ;;  %v21346_v34 = vld [vmem:[#allocation247_spill] sm:$0xff] }
 0xbdf   :  { %13160 = vmatpush1.msra.mxu1 %v19793_v3  ;;  %13008 = vmatprep.subr.mxu0 %v21297_v2  ;;  %v21302_v3 = vld [vmem:[#allocation91_spill] sm:$0xff]  ;;  %v21347_v2 = vld [vmem:[#allocation165_spill] sm:$0xff] }
 0xbe0   :  { %13162 = vmatprep.subr.mxu1 %v21234_v11  ;;  %13012 = vmatpush1.msra.mxu0 %v21298_v48  ;;  %v21303_v11 = vld [vmem:[#allocation95_spill] sm:$0xff]  ;;  %v21348_v48 = vld [vmem:[#allocation249_spill] sm:$0xff] }
 0xbe1   :  { %13164 = vmatpush1.msra.mxu1 %v21236_v51  ;;  %13016 = vmatprep.subr.mxu0 %v21299_v53  ;;  %v21304_v51 = vld [vmem:[#allocation98_spill] sm:$0xff]  ;;  %v21349_v53 = vld [vmem:[#allocation169_spill] sm:$0xff] }
 0xbe2   :  { %13166 = vmatprep.subr.mxu1 %v21238_v32  ;;  %13020 = vmatpush1.msra.mxu0 %v21300_v14  ;;  %v21305_v32 = vld [vmem:[#allocation104_spill] sm:$0xff]  ;;  %v21350_v14 = vld [vmem:[#allocation251_spill] sm:$0xff] }
 0xbe3   :  { %13168 = vmatpush1.msra.mxu1 %v21239_v63  ;;  %13024 = vmatprep.subr.mxu0 %v21301_v37  ;;  %v21306_v63 = vld [vmem:[#allocation107_spill] sm:$0xff] }
 0xbe4   :  { %13170 = vmatprep.subr.mxu1 %v21240_v58  ;;  %13028 = vmatpush1.msra.mxu0 %v21302_v3  ;;  %v21307_v58 = vld [vmem:[#allocation111_spill] sm:$0xff]  ;;  %v21352_v3 = vld [vmem:[#allocation253_spill] sm:$0xff] }
 0xbe5   :  { %13172 = vmatpush1.msra.mxu1 %v21241_v25  ;;  %13032 = vmatprep.subr.mxu0 %v21303_v11  ;;  %v21308_v25 = vld [vmem:[#allocation168_spill] sm:$0xff]  ;;  %v21351_v37 = vld [vmem:[#allocation175_spill] sm:$0xff]  ;;  %v21353_v11 = vld [vmem:[#allocation182_spill] sm:$0xff] }
 0xbe6   :  { %13174 = vmatprep.subr.mxu1 %v21242_v59  ;;  %13036 = vmatpush1.msra.mxu0 %v21304_v51  ;;  %v21309_v59 = vld [vmem:[#allocation113_spill] sm:$0xff]  ;;  %v21354_v51 = vld [vmem:[#allocation255_spill] sm:$0xff] }
 0xbe7   :  { %13176 = vmatpush1.msra.mxu1 %v21243_v42  ;;  %13040 = vmatprep.subr.mxu0 %v21305_v32  ;;  %v21311_v42 = vld [vmem:[#allocation114_spill] sm:$0xff] }
 0xbe8   :  { %13178 = vmatprep.subr.mxu1 %v21244_v36  ;;  %13044 = vmatpush1.msra.mxu0 %v21306_v63  ;;  %v21313_v36 = vld [vmem:[#allocation117_spill] sm:$0xff]  ;;  %v21355_v32 = vld [vmem:[#allocation186_spill] sm:$0xff]  ;;  %v21356_v63 = vld [vmem:[#allocation256_spill] sm:$0xff] }
 0xbe9   :  { %13180 = vmatpush1.msra.mxu1 %v21245_v38  ;;  %13213 = vmatprep.mubr.f32.mxu1 %v19527_v35  ;;  %v21315_v38 = vld [vmem:[#allocation120_spill] sm:$0xff] }
 0xbea   :  { %13048 = vmatprep.subr.mxu0 %v21307_v58  ;;  %13215 = vmatmul.mubr.f32.vlgmr.msra.gmra.mxu1 %v18253_v20  ;;  %v21357_v58 = vld [vmem:[#allocation191_spill] sm:$0xff] }
 0xbeb   :  { %13334 = vmatprep.subr.mxu1 %v21308_v25  ;;  %13052 = vmatpush1.msra.mxu0 %v21309_v59  ;;  %v21358_v25 = vld [vmem:[#allocation257_spill] sm:$0xff]  ;;  %v21359_v59 = vld [vmem:[#allocation192_spill] sm:$0xff] }
 0xbec   :  { %13340 = vmatpush1.msra.mxu1 %v21310_v1  ;;  %13056 = vmatprep.subr.mxu0 %v21311_v42  ;;  %v21360_v1 = vld [vmem:[#allocation258_spill] sm:$0xff] }
 0xbed   :  { %13346 = vmatprep.subr.mxu1 %v21312_v9  ;;  %13060 = vmatpush1.msra.mxu0 %v21313_v36  ;;  %v21361_v42 = vld [vmem:[#allocation194_spill] sm:$0xff]  ;;  %v21362_v9 = vld [vmem:[#allocation259_spill] sm:$0xff]  ;;  %v21363_v36 = vld [vmem:[#allocation197_spill] sm:$0xff] }
 0xbee   :  { %13352 = vmatpush1.msra.mxu1 %v21314_v55  ;;  %13064 = vmatprep.subr.mxu0 %v21315_v38  ;;  %v21364_v55 = vld [vmem:[#allocation260_spill] sm:$0xff]  ;;  %v21365_v38 = vld [vmem:[#allocation205_spill] sm:$0xff] }
 0xbef   :  { %13358 = vmatprep.subr.mxu1 %v21316_v27  ;;  %13068 = vmatpush1.msra.mxu0 %v21317_v52  ;;  %v21366_v27 = vld [vmem:[#allocation261_spill] sm:$0xff]  ;;  %v21367_v52 = vld [vmem:[#allocation208_spill] sm:$0xff] }
 0xbf0   :  { %13364 = vmatpush1.msra.mxu1 %v21318_v22  ;;  %13072 = vmatprep.subr.mxu0 %v21319_v56  ;;  %v21368_v22 = vld [vmem:[#allocation210_spill] sm:$0xff]  ;;  %v21369_v56 = vld [vmem:[#allocation216_spill] sm:$0xff] }
 0xbf1   :  { %13370 = vmatprep.subr.mxu1 %v21320_v23  ;;  %13076 = vmatpush1.msra.mxu0 %v21321_v8  ;;  %v21370_v23 = vld [vmem:[#allocation217_spill] sm:$0xff] }
 0xbf2   :  { %13109 = vmatprep.mubr.f32.mxu0 %v19527_v35  ;;  %13376 = vmatpush1.msra.mxu1 %v21322_v54  ;;  %v21371_v8 = vld [vmem:[#allocation221_spill] sm:$0xff] }
 0xbf3   :  { %13111 = vmatmul.mubr.f32.vlgmr.msra.gmra.mxu0 %v18253_v20  ;;  %13222 = vmatprep.subr.mxu0 %v19904_v57  ;;  %v21372_v54 = vld [vmem:[#allocation225_spill] sm:$0xff] }
 0xbf4   :  { %13382 = vmatprep.subr.mxu1 %v21323_v43  ;;  %13224 = vmatpush1.msra.mxu0 %v19906_v24  ;;  %v21373_v43 = vld [vmem:[#allocation230_spill] sm:$0xff] }
 0xbf5   :  { %13388 = vmatpush1.msra.mxu1 %v21324_v40  ;;  %13226 = vmatprep.subr.mxu0 %v19908_v12  ;;  %v21374_v40 = vld [vmem:[#allocation233_spill] sm:$0xff] }
 0xbf6   :  { %13394 = vmatprep.subr.mxu1 %v21325_v41  ;;  %13228 = vmatpush1.msra.mxu0 %v19910_v45  ;;  %v21375_v41 = vld [vmem:[#allocation139_spill] sm:$0xff] }
 0xbf7   :  { %13400 = vmatpush1.msra.mxu1 %v21326_v5  ;;  %13230 = vmatprep.subr.mxu0 %v21327_v61  ;;  %v21376_v5 = vld [vmem:[#allocation141_spill] sm:$0xff] }
 0xbf8   :  { %13406 = vmatprep.subr.mxu1 %v21328_v60  ;;  %13232 = vmatpush1.msra.mxu0 %v21329_v21  ;;  %v21377_v60 = vld [vmem:[#allocation142_spill] sm:$0xff] }
 0xbf9   :  { %13412 = vmatpush1.msra.mxu1 %v21330_v49  ;;  %13234 = vmatprep.subr.mxu0 %v21331_v7  ;;  %v21378_v49 = vld [vmem:[#allocation144_spill] sm:$0xff] }
 0xbfa   :  { %13418 = vmatprep.subr.mxu1 %v21332_v50  ;;  %13236 = vmatpush1.msra.mxu0 %v21333_v15  ;;  %v21379_v50 = vld [vmem:[#allocation145_spill] sm:$0xff] }
 0xbfb   :  { %13424 = vmatpush1.msra.mxu1 %v21334_v47  ;;  %13238 = vmatprep.subr.mxu0 %v21335_v33  ;;  %v21381_v47 = vld [vmem:[#allocation154_spill] sm:$0xff] }
 0xbfc   :  { %13430 = vmatprep.subr.mxu1 %v21336_v62  ;;  %13240 = vmatpush1.msra.mxu0 %v21337_v18  ;;  %v21382_v62 = vld [vmem:[#allocation159_spill] sm:$0xff] }
 0xbfd   :  { %13436 = vmatpush1.msra.mxu1 %v21338_v31  ;;  %13242 = vmatprep.subr.mxu0 %v21339_v6  ;;  %v21383_v31 = vld [vmem:[#allocation161_spill] sm:$0xff] }
 0xbfe   :  { %13442 = vmatprep.subr.mxu1 %v21340_v28  ;;  %13244 = vmatpush1.msra.mxu0 %v21341_v44  ;;  %v21384_v28 = vld [vmem:[#allocation164_spill] sm:$0xff] }
 0xbff   :  { %13448 = vmatpush1.msra.mxu1 %v21342_v29  ;;  %13246 = vmatprep.subr.mxu0 %v21343_v39  ;;  %v21385_v29 = vld [vmem:[#allocation166_spill] sm:$0xff] }
 0xc00   :  { %13454 = vmatprep.subr.mxu1 %v21344_v13  ;;  %13248 = vmatpush1.msra.mxu0 %v21345_v16  ;;  %v21386_v13 = vld [vmem:[#allocation167_spill] sm:$0xff] }
 0xc01   :  { %13460 = vmatpush1.msra.mxu1 %v21346_v34  ;;  %13250 = vmatprep.subr.mxu0 %v21347_v2  ;;  %v21387_v34 = vld [vmem:[#allocation171_spill] sm:$0xff] }
 0xc02   :  { %13466 = vmatprep.subr.mxu1 %v21348_v48  ;;  %13252 = vmatpush1.msra.mxu0 %v21349_v53  ;;  %v21388_v48 = vld [vmem:[#allocation177_spill] sm:$0xff] }
 0xc03   :  { %13472 = vmatpush1.msra.mxu1 %v21350_v14  ;;  %13254 = vmatprep.subr.mxu0 %v21351_v37  ;;  %v21389_v14 = vld [vmem:[#allocation184_spill] sm:$0xff] }
 0xc04   :  { %13478 = vmatprep.subr.mxu1 %v21352_v3  ;;  %13256 = vmatpush1.msra.mxu0 %v21353_v11  ;;  %v21390_v3 = vld [vmem:[#allocation187_spill] sm:$0xff] }
 0xc05   :  { %13484 = vmatpush1.msra.mxu1 %v21354_v51  ;;  %13258 = vmatprep.subr.mxu0 %v21355_v32  ;;  %v21391_v51 = vld [vmem:[#allocation190_spill] sm:$0xff] }
 0xc06   :  { %13490 = vmatprep.subr.mxu1 %v21356_v63  ;;  %13260 = vmatpush1.msra.mxu0 %v21357_v58  ;;  %v21392_v63 = vld [vmem:[#allocation199_spill] sm:$0xff] }
 0xc07   :  { %13496 = vmatpush1.msra.mxu1 %v21358_v25  ;;  %13262 = vmatprep.subr.mxu0 %v21359_v59  ;;  %v21393_v25 = vld [vmem:[#allocation202_spill] sm:$0xff] }
 0xc08   :  { %13502 = vmatprep.subr.mxu1 %v21360_v1  ;;  %13264 = vmatpush1.msra.mxu0 %v21361_v42  ;;  %v21394_v1 = vld [vmem:[#allocation206_spill] sm:$0xff] }
 0xc09   :  { %13508 = vmatpush1.msra.mxu1 %v21362_v9  ;;  %13266 = vmatprep.subr.mxu0 %v21363_v36  ;;  %v21395_v9 = vld [vmem:[#allocation209_spill] sm:$0xff] }
 0xc0a   :  { %13514 = vmatprep.subr.mxu1 %v21364_v55  ;;  %13268 = vmatpush1.msra.mxu0 %v21365_v38  ;;  %v21396_v55 = vld [vmem:[#allocation212_spill] sm:$0xff] }
 0xc0b   :  { %13520 = vmatpush1.msra.mxu1 %v21366_v27  ;;  %13553 = vmatprep.mubr.f32.mxu1 %v19527_v35  ;;  %v21397_v27 = vld [vmem:[#allocation215_spill] sm:$0xff] }
 0xc0c   :  { %13270 = vmatprep.subr.mxu0 %v21367_v52  ;;  %13555 = vmatmul.mubr.f32.vlgmr.msra.gmra.mxu1 %v18253_v20 }
 0xc0d   :  { %13699 = vmatprep.subr.mxu1 %v19904_v57  ;;  %13272 = vmatpush1.msra.mxu0 %v21368_v22 }
 0xc0e   :  { %13701 = vmatpush1.msra.mxu1 %v19906_v24  ;;  %13274 = vmatprep.subr.mxu0 %v21369_v56 }
 0xc0f   :  { %13703 = vmatprep.subr.mxu1 %v19908_v12  ;;  %13276 = vmatpush1.msra.mxu0 %v21370_v23 }
 0xc10   :  { %13705 = vmatpush1.msra.mxu1 %v19910_v45  ;;  %13278 = vmatprep.subr.mxu0 %v21371_v8 }
 0xc11   :  { %13707 = vmatprep.subr.mxu1 %v21327_v61  ;;  %13280 = vmatpush1.msra.mxu0 %v21372_v54 }
 0xc12   :  { %13709 = vmatpush1.msra.mxu1 %v21329_v21  ;;  %13282 = vmatprep.subr.mxu0 %v21373_v43 }
 0xc13   :  { %13711 = vmatprep.subr.mxu1 %v21331_v7  ;;  %13284 = vmatpush1.msra.mxu0 %v21374_v40 }
 0xc14   :  { %13317 = vmatprep.mubr.f32.mxu0 %v19527_v35  ;;  %13713 = vmatpush1.msra.mxu1 %v21333_v15 }
 0xc15   :  { %13323 = vmatmul.mubr.f32.vlgmr.msra.gmra.mxu0 %v18271_v26  ;;  %13563 = vmatprep.subr.mxu0 %v21375_v41  ;;  %v21380_v26 = vld [vmem:[#allocation151_spill] sm:$0xff] }
 0xc16   :  { %13715 = vmatprep.subr.mxu1 %v21335_v33  ;;  %13566 = vmatpush1.msra.mxu0 %v21376_v5  ;;  %v21398_v41 = vld [vmem:[#allocation219_spill] sm:$0xff] }
 0xc17   :  { %13717 = vmatpush1.msra.mxu1 %v21337_v18  ;;  %13569 = vmatprep.subr.mxu0 %v21377_v60  ;;  %v21399_v5 = vld [vmem:[#allocation223_spill] sm:$0xff]  ;;  %v21400_v60 = vld [vmem:[#allocation229_spill] sm:$0xff] }
 0xc18   :  { %13719 = vmatprep.subr.mxu1 %v21339_v6  ;;  %13572 = vmatpush1.msra.mxu0 %v21378_v49  ;;  %v21401_v49 = vld [vmem:[#allocation232_spill] sm:$0xff] }
 0xc19   :  { %13721 = vmatpush1.msra.mxu1 %v21341_v44  ;;  %13575 = vmatprep.subr.mxu0 %v21379_v50  ;;  %v21402_v50 = vld [vmem:[#allocation235_spill] sm:$0xff] }
 0xc1a   :  { %13723 = vmatprep.subr.mxu1 %v21343_v39  ;;  %13578 = vmatpush1.msra.mxu0 %v21380_v26  ;;  %v21403_v26 = vld [vmem:[#allocation237_spill] sm:$0xff] }
 0xc1b   :  { %13725 = vmatpush1.msra.mxu1 %v21345_v16  ;;  %13581 = vmatprep.subr.mxu0 %v21381_v47  ;;  %v21404_v47 = vld [vmem:[#allocation240_spill] sm:$0xff] }
 0xc1c   :  { %13727 = vmatprep.subr.mxu1 %v21347_v2  ;;  %13584 = vmatpush1.msra.mxu0 %v21382_v62 }
 0xc1d   :  { %13729 = vmatpush1.msra.mxu1 %v21349_v53  ;;  %13587 = vmatprep.subr.mxu0 %v21383_v31 }
 0xc1e   :  { %13731 = vmatprep.subr.mxu1 %v21351_v37  ;;  %13590 = vmatpush1.msra.mxu0 %v21384_v28 }
 0xc1f   :  { %13733 = vmatpush1.msra.mxu1 %v21353_v11  ;;  %13593 = vmatprep.subr.mxu0 %v21385_v29 }
 0xc20   :  { %13735 = vmatprep.subr.mxu1 %v21355_v32  ;;  %13596 = vmatpush1.msra.mxu0 %v21386_v13 }
 0xc21   :  { %13737 = vmatpush1.msra.mxu1 %v21357_v58  ;;  %13599 = vmatprep.subr.mxu0 %v21387_v34 }
 0xc22   :  { %13739 = vmatprep.subr.mxu1 %v21359_v59  ;;  %13602 = vmatpush1.msra.mxu0 %v21388_v48 }
 0xc23   :  { %13741 = vmatpush1.msra.mxu1 %v21361_v42  ;;  %13605 = vmatprep.subr.mxu0 %v21389_v14 }
 0xc24   :  { %13743 = vmatprep.subr.mxu1 %v21363_v36  ;;  %13608 = vmatpush1.msra.mxu0 %v21390_v3 }
 0xc25   :  { %13745 = vmatpush1.msra.mxu1 %v21365_v38  ;;  %13611 = vmatprep.subr.mxu0 %v21391_v51 }
 0xc26   :  { %13747 = vmatprep.subr.mxu1 %v21367_v52  ;;  %13614 = vmatpush1.msra.mxu0 %v21392_v63 }
 0xc27   :  { %13749 = vmatpush1.msra.mxu1 %v21368_v22  ;;  %13617 = vmatprep.subr.mxu0 %v21393_v25 }
 0xc28   :  { %13751 = vmatprep.subr.mxu1 %v21369_v56  ;;  %13620 = vmatpush1.msra.mxu0 %v21394_v1 }
 0xc29   :  { %13753 = vmatpush1.msra.mxu1 %v21370_v23  ;;  %13623 = vmatprep.subr.mxu0 %v21395_v9 }
 0xc2a   :  { %13755 = vmatprep.subr.mxu1 %v21371_v8  ;;  %13626 = vmatpush1.msra.mxu0 %v21396_v55 }
 0xc2b   :  { %13757 = vmatpush1.msra.mxu1 %v21372_v54  ;;  %13629 = vmatprep.subr.mxu0 %v21397_v27 }
 0xc2c   :  { %13759 = vmatprep.subr.mxu1 %v21373_v43  ;;  %13632 = vmatpush1.msra.mxu0 %v21398_v41 }
 0xc2d   :  { %13761 = vmatpush1.msra.mxu1 %v21374_v40  ;;  %13794 = vmatprep.mubr.f32.mxu1 %v19527_v35 }
 0xc2e   :  { %13635 = vmatprep.subr.mxu0 %v21399_v5  ;;  %13798 = vmatmul.mubr.f32.vlgmr.msra.gmra.mxu1 %v18263_v19  ;;  %v21409_v19 = vld [vmem:[#allocation150_spill] sm:$0xff] }
 0xc2f   :  { %13973 = vmatprep.subr.mxu1 %v19904_v57  ;;  %13638 = vmatpush1.msra.mxu0 %v21400_v60  ;;  %v21405_v57 = vld [vmem:[#allocation243_spill] sm:$0xff] }
 0xc30   :  { %13975 = vmatpush1.msra.mxu1 %v19906_v24  ;;  %13641 = vmatprep.subr.mxu0 %v21401_v49  ;;  %v21406_v24 = vld [vmem:[#allocation246_spill] sm:$0xff] }
 0xc31   :  { %13977 = vmatprep.subr.mxu1 %v19908_v12  ;;  %13644 = vmatpush1.msra.mxu0 %v21402_v50  ;;  %v21407_v12 = vld [vmem:[#allocation147_spill] sm:$0xff] }
 0xc32   :  { %13979 = vmatpush1.msra.mxu1 %v19910_v45  ;;  %13647 = vmatprep.subr.mxu0 %v21403_v26  ;;  %v21408_v45 = vld [vmem:[#allocation149_spill] sm:$0xff] }
 0xc33   :  { %13981 = vmatprep.subr.mxu1 %v21327_v61  ;;  %13650 = vmatpush1.msra.mxu0 %v21404_v47  ;;  %v21410_v61 = vld [vmem:[#allocation153_spill] sm:$0xff] }
 0xc34   :  { %13983 = vmatpush1.msra.mxu1 %v21329_v21  ;;  %13653 = vmatprep.subr.mxu0 %v21405_v57  ;;  %v21411_v21 = vld [vmem:[#allocation157_spill] sm:$0xff] }
 0xc35   :  { %13985 = vmatprep.subr.mxu1 %v21331_v7  ;;  %13656 = vmatpush1.msra.mxu0 %v21406_v24  ;;  %v21413_v7 = vld [vmem:[#allocation163_spill] sm:$0xff] }
 0xc36   :  { %13689 = vmatprep.mubr.f32.mxu0 %v19527_v35  ;;  %13987 = vmatpush1.msra.mxu1 %v21333_v15  ;;  %v21414_v15 = vld [vmem:[#allocation170_spill] sm:$0xff] }
 0xc37   :  { %13692 = vmatmul.mubr.f32.vlgmr.msra.gmra.mxu0 %v18257_v10  ;;  %13807 = vmatprep.subr.mxu0 %v21407_v12  ;;  %v21412_v10 = vld [vmem:[#allocation160_spill] sm:$0xff] }
 0xc38   :  { %13989 = vmatprep.subr.mxu1 %v21335_v33  ;;  %13811 = vmatpush1.msra.mxu0 %v21408_v45  ;;  %v21415_v33 = vld [vmem:[#allocation174_spill] sm:$0xff] }
 0xc39   :  { %13991 = vmatpush1.msra.mxu1 %v21337_v18  ;;  %13815 = vmatprep.subr.mxu0 %v21409_v19  ;;  %v21416_v18 = vld [vmem:[#allocation176_spill] sm:$0xff] }
 0xc3a   :  { %13993 = vmatprep.subr.mxu1 %v21339_v6  ;;  %13819 = vmatpush1.msra.mxu0 %v21410_v61  ;;  %v21417_v6 = vld [vmem:[#allocation180_spill] sm:$0xff] }
 0xc3b   :  { %13995 = vmatpush1.msra.mxu1 %v21341_v44  ;;  %13823 = vmatprep.subr.mxu0 %v21411_v21  ;;  %v21418_v44 = vld [vmem:[#allocation181_spill] sm:$0xff] }
 0xc3c   :  { %13997 = vmatprep.subr.mxu1 %v21343_v39  ;;  %13827 = vmatpush1.msra.mxu0 %v21412_v10  ;;  %v21419_v39 = vld [vmem:[#allocation183_spill] sm:$0xff] }
 0xc3d   :  { %13999 = vmatpush1.msra.mxu1 %v21345_v16  ;;  %13831 = vmatprep.subr.mxu0 %v21413_v7  ;;  %v21420_v16 = vld [vmem:[#allocation189_spill] sm:$0xff] }
 0xc3e   :  { %14001 = vmatprep.subr.mxu1 %v21347_v2  ;;  %13835 = vmatpush1.msra.mxu0 %v21414_v15  ;;  %v21421_v2 = vld [vmem:[#allocation195_spill] sm:$0xff] }
 0xc3f   :  { %14003 = vmatpush1.msra.mxu1 %v21349_v53  ;;  %13839 = vmatprep.subr.mxu0 %v21415_v33  ;;  %v21422_v53 = vld [vmem:[#allocation198_spill] sm:$0xff] }
 0xc40   :  { %14005 = vmatprep.subr.mxu1 %v21351_v37  ;;  %13843 = vmatpush1.msra.mxu0 %v21416_v18  ;;  %v21423_v37 = vld [vmem:[#allocation201_spill] sm:$0xff] }
 0xc41   :  { %14007 = vmatpush1.msra.mxu1 %v21353_v11  ;;  %13847 = vmatprep.subr.mxu0 %v21417_v6  ;;  %v21424_v11 = vld [vmem:[#allocation211_spill] sm:$0xff] }
 0xc42   :  { %14009 = vmatprep.subr.mxu1 %v21355_v32  ;;  %13851 = vmatpush1.msra.mxu0 %v21418_v44  ;;  %v21425_v32 = vld [vmem:[#allocation214_spill] sm:$0xff] }
 0xc43   :  { %14011 = vmatpush1.msra.mxu1 %v21357_v58  ;;  %13855 = vmatprep.subr.mxu0 %v21419_v39  ;;  %v21426_v58 = vld [vmem:[#allocation218_spill] sm:$0xff] }
 0xc44   :  { %14013 = vmatprep.subr.mxu1 %v21359_v59  ;;  %13859 = vmatpush1.msra.mxu0 %v21420_v16  ;;  %v21427_v59 = vld [vmem:[#allocation222_spill] sm:$0xff] }
 0xc45   :  { %14015 = vmatpush1.msra.mxu1 %v21361_v42  ;;  %13863 = vmatprep.subr.mxu0 %v21421_v2  ;;  %v21428_v42 = vld [vmem:[#allocation226_spill] sm:$0xff] }
 0xc46   :  { %14017 = vmatprep.subr.mxu1 %v21363_v36  ;;  %13867 = vmatpush1.msra.mxu0 %v21422_v53  ;;  %v21429_v36 = vld [vmem:[#allocation228_spill] sm:$0xff] }
 0xc47   :  { %14019 = vmatpush1.msra.mxu1 %v21365_v38  ;;  %13871 = vmatprep.subr.mxu0 %v21423_v37  ;;  %v21430_v38 = vld [vmem:[#allocation231_spill] sm:$0xff] }
 0xc48   :  { %14021 = vmatprep.subr.mxu1 %v21367_v52  ;;  %13875 = vmatpush1.msra.mxu0 %v21424_v11  ;;  %v21431_v52 = vld [vmem:[#allocation234_spill] sm:$0xff] }
 0xc49   :  { %14023 = vmatpush1.msra.mxu1 %v21368_v22  ;;  %13879 = vmatprep.subr.mxu0 %v21425_v32  ;;  %v21432_v22 = vld [vmem:[#allocation239_spill] sm:$0xff] }
 0xc4a   :  { %14025 = vmatprep.subr.mxu1 %v21369_v56  ;;  %13883 = vmatpush1.msra.mxu0 %v21426_v58  ;;  %v21433_v56 = vld [vmem:[#allocation242_spill] sm:$0xff] }
 0xc4b   :  { %14027 = vmatpush1.msra.mxu1 %v21370_v23  ;;  %13887 = vmatprep.subr.mxu0 %v21427_v59  ;;  %v21434_v23 = vld [vmem:[#allocation245_spill] sm:$0xff] }
 0xc4c   :  { %14029 = vmatprep.subr.mxu1 %v21371_v8  ;;  %13891 = vmatpush1.msra.mxu0 %v21428_v42  ;;  %v21435_v8 = vld [vmem:[#allocation248_spill] sm:$0xff] }
 0xc4d   :  { %14031 = vmatpush1.msra.mxu1 %v21372_v54  ;;  %13895 = vmatprep.subr.mxu0 %v21429_v36  ;;  %v21436_v54 = vld [vmem:[#allocation250_spill] sm:$0xff] }
 0xc4e   :  { %14033 = vmatprep.subr.mxu1 %v21373_v43  ;;  %13899 = vmatpush1.msra.mxu0 %v21430_v38  ;;  %v21437_v43 = vld [vmem:[#allocation252_spill] sm:$0xff] }
 0xc4f   :  { %14035 = vmatpush1.msra.mxu1 %v21374_v40  ;;  %14068 = vmatprep.mubr.f32.mxu1 %v19527_v35  ;;  %v21438_v40 = vld [vmem:[#allocation254_spill] sm:$0xff] }
 0xc50   :  { %13903 = vmatprep.subr.mxu0 %v21431_v52  ;;  %14070 = vmatmul.mubr.f32.vlgmr.msra.gmra.mxu1 %v18253_v20 }
 0xc51   :  { %13907 = vmatpush1.msra.mxu0 %v21432_v22  ;;  %13964 = vmatprep.mubr.f32.mxu0 %v19527_v35 }
 0xc52   :  { %13911 = vmatprep.subr.mxu0 %v21433_v56 }
 0xc53   :  { %13915 = vmatpush1.msra.mxu0 %v21434_v23 }
 0xc54   :  { %13919 = vmatprep.subr.mxu0 %v21435_v8 }
 0xc55   :  { %13923 = vmatpush1.msra.mxu0 %v21436_v54 }
 0xc56   :  { %13927 = vmatprep.subr.mxu0 %v21437_v43 }
 0xc57   :  { %13931 = vmatpush1.msra.mxu0 %v21438_v40 }
 0xc58   :  { %13966 = vmatmul.mubr.f32.vlgmr.msra.gmra.mxu0 %v18253_v20 }
 0xc68   :  { %v12701_v28 = vpop.f32.mrf.mxu1 }
 0xc6a   :  { %v12703_v13 = vpop.f32.mrf.mxu1 }
 0xc70   :  { %v12469_v62 = vpop.f32.mrf.mxu0 }
 0xc71   :  { %v12702_v3 = vadd.f32 %v12701_v28, %v12469_v62  ;;  %v14106_v62 = vrot.slane %v18250_v30, 6 }
 0xc72   :  { %v12471_v31 = vpop.f32.mrf.mxu0 }
 0xc73   :  { %v12704_v34 = vadd.f32 %v12703_v13, %v12471_v31 }
 0xc88   :  { %v12944_v48 = vpop.f32.mrf.mxu1 }
 0xc8a   :  { %v12946_v25 = vpop.f32.mrf.mxu1 }
 0xc91   :  { %v12838_v29 = vpop.f32.mrf.mxu0 }
 0xc92   :  { %v12839_v63 = vadd.f32 %v12838_v29, %v12702_v3 }
 0xc93   :  { %v12840_v35 = vpop.f32.mrf.mxu0 }
 0xc94   :  { %v12841_v51 = vadd.f32 %v12840_v35, %v12704_v34  ;;  %v12945_v27 = vadd.f32 %v12944_v48, %v12839_v63  ;;  %v14141_v63 = vld [vmem:[#allocation2] ss:$0 sm:$0xff] }
 0xc96   :  { %v12947_v9 = vadd.f32 %v12946_v25, %v12841_v51 }
 0xcaa   :  { %v13216_v55 = vpop.f32.mrf.mxu1 }
 0xcac   :  { %v13218_v60 = vpop.f32.mrf.mxu1 }
 0xcb3   :  { %v13112_v14 = vpop.f32.mrf.mxu0 }
 0xcb4   :  { %v13113_v5 = vadd.f32 %v13112_v14, %v12945_v27 }
 0xcb5   :  { %v13114_v1 = vpop.f32.mrf.mxu0 }
 0xcb6   :  { %v13115_v41 = vadd.f32 %v13114_v1, %v12947_v9  ;;  %v13217_v50 = vadd.f32 %v13216_v55, %v13113_v5 }
 0xcb8   :  { %v13219_v49 = vadd.f32 %v13218_v60, %v13115_v41  ;;  %v14080_v12 = vrot.slane %v13217_v50, 2 }
 0xcba   :  { %v14081_v57 = vrot.slane %v13219_v49, 2  ;;  %v14088_v15 = vadd.f32 %v14080_v12, %v21248_v4 }
 0xcbc   :  { %v14089_v19 = vadd.f32 %v14081_v57, %v21247_v46  ;;  %v14092_v39 = vmul.f32 0.5, %v14088_v15 }
 0xcbe   :  { %v14093_v6 = vmul.f32 0.5, %v14089_v19 }
 0xcc0   :  { %14218 = vtanh.f32 %v14093_v6 }
 0xcc1   :  { %14220 = vtanh.f32 %v14092_v39 }
 0xccc   :  { %v13556_v26 = vpop.f32.mrf.mxu1 }
 0xccd   :  { %v14219_v22 = vpop.eup %14218 }
 0xcce   :  { %v13558_v45 = vpop.f32.mrf.mxu1  ;;  %v14221_v56 = vpop.eup %14220  ;;  %v14099_v23 = vmul.f32 0.5, %v14219_v22 }
 0xccf   :  { %v14098_v54 = vmul.f32 0.5, %v14221_v56 }
 0xcd0   :  { %v14102_v43 = vadd.f32 0.5, %v14099_v23 }
 0xcd1   :  { %v14101_v40 = vadd.f32 0.5, %v14098_v54 }
 0xcd2   :  { %v14108_v28 = vmul.f32 %v14106_v62, %v14102_v43 }
 0xcd5   :  { %v13324_v20 = vpop.f32.mrf.mxu0 }
 0xcd6   :  { %v13557_v61 = vadd.f32 %v13556_v26, %v13324_v20 }
 0xcd7   :  { %v13326_v47 = vpop.f32.mrf.mxu0 }
 0xcd8   :  { %v13559_v7 = vadd.f32 %v13558_v45, %v13326_v47 }
 0xcee   :  { %v13799_v21 = vpop.f32.mrf.mxu1 }
 0xcf0   :  { %v13801_v44 = vpop.f32.mrf.mxu1 }
 0xcf7   :  { %v13693_v24 = vpop.f32.mrf.mxu0 }
 0xcf8   :  { %v13694_v33 = vadd.f32 %v13693_v24, %v13557_v61 }
 0xcf9   :  { %v13695_v10 = vpop.f32.mrf.mxu0 }
 0xcfa   :  { %v13696_v18 = vadd.f32 %v13695_v10, %v13559_v7  ;;  %v13800_v2 = vadd.f32 %v13799_v21, %v13694_v33 }
 0xcfc   :  { %v13802_v37 = vadd.f32 %v13801_v44, %v13696_v18 }
 0xd10   :  { %v14071_v16 = vpop.f32.mrf.mxu1 }
 0xd12   :  { %v14073_v46 = vpop.f32.mrf.mxu1 }
 0xd18   :  { %v13967_v53 = vpop.f32.mrf.mxu0 }
 0xd19   :  { %v13968_v11 = vadd.f32 %v13967_v53, %v13800_v2 }
 0xd1a   :  { %v13969_v32 = vpop.f32.mrf.mxu0 }
 0xd1b   :  { %v13970_v58 = vadd.f32 %v13969_v32, %v13802_v37  ;;  %v14072_v42 = vadd.f32 %v14071_v16, %v13968_v11 }
 0xd1d   :  { %v14074_v59 = vadd.f32 %v14073_v46, %v13970_v58  ;;  %v14082_v38 = vrot.slane %v14072_v42, 2 }
 0xd1f   :  { %v14083_v36 = vrot.slane %v14074_v59, 2  ;;  %v14090_v52 = vadd.f32 %v14082_v38, %v21250_v17  ;;  %v14140_v17 = vld [vmem:[%s18620_s4] ss:$0 sm:$0xff] }
 0xd21   :  { %v14091_v4 = vadd.f32 %v14083_v36, %v21249_v0  ;;  %v14094_v8 = vmul.f32 0.5, %v14090_v52 }
 0xd23   :  { %14222 = vtanh.f32 %v14091_v4 }
 0xd24   :  { %14224 = vtanh.f32 %v14094_v8 }
 0xd30   :  { %v14223_v31 = vpop.eup %14222 }
 0xd31   :  { %v14109_v29 = vmul.f32 %v14223_v31, %v14101_v40  ;;  %v14225_v0 = vpop.eup %14224 }
 0xd32   :  { %v14100_v35 = vmul.f32 0.5, %v14225_v0 }
 0xd33   :  { %v14110_v13 = vadd.f32 %v14109_v29, %v14108_v28 }
 0xd34   :  { %v14103_v34 = vadd.f32 0.5, %v14100_v35 }
 0xd35   :  { %14226 = vtanh.f32 %v14110_v13 }
 0xd42   :  { %v14227_v48 = vpop.eup %14226 }
 0xd43   :  { %v14112_v14 = vmul.f32 %v14227_v48, %v14103_v34 }
 0xd45   :  { %v14120_v3 = vmul.f32 %v14140_v17, %v14112_v14 }
 0xd47   :  { %v14122_v51 = vsel %vm14121_vm0, %v14120_v3, 0.0 }
 0xd48   :  { %14123 = vadd.xlane.f32.xlu1 %v14122_v51 }
 0xdd1   :  { %v14124_v30 = vpop.xlane.xlu1 %14123 }
 0xdd2   :  { %v14132_v25 = vadd.f32 %v14141_v63, %v14124_v30 }
 0xdd4   :  { %14134 = vst.msk [vmem:[%s18622_s6 - $0x6] sm:$0xc0] %vm14133_vm1, %v14132_v25 }
 0xdd5   :  { %14139 = vsyncpa [#allocation4], 1 }

</bundles_post_ra>
